<compile_context>
chip_gen: v7x
topology: tpu7x:2x2x1
jax: 0.10.0
libtpu: 0.0.40
codegen_flags: <defaults>
</compile_context>

<pallas_src>
import functools

import numpy as np

import jax
import jax.numpy as jnp
from jax.experimental import pallas as pl
from jax.experimental.pallas import tpu as pltpu


# --------------------------------------------------------------------------
# Constant-matrix builders (run once at init, host-side numpy).
# Activation layout: buffer (B*(H+2)+2, W*C); buffer row 1 + b*(H+2) + h holds
# image b, padded-grid row h (h=0 and h=H+1 are the zero H-pad rows); lane x*C+c.
# --------------------------------------------------------------------------

def _row_index(b, h, H):
    return 1 + b * (H + 2) + h


def conv3_band_mats(w, W):
    """w: (3,3,Cin,Cout) -> (3, W*Cin, W*Cout); one banded matrix per row-tap."""
    w = np.asarray(w, np.float32)
    _, _, cin, cout = w.shape
    mats = np.zeros((3, W * cin, W * cout), np.float32)
    for ky in range(3):
        for x in range(W):
            for kx in range(3):
                xi = x + kx - 1
                if 0 <= xi < W:
                    mats[ky, xi * cin:(xi + 1) * cin, x * cout:(x + 1) * cout] = w[ky, kx]
    return mats


def conv1_mat(w, W):
    """w: (Cin,Cout) -> block-diagonal (W*Cin, W*Cout) for a 1x1 conv."""
    w = np.asarray(w, np.float32)
    cin, cout = w.shape
    m = np.zeros((W * cin, W * cout), np.float32)
    for x in range(W):
        m[x * cin:(x + 1) * cin, x * cout:(x + 1) * cout] = w
    return m


def bias_lanes(b, W):
    return np.tile(np.asarray(b, np.float32), W)[None, :]          # (1, W*Cout)


def pool_row_mats(B, Hf, Hc):
    """Select the even / odd row of each 2-row pooling pair (coarse <- fine)."""
    Rf, Rc = B * (Hf + 2) + 2, B * (Hc + 2) + 2
    pe = np.zeros((Rc, Rf), np.float32)
    po = np.zeros((Rc, Rf), np.float32)
    for b in range(B):
        for hc in range(1, Hc + 1):
            r = _row_index(b, hc, Hc)
            pe[r, _row_index(b, 2 * hc - 1, Hf)] = 1.0
            po[r, _row_index(b, 2 * hc, Hf)] = 1.0
    return pe, po


def pool_lane_mats(Wf, C):
    """Select the even / odd W column of each 2-col pooling pair (lanes)."""
    Wc = Wf // 2
    se = np.zeros((Wf * C, Wc * C), np.float32)
    so = np.zeros((Wf * C, Wc * C), np.float32)
    for xc in range(Wc):
        for c in range(C):
            se[(2 * xc) * C + c, xc * C + c] = 1.0
            so[(2 * xc + 1) * C + c, xc * C + c] = 1.0
    return se, so


def up_row_mat(B, Hc, Hf):
    Rc, Rf = B * (Hc + 2) + 2, B * (Hf + 2) + 2
    u = np.zeros((Rf, Rc), np.float32)
    for b in range(B):
        for hf in range(1, Hf + 1):
            u[_row_index(b, hf, Hf), _row_index(b, (hf + 1) // 2, Hc)] = 1.0
    return u


def up_lane_mat(Wc, C):
    Wf = 2 * Wc
    u = np.zeros((Wc * C, Wf * C), np.float32)
    for xf in range(Wf):
        for c in range(C):
            u[(xf // 2) * C + c, xf * C + c] = 1.0
    return u


def row_mask(B, H):
    r = B * (H + 2) + 2
    m = np.zeros((r, 1), np.float32)
    for b in range(B):
        m[_row_index(b, 1, H):_row_index(b, H, H) + 1, 0] = 1.0
    return m


def class_select_mats(W, ncls):
    s = np.zeros((ncls, W * ncls, W), np.float32)
    for c in range(ncls):
        for x in range(W):
            s[c, x * ncls + c, x] = 1.0
    return s


# --------------------------------------------------------------------------
# The single fused Pallas kernel.
# --------------------------------------------------------------------------

def _fused_kernel(*refs):
    (x_ref,
     e1w, e1bias, e2w, e2bias, e3w, e3bias,
     d2wa, d2wb, d2bias, d1wa, d1wb, d1bias,
     hw, hbias,
     ph0e, ph0o, pw0e, pw0o, ph1e, ph1o, pw1e, pw1o,
     uh21, uw21, uh10, uw10,
     m0, m1, m2, scls,
     out_ref,
     e1_s, p1_s, e2_s, p2_s, e3_s, u3_s, d2_s, u2_s, logit_s) = refs

    f32 = jnp.float32
    R0, R1, R2 = 72, 40, 24          # grid rows per level = B * (H + 2), B = 4

    def dot(a, b):
        return jnp.dot(a, b, preferred_element_type=f32)

    def conv3x3(in_refs, mat_refs, bias_ref, mask_ref, rows):
        # 3 row-shifted contiguous slices x banded tap matrices (W taps + W-padding
        # are folded into the matrices).  ReLU, then zero the per-image pad rows.
        acc = None
        for in_ref, mat_ref in zip(in_refs, mat_refs):
            for dy in range(3):
                part = dot(in_ref[pl.ds(dy, rows), :], mat_ref[dy])
                acc = part if acc is None else acc + part
        acc = jnp.maximum(acc + bias_ref[...], 0.0)
        return acc * mask_ref[pl.ds(1, rows), :]

    def maxpool(src_ref, phe, pho, pwe, pwo):
        hmax = jnp.maximum(dot(phe[...], src_ref[...]), dot(pho[...], src_ref[...]))
        return jnp.maximum(dot(hmax, pwe[...]), dot(hmax, pwo[...]))

    def upsample(src_ref, uh, uw):
        return dot(dot(uh[...], src_ref[...]), uw[...])

    # conv-output buffers: zero once so the global margin rows stay zero forever.
    for buf in (e1_s, e2_s, e3_s, d2_s):
        buf[...] = jnp.zeros(buf.shape, f32)

    # ---------------- encoder ----------------
    e1_s[pl.ds(1, R0), :] = conv3x3([x_ref], [e1w], e1bias, m0, R0)      # (72, 16*8)
    p1_s[...] = maxpool(e1_s, ph0e, ph0o, pw0e, pw0o)                    # (42,  8*8)
    e2_s[pl.ds(1, R1), :] = conv3x3([p1_s], [e2w], e2bias, m1, R1)       # (40, 8*16)
    p2_s[...] = maxpool(e2_s, ph1e, ph1o, pw1e, pw1o)                    # (26, 4*16)
    e3_s[pl.ds(1, R2), :] = conv3x3([p2_s], [e3w], e3bias, m2, R2)       # (24, 4*32)

    # -------- decoder (skip "concat" folded into per-branch weight matrices) -------
    u3_s[...] = upsample(e3_s, uh21, uw21)                               # (42, 8*32)
    d2_s[pl.ds(1, R1), :] = conv3x3([u3_s, e2_s], [d2wa, d2wb], d2bias, m1, R1)
    u2_s[...] = upsample(d2_s, uh10, uw10)                               # (74, 16*16)
    d1 = conv3x3([u2_s, e1_s], [d1wa, d1wb], d1bias, m0, R0)             # (72, 16*8)

    # 1x1 segmentation head (logits, lane = x*4 + class)
    logit_s[...] = dot(d1, hw[...]) + hbias[...]                         # (72, 16*4)

    # ---------------- Dice loss (smp 'multiclass', classes 0..3) ----------------
    half = R0 // 2                               # sr -> rows [0,36), hr -> rows [36,72)
    dmask = m0[pl.ds(1, half), :]                # (36,1) interior-pixel row mask
    ls = [dot(logit_s[pl.ds(0, half), :], scls[c]) for c in range(4)]     # (36,16) each
    lh = [dot(logit_s[pl.ds(half, half), :], scls[c]) for c in range(4)]

    # softmax over classes for the SR branch (== log_softmax(dim=1).exp())
    ms = jnp.maximum(jnp.maximum(ls[0], ls[1]), jnp.maximum(ls[2], ls[3]))
    es = [jnp.exp(ls[c] - ms) for c in range(4)]
    den = es[0] + es[1] + es[2] + es[3]
    ps = [es[c] / den for c in range(4)]

    # argmax (first max) -> one-hot target from the HR branch (torch.no_grad path)
    mh = jnp.maximum(jnp.maximum(lh[0], lh[1]), jnp.maximum(lh[2], lh[3]))
    taken = jnp.zeros(mh.shape, f32)
    ys = []
    for c in range(4):
        hit = (lh[c] >= mh).astype(f32) * (1.0 - taken)
        ys.append(hit)
        taken = jnp.maximum(taken, hit)

    eps = 1e-7                                   # smp DiceLoss defaults (smooth = 0)
    loss = jnp.zeros((1, 1), f32)
    for c in range(4):
        p = ps[c] * dmask
        y = ys[c] * dmask
        inter = jnp.sum(p * y, axis=(0, 1), keepdims=True)
        card = jnp.sum(p + y, axis=(0, 1), keepdims=True)
        ysum = jnp.sum(y, axis=(0, 1), keepdims=True)
        score = 2.0 * inter / jnp.maximum(card, eps)
        loss = loss + (1.0 - score) * (ysum > 0.0).astype(f32)
    loss = loss * 0.25                           # mean over the 4 classes

    out_ref[...] = jnp.broadcast_to(loss, out_ref.shape)


_SCRATCH = [
    pltpu.VMEM((74, 128), jnp.float32),   # e1  (16x16, C=8)
    pltpu.VMEM((42, 64), jnp.float32),    # p1  ( 8x8 , C=8)
    pltpu.VMEM((42, 128), jnp.float32),   # e2  ( 8x8 , C=16)
    pltpu.VMEM((26, 64), jnp.float32),    # p2  ( 4x4 , C=16)
    pltpu.VMEM((26, 128), jnp.float32),   # e3  ( 4x4 , C=32)
    pltpu.VMEM((42, 256), jnp.float32),   # up(e3)
    pltpu.VMEM((42, 128), jnp.float32),   # d2
    pltpu.VMEM((74, 256), jnp.float32),   # up(d2)
    pltpu.VMEM((72, 64), jnp.float32),    # logits
]


# --------------------------------------------------------------------------
# Parameters + constant packing + loss wrapper.
# --------------------------------------------------------------------------

def init_params(key):
    c1, c2, c3, ncls = 8, 16, 32, 4
    specs = {
        'enc1': (3, 3, 1, c1),
        'enc2': (3, 3, c1, c2),
        'enc3': (3, 3, c2, c3),
        'dec2': (3, 3, c3 + c2, c2),
        'dec1': (3, 3, c2 + c1, c1),
        'head': (1, 1, c1, ncls),
    }
    params = {}
    for (name, shp), k in zip(specs.items(), jax.random.split(key, len(specs))):
        fan_in = shp[0] * shp[1] * shp[2]
        params[name + '_w'] = (jax.random.normal(k, shp, jnp.float32)
                               * jnp.sqrt(2.0 / fan_in))
        params[name + '_b'] = jnp.zeros((shp[3],), jnp.float32)
    return params


def build_constants(params):
    B = 4                                  # sr + hr stacked (N = 2 each)
    dec2_w = np.asarray(params['dec2_w'])  # (3,3,48,16): [up(e3) | e2]
    dec1_w = np.asarray(params['dec1_w'])  # (3,3,24, 8): [up(d2) | e1]
    consts = [
        conv3_band_mats(params['enc1_w'], 16), bias_lanes(params['enc1_b'], 16),
        conv3_band_mats(params['enc2_w'], 8), bias_lanes(params['enc2_b'], 8),
        conv3_band_mats(params['enc3_w'], 4), bias_lanes(params['enc3_b'], 4),
        conv3_band_mats(dec2_w[:, :, :32, :], 8),
        conv3_band_mats(dec2_w[:, :, 32:, :], 8),
        bias_lanes(params['dec2_b'], 8),
        conv3_band_mats(dec1_w[:, :, :16, :], 16),
        conv3_band_mats(dec1_w[:, :, 16:, :], 16),
        bias_lanes(params['dec1_b'], 16),
        conv1_mat(np.asarray(params['head_w'])[0, 0], 16),
        bias_lanes(params['head_b'], 16),
        *pool_row_mats(B, 16, 8), *pool_lane_mats(16, 8),
        *pool_row_mats(B, 8, 4), *pool_lane_mats(8, 16),
        up_row_mat(B, 4, 8), up_lane_mat(4, 32),
        up_row_mat(B, 8, 16), up_lane_mat(8, 16),
        row_mask(B, 16), row_mask(B, 8), row_mask(B, 4),
        class_select_mats(16, 4),
    ]
    return [jnp.asarray(c, jnp.float32) for c in consts]


def seg_unet_f_loss(consts, sr, hr):
    # sr, hr: NCHW float32 (PyTorch convention), OASIS -> C = 1.
    assert sr.shape == hr.shape, 'Seg UNet Loss invalid SR/HR shape'
    x = jnp.concatenate([sr, hr], axis=0)[:, 0].astype(jnp.float32)   # (4,16,16)
    x = jnp.pad(x, ((0, 0), (1, 1), (0, 0))).reshape(72, 16)          # per-image H pad
    x = jnp.pad(x, ((1, 1), (0, 0)))                                  # global margin
    out = pl.pallas_call(
        _fused_kernel,
        out_shape=jax.ShapeDtypeStruct((1, 128), jnp.float32),
        scratch_shapes=_SCRATCH,
    )(x, *consts)
    return out[0, 0]


class SegUNetF:
    """JAX/Pallas stand-in for SegUNet_F (mode='OASIS', loss_mode='label-hr')."""

    def __init__(self, loss_layers, mode='OASIS', key=None):
        assert 'OASIS' in mode
        self.dice_classes = (0, 1, 2, 3)
        for k in loss_layers:
            self.loss_mode = k
        self.loss_layers = loss_layers[self.loss_mode]
        self.loss_names = ['SegUNet({})'.format(self.loss_mode)]
        self.padding_flag = False   # reflection padding disabled, as in source
        self.params = init_params(key if key is not None
                                  else jax.random.PRNGKey(42))
        self._consts = build_constants(self.params)
        self._loss_fn = jax.jit(functools.partial(seg_unet_f_loss, self._consts))

    def forward(self, sr, hr, gt_label=None):
        loss = self._loss_fn(sr, hr)
        jax.block_until_ready(loss)
        return loss, {self.loss_names[0]: float(loss)}   # mirrors loss.item()


# --------------------------------- main --------------------------------------

if __name__ == "__main__":
    key = jax.random.PRNGKey(0)
    k_sr, k_hr, k_par = jax.random.split(key, 3)

    # OASIS mode: in_channels=1; small shapes: batch=2, spatial=16x16.
    sr = jax.random.normal(k_sr, (2, 1, 16, 16), jnp.float32)
    hr = jax.random.normal(k_hr, (2, 1, 16, 16), jnp.float32)

    model = SegUNetF(loss_layers={'label-hr': [0]}, mode='OASIS', key=k_par)
    loss, loss_dict = model.forward(sr, hr)
    jax.block_until_ready(loss)
    assert jnp.isfinite(loss)
    print("KERNEL_OK")
</pallas_src>

<mosaic_0001>
module attributes {stable_mosaic.version = 11 : i64} {
  func.func @_fused_kernel(%arg0: memref<74x16xf32, #tpu.memory_space<vmem>>, %arg1: memref<3x16x128xf32, #tpu.memory_space<vmem>>, %arg2: memref<1x128xf32, #tpu.memory_space<vmem>>, %arg3: memref<3x64x128xf32, #tpu.memory_space<vmem>>, %arg4: memref<1x128xf32, #tpu.memory_space<vmem>>, %arg5: memref<3x64x128xf32, #tpu.memory_space<vmem>>, %arg6: memref<1x128xf32, #tpu.memory_space<vmem>>, %arg7: memref<3x256x128xf32, #tpu.memory_space<vmem>>, %arg8: memref<3x128x128xf32, #tpu.memory_space<vmem>>, %arg9: memref<1x128xf32, #tpu.memory_space<vmem>>, %arg10: memref<3x256x128xf32, #tpu.memory_space<vmem>>, %arg11: memref<3x128x128xf32, #tpu.memory_space<vmem>>, %arg12: memref<1x128xf32, #tpu.memory_space<vmem>>, %arg13: memref<128x64xf32, #tpu.memory_space<vmem>>, %arg14: memref<1x64xf32, #tpu.memory_space<vmem>>, %arg15: memref<42x74xf32, #tpu.memory_space<vmem>>, %arg16: memref<42x74xf32, #tpu.memory_space<vmem>>, %arg17: memref<128x64xf32, #tpu.memory_space<vmem>>, %arg18: memref<128x64xf32, #tpu.memory_space<vmem>>, %arg19: memref<26x42xf32, #tpu.memory_space<vmem>>, %arg20: memref<26x42xf32, #tpu.memory_space<vmem>>, %arg21: memref<128x64xf32, #tpu.memory_space<vmem>>, %arg22: memref<128x64xf32, #tpu.memory_space<vmem>>, %arg23: memref<42x26xf32, #tpu.memory_space<vmem>>, %arg24: memref<128x256xf32, #tpu.memory_space<vmem>>, %arg25: memref<74x42xf32, #tpu.memory_space<vmem>>, %arg26: memref<128x256xf32, #tpu.memory_space<vmem>>, %arg27: memref<74x1xf32, #tpu.memory_space<vmem>>, %arg28: memref<42x1xf32, #tpu.memory_space<vmem>>, %arg29: memref<26x1xf32, #tpu.memory_space<vmem>>, %arg30: memref<4x64x16xf32, #tpu.memory_space<vmem>>, %arg31: memref<1x128xf32, #tpu.memory_space<vmem>>, %arg32: memref<74x128xf32, #tpu.memory_space<vmem>>, %arg33: memref<42x64xf32, #tpu.memory_space<vmem>>, %arg34: memref<42x128xf32, #tpu.memory_space<vmem>>, %arg35: memref<26x64xf32, #tpu.memory_space<vmem>>, %arg36: memref<26x128xf32, #tpu.memory_space<vmem>>, %arg37: memref<42x256xf32, #tpu.memory_space<vmem>>, %arg38: memref<42x128xf32, #tpu.memory_space<vmem>>, %arg39: memref<74x256xf32, #tpu.memory_space<vmem>>, %arg40: memref<72x64xf32, #tpu.memory_space<vmem>>) attributes {dimension_semantics = [], scalar_prefetch = 0 : i64, scratch_operands = 9 : i64, tpu.core_type = #tpu.core_type<tc>} {
    %cst = arith.constant 0.000000e+00 : f32
    %0 = vector.broadcast %cst : f32 to vector<74x128xf32>
    %c0 = arith.constant 0 : index
    %c0_0 = arith.constant 0 : index
    %1 = vector.load %arg32[%c0, %c0_0] : memref<74x128xf32, #tpu.memory_space<vmem>>, vector<74x128xf32>
    tpu.vector_store %arg32[%c0, %c0_0], %0 {strides = array<i32>} : memref<74x128xf32, #tpu.memory_space<vmem>>, vector<74x128xf32>,
    %cst_1 = arith.constant 0.000000e+00 : f32
    %2 = vector.broadcast %cst_1 : f32 to vector<42x128xf32>
    %c0_2 = arith.constant 0 : index
    %c0_3 = arith.constant 0 : index
    %3 = vector.load %arg34[%c0_2, %c0_3] : memref<42x128xf32, #tpu.memory_space<vmem>>, vector<42x128xf32>
    tpu.vector_store %arg34[%c0_2, %c0_3], %2 {strides = array<i32>} : memref<42x128xf32, #tpu.memory_space<vmem>>, vector<42x128xf32>,
    %cst_4 = arith.constant 0.000000e+00 : f32
    %4 = vector.broadcast %cst_4 : f32 to vector<26x128xf32>
    %c0_5 = arith.constant 0 : index
    %c0_6 = arith.constant 0 : index
    %5 = vector.load %arg36[%c0_5, %c0_6] : memref<26x128xf32, #tpu.memory_space<vmem>>, vector<26x128xf32>
    tpu.vector_store %arg36[%c0_5, %c0_6], %4 {strides = array<i32>} : memref<26x128xf32, #tpu.memory_space<vmem>>, vector<26x128xf32>,
    %cst_7 = arith.constant 0.000000e+00 : f32
    %6 = vector.broadcast %cst_7 : f32 to vector<42x128xf32>
    %c0_8 = arith.constant 0 : index
    %c0_9 = arith.constant 0 : index
    %7 = vector.load %arg38[%c0_8, %c0_9] : memref<42x128xf32, #tpu.memory_space<vmem>>, vector<42x128xf32>
    tpu.vector_store %arg38[%c0_8, %c0_9], %6 {strides = array<i32>} : memref<42x128xf32, #tpu.memory_space<vmem>>, vector<42x128xf32>,
    %c0_10 = arith.constant 0 : index
    %c0_11 = arith.constant 0 : index
    %8 = vector.load %arg0[%c0_10, %c0_11] : memref<74x16xf32, #tpu.memory_space<vmem>>, vector<72x16xf32>
    %c0_12 = arith.constant 0 : index
    %c0_13 = arith.constant 0 : index
    %c0_14 = arith.constant 0 : index
    %9 = vector.load %arg1[%c0_12, %c0_13, %c0_14] : memref<3x16x128xf32, #tpu.memory_space<vmem>>, vector<1x16x128xf32>
    %10 = vector.shape_cast %9 : vector<1x16x128xf32> to vector<16x128xf32>
    %cst_15 = arith.constant dense<0.000000e+00> : vector<72x128xf32>
    %11 = tpu.matmul %8, %10, %cst_15 {dimension_numbers = #tpu.dot_dimension_numbers<[1], [0], [0], [1], [0, 0, 1, 1], [], []>} : vector<72x16xf32>, vector<16x128xf32>, vector<72x128xf32> -> vector<72x128xf32>
    %c1 = arith.constant 1 : index
    %c0_16 = arith.constant 0 : index
    %12 = vector.load %arg0[%c1, %c0_16] : memref<74x16xf32, #tpu.memory_space<vmem>>, vector<72x16xf32>
    %c1_17 = arith.constant 1 : index
    %c0_18 = arith.constant 0 : index
    %c0_19 = arith.constant 0 : index
    %13 = vector.load %arg1[%c1_17, %c0_18, %c0_19] : memref<3x16x128xf32, #tpu.memory_space<vmem>>, vector<1x16x128xf32>
    %14 = vector.shape_cast %13 : vector<1x16x128xf32> to vector<16x128xf32>
    %cst_20 = arith.constant dense<0.000000e+00> : vector<72x128xf32>
    %15 = tpu.matmul %12, %14, %cst_20 {dimension_numbers = #tpu.dot_dimension_numbers<[1], [0], [0], [1], [0, 0, 1, 1], [], []>} : vector<72x16xf32>, vector<16x128xf32>, vector<72x128xf32> -> vector<72x128xf32>
    %16 = arith.addf %11, %15 : vector<72x128xf32>
    %c2 = arith.constant 2 : index
    %c0_21 = arith.constant 0 : index
    %17 = vector.load %arg0[%c2, %c0_21] : memref<74x16xf32, #tpu.memory_space<vmem>>, vector<72x16xf32>
    %c2_22 = arith.constant 2 : index
    %c0_23 = arith.constant 0 : index
    %c0_24 = arith.constant 0 : index
    %18 = vector.load %arg1[%c2_22, %c0_23, %c0_24] : memref<3x16x128xf32, #tpu.memory_space<vmem>>, vector<1x16x128xf32>
    %19 = vector.shape_cast %18 : vector<1x16x128xf32> to vector<16x128xf32>
    %cst_25 = arith.constant dense<0.000000e+00> : vector<72x128xf32>
    %20 = tpu.matmul %17, %19, %cst_25 {dimension_numbers = #tpu.dot_dimension_numbers<[1], [0], [0], [1], [0, 0, 1, 1], [], []>} : vector<72x16xf32>, vector<16x128xf32>, vector<72x128xf32> -> vector<72x128xf32>
    %21 = arith.addf %16, %20 : vector<72x128xf32>
    %c0_26 = arith.constant 0 : index
    %c0_27 = arith.constant 0 : index
    %22 = vector.load %arg2[%c0_26, %c0_27] : memref<1x128xf32, #tpu.memory_space<vmem>>, vector<1x128xf32>
    %23 = vector.broadcast %22 : vector<1x128xf32> to vector<72x128xf32>
    %24 = arith.addf %21, %23 : vector<72x128xf32>
    %cst_28 = arith.constant 0.000000e+00 : f32
    %25 = vector.broadcast %cst_28 : f32 to vector<72x128xf32>
    %26 = arith.maximumf %24, %25 : vector<72x128xf32>
    %c1_29 = arith.constant 1 : index
    %c0_30 = arith.constant 0 : index
    %27 = vector.load %arg27[%c1_29, %c0_30] : memref<74x1xf32, #tpu.memory_space<vmem>>, vector<72x1xf32>
    %28 = vector.broadcast %27 : vector<72x1xf32> to vector<72x128xf32>
    %29 = arith.mulf %26, %28 : vector<72x128xf32>
    %c1_31 = arith.constant 1 : index
    %c0_32 = arith.constant 0 : index
    %30 = vector.load %arg32[%c1_31, %c0_32] : memref<74x128xf32, #tpu.memory_space<vmem>>, vector<72x128xf32>
    tpu.vector_store %arg32[%c1_31, %c0_32], %29 {strides = array<i32>} : memref<74x128xf32, #tpu.memory_space<vmem>>, vector<72x128xf32>,
    %c0_33 = arith.constant 0 : index
    %c0_34 = arith.constant 0 : index
    %31 = vector.load %arg15[%c0_33, %c0_34] : memref<42x74xf32, #tpu.memory_space<vmem>>, vector<42x74xf32>
    %c0_35 = arith.constant 0 : index
    %c0_36 = arith.constant 0 : index
    %32 = vector.load %arg32[%c0_35, %c0_36] : memref<74x128xf32, #tpu.memory_space<vmem>>, vector<74x128xf32>
    %cst_37 = arith.constant dense<0.000000e+00> : vector<42x128xf32>
    %33 = tpu.matmul %31, %32, %cst_37 {dimension_numbers = #tpu.dot_dimension_numbers<[1], [0], [0], [1], [0, 0, 1, 1], [], []>} : vector<42x74xf32>, vector<74x128xf32>, vector<42x128xf32> -> vector<42x128xf32>
    %c0_38 = arith.constant 0 : index
    %c0_39 = arith.constant 0 : index
    %34 = vector.load %arg16[%c0_38, %c0_39] : memref<42x74xf32, #tpu.memory_space<vmem>>, vector<42x74xf32>
    %c0_40 = arith.constant 0 : index
    %c0_41 = arith.constant 0 : index
    %35 = vector.load %arg32[%c0_40, %c0_41] : memref<74x128xf32, #tpu.memory_space<vmem>>, vector<74x128xf32>
    %cst_42 = arith.constant dense<0.000000e+00> : vector<42x128xf32>
    %36 = tpu.matmul %34, %35, %cst_42 {dimension_numbers = #tpu.dot_dimension_numbers<[1], [0], [0], [1], [0, 0, 1, 1], [], []>} : vector<42x74xf32>, vector<74x128xf32>, vector<42x128xf32> -> vector<42x128xf32>
    %37 = arith.maximumf %33, %36 : vector<42x128xf32>
    %c0_43 = arith.constant 0 : index
    %c0_44 = arith.constant 0 : index
    %38 = vector.load %arg17[%c0_43, %c0_44] : memref<128x64xf32, #tpu.memory_space<vmem>>, vector<128x64xf32>
    %cst_45 = arith.constant dense<0.000000e+00> : vector<42x64xf32>
    %39 = tpu.matmul %37, %38, %cst_45 {dimension_numbers = #tpu.dot_dimension_numbers<[1], [0], [0], [1], [0, 0, 1, 1], [], []>} : vector<42x128xf32>, vector<128x64xf32>, vector<42x64xf32> -> vector<42x64xf32>
    %c0_46 = arith.constant 0 : index
    %c0_47 = arith.constant 0 : index
    %40 = vector.load %arg18[%c0_46, %c0_47] : memref<128x64xf32, #tpu.memory_space<vmem>>, vector<128x64xf32>
    %cst_48 = arith.constant dense<0.000000e+00> : vector<42x64xf32>
    %41 = tpu.matmul %37, %40, %cst_48 {dimension_numbers = #tpu.dot_dimension_numbers<[1], [0], [0], [1], [0, 0, 1, 1], [], []>} : vector<42x128xf32>, vector<128x64xf32>, vector<42x64xf32> -> vector<42x64xf32>
    %42 = arith.maximumf %39, %41 : vector<42x64xf32>
    %c0_49 = arith.constant 0 : index
    %c0_50 = arith.constant 0 : index
    %43 = vector.load %arg33[%c0_49, %c0_50] : memref<42x64xf32, #tpu.memory_space<vmem>>, vector<42x64xf32>
    tpu.vector_store %arg33[%c0_49, %c0_50], %42 {strides = array<i32>} : memref<42x64xf32, #tpu.memory_space<vmem>>, vector<42x64xf32>,
    %c0_51 = arith.constant 0 : index
    %c0_52 = arith.constant 0 : index
    %44 = vector.load %arg33[%c0_51, %c0_52] : memref<42x64xf32, #tpu.memory_space<vmem>>, vector<40x64xf32>
    %c0_53 = arith.constant 0 : index
    %c0_54 = arith.constant 0 : index
    %c0_55 = arith.constant 0 : index
    %45 = vector.load %arg3[%c0_53, %c0_54, %c0_55] : memref<3x64x128xf32, #tpu.memory_space<vmem>>, vector<1x64x128xf32>
    %46 = vector.shape_cast %45 : vector<1x64x128xf32> to vector<64x128xf32>
    %cst_56 = arith.constant dense<0.000000e+00> : vector<40x128xf32>
    %47 = tpu.matmul %44, %46, %cst_56 {dimension_numbers = #tpu.dot_dimension_numbers<[1], [0], [0], [1], [0, 0, 1, 1], [], []>} : vector<40x64xf32>, vector<64x128xf32>, vector<40x128xf32> -> vector<40x128xf32>
    %c1_57 = arith.constant 1 : index
    %c0_58 = arith.constant 0 : index
    %48 = vector.load %arg33[%c1_57, %c0_58] : memref<42x64xf32, #tpu.memory_space<vmem>>, vector<40x64xf32>
    %c1_59 = arith.constant 1 : index
    %c0_60 = arith.constant 0 : index
    %c0_61 = arith.constant 0 : index
    %49 = vector.load %arg3[%c1_59, %c0_60, %c0_61] : memref<3x64x128xf32, #tpu.memory_space<vmem>>, vector<1x64x128xf32>
    %50 = vector.shape_cast %49 : vector<1x64x128xf32> to vector<64x128xf32>
    %cst_62 = arith.constant dense<0.000000e+00> : vector<40x128xf32>
    %51 = tpu.matmul %48, %50, %cst_62 {dimension_numbers = #tpu.dot_dimension_numbers<[1], [0], [0], [1], [0, 0, 1, 1], [], []>} : vector<40x64xf32>, vector<64x128xf32>, vector<40x128xf32> -> vector<40x128xf32>
    %52 = arith.addf %47, %51 : vector<40x128xf32>
    %c2_63 = arith.constant 2 : index
    %c0_64 = arith.constant 0 : index
    %53 = vector.load %arg33[%c2_63, %c0_64] : memref<42x64xf32, #tpu.memory_space<vmem>>, vector<40x64xf32>
    %c2_65 = arith.constant 2 : index
    %c0_66 = arith.constant 0 : index
    %c0_67 = arith.constant 0 : index
    %54 = vector.load %arg3[%c2_65, %c0_66, %c0_67] : memref<3x64x128xf32, #tpu.memory_space<vmem>>, vector<1x64x128xf32>
    %55 = vector.shape_cast %54 : vector<1x64x128xf32> to vector<64x128xf32>
    %cst_68 = arith.constant dense<0.000000e+00> : vector<40x128xf32>
    %56 = tpu.matmul %53, %55, %cst_68 {dimension_numbers = #tpu.dot_dimension_numbers<[1], [0], [0], [1], [0, 0, 1, 1], [], []>} : vector<40x64xf32>, vector<64x128xf32>, vector<40x128xf32> -> vector<40x128xf32>
    %57 = arith.addf %52, %56 : vector<40x128xf32>
    %c0_69 = arith.constant 0 : index
    %c0_70 = arith.constant 0 : index
    %58 = vector.load %arg4[%c0_69, %c0_70] : memref<1x128xf32, #tpu.memory_space<vmem>>, vector<1x128xf32>
    %59 = vector.broadcast %58 : vector<1x128xf32> to vector<40x128xf32>
    %60 = arith.addf %57, %59 : vector<40x128xf32>
    %cst_71 = arith.constant 0.000000e+00 : f32
    %61 = vector.broadcast %cst_71 : f32 to vector<40x128xf32>
    %62 = arith.maximumf %60, %61 : vector<40x128xf32>
    %c1_72 = arith.constant 1 : index
    %c0_73 = arith.constant 0 : index
    %63 = vector.load %arg28[%c1_72, %c0_73] : memref<42x1xf32, #tpu.memory_space<vmem>>, vector<40x1xf32>
    %64 = vector.broadcast %63 : vector<40x1xf32> to vector<40x128xf32>
    %65 = arith.mulf %62, %64 : vector<40x128xf32>
    %c1_74 = arith.constant 1 : index
    %c0_75 = arith.constant 0 : index
    %66 = vector.load %arg34[%c1_74, %c0_75] : memref<42x128xf32, #tpu.memory_space<vmem>>, vector<40x128xf32>
    tpu.vector_store %arg34[%c1_74, %c0_75], %65 {strides = array<i32>} : memref<42x128xf32, #tpu.memory_space<vmem>>, vector<40x128xf32>,
    %c0_76 = arith.constant 0 : index
    %c0_77 = arith.constant 0 : index
    %67 = vector.load %arg19[%c0_76, %c0_77] : memref<26x42xf32, #tpu.memory_space<vmem>>, vector<26x42xf32>
    %c0_78 = arith.constant 0 : index
    %c0_79 = arith.constant 0 : index
    %68 = vector.load %arg34[%c0_78, %c0_79] : memref<42x128xf32, #tpu.memory_space<vmem>>, vector<42x128xf32>
    %cst_80 = arith.constant dense<0.000000e+00> : vector<26x128xf32>
    %69 = tpu.matmul %67, %68, %cst_80 {dimension_numbers = #tpu.dot_dimension_numbers<[1], [0], [0], [1], [0, 0, 1, 1], [], []>} : vector<26x42xf32>, vector<42x128xf32>, vector<26x128xf32> -> vector<26x128xf32>
    %c0_81 = arith.constant 0 : index
    %c0_82 = arith.constant 0 : index
    %70 = vector.load %arg20[%c0_81, %c0_82] : memref<26x42xf32, #tpu.memory_space<vmem>>, vector<26x42xf32>
    %c0_83 = arith.constant 0 : index
    %c0_84 = arith.constant 0 : index
    %71 = vector.load %arg34[%c0_83, %c0_84] : memref<42x128xf32, #tpu.memory_space<vmem>>, vector<42x128xf32>
    %cst_85 = arith.constant dense<0.000000e+00> : vector<26x128xf32>
    %72 = tpu.matmul %70, %71, %cst_85 {dimension_numbers = #tpu.dot_dimension_numbers<[1], [0], [0], [1], [0, 0, 1, 1], [], []>} : vector<26x42xf32>, vector<42x128xf32>, vector<26x128xf32> -> vector<26x128xf32>
    %73 = arith.maximumf %69, %72 : vector<26x128xf32>
    %c0_86 = arith.constant 0 : index
    %c0_87 = arith.constant 0 : index
    %74 = vector.load %arg21[%c0_86, %c0_87] : memref<128x64xf32, #tpu.memory_space<vmem>>, vector<128x64xf32>
    %cst_88 = arith.constant dense<0.000000e+00> : vector<26x64xf32>
    %75 = tpu.matmul %73, %74, %cst_88 {dimension_numbers = #tpu.dot_dimension_numbers<[1], [0], [0], [1], [0, 0, 1, 1], [], []>} : vector<26x128xf32>, vector<128x64xf32>, vector<26x64xf32> -> vector<26x64xf32>
    %c0_89 = arith.constant 0 : index
    %c0_90 = arith.constant 0 : index
    %76 = vector.load %arg22[%c0_89, %c0_90] : memref<128x64xf32, #tpu.memory_space<vmem>>, vector<128x64xf32>
    %cst_91 = arith.constant dense<0.000000e+00> : vector<26x64xf32>
    %77 = tpu.matmul %73, %76, %cst_91 {dimension_numbers = #tpu.dot_dimension_numbers<[1], [0], [0], [1], [0, 0, 1, 1], [], []>} : vector<26x128xf32>, vector<128x64xf32>, vector<26x64xf32> -> vector<26x64xf32>
    %78 = arith.maximumf %75, %77 : vector<26x64xf32>
    %c0_92 = arith.constant 0 : index
    %c0_93 = arith.constant 0 : index
    %79 = vector.load %arg35[%c0_92, %c0_93] : memref<26x64xf32, #tpu.memory_space<vmem>>, vector<26x64xf32>
    tpu.vector_store %arg35[%c0_92, %c0_93], %78 {strides = array<i32>} : memref<26x64xf32, #tpu.memory_space<vmem>>, vector<26x64xf32>,
    %c0_94 = arith.constant 0 : index
    %c0_95 = arith.constant 0 : index
    %80 = vector.load %arg35[%c0_94, %c0_95] : memref<26x64xf32, #tpu.memory_space<vmem>>, vector<24x64xf32>
    %c0_96 = arith.constant 0 : index
    %c0_97 = arith.constant 0 : index
    %c0_98 = arith.constant 0 : index
    %81 = vector.load %arg5[%c0_96, %c0_97, %c0_98] : memref<3x64x128xf32, #tpu.memory_space<vmem>>, vector<1x64x128xf32>
    %82 = vector.shape_cast %81 : vector<1x64x128xf32> to vector<64x128xf32>
    %cst_99 = arith.constant dense<0.000000e+00> : vector<24x128xf32>
    %83 = tpu.matmul %80, %82, %cst_99 {dimension_numbers = #tpu.dot_dimension_numbers<[1], [0], [0], [1], [0, 0, 1, 1], [], []>} : vector<24x64xf32>, vector<64x128xf32>, vector<24x128xf32> -> vector<24x128xf32>
    %c1_100 = arith.constant 1 : index
    %c0_101 = arith.constant 0 : index
    %84 = vector.load %arg35[%c1_100, %c0_101] : memref<26x64xf32, #tpu.memory_space<vmem>>, vector<24x64xf32>
    %c1_102 = arith.constant 1 : index
    %c0_103 = arith.constant 0 : index
    %c0_104 = arith.constant 0 : index
    %85 = vector.load %arg5[%c1_102, %c0_103, %c0_104] : memref<3x64x128xf32, #tpu.memory_space<vmem>>, vector<1x64x128xf32>
    %86 = vector.shape_cast %85 : vector<1x64x128xf32> to vector<64x128xf32>
    %cst_105 = arith.constant dense<0.000000e+00> : vector<24x128xf32>
    %87 = tpu.matmul %84, %86, %cst_105 {dimension_numbers = #tpu.dot_dimension_numbers<[1], [0], [0], [1], [0, 0, 1, 1], [], []>} : vector<24x64xf32>, vector<64x128xf32>, vector<24x128xf32> -> vector<24x128xf32>
    %88 = arith.addf %83, %87 : vector<24x128xf32>
    %c2_106 = arith.constant 2 : index
    %c0_107 = arith.constant 0 : index
    %89 = vector.load %arg35[%c2_106, %c0_107] : memref<26x64xf32, #tpu.memory_space<vmem>>, vector<24x64xf32>
    %c2_108 = arith.constant 2 : index
    %c0_109 = arith.constant 0 : index
    %c0_110 = arith.constant 0 : index
    %90 = vector.load %arg5[%c2_108, %c0_109, %c0_110] : memref<3x64x128xf32, #tpu.memory_space<vmem>>, vector<1x64x128xf32>
    %91 = vector.shape_cast %90 : vector<1x64x128xf32> to vector<64x128xf32>
    %cst_111 = arith.constant dense<0.000000e+00> : vector<24x128xf32>
    %92 = tpu.matmul %89, %91, %cst_111 {dimension_numbers = #tpu.dot_dimension_numbers<[1], [0], [0], [1], [0, 0, 1, 1], [], []>} : vector<24x64xf32>, vector<64x128xf32>, vector<24x128xf32> -> vector<24x128xf32>
    %93 = arith.addf %88, %92 : vector<24x128xf32>
    %c0_112 = arith.constant 0 : index
    %c0_113 = arith.constant 0 : index
    %94 = vector.load %arg6[%c0_112, %c0_113] : memref<1x128xf32, #tpu.memory_space<vmem>>, vector<1x128xf32>
    %95 = vector.broadcast %94 : vector<1x128xf32> to vector<24x128xf32>
    %96 = arith.addf %93, %95 : vector<24x128xf32>
    %cst_114 = arith.constant 0.000000e+00 : f32
    %97 = vector.broadcast %cst_114 : f32 to vector<24x128xf32>
    %98 = arith.maximumf %96, %97 : vector<24x128xf32>
    %c1_115 = arith.constant 1 : index
    %c0_116 = arith.constant 0 : index
    %99 = vector.load %arg29[%c1_115, %c0_116] : memref<26x1xf32, #tpu.memory_space<vmem>>, vector<24x1xf32>
    %100 = vector.broadcast %99 : vector<24x1xf32> to vector<24x128xf32>
    %101 = arith.mulf %98, %100 : vector<24x128xf32>
    %c1_117 = arith.constant 1 : index
    %c0_118 = arith.constant 0 : index
    %102 = vector.load %arg36[%c1_117, %c0_118] : memref<26x128xf32, #tpu.memory_space<vmem>>, vector<24x128xf32>
    tpu.vector_store %arg36[%c1_117, %c0_118], %101 {strides = array<i32>} : memref<26x128xf32, #tpu.memory_space<vmem>>, vector<24x128xf32>,
    %c0_119 = arith.constant 0 : index
    %c0_120 = arith.constant 0 : index
    %103 = vector.load %arg23[%c0_119, %c0_120] : memref<42x26xf32, #tpu.memory_space<vmem>>, vector<42x26xf32>
    %c0_121 = arith.constant 0 : index
    %c0_122 = arith.constant 0 : index
    %104 = vector.load %arg36[%c0_121, %c0_122] : memref<26x128xf32, #tpu.memory_space<vmem>>, vector<26x128xf32>
    %cst_123 = arith.constant dense<0.000000e+00> : vector<42x128xf32>
    %105 = tpu.matmul %103, %104, %cst_123 {dimension_numbers = #tpu.dot_dimension_numbers<[1], [0], [0], [1], [0, 0, 1, 1], [], []>} : vector<42x26xf32>, vector<26x128xf32>, vector<42x128xf32> -> vector<42x128xf32>
    %c0_124 = arith.constant 0 : index
    %c0_125 = arith.constant 0 : index
    %106 = vector.load %arg24[%c0_124, %c0_125] : memref<128x256xf32, #tpu.memory_space<vmem>>, vector<128x256xf32>
    %cst_126 = arith.constant dense<0.000000e+00> : vector<42x256xf32>
    %107 = tpu.matmul %105, %106, %cst_126 {dimension_numbers = #tpu.dot_dimension_numbers<[1], [0], [0], [1], [0, 0, 1, 1], [], []>} : vector<42x128xf32>, vector<128x256xf32>, vector<42x256xf32> -> vector<42x256xf32>
    %c0_127 = arith.constant 0 : index
    %c0_128 = arith.constant 0 : index
    %108 = vector.load %arg37[%c0_127, %c0_128] : memref<42x256xf32, #tpu.memory_space<vmem>>, vector<42x256xf32>
    tpu.vector_store %arg37[%c0_127, %c0_128], %107 {strides = array<i32>} : memref<42x256xf32, #tpu.memory_space<vmem>>, vector<42x256xf32>,
    %c0_129 = arith.constant 0 : index
    %c0_130 = arith.constant 0 : index
    %109 = vector.load %arg37[%c0_129, %c0_130] : memref<42x256xf32, #tpu.memory_space<vmem>>, vector<40x256xf32>
    %c0_131 = arith.constant 0 : index
    %c0_132 = arith.constant 0 : index
    %c0_133 = arith.constant 0 : index
    %110 = vector.load %arg7[%c0_131, %c0_132, %c0_133] : memref<3x256x128xf32, #tpu.memory_space<vmem>>, vector<1x256x128xf32>
    %111 = vector.shape_cast %110 : vector<1x256x128xf32> to vector<256x128xf32>
    %cst_134 = arith.constant dense<0.000000e+00> : vector<40x128xf32>
    %112 = tpu.matmul %109, %111, %cst_134 {dimension_numbers = #tpu.dot_dimension_numbers<[1], [0], [0], [1], [0, 0, 1, 1], [], []>} : vector<40x256xf32>, vector<256x128xf32>, vector<40x128xf32> -> vector<40x128xf32>
    %c1_135 = arith.constant 1 : index
    %c0_136 = arith.constant 0 : index
    %113 = vector.load %arg37[%c1_135, %c0_136] : memref<42x256xf32, #tpu.memory_space<vmem>>, vector<40x256xf32>
    %c1_137 = arith.constant 1 : index
    %c0_138 = arith.constant 0 : index
    %c0_139 = arith.constant 0 : index
    %114 = vector.load %arg7[%c1_137, %c0_138, %c0_139] : memref<3x256x128xf32, #tpu.memory_space<vmem>>, vector<1x256x128xf32>
    %115 = vector.shape_cast %114 : vector<1x256x128xf32> to vector<256x128xf32>
    %cst_140 = arith.constant dense<0.000000e+00> : vector<40x128xf32>
    %116 = tpu.matmul %113, %115, %cst_140 {dimension_numbers = #tpu.dot_dimension_numbers<[1], [0], [0], [1], [0, 0, 1, 1], [], []>} : vector<40x256xf32>, vector<256x128xf32>, vector<40x128xf32> -> vector<40x128xf32>
    %117 = arith.addf %112, %116 : vector<40x128xf32>
    %c2_141 = arith.constant 2 : index
    %c0_142 = arith.constant 0 : index
    %118 = vector.load %arg37[%c2_141, %c0_142] : memref<42x256xf32, #tpu.memory_space<vmem>>, vector<40x256xf32>
    %c2_143 = arith.constant 2 : index
    %c0_144 = arith.constant 0 : index
    %c0_145 = arith.constant 0 : index
    %119 = vector.load %arg7[%c2_143, %c0_144, %c0_145] : memref<3x256x128xf32, #tpu.memory_space<vmem>>, vector<1x256x128xf32>
    %120 = vector.shape_cast %119 : vector<1x256x128xf32> to vector<256x128xf32>
    %cst_146 = arith.constant dense<0.000000e+00> : vector<40x128xf32>
    %121 = tpu.matmul %118, %120, %cst_146 {dimension_numbers = #tpu.dot_dimension_numbers<[1], [0], [0], [1], [0, 0, 1, 1], [], []>} : vector<40x256xf32>, vector<256x128xf32>, vector<40x128xf32> -> vector<40x128xf32>
    %122 = arith.addf %117, %121 : vector<40x128xf32>
    %c0_147 = arith.constant 0 : index
    %c0_148 = arith.constant 0 : index
    %123 = vector.load %arg34[%c0_147, %c0_148] : memref<42x128xf32, #tpu.memory_space<vmem>>, vector<40x128xf32>
    %c0_149 = arith.constant 0 : index
    %c0_150 = arith.constant 0 : index
    %c0_151 = arith.constant 0 : index
    %124 = vector.load %arg8[%c0_149, %c0_150, %c0_151] : memref<3x128x128xf32, #tpu.memory_space<vmem>>, vector<1x128x128xf32>
    %125 = vector.shape_cast %124 : vector<1x128x128xf32> to vector<128x128xf32>
    %cst_152 = arith.constant dense<0.000000e+00> : vector<40x128xf32>
    %126 = tpu.matmul %123, %125, %cst_152 {dimension_numbers = #tpu.dot_dimension_numbers<[1], [0], [0], [1], [0, 0, 1, 1], [], []>} : vector<40x128xf32>, vector<128x128xf32>, vector<40x128xf32> -> vector<40x128xf32>
    %127 = arith.addf %122, %126 : vector<40x128xf32>
    %c1_153 = arith.constant 1 : index
    %c0_154 = arith.constant 0 : index
    %128 = vector.load %arg34[%c1_153, %c0_154] : memref<42x128xf32, #tpu.memory_space<vmem>>, vector<40x128xf32>
    %c1_155 = arith.constant 1 : index
    %c0_156 = arith.constant 0 : index
    %c0_157 = arith.constant 0 : index
    %129 = vector.load %arg8[%c1_155, %c0_156, %c0_157] : memref<3x128x128xf32, #tpu.memory_space<vmem>>, vector<1x128x128xf32>
    %130 = vector.shape_cast %129 : vector<1x128x128xf32> to vector<128x128xf32>
    %cst_158 = arith.constant dense<0.000000e+00> : vector<40x128xf32>
    %131 = tpu.matmul %128, %130, %cst_158 {dimension_numbers = #tpu.dot_dimension_numbers<[1], [0], [0], [1], [0, 0, 1, 1], [], []>} : vector<40x128xf32>, vector<128x128xf32>, vector<40x128xf32> -> vector<40x128xf32>
    %132 = arith.addf %127, %131 : vector<40x128xf32>
    %c2_159 = arith.constant 2 : index
    %c0_160 = arith.constant 0 : index
    %133 = vector.load %arg34[%c2_159, %c0_160] : memref<42x128xf32, #tpu.memory_space<vmem>>, vector<40x128xf32>
    %c2_161 = arith.constant 2 : index
    %c0_162 = arith.constant 0 : index
    %c0_163 = arith.constant 0 : index
    %134 = vector.load %arg8[%c2_161, %c0_162, %c0_163] : memref<3x128x128xf32, #tpu.memory_space<vmem>>, vector<1x128x128xf32>
    %135 = vector.shape_cast %134 : vector<1x128x128xf32> to vector<128x128xf32>
    %cst_164 = arith.constant dense<0.000000e+00> : vector<40x128xf32>
    %136 = tpu.matmul %133, %135, %cst_164 {dimension_numbers = #tpu.dot_dimension_numbers<[1], [0], [0], [1], [0, 0, 1, 1], [], []>} : vector<40x128xf32>, vector<128x128xf32>, vector<40x128xf32> -> vector<40x128xf32>
    %137 = arith.addf %132, %136 : vector<40x128xf32>
    %c0_165 = arith.constant 0 : index
    %c0_166 = arith.constant 0 : index
    %138 = vector.load %arg9[%c0_165, %c0_166] : memref<1x128xf32, #tpu.memory_space<vmem>>, vector<1x128xf32>
    %139 = vector.broadcast %138 : vector<1x128xf32> to vector<40x128xf32>
    %140 = arith.addf %137, %139 : vector<40x128xf32>
    %cst_167 = arith.constant 0.000000e+00 : f32
    %141 = vector.broadcast %cst_167 : f32 to vector<40x128xf32>
    %142 = arith.maximumf %140, %141 : vector<40x128xf32>
    %c1_168 = arith.constant 1 : index
    %c0_169 = arith.constant 0 : index
    %143 = vector.load %arg28[%c1_168, %c0_169] : memref<42x1xf32, #tpu.memory_space<vmem>>, vector<40x1xf32>
    %144 = vector.broadcast %143 : vector<40x1xf32> to vector<40x128xf32>
    %145 = arith.mulf %142, %144 : vector<40x128xf32>
    %c1_170 = arith.constant 1 : index
    %c0_171 = arith.constant 0 : index
    %146 = vector.load %arg38[%c1_170, %c0_171] : memref<42x128xf32, #tpu.memory_space<vmem>>, vector<40x128xf32>
    tpu.vector_store %arg38[%c1_170, %c0_171], %145 {strides = array<i32>} : memref<42x128xf32, #tpu.memory_space<vmem>>, vector<40x128xf32>,
    %c0_172 = arith.constant 0 : index
    %c0_173 = arith.constant 0 : index
    %147 = vector.load %arg25[%c0_172, %c0_173] : memref<74x42xf32, #tpu.memory_space<vmem>>, vector<74x42xf32>
    %c0_174 = arith.constant 0 : index
    %c0_175 = arith.constant 0 : index
    %148 = vector.load %arg38[%c0_174, %c0_175] : memref<42x128xf32, #tpu.memory_space<vmem>>, vector<42x128xf32>
    %cst_176 = arith.constant dense<0.000000e+00> : vector<74x128xf32>
    %149 = tpu.matmul %147, %148, %cst_176 {dimension_numbers = #tpu.dot_dimension_numbers<[1], [0], [0], [1], [0, 0, 1, 1], [], []>} : vector<74x42xf32>, vector<42x128xf32>, vector<74x128xf32> -> vector<74x128xf32>
    %c0_177 = arith.constant 0 : index
    %c0_178 = arith.constant 0 : index
    %150 = vector.load %arg26[%c0_177, %c0_178] : memref<128x256xf32, #tpu.memory_space<vmem>>, vector<128x256xf32>
    %cst_179 = arith.constant dense<0.000000e+00> : vector<74x256xf32>
    %151 = tpu.matmul %149, %150, %cst_179 {dimension_numbers = #tpu.dot_dimension_numbers<[1], [0], [0], [1], [0, 0, 1, 1], [], []>} : vector<74x128xf32>, vector<128x256xf32>, vector<74x256xf32> -> vector<74x256xf32>
    %c0_180 = arith.constant 0 : index
    %c0_181 = arith.constant 0 : index
    %152 = vector.load %arg39[%c0_180, %c0_181] : memref<74x256xf32, #tpu.memory_space<vmem>>, vector<74x256xf32>
    tpu.vector_store %arg39[%c0_180, %c0_181], %151 {strides = array<i32>} : memref<74x256xf32, #tpu.memory_space<vmem>>, vector<74x256xf32>,
    %c0_182 = arith.constant 0 : index
    %c0_183 = arith.constant 0 : index
    %153 = vector.load %arg39[%c0_182, %c0_183] : memref<74x256xf32, #tpu.memory_space<vmem>>, vector<72x256xf32>
    %c0_184 = arith.constant 0 : index
    %c0_185 = arith.constant 0 : index
    %c0_186 = arith.constant 0 : index
    %154 = vector.load %arg10[%c0_184, %c0_185, %c0_186] : memref<3x256x128xf32, #tpu.memory_space<vmem>>, vector<1x256x128xf32>
    %155 = vector.shape_cast %154 : vector<1x256x128xf32> to vector<256x128xf32>
    %cst_187 = arith.constant dense<0.000000e+00> : vector<72x128xf32>
    %156 = tpu.matmul %153, %155, %cst_187 {dimension_numbers = #tpu.dot_dimension_numbers<[1], [0], [0], [1], [0, 0, 1, 1], [], []>} : vector<72x256xf32>, vector<256x128xf32>, vector<72x128xf32> -> vector<72x128xf32>
    %c1_188 = arith.constant 1 : index
    %c0_189 = arith.constant 0 : index
    %157 = vector.load %arg39[%c1_188, %c0_189] : memref<74x256xf32, #tpu.memory_space<vmem>>, vector<72x256xf32>
    %c1_190 = arith.constant 1 : index
    %c0_191 = arith.constant 0 : index
    %c0_192 = arith.constant 0 : index
    %158 = vector.load %arg10[%c1_190, %c0_191, %c0_192] : memref<3x256x128xf32, #tpu.memory_space<vmem>>, vector<1x256x128xf32>
    %159 = vector.shape_cast %158 : vector<1x256x128xf32> to vector<256x128xf32>
    %cst_193 = arith.constant dense<0.000000e+00> : vector<72x128xf32>
    %160 = tpu.matmul %157, %159, %cst_193 {dimension_numbers = #tpu.dot_dimension_numbers<[1], [0], [0], [1], [0, 0, 1, 1], [], []>} : vector<72x256xf32>, vector<256x128xf32>, vector<72x128xf32> -> vector<72x128xf32>
    %161 = arith.addf %156, %160 : vector<72x128xf32>
    %c2_194 = arith.constant 2 : index
    %c0_195 = arith.constant 0 : index
    %162 = vector.load %arg39[%c2_194, %c0_195] : memref<74x256xf32, #tpu.memory_space<vmem>>, vector<72x256xf32>
    %c2_196 = arith.constant 2 : index
    %c0_197 = arith.constant 0 : index
    %c0_198 = arith.constant 0 : index
    %163 = vector.load %arg10[%c2_196, %c0_197, %c0_198] : memref<3x256x128xf32, #tpu.memory_space<vmem>>, vector<1x256x128xf32>
    %164 = vector.shape_cast %163 : vector<1x256x128xf32> to vector<256x128xf32>
    %cst_199 = arith.constant dense<0.000000e+00> : vector<72x128xf32>
    %165 = tpu.matmul %162, %164, %cst_199 {dimension_numbers = #tpu.dot_dimension_numbers<[1], [0], [0], [1], [0, 0, 1, 1], [], []>} : vector<72x256xf32>, vector<256x128xf32>, vector<72x128xf32> -> vector<72x128xf32>
    %166 = arith.addf %161, %165 : vector<72x128xf32>
    %c0_200 = arith.constant 0 : index
    %c0_201 = arith.constant 0 : index
    %167 = vector.load %arg32[%c0_200, %c0_201] : memref<74x128xf32, #tpu.memory_space<vmem>>, vector<72x128xf32>
    %c0_202 = arith.constant 0 : index
    %c0_203 = arith.constant 0 : index
    %c0_204 = arith.constant 0 : index
    %168 = vector.load %arg11[%c0_202, %c0_203, %c0_204] : memref<3x128x128xf32, #tpu.memory_space<vmem>>, vector<1x128x128xf32>
    %169 = vector.shape_cast %168 : vector<1x128x128xf32> to vector<128x128xf32>
    %cst_205 = arith.constant dense<0.000000e+00> : vector<72x128xf32>
    %170 = tpu.matmul %167, %169, %cst_205 {dimension_numbers = #tpu.dot_dimension_numbers<[1], [0], [0], [1], [0, 0, 1, 1], [], []>} : vector<72x128xf32>, vector<128x128xf32>, vector<72x128xf32> -> vector<72x128xf32>
    %171 = arith.addf %166, %170 : vector<72x128xf32>
    %c1_206 = arith.constant 1 : index
    %c0_207 = arith.constant 0 : index
    %172 = vector.load %arg32[%c1_206, %c0_207] : memref<74x128xf32, #tpu.memory_space<vmem>>, vector<72x128xf32>
    %c1_208 = arith.constant 1 : index
    %c0_209 = arith.constant 0 : index
    %c0_210 = arith.constant 0 : index
    %173 = vector.load %arg11[%c1_208, %c0_209, %c0_210] : memref<3x128x128xf32, #tpu.memory_space<vmem>>, vector<1x128x128xf32>
    %174 = vector.shape_cast %173 : vector<1x128x128xf32> to vector<128x128xf32>
    %cst_211 = arith.constant dense<0.000000e+00> : vector<72x128xf32>
    %175 = tpu.matmul %172, %174, %cst_211 {dimension_numbers = #tpu.dot_dimension_numbers<[1], [0], [0], [1], [0, 0, 1, 1], [], []>} : vector<72x128xf32>, vector<128x128xf32>, vector<72x128xf32> -> vector<72x128xf32>
    %176 = arith.addf %171, %175 : vector<72x128xf32>
    %c2_212 = arith.constant 2 : index
    %c0_213 = arith.constant 0 : index
    %177 = vector.load %arg32[%c2_212, %c0_213] : memref<74x128xf32, #tpu.memory_space<vmem>>, vector<72x128xf32>
    %c2_214 = arith.constant 2 : index
    %c0_215 = arith.constant 0 : index
    %c0_216 = arith.constant 0 : index
    %178 = vector.load %arg11[%c2_214, %c0_215, %c0_216] : memref<3x128x128xf32, #tpu.memory_space<vmem>>, vector<1x128x128xf32>
    %179 = vector.shape_cast %178 : vector<1x128x128xf32> to vector<128x128xf32>
    %cst_217 = arith.constant dense<0.000000e+00> : vector<72x128xf32>
    %180 = tpu.matmul %177, %179, %cst_217 {dimension_numbers = #tpu.dot_dimension_numbers<[1], [0], [0], [1], [0, 0, 1, 1], [], []>} : vector<72x128xf32>, vector<128x128xf32>, vector<72x128xf32> -> vector<72x128xf32>
    %181 = arith.addf %176, %180 : vector<72x128xf32>
    %c0_218 = arith.constant 0 : index
    %c0_219 = arith.constant 0 : index
    %182 = vector.load %arg12[%c0_218, %c0_219] : memref<1x128xf32, #tpu.memory_space<vmem>>, vector<1x128xf32>
    %183 = vector.broadcast %182 : vector<1x128xf32> to vector<72x128xf32>
    %184 = arith.addf %181, %183 : vector<72x128xf32>
    %cst_220 = arith.constant 0.000000e+00 : f32
    %185 = vector.broadcast %cst_220 : f32 to vector<72x128xf32>
    %186 = arith.maximumf %184, %185 : vector<72x128xf32>
    %c1_221 = arith.constant 1 : index
    %c0_222 = arith.constant 0 : index
    %187 = vector.load %arg27[%c1_221, %c0_222] : memref<74x1xf32, #tpu.memory_space<vmem>>, vector<72x1xf32>
    %188 = vector.broadcast %187 : vector<72x1xf32> to vector<72x128xf32>
    %189 = arith.mulf %186, %188 : vector<72x128xf32>
    %c0_223 = arith.constant 0 : index
    %c0_224 = arith.constant 0 : index
    %190 = vector.load %arg13[%c0_223, %c0_224] : memref<128x64xf32, #tpu.memory_space<vmem>>, vector<128x64xf32>
    %cst_225 = arith.constant dense<0.000000e+00> : vector<72x64xf32>
    %191 = tpu.matmul %189, %190, %cst_225 {dimension_numbers = #tpu.dot_dimension_numbers<[1], [0], [0], [1], [0, 0, 1, 1], [], []>} : vector<72x128xf32>, vector<128x64xf32>, vector<72x64xf32> -> vector<72x64xf32>
    %c0_226 = arith.constant 0 : index
    %c0_227 = arith.constant 0 : index
    %192 = vector.load %arg14[%c0_226, %c0_227] : memref<1x64xf32, #tpu.memory_space<vmem>>, vector<1x64xf32>
    %193 = vector.broadcast %192 : vector<1x64xf32> to vector<72x64xf32>
    %194 = arith.addf %191, %193 : vector<72x64xf32>
    %c0_228 = arith.constant 0 : index
    %c0_229 = arith.constant 0 : index
    %195 = vector.load %arg40[%c0_228, %c0_229] : memref<72x64xf32, #tpu.memory_space<vmem>>, vector<72x64xf32>
    tpu.vector_store %arg40[%c0_228, %c0_229], %194 {strides = array<i32>} : memref<72x64xf32, #tpu.memory_space<vmem>>, vector<72x64xf32>,
    %c1_230 = arith.constant 1 : index
    %c0_231 = arith.constant 0 : index
    %196 = vector.load %arg27[%c1_230, %c0_231] : memref<74x1xf32, #tpu.memory_space<vmem>>, vector<36x1xf32>
    %c0_232 = arith.constant 0 : index
    %c0_233 = arith.constant 0 : index
    %197 = vector.load %arg40[%c0_232, %c0_233] : memref<72x64xf32, #tpu.memory_space<vmem>>, vector<36x64xf32>
    %c0_234 = arith.constant 0 : index
    %c0_235 = arith.constant 0 : index
    %c0_236 = arith.constant 0 : index
    %198 = vector.load %arg30[%c0_234, %c0_235, %c0_236] : memref<4x64x16xf32, #tpu.memory_space<vmem>>, vector<1x64x16xf32>
    %199 = vector.shape_cast %198 : vector<1x64x16xf32> to vector<64x16xf32>
    %cst_237 = arith.constant dense<0.000000e+00> : vector<36x16xf32>
    %200 = tpu.matmul %197, %199, %cst_237 {dimension_numbers = #tpu.dot_dimension_numbers<[1], [0], [0], [1], [0, 0, 1, 1], [], []>} : vector<36x64xf32>, vector<64x16xf32>, vector<36x16xf32> -> vector<36x16xf32>
    %c0_238 = arith.constant 0 : index
    %c0_239 = arith.constant 0 : index
    %201 = vector.load %arg40[%c0_238, %c0_239] : memref<72x64xf32, #tpu.memory_space<vmem>>, vector<36x64xf32>
    %c1_240 = arith.constant 1 : index
    %c0_241 = arith.constant 0 : index
    %c0_242 = arith.constant 0 : index
    %202 = vector.load %arg30[%c1_240, %c0_241, %c0_242] : memref<4x64x16xf32, #tpu.memory_space<vmem>>, vector<1x64x16xf32>
    %203 = vector.shape_cast %202 : vector<1x64x16xf32> to vector<64x16xf32>
    %cst_243 = arith.constant dense<0.000000e+00> : vector<36x16xf32>
    %204 = tpu.matmul %201, %203, %cst_243 {dimension_numbers = #tpu.dot_dimension_numbers<[1], [0], [0], [1], [0, 0, 1, 1], [], []>} : vector<36x64xf32>, vector<64x16xf32>, vector<36x16xf32> -> vector<36x16xf32>
    %c0_244 = arith.constant 0 : index
    %c0_245 = arith.constant 0 : index
    %205 = vector.load %arg40[%c0_244, %c0_245] : memref<72x64xf32, #tpu.memory_space<vmem>>, vector<36x64xf32>
    %c2_246 = arith.constant 2 : index
    %c0_247 = arith.constant 0 : index
    %c0_248 = arith.constant 0 : index
    %206 = vector.load %arg30[%c2_246, %c0_247, %c0_248] : memref<4x64x16xf32, #tpu.memory_space<vmem>>, vector<1x64x16xf32>
    %207 = vector.shape_cast %206 : vector<1x64x16xf32> to vector<64x16xf32>
    %cst_249 = arith.constant dense<0.000000e+00> : vector<36x16xf32>
    %208 = tpu.matmul %205, %207, %cst_249 {dimension_numbers = #tpu.dot_dimension_numbers<[1], [0], [0], [1], [0, 0, 1, 1], [], []>} : vector<36x64xf32>, vector<64x16xf32>, vector<36x16xf32> -> vector<36x16xf32>
    %c0_250 = arith.constant 0 : index
    %c0_251 = arith.constant 0 : index
    %209 = vector.load %arg40[%c0_250, %c0_251] : memref<72x64xf32, #tpu.memory_space<vmem>>, vector<36x64xf32>
    %c3 = arith.constant 3 : index
    %c0_252 = arith.constant 0 : index
    %c0_253 = arith.constant 0 : index
    %210 = vector.load %arg30[%c3, %c0_252, %c0_253] : memref<4x64x16xf32, #tpu.memory_space<vmem>>, vector<1x64x16xf32>
    %211 = vector.shape_cast %210 : vector<1x64x16xf32> to vector<64x16xf32>
    %cst_254 = arith.constant dense<0.000000e+00> : vector<36x16xf32>
    %212 = tpu.matmul %209, %211, %cst_254 {dimension_numbers = #tpu.dot_dimension_numbers<[1], [0], [0], [1], [0, 0, 1, 1], [], []>} : vector<36x64xf32>, vector<64x16xf32>, vector<36x16xf32> -> vector<36x16xf32>
    %c36 = arith.constant 36 : index
    %c0_255 = arith.constant 0 : index
    %213 = vector.load %arg40[%c36, %c0_255] : memref<72x64xf32, #tpu.memory_space<vmem>>, vector<36x64xf32>
    %c0_256 = arith.constant 0 : index
    %c0_257 = arith.constant 0 : index
    %c0_258 = arith.constant 0 : index
    %214 = vector.load %arg30[%c0_256, %c0_257, %c0_258] : memref<4x64x16xf32, #tpu.memory_space<vmem>>, vector<1x64x16xf32>
    %215 = vector.shape_cast %214 : vector<1x64x16xf32> to vector<64x16xf32>
    %cst_259 = arith.constant dense<0.000000e+00> : vector<36x16xf32>
    %216 = tpu.matmul %213, %215, %cst_259 {dimension_numbers = #tpu.dot_dimension_numbers<[1], [0], [0], [1], [0, 0, 1, 1], [], []>} : vector<36x64xf32>, vector<64x16xf32>, vector<36x16xf32> -> vector<36x16xf32>
    %c36_260 = arith.constant 36 : index
    %c0_261 = arith.constant 0 : index
    %217 = vector.load %arg40[%c36_260, %c0_261] : memref<72x64xf32, #tpu.memory_space<vmem>>, vector<36x64xf32>
    %c1_262 = arith.constant 1 : index
    %c0_263 = arith.constant 0 : index
    %c0_264 = arith.constant 0 : index
    %218 = vector.load %arg30[%c1_262, %c0_263, %c0_264] : memref<4x64x16xf32, #tpu.memory_space<vmem>>, vector<1x64x16xf32>
    %219 = vector.shape_cast %218 : vector<1x64x16xf32> to vector<64x16xf32>
    %cst_265 = arith.constant dense<0.000000e+00> : vector<36x16xf32>
    %220 = tpu.matmul %217, %219, %cst_265 {dimension_numbers = #tpu.dot_dimension_numbers<[1], [0], [0], [1], [0, 0, 1, 1], [], []>} : vector<36x64xf32>, vector<64x16xf32>, vector<36x16xf32> -> vector<36x16xf32>
    %c36_266 = arith.constant 36 : index
    %c0_267 = arith.constant 0 : index
    %221 = vector.load %arg40[%c36_266, %c0_267] : memref<72x64xf32, #tpu.memory_space<vmem>>, vector<36x64xf32>
    %c2_268 = arith.constant 2 : index
    %c0_269 = arith.constant 0 : index
    %c0_270 = arith.constant 0 : index
    %222 = vector.load %arg30[%c2_268, %c0_269, %c0_270] : memref<4x64x16xf32, #tpu.memory_space<vmem>>, vector<1x64x16xf32>
    %223 = vector.shape_cast %222 : vector<1x64x16xf32> to vector<64x16xf32>
    %cst_271 = arith.constant dense<0.000000e+00> : vector<36x16xf32>
    %224 = tpu.matmul %221, %223, %cst_271 {dimension_numbers = #tpu.dot_dimension_numbers<[1], [0], [0], [1], [0, 0, 1, 1], [], []>} : vector<36x64xf32>, vector<64x16xf32>, vector<36x16xf32> -> vector<36x16xf32>
    %c36_272 = arith.constant 36 : index
    %c0_273 = arith.constant 0 : index
    %225 = vector.load %arg40[%c36_272, %c0_273] : memref<72x64xf32, #tpu.memory_space<vmem>>, vector<36x64xf32>
    %c3_274 = arith.constant 3 : index
    %c0_275 = arith.constant 0 : index
    %c0_276 = arith.constant 0 : index
    %226 = vector.load %arg30[%c3_274, %c0_275, %c0_276] : memref<4x64x16xf32, #tpu.memory_space<vmem>>, vector<1x64x16xf32>
    %227 = vector.shape_cast %226 : vector<1x64x16xf32> to vector<64x16xf32>
    %cst_277 = arith.constant dense<0.000000e+00> : vector<36x16xf32>
    %228 = tpu.matmul %225, %227, %cst_277 {dimension_numbers = #tpu.dot_dimension_numbers<[1], [0], [0], [1], [0, 0, 1, 1], [], []>} : vector<36x64xf32>, vector<64x16xf32>, vector<36x16xf32> -> vector<36x16xf32>
    %229 = arith.maximumf %200, %204 : vector<36x16xf32>
    %230 = arith.maximumf %208, %212 : vector<36x16xf32>
    %231 = arith.maximumf %229, %230 : vector<36x16xf32>
    %232 = arith.subf %200, %231 : vector<36x16xf32>
    %233 = math.exp %232 : vector<36x16xf32>
    %234 = arith.subf %204, %231 : vector<36x16xf32>
    %235 = math.exp %234 : vector<36x16xf32>
    %236 = arith.subf %208, %231 : vector<36x16xf32>
    %237 = math.exp %236 : vector<36x16xf32>
    %238 = arith.subf %212, %231 : vector<36x16xf32>
    %239 = math.exp %238 : vector<36x16xf32>
    %240 = arith.addf %233, %235 : vector<36x16xf32>
    %241 = arith.addf %240, %237 : vector<36x16xf32>
    %242 = arith.addf %241, %239 : vector<36x16xf32>
    %243 = arith.divf %233, %242 : vector<36x16xf32>
    %244 = arith.divf %235, %242 : vector<36x16xf32>
    %245 = arith.divf %237, %242 : vector<36x16xf32>
    %246 = arith.divf %239, %242 : vector<36x16xf32>
    %247 = arith.maximumf %216, %220 : vector<36x16xf32>
    %248 = arith.maximumf %224, %228 : vector<36x16xf32>
    %249 = arith.maximumf %247, %248 : vector<36x16xf32>
    %cst_278 = arith.constant 0.000000e+00 : f32
    %250 = vector.broadcast %cst_278 : f32 to vector<36x16xf32>
    %251 = arith.cmpf oge, %216, %249 : vector<36x16xf32>
    %252 = arith.extui %251 : vector<36x16xi1> to vector<36x16xi32>
    %253 = arith.sitofp %252 : vector<36x16xi32> to vector<36x16xf32>
    %cst_279 = arith.constant 1.000000e+00 : f32
    %254 = vector.broadcast %cst_279 : f32 to vector<36x16xf32>
    %255 = arith.subf %254, %250 : vector<36x16xf32>
    %256 = arith.mulf %253, %255 : vector<36x16xf32>
    %257 = arith.maximumf %250, %256 : vector<36x16xf32>
    %258 = arith.cmpf oge, %220, %249 : vector<36x16xf32>
    %259 = arith.extui %258 : vector<36x16xi1> to vector<36x16xi32>
    %260 = arith.sitofp %259 : vector<36x16xi32> to vector<36x16xf32>
    %cst_280 = arith.constant 1.000000e+00 : f32
    %261 = vector.broadcast %cst_280 : f32 to vector<36x16xf32>
    %262 = arith.subf %261, %257 : vector<36x16xf32>
    %263 = arith.mulf %260, %262 : vector<36x16xf32>
    %264 = arith.maximumf %257, %263 : vector<36x16xf32>
    %265 = arith.cmpf oge, %224, %249 : vector<36x16xf32>
    %266 = arith.extui %265 : vector<36x16xi1> to vector<36x16xi32>
    %267 = arith.sitofp %266 : vector<36x16xi32> to vector<36x16xf32>
    %cst_281 = arith.constant 1.000000e+00 : f32
    %268 = vector.broadcast %cst_281 : f32 to vector<36x16xf32>
    %269 = arith.subf %268, %264 : vector<36x16xf32>
    %270 = arith.mulf %267, %269 : vector<36x16xf32>
    %271 = arith.maximumf %264, %270 : vector<36x16xf32>
    %272 = arith.cmpf oge, %228, %249 : vector<36x16xf32>
    %273 = arith.extui %272 : vector<36x16xi1> to vector<36x16xi32>
    %274 = arith.sitofp %273 : vector<36x16xi32> to vector<36x16xf32>
    %cst_282 = arith.constant 1.000000e+00 : f32
    %275 = vector.broadcast %cst_282 : f32 to vector<36x16xf32>
    %276 = arith.subf %275, %271 : vector<36x16xf32>
    %277 = arith.mulf %274, %276 : vector<36x16xf32>
    %cst_283 = arith.constant 0.000000e+00 : f32
    %278 = vector.broadcast %cst_283 : f32 to vector<1x1xf32>
    %279 = vector.broadcast %196 : vector<36x1xf32> to vector<36x16xf32>
    %280 = arith.mulf %243, %279 : vector<36x16xf32>
    %281 = vector.broadcast %196 : vector<36x1xf32> to vector<36x16xf32>
    %282 = arith.mulf %256, %281 : vector<36x16xf32>
    %283 = arith.mulf %280, %282 : vector<36x16xf32>
    %284 = vector.shape_cast %283 : vector<36x16xf32> to vector<1x36x16xf32>
    %cst_284 = arith.constant dense<0.000000e+00> : vector<1xf32>
    %285 = vector.multi_reduction <add>, %284, %cst_284 [1, 2] : vector<1x36x16xf32> to vector<1xf32>
    %286 = vector.shape_cast %285 : vector<1xf32> to vector<1x1x1xf32>
    %287 = vector.extract %286[0, 0, 0] : f32 from vector<1x1x1xf32>
    %288 = vector.broadcast %287 : f32 to vector<1x1xf32>
    %289 = arith.addf %280, %282 : vector<36x16xf32>
    %290 = vector.shape_cast %289 : vector<36x16xf32> to vector<1x36x16xf32>
    %cst_285 = arith.constant dense<0.000000e+00> : vector<1xf32>
    %291 = vector.multi_reduction <add>, %290, %cst_285 [1, 2] : vector<1x36x16xf32> to vector<1xf32>
    %292 = vector.shape_cast %291 : vector<1xf32> to vector<1x1x1xf32>
    %293 = vector.extract %292[0, 0, 0] : f32 from vector<1x1x1xf32>
    %294 = vector.broadcast %293 : f32 to vector<1x1xf32>
    %295 = vector.shape_cast %282 : vector<36x16xf32> to vector<1x36x16xf32>
    %cst_286 = arith.constant dense<0.000000e+00> : vector<1xf32>
    %296 = vector.multi_reduction <add>, %295, %cst_286 [1, 2] : vector<1x36x16xf32> to vector<1xf32>
    %297 = vector.shape_cast %296 : vector<1xf32> to vector<1x1x1xf32>
    %298 = vector.extract %297[0, 0, 0] : f32 from vector<1x1x1xf32>
    %299 = vector.broadcast %298 : f32 to vector<1x1xf32>
    %cst_287 = arith.constant 2.000000e+00 : f32
    %300 = vector.broadcast %cst_287 : f32 to vector<1x1xf32>
    %301 = arith.mulf %300, %288 : vector<1x1xf32>
    %cst_288 = arith.constant 1.000000e-07 : f32
    %302 = vector.broadcast %cst_288 : f32 to vector<1x1xf32>
    %303 = arith.maximumf %294, %302 : vector<1x1xf32>
    %304 = arith.divf %301, %303 : vector<1x1xf32>
    %cst_289 = arith.constant 1.000000e+00 : f32
    %305 = vector.broadcast %cst_289 : f32 to vector<1x1xf32>
    %306 = arith.subf %305, %304 : vector<1x1xf32>
    %cst_290 = arith.constant 0.000000e+00 : f32
    %307 = vector.broadcast %cst_290 : f32 to vector<1x1xf32>
    %308 = arith.cmpf ogt, %299, %307 : vector<1x1xf32>
    %309 = arith.extui %308 : vector<1x1xi1> to vector<1x1xi32>
    %310 = arith.sitofp %309 : vector<1x1xi32> to vector<1x1xf32>
    %311 = arith.mulf %306, %310 : vector<1x1xf32>
    %312 = arith.addf %278, %311 : vector<1x1xf32>
    %313 = vector.broadcast %196 : vector<36x1xf32> to vector<36x16xf32>
    %314 = arith.mulf %244, %313 : vector<36x16xf32>
    %315 = vector.broadcast %196 : vector<36x1xf32> to vector<36x16xf32>
    %316 = arith.mulf %263, %315 : vector<36x16xf32>
    %317 = arith.mulf %314, %316 : vector<36x16xf32>
    %318 = vector.shape_cast %317 : vector<36x16xf32> to vector<1x36x16xf32>
    %cst_291 = arith.constant dense<0.000000e+00> : vector<1xf32>
    %319 = vector.multi_reduction <add>, %318, %cst_291 [1, 2] : vector<1x36x16xf32> to vector<1xf32>
    %320 = vector.shape_cast %319 : vector<1xf32> to vector<1x1x1xf32>
    %321 = vector.extract %320[0, 0, 0] : f32 from vector<1x1x1xf32>
    %322 = vector.broadcast %321 : f32 to vector<1x1xf32>
    %323 = arith.addf %314, %316 : vector<36x16xf32>
    %324 = vector.shape_cast %323 : vector<36x16xf32> to vector<1x36x16xf32>
    %cst_292 = arith.constant dense<0.000000e+00> : vector<1xf32>
    %325 = vector.multi_reduction <add>, %324, %cst_292 [1, 2] : vector<1x36x16xf32> to vector<1xf32>
    %326 = vector.shape_cast %325 : vector<1xf32> to vector<1x1x1xf32>
    %327 = vector.extract %326[0, 0, 0] : f32 from vector<1x1x1xf32>
    %328 = vector.broadcast %327 : f32 to vector<1x1xf32>
    %329 = vector.shape_cast %316 : vector<36x16xf32> to vector<1x36x16xf32>
    %cst_293 = arith.constant dense<0.000000e+00> : vector<1xf32>
    %330 = vector.multi_reduction <add>, %329, %cst_293 [1, 2] : vector<1x36x16xf32> to vector<1xf32>
    %331 = vector.shape_cast %330 : vector<1xf32> to vector<1x1x1xf32>
    %332 = vector.extract %331[0, 0, 0] : f32 from vector<1x1x1xf32>
    %333 = vector.broadcast %332 : f32 to vector<1x1xf32>
    %cst_294 = arith.constant 2.000000e+00 : f32
    %334 = vector.broadcast %cst_294 : f32 to vector<1x1xf32>
    %335 = arith.mulf %334, %322 : vector<1x1xf32>
    %cst_295 = arith.constant 1.000000e-07 : f32
    %336 = vector.broadcast %cst_295 : f32 to vector<1x1xf32>
    %337 = arith.maximumf %328, %336 : vector<1x1xf32>
    %338 = arith.divf %335, %337 : vector<1x1xf32>
    %cst_296 = arith.constant 1.000000e+00 : f32
    %339 = vector.broadcast %cst_296 : f32 to vector<1x1xf32>
    %340 = arith.subf %339, %338 : vector<1x1xf32>
    %cst_297 = arith.constant 0.000000e+00 : f32
    %341 = vector.broadcast %cst_297 : f32 to vector<1x1xf32>
    %342 = arith.cmpf ogt, %333, %341 : vector<1x1xf32>
    %343 = arith.extui %342 : vector<1x1xi1> to vector<1x1xi32>
    %344 = arith.sitofp %343 : vector<1x1xi32> to vector<1x1xf32>
    %345 = arith.mulf %340, %344 : vector<1x1xf32>
    %346 = arith.addf %312, %345 : vector<1x1xf32>
    %347 = vector.broadcast %196 : vector<36x1xf32> to vector<36x16xf32>
    %348 = arith.mulf %245, %347 : vector<36x16xf32>
    %349 = vector.broadcast %196 : vector<36x1xf32> to vector<36x16xf32>
    %350 = arith.mulf %270, %349 : vector<36x16xf32>
    %351 = arith.mulf %348, %350 : vector<36x16xf32>
    %352 = vector.shape_cast %351 : vector<36x16xf32> to vector<1x36x16xf32>
    %cst_298 = arith.constant dense<0.000000e+00> : vector<1xf32>
    %353 = vector.multi_reduction <add>, %352, %cst_298 [1, 2] : vector<1x36x16xf32> to vector<1xf32>
    %354 = vector.shape_cast %353 : vector<1xf32> to vector<1x1x1xf32>
    %355 = vector.extract %354[0, 0, 0] : f32 from vector<1x1x1xf32>
    %356 = vector.broadcast %355 : f32 to vector<1x1xf32>
    %357 = arith.addf %348, %350 : vector<36x16xf32>
    %358 = vector.shape_cast %357 : vector<36x16xf32> to vector<1x36x16xf32>
    %cst_299 = arith.constant dense<0.000000e+00> : vector<1xf32>
    %359 = vector.multi_reduction <add>, %358, %cst_299 [1, 2] : vector<1x36x16xf32> to vector<1xf32>
    %360 = vector.shape_cast %359 : vector<1xf32> to vector<1x1x1xf32>
    %361 = vector.extract %360[0, 0, 0] : f32 from vector<1x1x1xf32>
    %362 = vector.broadcast %361 : f32 to vector<1x1xf32>
    %363 = vector.shape_cast %350 : vector<36x16xf32> to vector<1x36x16xf32>
    %cst_300 = arith.constant dense<0.000000e+00> : vector<1xf32>
    %364 = vector.multi_reduction <add>, %363, %cst_300 [1, 2] : vector<1x36x16xf32> to vector<1xf32>
    %365 = vector.shape_cast %364 : vector<1xf32> to vector<1x1x1xf32>
    %366 = vector.extract %365[0, 0, 0] : f32 from vector<1x1x1xf32>
    %367 = vector.broadcast %366 : f32 to vector<1x1xf32>
    %cst_301 = arith.constant 2.000000e+00 : f32
    %368 = vector.broadcast %cst_301 : f32 to vector<1x1xf32>
    %369 = arith.mulf %368, %356 : vector<1x1xf32>
    %cst_302 = arith.constant 1.000000e-07 : f32
    %370 = vector.broadcast %cst_302 : f32 to vector<1x1xf32>
    %371 = arith.maximumf %362, %370 : vector<1x1xf32>
    %372 = arith.divf %369, %371 : vector<1x1xf32>
    %cst_303 = arith.constant 1.000000e+00 : f32
    %373 = vector.broadcast %cst_303 : f32 to vector<1x1xf32>
    %374 = arith.subf %373, %372 : vector<1x1xf32>
    %cst_304 = arith.constant 0.000000e+00 : f32
    %375 = vector.broadcast %cst_304 : f32 to vector<1x1xf32>
    %376 = arith.cmpf ogt, %367, %375 : vector<1x1xf32>
    %377 = arith.extui %376 : vector<1x1xi1> to vector<1x1xi32>
    %378 = arith.sitofp %377 : vector<1x1xi32> to vector<1x1xf32>
    %379 = arith.mulf %374, %378 : vector<1x1xf32>
    %380 = arith.addf %346, %379 : vector<1x1xf32>
    %381 = vector.broadcast %196 : vector<36x1xf32> to vector<36x16xf32>
    %382 = arith.mulf %246, %381 : vector<36x16xf32>
    %383 = vector.broadcast %196 : vector<36x1xf32> to vector<36x16xf32>
    %384 = arith.mulf %277, %383 : vector<36x16xf32>
    %385 = arith.mulf %382, %384 : vector<36x16xf32>
    %386 = vector.shape_cast %385 : vector<36x16xf32> to vector<1x36x16xf32>
    %cst_305 = arith.constant dense<0.000000e+00> : vector<1xf32>
    %387 = vector.multi_reduction <add>, %386, %cst_305 [1, 2] : vector<1x36x16xf32> to vector<1xf32>
    %388 = vector.shape_cast %387 : vector<1xf32> to vector<1x1x1xf32>
    %389 = vector.extract %388[0, 0, 0] : f32 from vector<1x1x1xf32>
    %390 = vector.broadcast %389 : f32 to vector<1x1xf32>
    %391 = arith.addf %382, %384 : vector<36x16xf32>
    %392 = vector.shape_cast %391 : vector<36x16xf32> to vector<1x36x16xf32>
    %cst_306 = arith.constant dense<0.000000e+00> : vector<1xf32>
    %393 = vector.multi_reduction <add>, %392, %cst_306 [1, 2] : vector<1x36x16xf32> to vector<1xf32>
    %394 = vector.shape_cast %393 : vector<1xf32> to vector<1x1x1xf32>
    %395 = vector.extract %394[0, 0, 0] : f32 from vector<1x1x1xf32>
    %396 = vector.broadcast %395 : f32 to vector<1x1xf32>
    %397 = vector.shape_cast %384 : vector<36x16xf32> to vector<1x36x16xf32>
    %cst_307 = arith.constant dense<0.000000e+00> : vector<1xf32>
    %398 = vector.multi_reduction <add>, %397, %cst_307 [1, 2] : vector<1x36x16xf32> to vector<1xf32>
    %399 = vector.shape_cast %398 : vector<1xf32> to vector<1x1x1xf32>
    %400 = vector.extract %399[0, 0, 0] : f32 from vector<1x1x1xf32>
    %401 = vector.broadcast %400 : f32 to vector<1x1xf32>
    %cst_308 = arith.constant 2.000000e+00 : f32
    %402 = vector.broadcast %cst_308 : f32 to vector<1x1xf32>
    %403 = arith.mulf %402, %390 : vector<1x1xf32>
    %cst_309 = arith.constant 1.000000e-07 : f32
    %404 = vector.broadcast %cst_309 : f32 to vector<1x1xf32>
    %405 = arith.maximumf %396, %404 : vector<1x1xf32>
    %406 = arith.divf %403, %405 : vector<1x1xf32>
    %cst_310 = arith.constant 1.000000e+00 : f32
    %407 = vector.broadcast %cst_310 : f32 to vector<1x1xf32>
    %408 = arith.subf %407, %406 : vector<1x1xf32>
    %cst_311 = arith.constant 0.000000e+00 : f32
    %409 = vector.broadcast %cst_311 : f32 to vector<1x1xf32>
    %410 = arith.cmpf ogt, %401, %409 : vector<1x1xf32>
    %411 = arith.extui %410 : vector<1x1xi1> to vector<1x1xi32>
    %412 = arith.sitofp %411 : vector<1x1xi32> to vector<1x1xf32>
    %413 = arith.mulf %408, %412 : vector<1x1xf32>
    %414 = arith.addf %380, %413 : vector<1x1xf32>
    %cst_312 = arith.constant 2.500000e-01 : f32
    %415 = vector.broadcast %cst_312 : f32 to vector<1x1xf32>
    %416 = arith.mulf %414, %415 : vector<1x1xf32>
    %417 = vector.shape_cast %416 : vector<1x1xf32> to vector<1x1xf32>
    %418 = vector.broadcast %417 : vector<1x1xf32> to vector<1x128xf32>
    %c0_313 = arith.constant 0 : index
    %c0_314 = arith.constant 0 : index
    %419 = vector.load %arg31[%c0_313, %c0_314] : memref<1x128xf32, #tpu.memory_space<vmem>>, vector<1x128xf32>
    tpu.vector_store %arg31[%c0_313, %c0_314], %418 {strides = array<i32>} : memref<1x128xf32, #tpu.memory_space<vmem>>, vector<1x128xf32>,
    return
  }
}

</mosaic_0001>

<bundles_post_ra>
// kernel: seg_unet_f_loss.1
= control target key start
LH: loop header
LB: loop body
LE: loop exit
PB: predicated region body
PF: predicated region fallthrough
CT: control target
= control target key end

     0   :  { %s10614_s6 = smov 1   ;;  %s10615_s10 = smov 2   ;;  %s12645_s0 = inlined_call_operand.smem [shape: u32[32], index: -1, kind: input, shape index: {}] }
   0x1   :  { %s10684_s5 = sld [smem:[%s12645_s0]]   ;;  %s10616_s14 = smov 3  }
   0x2   :  { %s10689_s9 = sld [smem:[%s12645_s0 + %s10614_s6]]   ;;  %s10617_s18 = smov 4  }
   0x3   :  { %s10694_s13 = sld [smem:[%s12645_s0 + %s10615_s10]]   ;;  %s10618_s22 = smov 5  }
   0x4   :  { %s10699_s17 = sld [smem:[%s12645_s0 + %s10616_s14]]   ;;  %s10619_s26 = smov 6  }
   0x5   :  { %s10704_s21 = sld [smem:[%s12645_s0 + %s10617_s18]]   ;;  %s10620_s30 = smov 7  }
   0x6   :  { %s10709_s25 = sld [smem:[%s12645_s0 + %s10618_s22]]   ;;  %s10621_s4 = smov 8  }
   0x7   :  { %12659 = sst [smem:[#allocation57_spill]] %s10684_s5  ;;  %s10622_s10 = smov 9  }
   0x8   :  { %12660 = sst [smem:[#allocation58_spill]] %s10689_s9  ;;  %s10623_s15 = smov 10  }
   0x9   :  { %12661 = sst [smem:[#allocation59_spill]] %s10694_s13  ;;  %s10624_s20 = smov 11  }
   0xa   :  { %s10714_s29 = sld [smem:[%s12645_s0 + %s10619_s26]]   ;;  %s10625_s26 = smov 12  }
   0xb   :  { %12662 = sst [smem:[#allocation60_spill]] %s10704_s21  ;;  %s10626_s1 = smov 13  }
   0xc   :  { %s10719_s3 = sld [smem:[%s12645_s0 + %s10620_s30]]   ;;  %s10627_s7 = smov 14  }
   0xd   :  { %s10724_s8 = sld [smem:[%s12645_s0 + %s10621_s4]]   ;;  %s10629_s22 = smov 16  }
   0xe   :  { %s10729_s14 = sld [smem:[%s12645_s0 + %s10622_s10]]   ;;  %s10630_s28 = smov 17  }
   0xf   :  { %s10734_s19 = sld [smem:[%s12645_s0 + %s10623_s15]]   ;;  %s10628_s15 = smov 15  }
  0x10   :  { %12663 = sst [smem:[#allocation61_spill]] %s10714_s29 }
  0x11   :  { %s10739_s24 = sld [smem:[%s12645_s0 + %s10624_s20]]  }
  0x12   :  { %s10744_s30 = sld [smem:[%s12645_s0 + %s10625_s26]]  }
  0x13   :  { %12664 = sst [smem:[#allocation62_spill]] %s10724_s8 }
  0x14   :  { %12665 = sst [smem:[#allocation63_spill]] %s10729_s14 }
  0x15   :  { %s10749_s6 = sld [smem:[%s12645_s0 + %s10626_s1]]  }
  0x16   :  { %s10754_s12 = sld [smem:[%s12645_s0 + %s10627_s7]]   ;;  %s10631_s7 = smov 18  }
  0x17   :  { %s10759_s20 = sld [smem:[%s12645_s0 + %s10628_s15]]   ;;  %s10632_s15 = smov 19  }
  0x18   :  { %12666 = sst [smem:[#allocation64_spill]] %s10744_s30 }
  0x19   :  { %s10764_s27 = sld [smem:[%s12645_s0 + %s10629_s22]]   ;;  %s10633_s22 = smov 20  }
  0x1a   :  { %s10769_s4 = sld [smem:[%s12645_s0 + %s10630_s28]]   ;;  %s10634_s28 = smov 21  }
  0x1b   :  { %s10779_s30 = sld [smem:[%s12645_s0 + %s10632_s15]]   ;;  %s10636_s15 = smov 23  }
  0x1c   :  { %12667 = sst [smem:[#allocation65_spill]] %s10754_s12 }
  0x1d   :  { %s10774_s12 = sld [smem:[%s12645_s0 + %s10631_s7]]   ;;  %s10635_s7 = smov 22  }
  0x1e   :  { %s10784_s14 = sld [smem:[%s12645_s0 + %s10633_s22]]   ;;  %s10637_s22 = smov 24  }
  0x1f   :  { %s10789_s8 = sld [smem:[%s12645_s0 + %s10634_s28]]   ;;  %s10638_s28 = smov 25  }
  0x20   :  { %s10794_s29 = sld [smem:[%s12645_s0 + %s10635_s7]]   ;;  %s10639_s7 = smov 26  }
  0x21   :  { %12668 = sst [smem:[#allocation66_spill]] %s10779_s30 }
  0x22   :  { %s10799_s21 = sld [smem:[%s12645_s0 + %s10636_s15]]   ;;  %s10640_s15 = smov 27  }
  0x23   :  { %s10804_s13 = sld [smem:[%s12645_s0 + %s10637_s22]]   ;;  %s10641_s22 = smov 28  }
  0x24   :  { %s10809_s5 = sld [smem:[%s12645_s0 + %s10638_s28]]   ;;  %s10642_s28 = smov 29  }
  0x25   :  { %12669 = sst [smem:[#allocation67_spill]] %s10789_s8 }
  0x26   :  { %s10814_s9 = sld [smem:[%s12645_s0 + %s10639_s7]]   ;;  %s10643_s7 = smov 30  }
  0x27   :  { %s10829_s8 = sld [smem:[%s12645_s0 + %s10642_s28]]  }
  0x28   :  { %12670 = sst [smem:[#allocation68_spill]] %s10799_s21 }
  0x29   :  { %12671 = sst [smem:[#allocation69_spill]] %s10804_s13 }
  0x2a   :  { %s10819_s21 = sld [smem:[%s12645_s0 + %s10640_s15]]   ;;  %s10644_s15 = smov 31  }
  0x2b   :  { %s10824_s13 = sld [smem:[%s12645_s0 + %s10641_s22]]  }
  0x2c   :  { %12672 = sst [smem:[#allocation70_spill]] %s10814_s9 }
  0x2d   :  { %s10834_s9 = sld [smem:[%s12645_s0 + %s10643_s7]]  }
  0x2e   :  { %s10839_s30 = sld [smem:[%s12645_s0 + %s10644_s15]]  }
  0x2f   :  { %68 = vsyncpa [#allocation12], 0 }
  0x30   :  { %69 = vsyncpa [#allocation15], 0 }
  0x31   :  { %70 = vsyncpa [#allocation18], 0 }
  0x32   :  { %71 = vsyncpa [#allocation21], 0 }
  0x33   :  { %72 = vsyncpa [#allocation24], 0 }
  0x34   :  { %73 = vsyncpa [#allocation27], 0 }
  0x35   :  { %74 = vsyncpa [#allocation30], 0 }
  0x36   :  { %75 = vsyncpa [#allocation33], 0 }
  0x37   :  { %76 = vsyncpa [#allocation36], 0 }
  0x38   :  { %77 = vsyncpa [#allocation39], 0 }
  0x39   :  { %78 = vsyncpa [#allocation42], 0 }
  0x3a   :  { %79 = vsyncpa [#allocation13], 0  ;;  %s10645_s22 = smov [#allocation14]   ;;  %s10646_s26 = smov [#allocation17]  }
  0x3b   :  { %s105_s23 = sshll.u32 %s10645_s22, 4  ;;  %s135_s0 = sshll.u32 %s10646_s26, 4  ;;  %s106_s23 = int_to_ptr.vmem [resolvable:$true] %s105_s23  ;;  %s10841_s0 = int_to_ptr.vmem [resolvable:$true] %s135_s0 }
  0x3c   :  { %s10106_s28 = scalar_lea.hbm %s10709_s25, 3072 }
  0x3d   :  { %p10107_p0 = scmp.ne.s32.totalorder %s10709_s25, %s10106_s28  ;;  %p10110_p1 = scmp.lt.u32.totalorder %s10106_s28, %s10709_s25 }
  0x3f   :  { %p10112_p2 = pnand %p10110_p1, %p10107_p0 }
  0x41   :  { %10115 = shalt.err (!%p10112_p2)
}
  0x42   :  { %s10116_s1 = scalar_lea.vmem %s106_s23, 3072  ;;  %p10121_p4 = scmp.lt.s32.totalorder %s106_s23, %s106_s23 }
  0x43   :  { %p10117_p3 = scmp.ne.s32.totalorder %s106_s23, %s10116_s1  ;;  %p10122_p5 = scmp.lt.s32.totalorder %s10116_s1, %s10116_s1 }
  0x45   :  { %p10123_p6 = por %p10122_p5, %p10121_p4 }
  0x47   :  { %p10124_p7 = pnand %p10123_p6, %p10117_p3 }
  0x49   :  { %10127 = shalt.err (!%p10124_p7)
}
  0x4a   :  { %s10647_s2 = smov 128   ;;  %s10648_s7 = smov 8  }
  0x4b   :  { %111 = dma.hbm_to_vmem [thread:$0]  %s10709_s25, 3072, %s106_s23, [#allocation15], %s10647_s2, %s10647_s2, %s10648_s7  }
  0x4c   :  { %s10128_s10 = scalar_lea.hbm %s10734_s19, 12288 }
  0x4d   :  { %p10129_p8 = scmp.ne.s32.totalorder %s10734_s19, %s10128_s10  ;;  %p10132_p9 = scmp.lt.u32.totalorder %s10128_s10, %s10734_s19 }
  0x4f   :  { %p10134_p10 = pnand %p10132_p9, %p10129_p8 }
  0x51   :  { %10137 = shalt.err (!%p10134_p10)
}
  0x52   :  { %s10138_s11 = scalar_lea.vmem %s10841_s0, 12288  ;;  %p10143_p12 = scmp.lt.s32.totalorder %s10841_s0, %s10841_s0 }
  0x53   :  { %p10139_p11 = scmp.ne.s32.totalorder %s10841_s0, %s10138_s11  ;;  %p10144_p13 = scmp.lt.s32.totalorder %s10138_s11, %s10138_s11 }
  0x55   :  { %p10145_p0 = por %p10144_p13, %p10143_p12 }
  0x57   :  { %p10146_p1 = pnand %p10145_p0, %p10139_p11 }
  0x59   :  { %10149 = shalt.err (!%p10146_p1)
}
  0x5a   :  { %141 = dma.hbm_to_vmem [thread:$0]  %s10734_s19, 12288, %s10841_s0, [#allocation18], %s10647_s2, %s10647_s2, %s10648_s7  }
  0x5b   :  { %s10649_s25 = smov [#allocation20]   ;;  %s10650_s16 = smov [#allocation23]  }
  0x5c   :  { %s161_s15 = sshll.u32 %s10649_s25, 4  ;;  %s187_s18 = sshll.u32 %s10650_s16, 4  ;;  %s162_s15 = int_to_ptr.vmem [resolvable:$true] %s161_s15  ;;  %s10862_s18 = int_to_ptr.vmem [resolvable:$true] %s187_s18 }
  0x5d   :  { %s10150_s22 = scalar_lea.hbm %s10749_s6, 2048 }
  0x5e   :  { %p10151_p2 = scmp.ne.s32.totalorder %s10749_s6, %s10150_s22  ;;  %p10154_p3 = scmp.lt.u32.totalorder %s10150_s22, %s10749_s6 }
  0x60   :  { %p10156_p4 = pnand %p10154_p3, %p10151_p2 }
  0x62   :  { %10159 = shalt.err (!%p10156_p4)
}
  0x63   :  { %s10160_s23 = scalar_lea.vmem %s162_s15, 2048  ;;  %p10165_p6 = scmp.lt.s32.totalorder %s162_s15, %s162_s15 }
  0x64   :  { %p10161_p5 = scmp.ne.s32.totalorder %s162_s15, %s10160_s23  ;;  %p10166_p7 = scmp.lt.s32.totalorder %s10160_s23, %s10160_s23 }
  0x66   :  { %p10167_p8 = por %p10166_p7, %p10165_p6 }
  0x68   :  { %p10168_p9 = pnand %p10167_p8, %p10161_p5 }
  0x6a   :  { %10171 = shalt.err (!%p10168_p9)
}
  0x6b   :  { %167 = dma.hbm_to_vmem [thread:$0]  %s10749_s6, 2048, %s162_s15, [#allocation21], %s10647_s2, %s10647_s2, %s10648_s7  }
  0x6c   :  { %s10172_s19 = scalar_lea.hbm %s10764_s27, 768 }
  0x6d   :  { %p10173_p10 = scmp.ne.s32.totalorder %s10764_s27, %s10172_s19  ;;  %p10176_p11 = scmp.lt.u32.totalorder %s10172_s19, %s10764_s27 }
  0x6f   :  { %p10178_p12 = pnand %p10176_p11, %p10173_p10 }
  0x71   :  { %10181 = shalt.err (!%p10178_p12)
}
  0x72   :  { %s10182_s26 = scalar_lea.vmem %s10862_s18, 768  ;;  %p10187_p0 = scmp.lt.s32.totalorder %s10862_s18, %s10862_s18 }
  0x73   :  { %p10183_p13 = scmp.ne.s32.totalorder %s10862_s18, %s10182_s26  ;;  %p10188_p1 = scmp.lt.s32.totalorder %s10182_s26, %s10182_s26 }
  0x75   :  { %p10189_p2 = por %p10188_p1, %p10187_p0 }
  0x77   :  { %p10190_p3 = pnand %p10189_p2, %p10183_p13 }
  0x79   :  { %10193 = shalt.err (!%p10190_p3)
}
  0x7a   :  { %193 = dma.hbm_to_vmem [thread:$0]  %s10764_s27, 768, %s10862_s18, [#allocation24], %s10647_s2, %s10647_s2, %s10648_s7  }
  0x7b   :  { %s10651_s6 = smov [#allocation26]   ;;  %s10652_s28 = smov [#allocation29]  }
  0x7c   :  { %s211_s0 = sshll.u32 %s10651_s6, 4  ;;  %s235_s1 = sshll.u32 %s10652_s28, 4  ;;  %s212_s0 = int_to_ptr.vmem [resolvable:$true] %s211_s0  ;;  %s10883_s1 = int_to_ptr.vmem [resolvable:$true] %s235_s1 }
  0x7d   :  { %s10194_s10 = scalar_lea.hbm %s10774_s12, 2048 }
  0x7e   :  { %p10195_p4 = scmp.ne.s32.totalorder %s10774_s12, %s10194_s10  ;;  %p10198_p5 = scmp.lt.u32.totalorder %s10194_s10, %s10774_s12 }
  0x80   :  { %p10200_p6 = pnand %p10198_p5, %p10195_p4 }
  0x82   :  { %10203 = shalt.err (!%p10200_p6)
}
  0x83   :  { %s10204_s11 = scalar_lea.vmem %s212_s0, 2048  ;;  %p10209_p8 = scmp.lt.s32.totalorder %s212_s0, %s212_s0 }
  0x84   :  { %p10205_p7 = scmp.ne.s32.totalorder %s212_s0, %s10204_s11  ;;  %p10210_p9 = scmp.lt.s32.totalorder %s10204_s11, %s10204_s11 }
  0x86   :  { %p10211_p10 = por %p10210_p9, %p10209_p8 }
  0x88   :  { %p10212_p11 = pnand %p10211_p10, %p10205_p7 }
  0x8a   :  { %10215 = shalt.err (!%p10212_p11)
}
  0x8b   :  { %217 = dma.hbm_to_vmem [thread:$0]  %s10774_s12, 2048, %s212_s0, [#allocation27], %s10647_s2, %s10647_s2, %s10648_s7  }
  0x8c   :  { %s10216_s27 = scalar_lea.hbm %s10784_s14, 512 }
  0x8d   :  { %p10217_p12 = scmp.ne.s32.totalorder %s10784_s14, %s10216_s27  ;;  %p10220_p13 = scmp.lt.u32.totalorder %s10216_s27, %s10784_s14 }
  0x8f   :  { %p10222_p0 = pnand %p10220_p13, %p10217_p12 }
  0x91   :  { %10225 = shalt.err (!%p10222_p0)
}
  0x92   :  { %s10226_s25 = scalar_lea.vmem %s10883_s1, 512  ;;  %p10231_p2 = scmp.lt.s32.totalorder %s10883_s1, %s10883_s1 }
  0x93   :  { %p10227_p1 = scmp.ne.s32.totalorder %s10883_s1, %s10226_s25  ;;  %p10232_p3 = scmp.lt.s32.totalorder %s10226_s25, %s10226_s25 }
  0x95   :  { %p10233_p4 = por %p10232_p3, %p10231_p2 }
  0x97   :  { %p10234_p5 = pnand %p10233_p4, %p10227_p1 }
  0x99   :  { %10237 = shalt.err (!%p10234_p5)
}
  0x9a   :  { %241 = dma.hbm_to_vmem [thread:$0]  %s10784_s14, 512, %s10883_s1, [#allocation30], %s10647_s2, %s10647_s2, %s10648_s7  }
  0x9b   :  { %s10653_s12 = smov [#allocation32]   ;;  %s10654_s16 = smov [#allocation35]  }
  0x9c   :  { %s259_s15 = sshll.u32 %s10653_s12, 4  ;;  %s285_s18 = sshll.u32 %s10654_s16, 4  ;;  %s260_s15 = int_to_ptr.vmem [resolvable:$true] %s259_s15  ;;  %s10904_s18 = int_to_ptr.vmem [resolvable:$true] %s285_s18 }
  0x9d   :  { %s10238_s22 = scalar_lea.hbm %s10794_s29, 2048 }
  0x9e   :  { %p10239_p6 = scmp.ne.s32.totalorder %s10794_s29, %s10238_s22  ;;  %p10242_p7 = scmp.lt.u32.totalorder %s10238_s22, %s10794_s29 }
  0xa0   :  { %p10244_p8 = pnand %p10242_p7, %p10239_p6 }
  0xa2   :  { %10247 = shalt.err (!%p10244_p8)
}
  0xa3   :  { %s10248_s23 = scalar_lea.vmem %s260_s15, 2048  ;;  %p10253_p10 = scmp.lt.s32.totalorder %s260_s15, %s260_s15 }
  0xa4   :  { %p10249_p9 = scmp.ne.s32.totalorder %s260_s15, %s10248_s23  ;;  %p10254_p11 = scmp.lt.s32.totalorder %s10248_s23, %s10248_s23 }
  0xa6   :  { %p10255_p12 = por %p10254_p11, %p10253_p10 }
  0xa8   :  { %p10256_p13 = pnand %p10255_p12, %p10249_p9 }
  0xaa   :  { %10259 = shalt.err (!%p10256_p13)
}
  0xab   :  { %265 = dma.hbm_to_vmem [thread:$0]  %s10794_s29, 2048, %s260_s15, [#allocation33], %s10647_s2, %s10647_s2, %s10648_s7  }
  0xac   :  { %s10260_s14 = scalar_lea.hbm %s10809_s5, 1280 }
  0xad   :  { %p10261_p0 = scmp.ne.s32.totalorder %s10809_s5, %s10260_s14  ;;  %p10264_p1 = scmp.lt.u32.totalorder %s10260_s14, %s10809_s5 }
  0xaf   :  { %p10266_p2 = pnand %p10264_p1, %p10261_p0 }
  0xb1   :  { %10269 = shalt.err (!%p10266_p2)
}
  0xb2   :  { %s10270_s19 = scalar_lea.vmem %s10904_s18, 1280  ;;  %p10275_p4 = scmp.lt.s32.totalorder %s10904_s18, %s10904_s18 }
  0xb3   :  { %p10271_p3 = scmp.ne.s32.totalorder %s10904_s18, %s10270_s19  ;;  %p10276_p5 = scmp.lt.s32.totalorder %s10270_s19, %s10270_s19 }
  0xb5   :  { %p10277_p6 = por %p10276_p5, %p10275_p4 }
  0xb7   :  { %p10278_p7 = pnand %p10277_p6, %p10271_p3 }
  0xb9   :  { %10281 = shalt.err (!%p10278_p7)
}
  0xba   :  { %291 = dma.hbm_to_vmem [thread:$0]  %s10809_s5, 1280, %s10904_s18, [#allocation36], %s10647_s2, %s10647_s2, %s10648_s7  }
  0xbb   :  { %s10655_s29 = smov [#allocation38]   ;;  %s10656_s6 = smov [#allocation41]  }
  0xbc   :  { %s309_s26 = sshll.u32 %s10655_s29, 4  ;;  %s333_s0 = sshll.u32 %s10656_s6, 4  ;;  %s310_s26 = int_to_ptr.vmem [resolvable:$true] %s309_s26  ;;  %s10925_s0 = int_to_ptr.vmem [resolvable:$true] %s333_s0 }
  0xbd   :  { %s10282_s28 = scalar_lea.hbm %s10819_s21, 1280 }
  0xbe   :  { %p10283_p8 = scmp.ne.s32.totalorder %s10819_s21, %s10282_s28  ;;  %p10286_p9 = scmp.lt.u32.totalorder %s10282_s28, %s10819_s21 }
  0xc0   :  { %p10288_p10 = pnand %p10286_p9, %p10283_p8 }
  0xc2   :  { %10291 = shalt.err (!%p10288_p10)
}
  0xc3   :  { %s10292_s1 = scalar_lea.vmem %s310_s26, 1280  ;;  %p10297_p12 = scmp.lt.s32.totalorder %s310_s26, %s310_s26 }
  0xc4   :  { %p10293_p11 = scmp.ne.s32.totalorder %s310_s26, %s10292_s1  ;;  %p10298_p13 = scmp.lt.s32.totalorder %s10292_s1, %s10292_s1 }
  0xc6   :  { %p10299_p0 = por %p10298_p13, %p10297_p12 }
  0xc8   :  { %p10300_p1 = pnand %p10299_p0, %p10293_p11 }
  0xca   :  { %10303 = shalt.err (!%p10300_p1)
}
  0xcb   :  { %315 = dma.hbm_to_vmem [thread:$0]  %s10819_s21, 1280, %s310_s26, [#allocation39], %s10647_s2, %s10647_s2, %s10648_s7  }
  0xcc   :  { %s10304_s5 = scalar_lea.hbm %s10829_s8, 512 }
  0xcd   :  { %p10305_p2 = scmp.ne.s32.totalorder %s10829_s8, %s10304_s5  ;;  %p10308_p3 = scmp.lt.u32.totalorder %s10304_s5, %s10829_s8 }
  0xcf   :  { %p10310_p4 = pnand %p10308_p3, %p10305_p2 }
  0xd1   :  { %10313 = shalt.err (!%p10310_p4)
}
  0xd2   :  { %s10314_s10 = scalar_lea.vmem %s10925_s0, 512  ;;  %p10319_p6 = scmp.lt.s32.totalorder %s10925_s0, %s10925_s0 }
  0xd3   :  { %p10315_p5 = scmp.ne.s32.totalorder %s10925_s0, %s10314_s10  ;;  %p10320_p7 = scmp.lt.s32.totalorder %s10314_s10, %s10314_s10 }
  0xd5   :  { %p10321_p8 = por %p10320_p7, %p10319_p6 }
  0xd7   :  { %p10322_p9 = pnand %p10321_p8, %p10315_p5 }
  0xd9   :  { %10325 = shalt.err (!%p10322_p9)
}
  0xda   :  { %339 = dma.hbm_to_vmem [thread:$0]  %s10829_s8, 512, %s10925_s0, [#allocation42], %s10647_s2, %s10647_s2, %s10648_s7  }
  0xdb   :  { %s10657_s21 = smov [#allocation11]   ;;  %s10658_s27 = smov [#allocation16]  }
  0xdc   :  { %s91_s11 = sshll.u32 %s10657_s21, 4  ;;  %s119_s25 = sshll.u32 %s10658_s27, 4  ;;  %s92_s11 = int_to_ptr.vmem [resolvable:$true] %s91_s11  ;;  %s10946_s25 = int_to_ptr.vmem [resolvable:$true] %s119_s25 }
  0xdd   :  { %s10326_s12 = scalar_lea.hbm %s10699_s17, 3072 }
  0xde   :  { %p10327_p10 = scmp.ne.s32.totalorder %s10699_s17, %s10326_s12  ;;  %p10330_p11 = scmp.lt.u32.totalorder %s10326_s12, %s10699_s17 }
  0xe0   :  { %p10332_p12 = pnand %p10330_p11, %p10327_p10 }
  0xe2   :  { %10335 = shalt.err (!%p10332_p12)
}
  0xe3   :  { %s10336_s15 = scalar_lea.vmem %s92_s11, 3072  ;;  %p10341_p0 = scmp.lt.s32.totalorder %s92_s11, %s92_s11 }
  0xe4   :  { %p10337_p13 = scmp.ne.s32.totalorder %s92_s11, %s10336_s15  ;;  %p10342_p1 = scmp.lt.s32.totalorder %s10336_s15, %s10336_s15 }
  0xe6   :  { %p10343_p2 = por %p10342_p1, %p10341_p0 }
  0xe8   :  { %p10344_p3 = pnand %p10343_p2, %p10337_p13 }
  0xea   :  { %10347 = shalt.err (!%p10344_p3)
}
  0xeb   :  { %97 = dma.hbm_to_vmem [thread:$0]  %s10699_s17, 3072, %s92_s11, [#allocation12], %s10647_s2, %s10647_s2, %s10648_s7  }
  0xec   :  { %s10348_s8 = scalar_lea.hbm %s10719_s3, 12288 }
  0xed   :  { %p10349_p4 = scmp.ne.s32.totalorder %s10719_s3, %s10348_s8  ;;  %p10352_p5 = scmp.lt.u32.totalorder %s10348_s8, %s10719_s3 }
  0xef   :  { %p10354_p6 = pnand %p10352_p5, %p10349_p4 }
  0xf1   :  { %10357 = shalt.err (!%p10354_p6)
}
  0xf2   :  { %s10358_s16 = scalar_lea.vmem %s10946_s25, 12288  ;;  %p10363_p8 = scmp.lt.s32.totalorder %s10946_s25, %s10946_s25 }
  0xf3   :  { %p10359_p7 = scmp.ne.s32.totalorder %s10946_s25, %s10358_s16  ;;  %p10364_p9 = scmp.lt.s32.totalorder %s10358_s16, %s10358_s16 }
  0xf5   :  { %p10365_p10 = por %p10364_p9, %p10363_p8 }
  0xf7   :  { %p10366_p11 = pnand %p10365_p10, %p10359_p7 }
  0xf9   :  { %10369 = shalt.err (!%p10366_p11)
}
  0xfa   :  { %125 = dma.hbm_to_vmem [thread:$0]  %s10719_s3, 12288, %s10946_s25, [#allocation15], %s10647_s2, %s10647_s2, %s10648_s7  }
  0xfb   :  { %s10659_s17 = smov [#allocation19]   ;;  %s10660_s22 = smov [#allocation22]  }
  0xfc   :  { %s147_s18 = sshll.u32 %s10659_s17, 4  ;;  %s175_s23 = sshll.u32 %s10660_s22, 4  ;;  %s148_s18 = int_to_ptr.vmem [resolvable:$true] %s147_s18  ;;  %s10967_s23 = int_to_ptr.vmem [resolvable:$true] %s175_s23 }
  0xfd   :  { %s10370_s14 = scalar_lea.hbm %s10739_s24, 6144 }
  0xfe   :  { %p10371_p12 = scmp.ne.s32.totalorder %s10739_s24, %s10370_s14  ;;  %p10374_p13 = scmp.lt.u32.totalorder %s10370_s14, %s10739_s24 }
 0x100   :  { %p10376_p0 = pnand %p10374_p13, %p10371_p12 }
 0x102   :  { %10379 = shalt.err (!%p10376_p0)
}
 0x103   :  { %s10380_s19 = scalar_lea.vmem %s148_s18, 6144  ;;  %p10385_p2 = scmp.lt.s32.totalorder %s148_s18, %s148_s18 }
 0x104   :  { %p10381_p1 = scmp.ne.s32.totalorder %s148_s18, %s10380_s19  ;;  %p10386_p3 = scmp.lt.s32.totalorder %s10380_s19, %s10380_s19 }
 0x106   :  { %p10387_p4 = por %p10386_p3, %p10385_p2 }
 0x108   :  { %p10388_p5 = pnand %p10387_p4, %p10381_p1 }
 0x10a   :  { %10391 = shalt.err (!%p10388_p5)
}
 0x10b   :  { %153 = dma.hbm_to_vmem [thread:$0]  %s10739_s24, 6144, %s148_s18, [#allocation18], %s10647_s2, %s10647_s2, %s10648_s7  }
 0x10c   :  { %s10392_s3 = scalar_lea.hbm %s10759_s20, 768 }
 0x10d   :  { %p10393_p6 = scmp.ne.s32.totalorder %s10759_s20, %s10392_s3  ;;  %p10396_p7 = scmp.lt.u32.totalorder %s10392_s3, %s10759_s20 }
 0x10f   :  { %p10398_p8 = pnand %p10396_p7, %p10393_p6 }
 0x111   :  { %10401 = shalt.err (!%p10398_p8)
}
 0x112   :  { %s10402_s29 = scalar_lea.vmem %s10967_s23, 768  ;;  %p10407_p10 = scmp.lt.s32.totalorder %s10967_s23, %s10967_s23 }
 0x113   :  { %p10403_p9 = scmp.ne.s32.totalorder %s10967_s23, %s10402_s29  ;;  %p10408_p11 = scmp.lt.s32.totalorder %s10402_s29, %s10402_s29 }
 0x115   :  { %p10409_p12 = por %p10408_p11, %p10407_p10 }
 0x117   :  { %p10410_p13 = pnand %p10409_p12, %p10403_p9 }
 0x119   :  { %10413 = shalt.err (!%p10410_p13)
}
 0x11a   :  { %181 = dma.hbm_to_vmem [thread:$0]  %s10759_s20, 768, %s10967_s23, [#allocation21], %s10647_s2, %s10647_s2, %s10648_s7  }
 0x11b   :  { %s10661_s24 = smov [#allocation25]   ;;  %s10662_s6 = smov [#allocation28]  }
 0x11c   :  { %s199_s26 = sshll.u32 %s10661_s24, 4  ;;  %s223_s0 = sshll.u32 %s10662_s6, 4  ;;  %s200_s26 = int_to_ptr.vmem [resolvable:$true] %s199_s26  ;;  %s10988_s0 = int_to_ptr.vmem [resolvable:$true] %s223_s0 }
 0x11d   :  { %s10414_s28 = scalar_lea.hbm %s10769_s4, 2048 }
 0x11e   :  { %p10415_p0 = scmp.ne.s32.totalorder %s10769_s4, %s10414_s28  ;;  %p10418_p1 = scmp.lt.u32.totalorder %s10414_s28, %s10769_s4 }
 0x120   :  { %p10420_p2 = pnand %p10418_p1, %p10415_p0 }
 0x122   :  { %10423 = shalt.err (!%p10420_p2)
}
 0x123   :  { %s10424_s1 = scalar_lea.vmem %s200_s26, 2048  ;;  %p10429_p4 = scmp.lt.s32.totalorder %s200_s26, %s200_s26 }
 0x124   :  { %p10425_p3 = scmp.ne.s32.totalorder %s200_s26, %s10424_s1  ;;  %p10430_p5 = scmp.lt.s32.totalorder %s10424_s1, %s10424_s1 }
 0x126   :  { %p10431_p6 = por %p10430_p5, %p10429_p4 }
 0x128   :  { %p10432_p7 = pnand %p10431_p6, %p10425_p3 }
 0x12a   :  { %10435 = shalt.err (!%p10432_p7)
}
 0x12b   :  { %s12673_s20 = sld [smem:[#allocation66_spill]] }
 0x12c   :  { %205 = dma.hbm_to_vmem [thread:$0]  %s10769_s4, 2048, %s200_s26, [#allocation24], %s10647_s2, %s10647_s2, %s10648_s7  }
 0x131   :  { %s10436_s5 = scalar_lea.hbm %s12673_s20, 512 }
 0x132   :  { %p10437_p8 = scmp.ne.s32.totalorder %s12673_s20, %s10436_s5  ;;  %p10440_p9 = scmp.lt.u32.totalorder %s10436_s5, %s12673_s20 }
 0x134   :  { %p10442_p10 = pnand %p10440_p9, %p10437_p8 }
 0x136   :  { %10445 = shalt.err (!%p10442_p10)
}
 0x137   :  { %s10446_s10 = scalar_lea.vmem %s10988_s0, 512  ;;  %p10451_p12 = scmp.lt.s32.totalorder %s10988_s0, %s10988_s0 }
 0x138   :  { %p10447_p11 = scmp.ne.s32.totalorder %s10988_s0, %s10446_s10  ;;  %p10452_p13 = scmp.lt.s32.totalorder %s10446_s10, %s10446_s10 }
 0x13a   :  { %p10453_p0 = por %p10452_p13, %p10451_p12 }
 0x13c   :  { %p10454_p1 = pnand %p10453_p0, %p10447_p11 }
 0x13e   :  { %10457 = shalt.err (!%p10454_p1)
}
 0x13f   :  { %s12674_s4 = sld [smem:[#allocation67_spill]]  ;;  %s10663_s21 = smov [#allocation31]  }
 0x140   :  { %229 = dma.hbm_to_vmem [thread:$0]  %s12673_s20, 512, %s10988_s0, [#allocation27], %s10647_s2, %s10647_s2, %s10648_s7  }
 0x141   :  { %s247_s11 = sshll.u32 %s10663_s21, 4  ;;  %s10664_s27 = smov [#allocation34]   ;;  %s248_s11 = int_to_ptr.vmem [resolvable:$true] %s247_s11 }
 0x142   :  { %s271_s25 = sshll.u32 %s10664_s27, 4  ;;  %s11009_s25 = int_to_ptr.vmem [resolvable:$true] %s271_s25 }
 0x145   :  { %s10458_s12 = scalar_lea.hbm %s12674_s4, 2048 }
 0x146   :  { %p10459_p2 = scmp.ne.s32.totalorder %s12674_s4, %s10458_s12  ;;  %p10462_p3 = scmp.lt.u32.totalorder %s10458_s12, %s12674_s4 }
 0x148   :  { %p10464_p4 = pnand %p10462_p3, %p10459_p2 }
 0x14a   :  { %10467 = shalt.err (!%p10464_p4)
}
 0x14b   :  { %s10468_s15 = scalar_lea.vmem %s248_s11, 2048  ;;  %p10473_p6 = scmp.lt.s32.totalorder %s248_s11, %s248_s11 }
 0x14c   :  { %p10469_p5 = scmp.ne.s32.totalorder %s248_s11, %s10468_s15  ;;  %p10474_p7 = scmp.lt.s32.totalorder %s10468_s15, %s10468_s15 }
 0x14e   :  { %p10475_p8 = por %p10474_p7, %p10473_p6 }
 0x150   :  { %p10476_p9 = pnand %p10475_p8, %p10469_p5 }
 0x152   :  { %10479 = shalt.err (!%p10476_p9)
}
 0x153   :  { %s12675_s8 = sld [smem:[#allocation68_spill]] }
 0x154   :  { %253 = dma.hbm_to_vmem [thread:$0]  %s12674_s4, 2048, %s248_s11, [#allocation30], %s10647_s2, %s10647_s2, %s10648_s7  }
 0x159   :  { %s10480_s16 = scalar_lea.hbm %s12675_s8, 768 }
 0x15a   :  { %p10481_p10 = scmp.ne.s32.totalorder %s12675_s8, %s10480_s16  ;;  %p10484_p11 = scmp.lt.u32.totalorder %s10480_s16, %s12675_s8 }
 0x15c   :  { %p10486_p12 = pnand %p10484_p11, %p10481_p10 }
 0x15e   :  { %10489 = shalt.err (!%p10486_p12)
}
 0x15f   :  { %s10490_s17 = scalar_lea.vmem %s11009_s25, 768  ;;  %p10495_p0 = scmp.lt.s32.totalorder %s11009_s25, %s11009_s25 }
 0x160   :  { %p10491_p13 = scmp.ne.s32.totalorder %s11009_s25, %s10490_s17  ;;  %p10496_p1 = scmp.lt.s32.totalorder %s10490_s17, %s10490_s17 }
 0x162   :  { %p10497_p2 = por %p10496_p1, %p10495_p0 }
 0x164   :  { %p10498_p3 = pnand %p10497_p2, %p10491_p13 }
 0x166   :  { %10501 = shalt.err (!%p10498_p3)
}
 0x167   :  { %s12676_s18 = sld [smem:[#allocation70_spill]]  ;;  %s10665_s22 = smov [#allocation37]  }
 0x168   :  { %277 = dma.hbm_to_vmem [thread:$0]  %s12675_s8, 768, %s11009_s25, [#allocation33], %s10647_s2, %s10647_s2, %s10648_s7  }
 0x169   :  { %s297_s23 = sshll.u32 %s10665_s22, 4  ;;  %s298_s23 = int_to_ptr.vmem [resolvable:$true] %s297_s23 }
 0x16d   :  { %s10502_s14 = scalar_lea.hbm %s12676_s18, 4096 }
 0x16e   :  { %p10503_p4 = scmp.ne.s32.totalorder %s12676_s18, %s10502_s14  ;;  %p10506_p5 = scmp.lt.u32.totalorder %s10502_s14, %s12676_s18 }
 0x170   :  { %p10508_p6 = pnand %p10506_p5, %p10503_p4 }
 0x172   :  { %10511 = shalt.err (!%p10508_p6)
}
 0x173   :  { %s10512_s19 = scalar_lea.vmem %s298_s23, 4096  ;;  %p10517_p8 = scmp.lt.s32.totalorder %s298_s23, %s298_s23 }
 0x174   :  { %p10513_p7 = scmp.ne.s32.totalorder %s298_s23, %s10512_s19  ;;  %p10518_p9 = scmp.lt.s32.totalorder %s10512_s19, %s10512_s19 }
 0x176   :  { %p10519_p10 = por %p10518_p9, %p10517_p8 }
 0x178   :  { %p10520_p11 = pnand %p10519_p10, %p10513_p7 }
 0x17a   :  { %10523 = shalt.err (!%p10520_p11)
}
 0x17b   :  { %s10666_s3 = smov 256   ;;  %s10667_s29 = smov 16  }
 0x17c   :  { %303 = dma.hbm_to_vmem [thread:$0]  %s12676_s18, 4096, %s298_s23, [#allocation36], %s10666_s3, %s10666_s3, %s10667_s29  }
 0x17d   :  { %s10668_s24 = smov [#allocation40]   ;;  %s10669_s6 = smov [#allocation43]  }
 0x17e   :  { %s321_s26 = sshll.u32 %s10668_s24, 4  ;;  %s345_s0 = sshll.u32 %s10669_s6, 4  ;;  %s322_s26 = int_to_ptr.vmem [resolvable:$true] %s321_s26  ;;  %s346_s0 = int_to_ptr.vmem [resolvable:$true] %s345_s0 }
 0x17f   :  { %s10524_s28 = scalar_lea.hbm %s10824_s13, 768 }
 0x180   :  { %p10525_p12 = scmp.ne.s32.totalorder %s10824_s13, %s10524_s28  ;;  %p10528_p13 = scmp.lt.u32.totalorder %s10524_s28, %s10824_s13 }
 0x182   :  { %p10530_p0 = pnand %p10528_p13, %p10525_p12 }
 0x184   :  { %10533 = shalt.err (!%p10530_p0)
}
 0x185   :  { %s10534_s1 = scalar_lea.vmem %s322_s26, 768  ;;  %p10539_p2 = scmp.lt.s32.totalorder %s322_s26, %s322_s26 }
 0x186   :  { %p10535_p1 = scmp.ne.s32.totalorder %s322_s26, %s10534_s1  ;;  %p10540_p3 = scmp.lt.s32.totalorder %s10534_s1, %s10534_s1 }
 0x188   :  { %p10541_p4 = por %p10540_p3, %p10539_p2 }
 0x18a   :  { %p10542_p5 = pnand %p10541_p4, %p10535_p1 }
 0x18c   :  { %10545 = shalt.err (!%p10542_p5)
}
 0x18d   :  { %327 = dma.hbm_to_vmem [thread:$0]  %s10824_s13, 768, %s322_s26, [#allocation39], %s10647_s2, %s10647_s2, %s10648_s7  }
 0x18e   :  { %s10546_s20 = scalar_lea.hbm %s10834_s9, 4096 }
 0x18f   :  { %p10547_p6 = scmp.ne.s32.totalorder %s10834_s9, %s10546_s20  ;;  %p10550_p7 = scmp.lt.u32.totalorder %s10546_s20, %s10834_s9 }
 0x191   :  { %p10552_p8 = pnand %p10550_p7, %p10547_p6 }
 0x193   :  { %10555 = shalt.err (!%p10552_p8)
}
 0x194   :  { %s10556_s5 = scalar_lea.vmem %s346_s0, 4096  ;;  %p10561_p10 = scmp.lt.s32.totalorder %s346_s0, %s346_s0 }
 0x195   :  { %p10557_p9 = scmp.ne.s32.totalorder %s346_s0, %s10556_s5  ;;  %p10562_p11 = scmp.lt.s32.totalorder %s10556_s5, %s10556_s5 }
 0x197   :  { %p10563_p12 = por %p10562_p11, %p10561_p10 }
 0x199   :  { %p10564_p13 = pnand %p10563_p12, %p10557_p9 }
 0x19b   :  { %10567 = shalt.err (!%p10564_p13)
}
 0x19c   :  { %351 = dma.hbm_to_vmem [thread:$0]  %s10834_s9, 4096, %s346_s0, [#allocation42], %s10647_s2, %s10647_s2, %s10648_s7  }
 0x19d   :  { %10590 = dma.done.wait [#allocation12], 3072  }
 0x19e   :  { %10591 = vsyncadd [#allocation12], 4294964224 }
 0x19f   :  { %10592 = dma.done.wait [#allocation15], 15360  }
 0x1a0   :  { %10593 = vsyncadd [#allocation15], 4294951936 }
 0x1a1   :  { %10594 = dma.done.wait [#allocation18], 18432  }
 0x1a2   :  { %10595 = vsyncadd [#allocation18], 4294948864 }
 0x1a3   :  { %10596 = dma.done.wait [#allocation21], 2816  }
 0x1a4   :  { %10597 = vsyncadd [#allocation21], 4294964480 }
 0x1a5   :  { %10598 = dma.done.wait [#allocation24], 2816  }
 0x1a6   :  { %10599 = vsyncadd [#allocation24], 4294964480 }
 0x1a7   :  { %10600 = dma.done.wait [#allocation27], 2560  }
 0x1a8   :  { %10601 = vsyncadd [#allocation27], 4294964736 }
 0x1a9   :  { %10602 = dma.done.wait [#allocation30], 2560  }
 0x1aa   :  { %10603 = vsyncadd [#allocation30], 4294964736 }
 0x1ab   :  { %10604 = dma.done.wait [#allocation33], 2816  }
 0x1ac   :  { %10605 = vsyncadd [#allocation33], 4294964480 }
 0x1ad   :  { %10606 = dma.done.wait [#allocation36], 5376  }
 0x1ae   :  { %10607 = vsyncadd [#allocation36], 4294961920 }
 0x1af   :  { %10608 = dma.done.wait [#allocation39], 2048  }
 0x1b0   :  { %10609 = vsyncadd [#allocation39], 4294965248 }
 0x1b1   :  { %10610 = dma.done.wait [#allocation42], 4608  }
 0x1b2   :  { %10611 = vsyncadd [#allocation42], 4294962688  ;;  %v10670_v0 = vmov 0.0|0.0   ;;  %v10671_v1 = vmov 0.0   ;;  %s12677_s9 = sld [smem:[#allocation58_spill]]  ;;  %s12678_s13 = sld [smem:[#allocation57_spill]] }
 0x1b3   :  { %9131 = vmatprep.subr.bf16.mxu0 %v10670_v0  ;;  %9956 = vmatprep.subr.bf16.mxu1 %v10670_v0  ;;  %415 = vst [vmem:[#allocation2] sm:$0xff] %v10671_v1  ;;  %416 = vst [vmem:[#allocation2 + $0x8] sm:$0xff] %v10671_v1  ;;  %vm10672_vm0 = vmmov 0   ;;  %v10673_v2 = vmov 0   ;;  %vm464_vm1 = vcmask 130048   ;;  %v11100_v16 = vld [vmem:[#allocation38 + $0x1] sm:$0xff] }
 0x1b4   :  { %417 = vst [vmem:[#allocation2 + $0x10] sm:$0xff] %v10671_v1  ;;  %418 = vst [vmem:[#allocation2 + $0x18] sm:$0xff] %v10671_v1  ;;  %7953 = vmatprep.mubr.msk.f32.mxu0 %vm10672_vm0, %v10671_v1  ;;  %7977 = vmatprep.mubr.msk.f32.mxu1 %vm10672_vm0, %v10671_v1  ;;  %v11108_v19 = vld [vmem:[#allocation38 + $0x11] sm:$0xff]  ;;  %v11112_v20 = vld [vmem:[#allocation38 + $0x9] sm:$0xff]  ;;  %vm1010_vm2 = vcmask 605184   ;;  %s12679_s2 = sld [smem:[#allocation59_spill]] }
 0x1b5   :  { %419 = vst [vmem:[#allocation2 + $0x20] sm:$0xff] %v10671_v1  ;;  %420 = vst [vmem:[#allocation2 + $0x28] sm:$0xff] %v10671_v1  ;;  %10044 = vset.pattern.permute.xlu0 %v10673_v2  ;;  %10045 = vset.pattern.permute.xlu1 %v10673_v2  ;;  %v11114_v21 = vld [vmem:[#allocation38 + $0x19] sm:$0xff]  ;;  %v11126_v24 = vld [vmem:[#allocation38 + $0x21] sm:$0xff]  ;;  %vm1029_vm3 = vcmask 1041408   ;;  %vm10674_vm4 = vmmov 1  }
 0x1b6   :  { %421 = vst [vmem:[#allocation2 + $0x30] sm:$0xff] %v10671_v1  ;;  %422 = vst [vmem:[#allocation2 + $0x38] sm:$0xff] %v10671_v1  ;;  %933 = vperm.xlu0 %10044, %v11100_v16   ;;  %943 = vperm.xlu1 %10045, %v11108_v19   ;;  %v11128_v25 = vld [vmem:[#allocation38 + $0x29] sm:$0xff]  ;;  %v11140_v28 = vld [vmem:[#allocation38 + $0x31] sm:$0xff]  ;;  %vm1481_vm6 = vcmask 523264   ;;  %vm1487_vm7 = vcmask 517120  }
 0x1b7   :  { %423 = vst [vmem:[#allocation2 + $0x40] sm:$0xff] %v10671_v1  ;;  %424 = vst [vmem:[#allocation2 + $0x48] sm:$0x3] %v10671_v1  ;;  %v11142_v29 = vld [vmem:[#allocation38 + $0x39] sm:$0xff]  ;;  %v11154_v32 = vld [vmem:[#allocation38 + $0x41] sm:$0xff]  ;;  %vm1917_vm8 = vcmask 343040  }
 0x1b8   :  { %425 = vst [vmem:[#allocation4] sm:$0xff] %v10671_v1  ;;  %426 = vst [vmem:[#allocation4 + $0x8] sm:$0xff] %v10671_v1  ;;  %v6898_v3 = vld [vmem:[%s12677_s9 + $0x10] sm:$0xff]  ;;  %v6899_v4 = vld [vmem:[%s12677_s9 + $0x18] sm:$0xff]  ;;  %s12682_s7 = sld [smem:[#allocation60_spill]]  ;;  %vm2685_vm9 = vcmask 211968  }
 0x1b9   :  { %427 = vst [vmem:[#allocation4 + $0x10] sm:$0xff] %v10671_v1  ;;  %428 = vst [vmem:[#allocation4 + $0x18] sm:$0xff] %v10671_v1  ;;  %v9132_v5 = vpack.c.bf16 %v6899_v4, %v6898_v3  ;;  %v450_v6 = vld [vmem:[%s12677_s9] sm:$0xff]  ;;  %v451_v7 = vld [vmem:[%s12677_s9 + $0x8] sm:$0xff]  ;;  %s12683_s10 = sld [smem:[#allocation61_spill]]  ;;  %s12686_s21 = sld [smem:[#allocation62_spill]] }
 0x1ba   :  { %429 = vst [vmem:[#allocation4 + $0x20] sm:$0xff] %v10671_v1  ;;  %430 = vst [vmem:[#allocation4 + $0x28] sm:$0x3] %v10671_v1  ;;  %v6918_v8 = vld [vmem:[%s12677_s9 + $0x20] sm:$0xff]  ;;  %v9135_v11 = vpack.c.bf16 %v451_v7, %v450_v6  ;;  %v6919_v12 = vld [vmem:[%s12677_s9 + $0x28] sm:$0xff]  ;;  %938 = vperm.xlu0 %10044, %v11112_v20   ;;  %948 = vperm.xlu1 %10045, %v11114_v21   ;;  %s12684_s4 = sld [smem:[#allocation69_spill]] }
 0x1bb   :  { %431 = vst [vmem:[#allocation6] sm:$0xff] %v10671_v1  ;;  %432 = vst [vmem:[#allocation6 + $0x8] sm:$0xff] %v10671_v1  ;;  %9133 = vmatpush3.bf16.msra.mxu0 %v9132_v5  ;;  %9957 = vmatpush3.bf16.msra.mxu1 %v9132_v5  ;;  %v452_v9 = vld [vmem:[%s12678_s13 + $0x1] sm:$0xff]  ;;  %v9138_v13 = vpack.c.bf16 %v6919_v12, %v6918_v8  ;;  %v453_v14 = vld [vmem:[%s12678_s13 + $0x9] sm:$0xff]  ;;  %vm3038_vm10 = vcmask 1046528   ;;  %vm3292_vm11 = vcmask 1045504  }
 0x1bc   :  { %433 = vst [vmem:[#allocation6 + $0x10] sm:$0xff] %v10671_v1  ;;  %434 = vst [vmem:[#allocation6 + $0x18] sm:$0x3] %v10671_v1  ;;  %v460_v10 = vld [vmem:[%s12678_s13 + $0x41] sm:$0xff]  ;;  %9134 = vmatprep.subr.bf16.mxu1 %v10670_v0  ;;  %9137 = vmatprep.subr.bf16.mxu0 %v10670_v0  ;;  %v454_v17 = vld [vmem:[%s12678_s13 + $0x11] sm:$0xff]  ;;  %s12687_s11 = sld [smem:[#allocation63_spill]] }
 0x1bd   :  { %435 = vst [vmem:[#allocation8] sm:$0xff] %v10671_v1  ;;  %436 = vst [vmem:[#allocation8 + $0x8] sm:$0xff] %v10671_v1  ;;  %v441_v15 = vld [vmem:[%s12678_s13] sm:$0xff]  ;;  %v442_v18 = vld [vmem:[%s12678_s13 + $0x8] sm:$0xff]  ;;  %s12688_s27 = sld [smem:[#allocation64_spill]]  ;;  %s12689_s25 = sld [smem:[#allocation65_spill]] }
 0x1be   :  { %437 = vst [vmem:[#allocation8 + $0x10] sm:$0xff] %v10671_v1  ;;  %438 = vst [vmem:[#allocation8 + $0x18] sm:$0xff] %v10671_v1  ;;  %7954 = vmatmul.mubr.msk.f32.vlgmr.msra.gmra.mrb[0].mxu0 %vm464_vm1, %v452_v9  ;;  %7978 = vmatmul.mubr.msk.f32.vlgmr.msra.gmra.mrb[0].mxu1 %vm464_vm1, %v460_v10  ;;  %v455_v22 = vld [vmem:[%s12678_s13 + $0x19] sm:$0xff]  ;;  %v443_v23 = vld [vmem:[%s12678_s13 + $0x10] sm:$0xff]  ;;  %s10675_s24 = smov [#allocation44]  }
 0x1bf   :  { %439 = vst [vmem:[#allocation8 + $0x20] sm:$0xff] %v10671_v1  ;;  %440 = vst [vmem:[#allocation8 + $0x28] sm:$0x3] %v10671_v1  ;;  %9136 = vmatpush3.bf16.msra.mxu1 %v9135_v11  ;;  %7956 = vmatprep.mubr.msk.f32.mxu0 %vm10672_vm0, %v10671_v1  ;;  %v456_v26 = vld [vmem:[%s12678_s13 + $0x21] sm:$0xff]  ;;  %v444_v27 = vld [vmem:[%s12678_s13 + $0x18] sm:$0xff]  ;;  %s6848_s26 = sshll.u32 %s10675_s24, 4  ;;  %s6849_s26 = int_to_ptr.vmem [resolvable:$true] %s6848_s26 }
 0x1c0   :  { %7984 = vmatprep.mubr.msk.f32.mxu1 %vm10672_vm0, %v10671_v1  ;;  %9139 = vmatpush3.bf16.msra.mxu0 %v9138_v13  ;;  %v457_v30 = vld [vmem:[%s12678_s13 + $0x29] sm:$0xff]  ;;  %v445_v31 = vld [vmem:[%s12678_s13 + $0x20] sm:$0xff]  ;;  %v458_v34 = vld [vmem:[%s12678_s13 + $0x31] sm:$0xff]  ;;  %s10568_s6 = scalar_lea.vmem %s6849_s26, 16  ;;  %s10572_s0 = scalar_lea.vmem %s6849_s26, 32 }
 0x1c1   :  { %953 = vperm.xlu0 %10044, %v11126_v24   ;;  %958 = vperm.xlu1 %10045, %v11128_v25   ;;  %v1867_v33 = vld [vmem:[#allocation40 + $0x1] sm:$0xff]  ;;  %v446_v35 = vld [vmem:[%s12678_s13 + $0x28] sm:$0xff]  ;;  %v447_v39 = vld [vmem:[%s12678_s13 + $0x30] sm:$0xff]  ;;  %p10569_p0 = scmp.ne.s32.totalorder %s6849_s26, %s10568_s6  ;;  %p10573_p1 = scmp.lt.s32.totalorder %s6849_s26, %s6849_s26 }
 0x1c2   :  { %7957 = vmatmul.mubr.msk.f32.gmra.mrb[2].mxu0 %vm464_vm1, %v453_v14  ;;  %7985 = vmatmul.mubr.msk.f32.vlgmr.msra.gmra.mrb[2].mxu1 %vm464_vm1, %v441_v15  ;;  %v1868_v36 = vld [vmem:[#allocation40 + $0x9] sm:$0xff]  ;;  %v1869_v37 = vld [vmem:[#allocation40 + $0x11] sm:$0xff]  ;;  %v459_v38 = vld [vmem:[%s12678_s13 + $0x39] sm:$0xff]  ;;  %p10574_p2 = scmp.lt.s32.totalorder %s10572_s0, %s10568_s6 }
 0x1c3   :  { %7959 = vmatprep.mubr.msk.f32.mxu0 %vm10672_vm0, %v10671_v1  ;;  %7987 = vmatprep.mubr.msk.f32.mxu1 %vm10672_vm0, %v10671_v1  ;;  %v1870_v40 = vld [vmem:[#allocation40 + $0x19] sm:$0xff]  ;;  %v1871_v41 = vld [vmem:[#allocation40 + $0x21] sm:$0xff]  ;;  %v739_v43 = vld [vmem:[%s12678_s13 + $0x2] sm:$0xff] }
 0x1c4   :  { %v448_v42 = vld [vmem:[%s12678_s13 + $0x38] sm:$0xff]  ;;  %v2651_v44 = vld [vmem:[#allocation41 + $0x1] sm:$0xff]  ;;  %v449_v46 = vld [vmem:[%s12678_s13 + $0x40] sm:$0xff]  ;;  %p10575_p3 = por %p10574_p2, %p10573_p1 }
 0x1c5   :  { %963 = vperm.xlu0 %10044, %v11140_v28   ;;  %968 = vperm.xlu1 %10045, %v11142_v29   ;;  %v2652_v45 = vld [vmem:[#allocation41 + $0x9] sm:$0xff]  ;;  %v2653_v48 = vld [vmem:[#allocation41 + $0x11] sm:$0xff]  ;;  %v743_v51 = vld [vmem:[%s12678_s13 + $0x22] sm:$0xff] }
 0x1c6   :  { %7960 = vmatmul.mubr.msk.f32.gmra.mrb[4].mxu0 %vm464_vm1, %v454_v17  ;;  %7988 = vmatmul.mubr.msk.f32.gmra.mrb[4].mxu1 %vm464_vm1, %v442_v18  ;;  %v740_v47 = vld [vmem:[%s12678_s13 + $0xa] sm:$0xff]  ;;  %v741_v49 = vld [vmem:[%s12678_s13 + $0x12] sm:$0xff]  ;;  %v742_v50 = vld [vmem:[%s12678_s13 + $0x1a] sm:$0xff]  ;;  %p10576_p4 = pnand %p10575_p3, %p10569_p0 }
 0x1c7   :  { %7962 = vmatprep.mubr.msk.f32.mxu0 %vm10672_vm0, %v10671_v1  ;;  %7990 = vmatprep.mubr.msk.f32.mxu1 %vm10672_vm0, %v10671_v1  ;;  %v744_v52 = vld [vmem:[%s12678_s13 + $0x2a] sm:$0xff]  ;;  %v745_v53 = vld [vmem:[%s12678_s13 + $0x32] sm:$0xff]  ;;  %v746_v54 = vld [vmem:[%s12678_s13 + $0x3a] sm:$0xff] }
 0x1c8   :  { %v747_v55 = vld [vmem:[%s12678_s13 + $0x42] sm:$0xff]  ;;  %v1254_v59 = vld [vmem:[#allocation25 + $0x8] sm:$0xff]  ;;  %v1255_v61 = vld [vmem:[#allocation25 + $0x10] sm:$0xff] }
 0x1c9   :  { %973 = vperm.xlu0 %10044, %v11154_v32   ;;  %1874 = vperm.xlu1 %10045, %v1867_v33   ;;  %v5435_v56 = vld [vmem:[#allocation38 + $0x21] sm:$0xf]  ;;  %v1256_v62 = vld [vmem:[#allocation25 + $0x18] sm:$0xff]  ;;  %vm11251_vm5 = vmpackc.low %vm1029_vm3, %vm10674_vm4 }
 0x1ca   :  { %7963 = vmatmul.mubr.msk.f32.gmra.mrb[6].mxu0 %vm464_vm1, %v455_v22  ;;  %7991 = vmatmul.mubr.msk.f32.gmra.mrb[6].mxu1 %vm464_vm1, %v443_v23  ;;  %v994_v57 = vld [vmem:[#allocation22] sm:$0xff]  ;;  %v9188_v63 = vpack.c.bf16 %v1256_v62, %v1255_v61 }
 0x1cb   :  { %7965 = vmatprep.mubr.msk.f32.mxu0 %vm10672_vm0, %v10671_v1  ;;  %7993 = vmatprep.mubr.msk.f32.mxu1 %vm10672_vm0, %v10671_v1  ;;  %v1253_v58 = vld [vmem:[#allocation25] sm:$0xff] }
 0x1cc   :  { %v9184_v60 = vpack.c.bf16 %v1254_v59, %v1253_v58 }
 0x1cd   :  { %1879 = vperm.xlu0 %10044, %v1868_v36   ;;  %1884 = vperm.xlu1 %10045, %v1869_v37  }
 0x1ce   :  { %7966 = vmatmul.mubr.msk.f32.gmra.mrb[8].mxu0 %vm464_vm1, %v456_v26  ;;  %7994 = vmatmul.mubr.msk.f32.gmra.mrb[8].mxu1 %vm464_vm1, %v444_v27 }
 0x1cf   :  { %7968 = vmatprep.mubr.msk.f32.mxu0 %vm10672_vm0, %v10671_v1  ;;  %7996 = vmatprep.mubr.msk.f32.mxu1 %vm10672_vm0, %v10671_v1 }
 0x1d0   :  { %9185 = vmatprep.subr.bf16.mxu0 %v9184_v60 }
 0x1d1   :  { %1889 = vperm.xlu0 %10044, %v1870_v40   ;;  %1894 = vperm.xlu1 %10045, %v1871_v41  }
 0x1d2   :  { %7969 = vmatmul.mubr.msk.f32.gmra.mrb[10].mxu0 %vm464_vm1, %v457_v30  ;;  %7997 = vmatmul.mubr.msk.f32.gmra.mrb[10].mxu1 %vm464_vm1, %v445_v31 }
 0x1d3   :  { %7971 = vmatprep.mubr.msk.f32.mxu0 %vm10672_vm0, %v10671_v1  ;;  %7999 = vmatprep.mubr.msk.f32.mxu1 %vm10672_vm0, %v10671_v1 }
 0x1d5   :  { %2656 = vperm.xlu0 %10044, %v2651_v44   ;;  %2661 = vperm.xlu1 %10045, %v2652_v45  }
 0x1d6   :  { %7972 = vmatmul.mubr.msk.f32.gmra.mrb[12].mxu0 %vm464_vm1, %v458_v34  ;;  %8000 = vmatmul.mubr.msk.f32.gmra.mrb[12].mxu1 %vm464_vm1, %v446_v35 }
 0x1d7   :  { %7974 = vmatprep.mubr.msk.f32.mxu0 %vm10672_vm0, %v10671_v1  ;;  %8002 = vmatprep.mubr.msk.f32.mxu1 %vm10672_vm0, %v10671_v1 }
 0x1d9   :  { %2666 = vperm.xlu0 %10044, %v2653_v48   ;;  %3794 = vperm.xlu1 %10045, %v1867_v33  }
 0x1da   :  { %7975 = vmatmul.mubr.msk.f32.gmra.mrb[14].mxu0 %vm464_vm1, %v459_v38  ;;  %8003 = vmatmul.mubr.msk.f32.gmra.mrb[14].mxu1 %vm464_vm1, %v447_v39 }
 0x1db   :  { %8005 = vmatprep.mubr.msk.f32.mxu1 %vm10672_vm0, %v10671_v1  ;;  %8015 = vmatprep.mubr.msk.f32.mxu0 %vm10672_vm0, %v10671_v1 }
 0x1dd   :  { %3799 = vperm.xlu0 %10044, %v1868_v36   ;;  %3804 = vperm.xlu1 %10045, %v1869_v37  }
 0x1de   :  { %8006 = vmatmul.mubr.msk.f32.gmra.mrb[16].mxu1 %vm464_vm1, %v448_v42  ;;  %8016 = vmatmul.mubr.msk.f32.vlgmr.msra.gmra.mrb[16].mxu0 %vm464_vm1, %v739_v43  ;;  %v11234_v43 = vld [vmem:[%s12679_s2] ss:$0 sm:$0xff] }
 0x1df   :  { %8008 = vmatprep.mubr.msk.f32.mxu1 %vm10672_vm0, %v10671_v1  ;;  %8018 = vmatprep.mubr.msk.f32.mxu0 %vm10672_vm0, %v10671_v1 }
 0x1e0   :  { %9187 = vmatpush3.bf16.msra.mxu0 %v9184_v60 }
 0x1e1   :  { %3809 = vperm.xlu0 %10044, %v1870_v40   ;;  %3814 = vperm.xlu1 %10045, %v1871_v41  }
 0x1e2   :  { %8009 = vmatmul.mubr.msk.f32.gmra.mrb[18].mxu1 %vm464_vm1, %v449_v46  ;;  %8019 = vmatmul.mubr.msk.f32.gmra.mrb[18].mxu0 %vm464_vm1, %v740_v47 }
 0x1e3   :  { %8021 = vmatprep.mubr.msk.f32.mxu0 %vm10672_vm0, %v10671_v1  ;;  %8062 = vmatprep.mubr.msk.f32.mxu1 %vm1010_vm2, %v994_v57 }
 0x1e4   :  { %9189 = vmatprep.subr.bf16.mxu0 %v9188_v63 }
 0x1e5   :  { %5237 = vperm.xlu0 %10044, %v11100_v16   ;;  %5242 = vperm.xlu1 %10045, %v11112_v20  }
 0x1e6   :  { %8022 = vmatmul.mubr.msk.f32.gmra.mrb[20].mxu0 %vm464_vm1, %v741_v49 }
 0x1e7   :  { %8024 = vmatprep.mubr.msk.f32.mxu0 %vm10672_vm0, %v10671_v1  ;;  %9191 = vmatpush3.bf16.msra.mxu0 %v9188_v63 }
 0x1e9   :  { %5247 = vperm.xlu0 %10044, %v11108_v19   ;;  %5252 = vperm.xlu1 %10045, %v11114_v21  }
 0x1ea   :  { %8025 = vmatmul.mubr.msk.f32.gmra.mrb[22].mxu0 %vm464_vm1, %v742_v50 }
 0x1eb   :  { %8027 = vmatprep.mubr.msk.f32.mxu0 %vm10672_vm0, %v10671_v1 }
 0x1ed   :  { %5257 = vperm.xlu0 %10044, %v11126_v24   ;;  %5262 = vperm.xlu1 %10045, %v11128_v25  }
 0x1ee   :  { %8028 = vmatmul.mubr.msk.f32.gmra.mrb[24].mxu0 %vm464_vm1, %v743_v51 }
 0x1ef   :  { %8030 = vmatprep.mubr.msk.f32.mxu0 %vm10672_vm0, %v10671_v1 }
 0x1f1   :  { %5267 = vperm.xlu0 %10044, %v11140_v28   ;;  %5272 = vperm.xlu1 %10045, %v11142_v29  }
 0x1f2   :  { %8031 = vmatmul.mubr.msk.f32.gmra.mrb[26].mxu0 %vm464_vm1, %v744_v52 }
 0x1f3   :  { %8033 = vmatprep.mubr.msk.f32.mxu0 %vm10672_vm0, %v10671_v1 }
 0x1f5   :  { %5277 = vperm.xlu0 %10044, %v11154_v32   ;;  %6468 = vperm.xlu1 %10045, %v11100_v16  }
 0x1f6   :  { %8034 = vmatmul.mubr.msk.f32.gmra.mrb[28].mxu0 %vm464_vm1, %v745_v53 }
 0x1f7   :  { %8036 = vmatprep.mubr.msk.f32.mxu0 %vm10672_vm0, %v10671_v1 }
 0x1f9   :  { %6473 = vperm.xlu0 %10044, %v11112_v20   ;;  %6478 = vperm.xlu1 %10045, %v11108_v19  }
 0x1fa   :  { %8037 = vmatmul.mubr.msk.f32.gmra.mrb[30].mxu0 %vm464_vm1, %v746_v54 }
 0x1fb   :  { %8039 = vmatprep.mubr.msk.f32.mxu0 %vm10672_vm0, %v10671_v1 }
 0x1fd   :  { %6483 = vperm.xlu0 %10044, %v11114_v21   ;;  %6488 = vperm.xlu1 %10045, %v5435_v56  }
 0x1fe   :  { %8040 = vmatmul.mubr.msk.f32.gmra.mrb[32].mxu0 %vm464_vm1, %v747_v55 }
 0x235   :  { %v934_v48 = vpop.permute.xlu0 %933 }
 0x239   :  { %v939_v63 = vpop.permute.xlu0 %938 }
 0x291   :  { %v558_v2 = vpop.f32.mrb[0].mxu0  ;;  %v598_v3 = vpop.f32.mrb[0].mxu1 }
 0x292   :  { %v7955_v4 = vpop.f32.mrb[1].mxu0  ;;  %v7979_v5 = vpop.f32.mrb[1].mxu1 }
 0x293   :  { %v944_v5 = vpop.permute.xlu1 %943 }
 0x295   :  { %v563_v6 = vpop.f32.mrb[2].mxu0  ;;  %v695_v7 = vpop.f32.mrb[2].mxu1 }
 0x296   :  { %v696_v8 = vadd.f32 %v695_v7, %v558_v2  ;;  %v7958_v9 = vpop.f32.mrb[3].mxu0  ;;  %v7986_v10 = vpop.f32.mrb[3].mxu1 }
 0x299   :  { %v568_v11 = vpop.f32.mrb[4].mxu0  ;;  %v700_v12 = vpop.f32.mrb[4].mxu1 }
 0x29a   :  { %v701_v13 = vadd.f32 %v700_v12, %v563_v6  ;;  %v7961_v14 = vpop.f32.mrb[5].mxu0  ;;  %v7989_v15 = vpop.f32.mrb[5].mxu1 }
 0x29b   :  { %v949_v15 = vpop.permute.xlu1 %948 }
 0x29d   :  { %v573_v16 = vpop.f32.mrb[6].mxu0  ;;  %v705_v17 = vpop.f32.mrb[6].mxu1 }
 0x29e   :  { %v706_v18 = vadd.f32 %v705_v17, %v568_v11  ;;  %v7964_v19 = vpop.f32.mrb[7].mxu0  ;;  %v7992_v20 = vpop.f32.mrb[7].mxu1 }
 0x2a1   :  { %v578_v21 = vpop.f32.mrb[8].mxu0  ;;  %v710_v22 = vpop.f32.mrb[8].mxu1 }
 0x2a2   :  { %v711_v23 = vadd.f32 %v710_v22, %v573_v16  ;;  %v7967_v24 = vpop.f32.mrb[9].mxu0  ;;  %v7995_v25 = vpop.f32.mrb[9].mxu1 }
 0x2a3   :  { %v954_v25 = vpop.permute.xlu0 %953 }
 0x2a5   :  { %v583_v26 = vpop.f32.mrb[10].mxu0  ;;  %v715_v27 = vpop.f32.mrb[10].mxu1 }
 0x2a6   :  { %v716_v28 = vadd.f32 %v715_v27, %v578_v21  ;;  %v7970_v29 = vpop.f32.mrb[11].mxu0  ;;  %v7998_v30 = vpop.f32.mrb[11].mxu1 }
 0x2a9   :  { %v588_v31 = vpop.f32.mrb[12].mxu0  ;;  %v720_v32 = vpop.f32.mrb[12].mxu1 }
 0x2aa   :  { %v721_v33 = vadd.f32 %v720_v32, %v583_v26  ;;  %v7973_v34 = vpop.f32.mrb[13].mxu0  ;;  %v8001_v35 = vpop.f32.mrb[13].mxu1 }
 0x2ab   :  { %v959_v32 = vpop.permute.xlu1 %958 }
 0x2ad   :  { %v593_v36 = vpop.f32.mrb[14].mxu0  ;;  %v725_v37 = vpop.f32.mrb[14].mxu1 }
 0x2ae   :  { %v726_v38 = vadd.f32 %v725_v37, %v588_v31  ;;  %v7976_v39 = vpop.f32.mrb[15].mxu0  ;;  %v8004_v40 = vpop.f32.mrb[15].mxu1 }
 0x2b1   :  { %v730_v41 = vpop.f32.mrb[16].mxu1  ;;  %v844_v42 = vpop.f32.mrb[16].mxu0 }
 0x2b2   :  { %v11236_v44 = vadd.f32 %v730_v41, %v593_v36  ;;  %v888_v45 = vadd.f32 %v844_v42, %v696_v8  ;;  %v8017_v46 = vpop.f32.mrb[17].mxu0  ;;  %v8007_v47 = vpop.f32.mrb[17].mxu1 }
 0x2b4   :  { %v904_v49 = vadd.f32 %v11234_v43, %v888_v45  ;;  %v964_v45 = vpop.permute.xlu0 %963 }
 0x2b5   :  { %v735_v50 = vpop.f32.mrb[18].mxu1  ;;  %v849_v51 = vpop.f32.mrb[18].mxu0 }
 0x2b6   :  { %v913_v52 = vmax.f32 %v904_v49, 0.0  ;;  %v11239_v53 = vadd.f32 %v735_v50, %v598_v3  ;;  %v889_v54 = vadd.f32 %v849_v51, %v701_v13  ;;  %v8020_v55 = vpop.f32.mrb[19].mxu0  ;;  %v8010_v56 = vpop.f32.mrb[19].mxu1 }
 0x2b7   :  { %v969_v51 = vpop.permute.xlu1 %968 }
 0x2b8   :  { %v976_v57 = vmul.f32 %v934_v48, %v913_v52  ;;  %v905_v58 = vadd.f32 %v11234_v43, %v889_v54 }
 0x2b9   :  { %v854_v59 = vpop.f32.mrb[20].mxu0 }
 0x2ba   :  { %985 = vst [vmem:[#allocation2 + $0x1] sm:$0xff] %v976_v57  ;;  %v914_v60 = vmax.f32 %v905_v58, 0.0  ;;  %v890_v61 = vadd.f32 %v854_v59, %v706_v18  ;;  %v8023_v62 = vpop.f32.mrb[21].mxu0  ;;  %v974_v58 = vpop.permute.xlu0 %973 }
 0x2bc   :  { %v977_v2 = vmul.f32 %v939_v63, %v914_v60  ;;  %v906_v4 = vadd.f32 %v11234_v43, %v890_v61 }
 0x2bd   :  { %v859_v6 = vpop.f32.mrb[22].mxu0 }
 0x2be   :  { %986 = vst [vmem:[#allocation2 + $0x9] sm:$0xff] %v977_v2  ;;  %v915_v3 = vmax.f32 %v906_v4, 0.0  ;;  %v891_v7 = vadd.f32 %v859_v6, %v711_v23  ;;  %v8026_v8 = vpop.f32.mrb[23].mxu0  ;;  %v995_v4 = vld [vmem:[#allocation22 + $0x8] sm:$0xff]  ;;  %v997_v6 = vld [vmem:[#allocation22 + $0x18] sm:$0xff] }
 0x2bf   :  { %v1128_v8 = vld [vmem:[#allocation23] sm:$0xff] }
 0x2c0   :  { %v978_v9 = vmul.f32 %v944_v5, %v915_v3  ;;  %v907_v10 = vadd.f32 %v11234_v43, %v891_v7  ;;  %v996_v5 = vld [vmem:[#allocation22 + $0x10] sm:$0xff]  ;;  %v998_v3 = vld [vmem:[#allocation22 + $0x20] sm:$0xff]  ;;  %v999_v7 = vld [vmem:[#allocation22 + $0x28] sm:$0x3] }
 0x2c1   :  { %v864_v11 = vpop.f32.mrb[24].mxu0  ;;  %v1000_v19 = vld [vmem:[#allocation2] sm:$0xff] }
 0x2c2   :  { %987 = vst [vmem:[#allocation2 + $0x11] sm:$0xff] %v978_v9  ;;  %v916_v12 = vmax.f32 %v907_v10, 0.0  ;;  %v892_v13 = vadd.f32 %v864_v11, %v716_v28  ;;  %v8029_v14 = vpop.f32.mrb[25].mxu0  ;;  %v1364_v9 = vld [vmem:[#allocation26] sm:$0xff]  ;;  %v1365_v10 = vld [vmem:[#allocation26 + $0x8] sm:$0xff] }
 0x2c3   :  { %v9216_v11 = vpack.c.bf16 %v1365_v10, %v1364_v9  ;;  %v1129_v14 = vld [vmem:[#allocation23 + $0x8] sm:$0xff] }
 0x2c4   :  { %v979_v16 = vmul.f32 %v949_v15, %v916_v12  ;;  %v908_v17 = vadd.f32 %v11234_v43, %v892_v13  ;;  %v1366_v12 = vld [vmem:[#allocation26 + $0x10] sm:$0xff]  ;;  %v1367_v13 = vld [vmem:[#allocation26 + $0x18] sm:$0xff]  ;;  %v1130_v15 = vld [vmem:[#allocation23 + $0x10] sm:$0xff] }
 0x2c5   :  { %v869_v18 = vpop.f32.mrb[26].mxu0  ;;  %v1001_v20 = vld [vmem:[#allocation2 + $0x8] sm:$0xff] }
 0x2c6   :  { %988 = vst [vmem:[#allocation2 + $0x19] sm:$0xff] %v979_v16  ;;  %v917_v21 = vmax.f32 %v908_v17, 0.0  ;;  %v893_v22 = vadd.f32 %v869_v18, %v721_v33  ;;  %v8032_v23 = vpop.f32.mrb[27].mxu0  ;;  %v9140_v24 = vpack.c.bf16 %v1001_v20, %v1000_v19  ;;  %v9220_v16 = vpack.c.bf16 %v1367_v13, %v1366_v12  ;;  %v1131_v17 = vld [vmem:[#allocation23 + $0x18] sm:$0xff]  ;;  %v1132_v18 = vld [vmem:[#allocation23 + $0x20] sm:$0xff]  ;;  %v1257_v20 = vld [vmem:[#allocation25 + $0x20] sm:$0xff] }
 0x2c7   :  { %v1133_v19 = vld [vmem:[#allocation23 + $0x28] sm:$0x3] }
 0x2c8   :  { %v980_v26 = vmul.f32 %v954_v25, %v917_v21  ;;  %v909_v27 = vadd.f32 %v11234_v43, %v893_v22  ;;  %9141 = vmatprep.subr.bf16.mxu1 %v9140_v24  ;;  %v1258_v21 = vld [vmem:[#allocation25 + $0x28] sm:$0xff]  ;;  %v1368_v22 = vld [vmem:[#allocation26 + $0x20] sm:$0xff] }
 0x2c9   :  { %v874_v29 = vpop.f32.mrb[28].mxu0  ;;  %9143 = vmatpush3.bf16.msra.mxu1 %v9140_v24  ;;  %v1002_v37 = vld [vmem:[#allocation2 + $0x10] sm:$0xff]  ;;  %v9192_v23 = vpack.c.bf16 %v1258_v21, %v1257_v20  ;;  %v1511_v20 = vld [vmem:[#allocation11 + $0x58] sm:$0xff]  ;;  %v1496_v21 = vld [vmem:[#allocation11 + $0x10] sm:$0xff] }
 0x2ca   :  { %989 = vst [vmem:[#allocation2 + $0x21] sm:$0xff] %v980_v26  ;;  %v918_v28 = vmax.f32 %v909_v27, 0.0  ;;  %v894_v30 = vadd.f32 %v874_v29, %v726_v38  ;;  %v8035_v31 = vpop.f32.mrb[29].mxu0  ;;  %v1259_v26 = vld [vmem:[#allocation25 + $0x30] sm:$0xff]  ;;  %v1260_v27 = vld [vmem:[#allocation25 + $0x38] sm:$0xff] }
 0x2cb   :  { %9193 = vmatprep.subr.bf16.mxu0 %v9192_v23  ;;  %v1370_v29 = vld [vmem:[#allocation26 + $0x30] sm:$0xff]  ;;  %v1261_v31 = vld [vmem:[#allocation25 + $0x40] sm:$0xff] }
 0x2cc   :  { %v981_v34 = vmul.f32 %v959_v32, %v918_v28  ;;  %v910_v35 = vadd.f32 %v11234_v43, %v894_v30  ;;  %9195 = vmatpush3.bf16.msra.mxu0 %v9192_v23  ;;  %v9196_v28 = vpack.c.bf16 %v1260_v27, %v1259_v26  ;;  %v1371_v30 = vld [vmem:[#allocation26 + $0x38] sm:$0xff]  ;;  %v1262_v32 = vld [vmem:[#allocation25 + $0x48] sm:$0xff]  ;;  %v1498_v27 = vld [vmem:[#allocation11 + $0x20] sm:$0xff] }
 0x2cd   :  { %v879_v36 = vpop.f32.mrb[30].mxu0  ;;  %v1003_v33 = vld [vmem:[#allocation2 + $0x18] sm:$0xff]  ;;  %v1497_v23 = vld [vmem:[#allocation11 + $0x18] sm:$0xff]  ;;  %v1513_v26 = vld [vmem:[#allocation11 + $0x68] sm:$0xff] }
 0x2ce   :  { %990 = vst [vmem:[#allocation2 + $0x29] sm:$0xff] %v981_v34  ;;  %v919_v39 = vmax.f32 %v910_v35, 0.0  ;;  %v895_v40 = vadd.f32 %v879_v36, %v11236_v44  ;;  %v8038_v41 = vpop.f32.mrb[31].mxu0  ;;  %v9144_v42 = vpack.c.bf16 %v1003_v33, %v1002_v37  ;;  %v9228_v34 = vpack.c.bf16 %v1371_v30, %v1370_v29  ;;  %v1372_v36 = vld [vmem:[#allocation26 + $0x40] sm:$0xff]  ;;  %v1373_v37 = vld [vmem:[#allocation26 + $0x48] sm:$0xff]  ;;  %9197 = vmatprep.subr.bf16.mxu0 %v9196_v28 }
 0x2cf   :  { %v9200_v35 = vpack.c.bf16 %v1262_v32, %v1261_v31  ;;  %v9232_v33 = vpack.c.bf16 %v1373_v37, %v1372_v36  ;;  %v1374_v41 = vld [vmem:[#allocation26 + $0x50] sm:$0xff]  ;;  %v1515_v31 = vld [vmem:[#allocation11 + $0x78] sm:$0xff] }
 0x2d0   :  { %v982_v46 = vmul.f32 %v964_v45, %v919_v39  ;;  %v911_v47 = vadd.f32 %v11234_v43, %v895_v40  ;;  %9145 = vmatprep.subr.bf16.mxu1 %v9144_v42  ;;  %v1263_v39 = vld [vmem:[#allocation25 + $0x50] sm:$0xff]  ;;  %v1264_v40 = vld [vmem:[#allocation25 + $0x58] sm:$0xff]  ;;  %9199 = vmatpush3.bf16.msra.mxu0 %v9196_v28  ;;  %v1499_v28 = vld [vmem:[#allocation11 + $0x28] sm:$0xff] }
 0x2d1   :  { %v884_v38 = vpop.f32.mrb[32].mxu0  ;;  %9147 = vmatpush3.bf16.msra.mxu1 %v9144_v42  ;;  %v1004_v55 = vld [vmem:[#allocation2 + $0x20] sm:$0xff]  ;;  %9201 = vmatprep.subr.bf16.mxu0 %v9200_v35  ;;  %v9204_v45 = vpack.c.bf16 %v1264_v40, %v1263_v39  ;;  %v9267_v30 = vpack.c.bf16 %v1499_v28, %v1498_v27  ;;  %v1500_v32 = vld [vmem:[#allocation11 + $0x30] sm:$0xff] }
 0x2d2   :  { %991 = vst [vmem:[#allocation2 + $0x31] sm:$0xff] %v982_v46  ;;  %v920_v48 = vmax.f32 %v911_v47, 0.0  ;;  %v896_v49 = vadd.f32 %v884_v38, %v11239_v53  ;;  %v8041_v50 = vpop.f32.mrb[33].mxu0  ;;  %v1265_v47 = vld [vmem:[#allocation25 + $0x60] sm:$0xff]  ;;  %v1266_v38 = vld [vmem:[#allocation25 + $0x68] sm:$0xff] }
 0x2d3   :  { %v9208_v50 = vpack.c.bf16 %v1266_v38, %v1265_v47 }
 0x2d4   :  { %v983_v52 = vmul.f32 %v969_v51, %v920_v48  ;;  %v912_v54 = vadd.f32 %v11234_v43, %v896_v49  ;;  %v1376_v48 = vld [vmem:[#allocation26 + $0x60] sm:$0xff]  ;;  %9203 = vmatpush3.bf16.msra.mxu0 %v9200_v35  ;;  %v1377_v49 = vld [vmem:[#allocation26 + $0x68] sm:$0xff]  ;;  %v1501_v35 = vld [vmem:[#allocation11 + $0x38] sm:$0xff] }
 0x2d5   :  { %v1005_v44 = vld [vmem:[#allocation2 + $0x28] sm:$0xff]  ;;  %9205 = vmatprep.subr.bf16.mxu0 %v9204_v45  ;;  %v9240_v51 = vpack.c.bf16 %v1377_v49, %v1376_v48  ;;  %v9270_v36 = vpack.c.bf16 %v1501_v35, %v1500_v32 }
 0x2d6   :  { %992 = vst [vmem:[#allocation2 + $0x39] sm:$0xff] %v983_v52  ;;  %v921_v56 = vmax.f32 %v912_v54, 0.0  ;;  %v9148_v57 = vpack.c.bf16 %v1005_v44, %v1004_v55  ;;  %v1267_v52 = vld [vmem:[#allocation25 + $0x70] sm:$0xff]  ;;  %v1268_v54 = vld [vmem:[#allocation25 + $0x78] sm:$0xff] }
 0x2d7   :  { %v1378_v55 = vld [vmem:[#allocation26 + $0x70] sm:$0xff]  ;;  %v9212_v44 = vpack.c.bf16 %v1268_v54, %v1267_v52 }
 0x2d8   :  { %v984_v59 = vmul.f32 %v974_v58, %v921_v56  ;;  %9149 = vmatprep.subr.bf16.mxu1 %v9148_v57  ;;  %9207 = vmatpush3.bf16.msra.mxu0 %v9204_v45  ;;  %v1379_v56 = vld [vmem:[#allocation26 + $0x78] sm:$0xff] }
 0x2d9   :  { %9151 = vmatpush3.bf16.msra.mxu1 %v9148_v57  ;;  %v1006_v60 = vld [vmem:[#allocation2 + $0x30] sm:$0xff]  ;;  %9209 = vmatprep.subr.bf16.mxu0 %v9208_v50 }
 0x2da   :  { %993 = vst [vmem:[#allocation2 + $0x41] sm:$0xff] %v984_v59 }
 0x2dc   :  { %9211 = vmatpush3.bf16.msra.mxu0 %v9208_v50  ;;  %v1732_v50 = vld [vmem:[#allocation11 + $0x80] sm:$0xff] }
 0x2dd   :  { %v1007_v61 = vld [vmem:[#allocation2 + $0x38] sm:$0xff]  ;;  %9213 = vmatprep.subr.bf16.mxu0 %v9212_v44 }
 0x2de   :  { %v9152_v62 = vpack.c.bf16 %v1007_v61, %v1006_v60 }
 0x2e0   :  { %9153 = vmatprep.subr.bf16.mxu1 %v9152_v62  ;;  %9215 = vmatpush3.bf16.msra.mxu0 %v9212_v44 }
 0x2e1   :  { %9155 = vmatpush3.bf16.msra.mxu1 %v9152_v62  ;;  %v1008_v53 = vld [vmem:[#allocation2 + $0x40] sm:$0xff]  ;;  %v1009_v63 = vld [vmem:[#allocation2 + $0x48] sm:$0x3]  ;;  %9248 = vmatprep.subr.bf16.mxu0 %v10670_v0 }
 0x2e2   :  { %v9156_v2 = vpack.c.bf16 %v1009_v63, %v1008_v53  ;;  %v1508_v63 = vld [vmem:[#allocation11 + $0x40] sm:$0xff] }
 0x2e4   :  { %9158 = vmatprep.subr.msk.bf16.mxu1 %vm11251_vm5, %v9156_v2 }
 0x2e5   :  { %9161 = vmatpush3.bf16.msk.msra.mxu1 %vm11251_vm5, %v9156_v2 }
 0x2e6   :  { %9163 = vmatprep.subr.bf16.mxu1 %v9140_v24 }
 0x2e8   :  { %8063 = vmatmul.mubr.msk.f32.vlgmr.msra.gmra.mrb[20].mxu1 %vm1010_vm2, %v995_v4  ;;  %v1494_v4 = vld [vmem:[#allocation11] sm:$0xff] }
 0x2e9   :  { %9165 = vmatpush3.bf16.msra.mxu1 %v9140_v24  ;;  %8065 = vmatprep.mubr.msk.f32.mxu1 %vm1010_vm2, %v996_v5  ;;  %v1369_v24 = vld [vmem:[#allocation26 + $0x28] sm:$0xff] }
 0x2ea   :  { %9167 = vmatprep.subr.bf16.mxu1 %v9144_v42  ;;  %v9224_v25 = vpack.c.bf16 %v1369_v24, %v1368_v22  ;;  %v1495_v5 = vld [vmem:[#allocation11 + $0x8] sm:$0xff]  ;;  %v9264_v24 = vpack.c.bf16 %v1497_v23, %v1496_v21  ;;  %v1907_v21 = vld [vmem:[#allocation28] sm:$0xff] }
 0x2eb   :  { %v9261_v10 = vpack.c.bf16 %v1495_v5, %v1494_v4 }
 0x2ec   :  { %8066 = vmatmul.mubr.msk.f32.gmra.mrb[22].mxu1 %vm1010_vm2, %v997_v6 }
 0x2ed   :  { %9169 = vmatpush3.bf16.msra.mxu1 %v9144_v42  ;;  %8068 = vmatprep.mubr.msk.f32.mxu1 %vm1010_vm2, %v998_v3  ;;  %v1375_v42 = vld [vmem:[#allocation26 + $0x58] sm:$0xff] }
 0x2ee   :  { %9171 = vmatprep.subr.bf16.mxu1 %v9148_v57  ;;  %v9236_v46 = vpack.c.bf16 %v1375_v42, %v1374_v41 }
 0x2f0   :  { %8069 = vmatmul.mubr.msk.f32.gmra.mrb[24].mxu1 %vm1010_vm2, %v999_v7 }
 0x2f1   :  { %9173 = vmatpush3.bf16.msra.mxu1 %v9148_v57  ;;  %8091 = vmatprep.mubr.msk.f32.mxu1 %vm1010_vm2, %v1128_v8  ;;  %v9244_v57 = vpack.c.bf16 %v1379_v56, %v1378_v55 }
 0x2f2   :  { %9175 = vmatprep.subr.bf16.mxu1 %v9152_v62 }
 0x2f5   :  { %9177 = vmatpush3.bf16.msra.mxu1 %v9152_v62 }
 0x2f6   :  { %9180 = vmatprep.subr.msk.bf16.mxu1 %vm11251_vm5, %v9156_v2 }
 0x2f9   :  { %9183 = vmatpush3.bf16.msk.msra.mxu1 %vm11251_vm5, %v9156_v2  ;;  %v1509_v2 = vld [vmem:[#allocation11 + $0x48] sm:$0xff] }
 0x2fa   :  { %9217 = vmatprep.subr.bf16.mxu1 %v9216_v11  ;;  %v9249_v9 = vpack.c.bf16 %v1509_v2, %v1508_v63  ;;  %v1736_v2 = vld [vmem:[#allocation11 + $0xa0] sm:$0xff] }
 0x2fc   :  { %8092 = vmatmul.mubr.msk.f32.vlgmr.msra.gmra.mrb[26].mxu1 %vm1010_vm2, %v1129_v14 }
 0x2fd   :  { %8094 = vmatprep.mubr.msk.f32.mxu1 %vm1010_vm2, %v1130_v15  ;;  %9219 = vmatpush3.bf16.msra.mxu1 %v9216_v11 }
 0x2fe   :  { %9221 = vmatprep.subr.bf16.mxu1 %v9220_v16 }
 0x300   :  { %8095 = vmatmul.mubr.msk.f32.gmra.mrb[28].mxu1 %vm1010_vm2, %v1131_v17 }
 0x301   :  { %8097 = vmatprep.mubr.msk.f32.mxu1 %vm1010_vm2, %v1132_v18  ;;  %9223 = vmatpush3.bf16.msra.mxu1 %v9220_v16 }
 0x302   :  { %9225 = vmatprep.subr.bf16.mxu1 %v9224_v25 }
 0x304   :  { %8098 = vmatmul.mubr.msk.f32.gmra.mrb[30].mxu1 %vm1010_vm2, %v1133_v19  ;;  %v1510_v19 = vld [vmem:[#allocation11 + $0x50] sm:$0xff] }
 0x305   :  { %9227 = vmatpush3.bf16.msra.mxu1 %v9224_v25  ;;  %v9252_v22 = vpack.c.bf16 %v1511_v20, %v1510_v19  ;;  %v1512_v25 = vld [vmem:[#allocation11 + $0x60] sm:$0xff] }
 0x306   :  { %9229 = vmatprep.subr.bf16.mxu1 %v9228_v34  ;;  %v9255_v29 = vpack.c.bf16 %v1513_v26, %v1512_v25 }
 0x309   :  { %9231 = vmatpush3.bf16.msra.mxu1 %v9228_v34 }
 0x30a   :  { %9233 = vmatprep.subr.bf16.mxu1 %v9232_v33 }
 0x30d   :  { %9235 = vmatpush3.bf16.msra.mxu1 %v9232_v33 }
 0x30e   :  { %9237 = vmatprep.subr.bf16.mxu1 %v9236_v46 }
 0x311   :  { %9239 = vmatpush3.bf16.msra.mxu1 %v9236_v46 }
 0x312   :  { %9241 = vmatprep.subr.bf16.mxu1 %v9240_v51 }
 0x315   :  { %9243 = vmatpush3.bf16.msra.mxu1 %v9240_v51  ;;  %v1733_v51 = vld [vmem:[#allocation11 + $0x88] sm:$0xff] }
 0x316   :  { %9245 = vmatprep.subr.bf16.mxu1 %v9244_v57 }
 0x319   :  { %9247 = vmatpush3.bf16.msra.mxu1 %v9244_v57 }
 0x31a   :  { %9260 = vmatprep.subr.bf16.mxu1 %v10670_v0 }
 0x3bb   :  { %v8064_v58 = vpop.f32.mrb[20].mxu1 }
 0x3bc   :  { %v1099_v59 = vpop.f32.mrb[21].mxu1 }
 0x3bf   :  { %v8067_v60 = vpop.f32.mrb[22].mxu1 }
 0x3c0   :  { %v1109_v61 = vpop.f32.mrb[23].mxu1 }
 0x3c3   :  { %v8070_v62 = vpop.f32.mrb[24].mxu1 }
 0x3c4   :  { %v1119_v53 = vpop.f32.mrb[25].mxu1 }
 0x3cf   :  { %v8093_v6 = vpop.f32.mrb[26].mxu1 }
 0x3d0   :  { %v1248_v3 = vmax.f32 %v8064_v58, %v8093_v6  ;;  %v1218_v7 = vpop.f32.mrb[27].mxu1  ;;  %v9273_v58 = vpack.c.bf16 %v1733_v51, %v1732_v50  ;;  %v1737_v6 = vld [vmem:[#allocation11 + $0xa8] sm:$0xff]  ;;  %v6959_v50 = vld [vmem:[%s12682_s7] ss:$0 sm:$0xff] }
 0x3d1   :  { %v1247_v8 = vmax.f32 %v1099_v59, %v1218_v7  ;;  %v1734_v59 = vld [vmem:[#allocation11 + $0x90] sm:$0xff] }
 0x3d2   :  { %v1738_v7 = vld [vmem:[#allocation11 + $0xb0] sm:$0xff] }
 0x3d3   :  { %v8096_v11 = vpop.f32.mrb[28].mxu1  ;;  %8132 = vmatprep.mubr.f32.mxu0 %v1247_v8  ;;  %8173 = vmatprep.mubr.f32.mxu1 %v1247_v8 }
 0x3d4   :  { %v1250_v12 = vmax.f32 %v8067_v60, %v8096_v11  ;;  %v1228_v13 = vpop.f32.mrb[29].mxu1  ;;  %8133 = vmatmul.mubr.f32.vlgmr.msra.gmra.mrb[34].mxu0 %v1248_v3  ;;  %8174 = vmatmul.mubr.f32.vlgmr.msra.gmra.mrb[32].mxu1 %v1248_v3  ;;  %v9279_v3 = vpack.c.bf16 %v1737_v6, %v1736_v2 }
 0x3d5   :  { %v1249_v14 = vmax.f32 %v1109_v61, %v1228_v13  ;;  %9250 = vmatpush3.bf16.msra.mxu0 %v9249_v9  ;;  %9262 = vmatpush3.bf16.msra.mxu1 %v9261_v10  ;;  %v1739_v10 = vld [vmem:[#allocation11 + $0xb8] sm:$0xff] }
 0x3d6   :  { %9251 = vmatprep.subr.bf16.mxu0 %v10670_v0  ;;  %9263 = vmatprep.subr.bf16.mxu1 %v10670_v0  ;;  %v9282_v11 = vpack.c.bf16 %v1739_v10, %v1738_v7 }
 0x3d7   :  { %v8099_v15 = vpop.f32.mrb[30].mxu1  ;;  %8135 = vmatprep.mubr.f32.mxu0 %v1249_v14  ;;  %8176 = vmatprep.mubr.f32.mxu1 %v1249_v14 }
 0x3d8   :  { %v1252_v16 = vmax.f32 %v8070_v62, %v8099_v15  ;;  %v1238_v17 = vpop.f32.mrb[31].mxu1  ;;  %8136 = vmatmul.mubr.f32.gmra.mrb[36].mxu0 %v1250_v12  ;;  %8177 = vmatmul.mubr.f32.gmra.mrb[34].mxu1 %v1250_v12  ;;  %v1735_v62 = vld [vmem:[#allocation11 + $0x98] sm:$0xff] }
 0x3d9   :  { %v1251_v18 = vmax.f32 %v1119_v53, %v1238_v17  ;;  %9253 = vmatpush3.bf16.msra.mxu0 %v9252_v22  ;;  %9265 = vmatpush3.bf16.msra.mxu1 %v9264_v24  ;;  %v11295_v53 = vld [vmem:[#allocation4] sm:$0xff]  ;;  %v9276_v63 = vpack.c.bf16 %v1735_v62, %v1734_v59  ;;  %v2018_v22 = vld [vmem:[#allocation29] sm:$0xff] }
 0x3da   :  { %9254 = vmatprep.subr.bf16.mxu0 %v10670_v0  ;;  %9266 = vmatprep.subr.bf16.mxu1 %v10670_v0 }
 0x3db   :  { %8138 = vmatprep.mubr.f32.mxu0 %v1251_v18  ;;  %8179 = vmatprep.mubr.f32.mxu1 %v1251_v18 }
 0x3dc   :  { %8139 = vmatmul.mubr.f32.gmra.mrb[38].mxu0 %v1252_v16  ;;  %8180 = vmatmul.mubr.f32.gmra.mrb[36].mxu1 %v1252_v16 }
 0x3dd   :  { %8198 = vmatprep.mubr.msk.f32.mxu0 %vm10672_vm0, %v10671_v1  ;;  %8229 = vmatprep.mubr.msk.f32.mxu1 %vm10672_vm0, %v10671_v1  ;;  %v1514_v1 = vld [vmem:[#allocation11 + $0x70] sm:$0xff] }
 0x3de   :  { %9256 = vmatpush3.bf16.msra.mxu0 %v9255_v29  ;;  %9268 = vmatpush3.bf16.msra.mxu1 %v9267_v30  ;;  %v9258_v34 = vpack.c.bf16 %v1515_v31, %v1514_v1 }
 0x3df   :  { %9257 = vmatprep.subr.bf16.mxu0 %v10670_v0  ;;  %9269 = vmatprep.subr.bf16.mxu1 %v10670_v0 }
 0x3e2   :  { %9259 = vmatpush3.bf16.msra.mxu0 %v9258_v34  ;;  %9271 = vmatpush3.bf16.msra.mxu1 %v9270_v36 }
 0x3e3   :  { %9272 = vmatprep.subr.bf16.mxu0 %v10670_v0 }
 0x4a7   :  { %v8134_v37 = vpop.f32.mrb[34].mxu0  ;;  %v8175_v33 = vpop.f32.mrb[32].mxu1 }
 0x4a8   :  { %v1476_v39 = vmax.f32 %v8134_v37, %v8175_v33  ;;  %v1335_v40 = vpop.f32.mrb[35].mxu0  ;;  %v1446_v41 = vpop.f32.mrb[33].mxu1 }
 0x4a9   :  { %v1475_v42 = vmax.f32 %v1335_v40, %v1446_v41 }
 0x4aa   :  { %1483 = vst.msk [vmem:[#allocation3 + $0x8] sm:$0xff] %vm1481_vm6, %v1476_v39 }
 0x4ab   :  { %1482 = vst.msk [vmem:[#allocation3] sm:$0xff] %vm1481_vm6, %v1475_v42  ;;  %v8137_v45 = vpop.f32.mrb[36].mxu0  ;;  %v8178_v46 = vpop.f32.mrb[34].mxu1 }
 0x4ac   :  { %v1478_v47 = vmax.f32 %v8137_v45, %v8178_v46  ;;  %v1345_v38 = vpop.f32.mrb[37].mxu0  ;;  %v1456_v48 = vpop.f32.mrb[35].mxu1 }
 0x4ad   :  { %v1477_v49 = vmax.f32 %v1345_v38, %v1456_v48 }
 0x4ae   :  { %1485 = vst.msk [vmem:[#allocation3 + $0x18] sm:$0xff] %vm1481_vm6, %v1478_v47 }
 0x4af   :  { %1484 = vst.msk [vmem:[#allocation3 + $0x10] sm:$0xff] %vm1481_vm6, %v1477_v49  ;;  %v8140_v52 = vpop.f32.mrb[38].mxu0  ;;  %v8181_v54 = vpop.f32.mrb[36].mxu1 }
 0x4b0   :  { %v1480_v55 = vmax.f32 %v8140_v52, %v8181_v54  ;;  %v1355_v44 = vpop.f32.mrb[39].mxu0  ;;  %v1466_v56 = vpop.f32.mrb[37].mxu1 }
 0x4b1   :  { %v1479_v57 = vmax.f32 %v1355_v44, %v1466_v56  ;;  %v1490_v5 = vld [vmem:[#allocation3 + $0x8] sm:$0xff] }
 0x4b2   :  { %1488 = vst.msk [vmem:[#allocation3 + $0x28] sm:$0x3] %vm1487_vm7, %v1480_v55  ;;  %v1502_v60 = vld [vmem:[#allocation3 + $0x1] sm:$0xff] }
 0x4b3   :  { %v1489_v61 = vld [vmem:[#allocation3] sm:$0xff]  ;;  %1486 = vst.msk [vmem:[#allocation3 + $0x20] sm:$0xff] %vm1481_vm6, %v1479_v57  ;;  %8199 = vmatmul.mubr.msk.f32.vlgmr.msra.gmra.mrb[40].mxu0 %vm1481_vm6, %v1502_v60 }
 0x4b4   :  { %8230 = vmatmul.mubr.msk.f32.vlgmr.msra.gmra.mrb[38].mxu1 %vm1481_vm6, %v1489_v61  ;;  %8201 = vmatprep.mubr.msk.f32.mxu0 %vm10672_vm0, %v11295_v53  ;;  %v1726_v16 = vld [vmem:[#allocation3 + $0x2] sm:$0xff] }
 0x4b5   :  { %8232 = vmatprep.mubr.msk.f32.mxu1 %vm10672_vm0, %v11295_v53  ;;  %9274 = vmatpush3.bf16.msra.mxu0 %v9273_v58  ;;  %v1492_v13 = vld [vmem:[#allocation3 + $0x18] sm:$0xff]  ;;  %v1875_v58 = vpop.permute.xlu1 %1874 }
 0x4b6   :  { %v1503_v4 = vld [vmem:[#allocation3 + $0x9] sm:$0xff]  ;;  %9275 = vmatprep.subr.bf16.mxu0 %v10670_v0  ;;  %v1504_v8 = vld [vmem:[#allocation3 + $0x11] sm:$0xff] }
 0x4b7   :  { %8202 = vmatmul.mubr.msk.f32.gmra.mrb[42].mxu0 %vm1481_vm6, %v1503_v4  ;;  %v1491_v9 = vld [vmem:[#allocation3 + $0x10] sm:$0xff]  ;;  %v1880_v4 = vpop.permute.xlu0 %1879 }
 0x4b8   :  { %8233 = vmatmul.mubr.msk.f32.gmra.mrb[40].mxu1 %vm1481_vm6, %v1490_v5  ;;  %8204 = vmatprep.mubr.msk.f32.mxu0 %vm10672_vm0, %v11295_v53  ;;  %v1727_v17 = vld [vmem:[#allocation3 + $0xa] sm:$0xff]  ;;  %v1728_v18 = vld [vmem:[#allocation3 + $0x12] sm:$0xff] }
 0x4b9   :  { %8235 = vmatprep.mubr.msk.f32.mxu1 %vm10672_vm0, %v11295_v53  ;;  %9277 = vmatpush3.bf16.msra.mxu0 %v9276_v63  ;;  %v1885_v10 = vpop.permute.xlu1 %1884 }
 0x4ba   :  { %9278 = vmatprep.subr.bf16.mxu0 %v10670_v0  ;;  %v1505_v12 = vld [vmem:[#allocation3 + $0x19] sm:$0xff]  ;;  %v1506_v14 = vld [vmem:[#allocation3 + $0x21] sm:$0xff] }
 0x4bb   :  { %8205 = vmatmul.mubr.msk.f32.gmra.mrb[44].mxu0 %vm1481_vm6, %v1504_v8  ;;  %v1493_v15 = vld [vmem:[#allocation3 + $0x20] sm:$0xff] }
 0x4bc   :  { %8236 = vmatmul.mubr.msk.f32.gmra.mrb[42].mxu1 %vm1481_vm6, %v1491_v9  ;;  %8207 = vmatprep.mubr.msk.f32.mxu0 %vm10672_vm0, %v11295_v53  ;;  %v1729_v19 = vld [vmem:[#allocation3 + $0x1a] sm:$0xff]  ;;  %v1730_v20 = vld [vmem:[#allocation3 + $0x22] sm:$0xff] }
 0x4bd   :  { %8238 = vmatprep.mubr.msk.f32.mxu1 %vm10672_vm0, %v11295_v53  ;;  %9280 = vmatpush3.bf16.msra.mxu0 %v9279_v3 }
 0x4be   :  { %9281 = vmatprep.subr.bf16.mxu0 %v10670_v0 }
 0x4bf   :  { %8208 = vmatmul.mubr.msk.f32.gmra.mrb[46].mxu0 %vm1481_vm6, %v1505_v12 }
 0x4c0   :  { %8239 = vmatmul.mubr.msk.f32.gmra.mrb[44].mxu1 %vm1481_vm6, %v1492_v13  ;;  %8210 = vmatprep.mubr.msk.f32.mxu0 %vm10672_vm0, %v11295_v53 }
 0x4c1   :  { %8241 = vmatprep.mubr.msk.f32.mxu1 %vm10672_vm0, %v11295_v53  ;;  %9283 = vmatpush3.bf16.msra.mxu0 %v9282_v11 }
 0x4c3   :  { %8211 = vmatmul.mubr.msk.f32.gmra.mrb[48].mxu0 %vm1481_vm6, %v1506_v14 }
 0x4c4   :  { %8242 = vmatmul.mubr.msk.f32.gmra.mrb[46].mxu1 %vm1481_vm6, %v1493_v15  ;;  %8260 = vmatprep.mubr.msk.f32.mxu0 %vm10672_vm0, %v11295_v53 }
 0x4c5   :  { %8287 = vmatprep.mubr.msk.f32.mxu1 %vm1917_vm8, %v1907_v21 }
 0x4c7   :  { %8261 = vmatmul.mubr.msk.f32.vlgmr.msra.gmra.mrb[50].mxu0 %vm1481_vm6, %v1726_v16 }
 0x4c8   :  { %8263 = vmatprep.mubr.msk.f32.mxu0 %vm10672_vm0, %v11295_v53 }
 0x4cb   :  { %8264 = vmatmul.mubr.msk.f32.gmra.mrb[52].mxu0 %vm1481_vm6, %v1727_v17  ;;  %v1890_v17 = vpop.permute.xlu0 %1889 }
 0x4cc   :  { %8266 = vmatprep.mubr.msk.f32.mxu0 %vm10672_vm0, %v11295_v53 }
 0x4cf   :  { %8267 = vmatmul.mubr.msk.f32.gmra.mrb[54].mxu0 %vm1481_vm6, %v1728_v18 }
 0x4d0   :  { %8269 = vmatprep.mubr.msk.f32.mxu0 %vm10672_vm0, %v11295_v53 }
 0x4d3   :  { %8270 = vmatmul.mubr.msk.f32.gmra.mrb[56].mxu0 %vm1481_vm6, %v1729_v19 }
 0x4d4   :  { %8272 = vmatprep.mubr.msk.f32.mxu0 %vm10672_vm0, %v11295_v53 }
 0x4d7   :  { %8273 = vmatmul.mubr.msk.f32.gmra.mrb[58].mxu0 %vm1481_vm6, %v1730_v20 }
 0x4d8   :  { %8305 = vmatprep.mubr.msk.f32.mxu0 %vm1917_vm8, %v2018_v22 }
 0x586   :  { %v1597_v23 = vpop.f32.mrb[40].mxu0 }
 0x587   :  { %v1702_v24 = vpop.f32.mrb[38].mxu1  ;;  %v8200_v26 = vpop.f32.mrb[41].mxu0 }
 0x588   :  { %v1703_v25 = vadd.f32 %v1702_v24, %v1597_v23  ;;  %v8231_v27 = vpop.f32.mrb[39].mxu1  ;;  %v1895_v24 = vpop.permute.xlu1 %1894 }
 0x58a   :  { %v1602_v29 = vpop.f32.mrb[42].mxu0 }
 0x58b   :  { %v1707_v28 = vpop.f32.mrb[40].mxu1  ;;  %v8203_v1 = vpop.f32.mrb[43].mxu0 }
 0x58c   :  { %v1708_v30 = vadd.f32 %v1707_v28, %v1602_v29  ;;  %v8234_v31 = vpop.f32.mrb[41].mxu1  ;;  %v2123_v28 = vld [vmem:[#allocation31] sm:$0xff] }
 0x58d   :  { %v2224_v1 = vld [vmem:[#allocation32] sm:$0xff]  ;;  %v2225_v31 = vld [vmem:[#allocation32 + $0x8] sm:$0xff] }
 0x58e   :  { %v1607_v32 = vpop.f32.mrb[44].mxu0 }
 0x58f   :  { %v1712_v34 = vpop.f32.mrb[42].mxu1  ;;  %v8206_v36 = vpop.f32.mrb[45].mxu0 }
 0x590   :  { %v1713_v35 = vadd.f32 %v1712_v34, %v1607_v32  ;;  %v8237_v37 = vpop.f32.mrb[43].mxu1 }
 0x591   :  { %v9344_v37 = vpack.c.bf16 %v2225_v31, %v2224_v1 }
 0x592   :  { %v1612_v33 = vpop.f32.mrb[46].mxu0 }
 0x593   :  { %v1717_v39 = vpop.f32.mrb[44].mxu1  ;;  %v8209_v41 = vpop.f32.mrb[47].mxu0 }
 0x594   :  { %v1718_v40 = vadd.f32 %v1717_v39, %v1612_v33  ;;  %v8240_v42 = vpop.f32.mrb[45].mxu1  ;;  %v2125_v33 = vld [vmem:[#allocation31 + $0x10] sm:$0xff]  ;;  %v2126_v39 = vld [vmem:[#allocation31 + $0x18] sm:$0xff] }
 0x595   :  { %v2227_v41 = vld [vmem:[#allocation32 + $0x18] sm:$0xff]  ;;  %v1908_v42 = vld [vmem:[#allocation28 + $0x8] sm:$0xff] }
 0x596   :  { %v1617_v45 = vpop.f32.mrb[48].mxu0 }
 0x597   :  { %v1722_v46 = vpop.f32.mrb[46].mxu1  ;;  %v8212_v38 = vpop.f32.mrb[49].mxu0 }
 0x598   :  { %v1723_v47 = vadd.f32 %v1722_v46, %v1617_v45  ;;  %v8243_v48 = vpop.f32.mrb[47].mxu1  ;;  %v2019_v45 = vld [vmem:[#allocation29 + $0x8] sm:$0xff]  ;;  %v1909_v46 = vld [vmem:[#allocation28 + $0x10] sm:$0xff]  ;;  %v9316_v38 = vpack.c.bf16 %v2126_v39, %v2125_v33 }
 0x59a   :  { %v1821_v49 = vpop.f32.mrb[50].mxu0 }
 0x59b   :  { %v1845_v51 = vadd.f32 %v1821_v49, %v1703_v25  ;;  %v8262_v52 = vpop.f32.mrb[51].mxu0  ;;  %v2127_v49 = vld [vmem:[#allocation31 + $0x20] sm:$0xff] }
 0x59c   :  { %v2229_v52 = vld [vmem:[#allocation32 + $0x28] sm:$0xff] }
 0x59d   :  { %v1857_v54 = vadd.f32 %v6959_v50, %v1845_v51  ;;  %v2228_v51 = vld [vmem:[#allocation32 + $0x20] sm:$0xff] }
 0x59e   :  { %v1826_v55 = vpop.f32.mrb[52].mxu0 }
 0x59f   :  { %v1862_v44 = vmax.f32 %v1857_v54, 0.0  ;;  %v1846_v56 = vadd.f32 %v1826_v55, %v1708_v30  ;;  %v8265_v57 = vpop.f32.mrb[53].mxu0  ;;  %v2124_v30 = vld [vmem:[#allocation31 + $0x8] sm:$0xff]  ;;  %v1910_v54 = vld [vmem:[#allocation28 + $0x18] sm:$0x3] }
 0x5a0   :  { %v9312_v36 = vpack.c.bf16 %v2124_v30, %v2123_v28  ;;  %v2021_v55 = vld [vmem:[#allocation29 + $0x18] sm:$0x3]  ;;  %v2129_v57 = vld [vmem:[#allocation31 + $0x30] sm:$0xff] }
 0x5a1   :  { %v1897_v59 = vmul.f32 %v1875_v58, %v1862_v44  ;;  %v1858_v60 = vadd.f32 %v6959_v50, %v1846_v56  ;;  %v9352_v56 = vpack.c.bf16 %v2229_v52, %v2228_v51  ;;  %v2130_v58 = vld [vmem:[#allocation31 + $0x38] sm:$0xff]  ;;  %v2353_v51 = vld [vmem:[#allocation14 + $0x68] sm:$0xff] }
 0x5a2   :  { %v1831_v61 = vpop.f32.mrb[54].mxu0 }
 0x5a3   :  { %1902 = vst [vmem:[#allocation4 + $0x1] sm:$0xff] %v1897_v59  ;;  %v1863_v62 = vmax.f32 %v1858_v60, 0.0  ;;  %v1847_v63 = vadd.f32 %v1831_v61, %v1713_v35  ;;  %v8268_v2 = vpop.f32.mrb[55].mxu0  ;;  %v2230_v59 = vld [vmem:[#allocation32 + $0x30] sm:$0xff]  ;;  %v2231_v60 = vld [vmem:[#allocation32 + $0x38] sm:$0xff]  ;;  %v9324_v61 = vpack.c.bf16 %v2130_v58, %v2129_v57 }
 0x5a4   :  { %v2132_v2 = vld [vmem:[#allocation31 + $0x48] sm:$0xff]  ;;  %v2355_v57 = vld [vmem:[#allocation14 + $0x78] sm:$0xff] }
 0x5a5   :  { %v1898_v5 = vmul.f32 %v1880_v4, %v1863_v62  ;;  %v1859_v6 = vadd.f32 %v6959_v50, %v1847_v63  ;;  %v9356_v62 = vpack.c.bf16 %v2231_v60, %v2230_v59  ;;  %v2131_v63 = vld [vmem:[#allocation31 + $0x40] sm:$0xff]  ;;  %v2342_v59 = vld [vmem:[#allocation14 + $0x30] sm:$0xff]  ;;  %v2343_v60 = vld [vmem:[#allocation14 + $0x38] sm:$0xff] }
 0x5a6   :  { %v1836_v3 = vpop.f32.mrb[56].mxu0  ;;  %v2232_v4 = vld [vmem:[#allocation32 + $0x40] sm:$0xff] }
 0x5a7   :  { %1903 = vst [vmem:[#allocation4 + $0x9] sm:$0xff] %v1898_v5  ;;  %v1864_v7 = vmax.f32 %v1859_v6, 0.0  ;;  %v1848_v8 = vadd.f32 %v1836_v3, %v1718_v40  ;;  %v8271_v9 = vpop.f32.mrb[57].mxu0  ;;  %v2226_v40 = vld [vmem:[#allocation32 + $0x10] sm:$0xff]  ;;  %v2233_v5 = vld [vmem:[#allocation32 + $0x48] sm:$0xff]  ;;  %v9328_v6 = vpack.c.bf16 %v2132_v2, %v2131_v63 }
 0x5a8   :  { %v9348_v48 = vpack.c.bf16 %v2227_v41, %v2226_v40  ;;  %v9360_v3 = vpack.c.bf16 %v2233_v5, %v2232_v4  ;;  %v2234_v9 = vld [vmem:[#allocation32 + $0x50] sm:$0xff] }
 0x5a9   :  { %v1899_v11 = vmul.f32 %v1885_v10, %v1864_v7  ;;  %v1860_v12 = vadd.f32 %v6959_v50, %v1848_v8  ;;  %v2133_v7 = vld [vmem:[#allocation31 + $0x50] sm:$0xff]  ;;  %v2134_v8 = vld [vmem:[#allocation31 + $0x58] sm:$0xff] }
 0x5aa   :  { %v1841_v13 = vpop.f32.mrb[58].mxu0  ;;  %v1911_v20 = vld [vmem:[#allocation4] sm:$0xff] }
 0x5ab   :  { %1904 = vst [vmem:[#allocation4 + $0x11] sm:$0xff] %v1899_v11  ;;  %v1865_v14 = vmax.f32 %v1860_v12, 0.0  ;;  %v1849_v15 = vadd.f32 %v1841_v13, %v1723_v47  ;;  %v8274_v16 = vpop.f32.mrb[59].mxu0  ;;  %v2020_v47 = vld [vmem:[#allocation29 + $0x10] sm:$0xff]  ;;  %v2235_v10 = vld [vmem:[#allocation32 + $0x58] sm:$0xff]  ;;  %v9332_v11 = vpack.c.bf16 %v2134_v8, %v2133_v7  ;;  %v2135_v13 = vld [vmem:[#allocation31 + $0x60] sm:$0xff] }
 0x5ac   :  { %v9364_v12 = vpack.c.bf16 %v2235_v10, %v2234_v9  ;;  %v2237_v16 = vld [vmem:[#allocation32 + $0x68] sm:$0xff] }
 0x5ad   :  { %v1900_v18 = vmul.f32 %v1890_v17, %v1865_v14  ;;  %v1861_v19 = vadd.f32 %v6959_v50, %v1849_v15  ;;  %v2128_v50 = vld [vmem:[#allocation31 + $0x28] sm:$0xff]  ;;  %v2236_v15 = vld [vmem:[#allocation32 + $0x60] sm:$0xff] }
 0x5ae   :  { %v1912_v21 = vld [vmem:[#allocation4 + $0x8] sm:$0xff]  ;;  %v9320_v44 = vpack.c.bf16 %v2128_v50, %v2127_v49  ;;  %v2136_v14 = vld [vmem:[#allocation31 + $0x68] sm:$0xff] }
 0x5af   :  { %1905 = vst [vmem:[#allocation4 + $0x19] sm:$0xff] %v1900_v18  ;;  %v1866_v22 = vmax.f32 %v1861_v19, 0.0  ;;  %v9284_v23 = vpack.c.bf16 %v1912_v21, %v1911_v20  ;;  %v9336_v17 = vpack.c.bf16 %v2136_v14, %v2135_v13  ;;  %v9368_v18 = vpack.c.bf16 %v2237_v16, %v2236_v15  ;;  %v2137_v19 = vld [vmem:[#allocation31 + $0x70] sm:$0xff]  ;;  %v2138_v20 = vld [vmem:[#allocation31 + $0x78] sm:$0xff]  ;;  %v2352_v50 = vld [vmem:[#allocation14 + $0x60] sm:$0xff] }
 0x5b0   :  { %v2238_v21 = vld [vmem:[#allocation32 + $0x70] sm:$0xff]  ;;  %v9383_v52 = vpack.c.bf16 %v2353_v51, %v2352_v50  ;;  %v2539_v13 = vld [vmem:[#allocation14 + $0x88] sm:$0xff]  ;;  %v2541_v16 = vld [vmem:[#allocation14 + $0x98] sm:$0xff] }
 0x5b1   :  { %v1901_v25 = vmul.f32 %v1895_v24, %v1866_v22  ;;  %9285 = vmatprep.subr.bf16.mxu1 %v9284_v23  ;;  %9299 = vmatprep.subr.bf16.mxu0 %v9284_v23  ;;  %v9340_v22 = vpack.c.bf16 %v2138_v20, %v2137_v19  ;;  %v2540_v15 = vld [vmem:[#allocation14 + $0x90] sm:$0xff]  ;;  %v2542_v20 = vld [vmem:[#allocation14 + $0xa0] sm:$0xff]  ;;  %v6979_v51 = vld [vmem:[%s12683_s10] ss:$0 sm:$0xff] }
 0x5b2   :  { %9287 = vmatpush3.bf16.msra.mxu1 %v9284_v23  ;;  %9301 = vmatpush3.bf16.msra.mxu0 %v9284_v23  ;;  %v1913_v26 = vld [vmem:[#allocation4 + $0x10] sm:$0xff]  ;;  %v2239_v23 = vld [vmem:[#allocation32 + $0x78] sm:$0xff]  ;;  %v9404_v19 = vpack.c.bf16 %v2541_v16, %v2540_v15 }
 0x5b3   :  { %1906 = vst [vmem:[#allocation4 + $0x21] sm:$0xff] %v1901_v25  ;;  %v9372_v24 = vpack.c.bf16 %v2239_v23, %v2238_v21  ;;  %v2348_v25 = vld [vmem:[#allocation14 + $0x40] sm:$0xff]  ;;  %v2543_v21 = vld [vmem:[#allocation14 + $0xa8] sm:$0xff] }
 0x5b6   :  { %v1914_v27 = vld [vmem:[#allocation4 + $0x18] sm:$0xff] }
 0x5b7   :  { %v9288_v29 = vpack.c.bf16 %v1914_v27, %v1913_v26  ;;  %v2349_v26 = vld [vmem:[#allocation14 + $0x48] sm:$0xff]  ;;  %v2336_v27 = vld [vmem:[#allocation14] sm:$0xff] }
 0x5b9   :  { %9289 = vmatprep.subr.bf16.mxu1 %v9288_v29  ;;  %9303 = vmatprep.subr.bf16.mxu0 %v9288_v29 }
 0x5ba   :  { %9291 = vmatpush3.bf16.msra.mxu1 %v9288_v29  ;;  %9305 = vmatpush3.bf16.msra.mxu0 %v9288_v29  ;;  %v1915_v32 = vld [vmem:[#allocation4 + $0x20] sm:$0xff]  ;;  %v1916_v34 = vld [vmem:[#allocation4 + $0x28] sm:$0x3]  ;;  %v2337_v29 = vld [vmem:[#allocation14 + $0x8] sm:$0xff] }
 0x5bb   :  { %v9292_v35 = vpack.c.bf16 %v1916_v34, %v1915_v32 }
 0x5bd   :  { %9294 = vmatprep.subr.msk.bf16.mxu1 %vm11251_vm5, %v9292_v35  ;;  %9308 = vmatprep.subr.msk.bf16.mxu0 %vm11251_vm5, %v9292_v35 }
 0x5be   :  { %9297 = vmatpush3.bf16.msk.msra.mxu1 %vm11251_vm5, %v9292_v35  ;;  %9311 = vmatpush3.bf16.msk.msra.mxu0 %vm11251_vm5, %v9292_v35  ;;  %v9377_v35 = vpack.c.bf16 %v2349_v26, %v2348_v25  ;;  %v2544_v25 = vld [vmem:[#allocation14 + $0xb0] sm:$0xff]  ;;  %v2545_v26 = vld [vmem:[#allocation14 + $0xb8] sm:$0xff] }
 0x5bf   :  { %9313 = vmatprep.subr.bf16.mxu1 %v9312_v36  ;;  %9345 = vmatprep.subr.bf16.mxu0 %v9344_v37 }
 0x5c1   :  { %8288 = vmatmul.mubr.msk.f32.vlgmr.msra.gmra.mrb[48].mxu1 %vm1917_vm8, %v1908_v42  ;;  %8306 = vmatmul.mubr.msk.f32.vlgmr.msra.gmra.mrb[60].mxu0 %vm1917_vm8, %v2019_v45  ;;  %v2350_v45 = vld [vmem:[#allocation14 + $0x50] sm:$0xff] }
 0x5c2   :  { %8290 = vmatprep.mubr.msk.f32.mxu1 %vm1917_vm8, %v1909_v46  ;;  %8308 = vmatprep.mubr.msk.f32.mxu0 %vm1917_vm8, %v2020_v47  ;;  %v2351_v46 = vld [vmem:[#allocation14 + $0x58] sm:$0xff] }
 0x5c3   :  { %9315 = vmatpush3.bf16.msra.mxu1 %v9312_v36  ;;  %9347 = vmatpush3.bf16.msra.mxu0 %v9344_v37  ;;  %v9389_v36 = vpack.c.bf16 %v2337_v29, %v2336_v27  ;;  %v9380_v47 = vpack.c.bf16 %v2351_v46, %v2350_v45 }
 0x5c4   :  { %9317 = vmatprep.subr.bf16.mxu1 %v9316_v38  ;;  %9349 = vmatprep.subr.bf16.mxu0 %v9348_v48 }
 0x5c5   :  { %8291 = vmatmul.mubr.msk.f32.gmra.mrb[50].mxu1 %vm1917_vm8, %v1910_v54  ;;  %8309 = vmatmul.mubr.msk.f32.gmra.mrb[62].mxu0 %vm1917_vm8, %v2021_v55  ;;  %v2340_v54 = vld [vmem:[#allocation14 + $0x20] sm:$0xff]  ;;  %v2341_v55 = vld [vmem:[#allocation14 + $0x28] sm:$0xff] }
 0x5c7   :  { %9319 = vmatpush3.bf16.msra.mxu1 %v9316_v38  ;;  %9351 = vmatpush3.bf16.msra.mxu0 %v9348_v48  ;;  %v2338_v38 = vld [vmem:[#allocation14 + $0x10] sm:$0xff]  ;;  %v2339_v48 = vld [vmem:[#allocation14 + $0x18] sm:$0xff] }
 0x5c8   :  { %9321 = vmatprep.subr.bf16.mxu1 %v9320_v44  ;;  %9353 = vmatprep.subr.bf16.mxu0 %v9352_v56  ;;  %v9392_v49 = vpack.c.bf16 %v2339_v48, %v2338_v38 }
 0x5cb   :  { %9323 = vmatpush3.bf16.msra.mxu1 %v9320_v44  ;;  %9355 = vmatpush3.bf16.msra.mxu0 %v9352_v56  ;;  %v9395_v44 = vpack.c.bf16 %v2341_v55, %v2340_v54  ;;  %v2354_v56 = vld [vmem:[#allocation14 + $0x70] sm:$0xff] }
 0x5cc   :  { %9325 = vmatprep.subr.bf16.mxu1 %v9324_v61  ;;  %9357 = vmatprep.subr.bf16.mxu0 %v9356_v62  ;;  %v9386_v58 = vpack.c.bf16 %v2355_v57, %v2354_v56 }
 0x5cf   :  { %9327 = vmatpush3.bf16.msra.mxu1 %v9324_v61  ;;  %9359 = vmatpush3.bf16.msra.mxu0 %v9356_v62  ;;  %v9398_v61 = vpack.c.bf16 %v2343_v60, %v2342_v59  ;;  %v2657_v59 = vpop.permute.xlu0 %2656 }
 0x5d0   :  { %9329 = vmatprep.subr.bf16.mxu1 %v9328_v6  ;;  %9361 = vmatprep.subr.bf16.mxu0 %v9360_v3 }
 0x5d3   :  { %9331 = vmatpush3.bf16.msra.mxu1 %v9328_v6  ;;  %9363 = vmatpush3.bf16.msra.mxu0 %v9360_v3 }
 0x5d4   :  { %9333 = vmatprep.subr.bf16.mxu1 %v9332_v11  ;;  %9365 = vmatprep.subr.bf16.mxu0 %v9364_v12 }
 0x5d7   :  { %9335 = vmatpush3.bf16.msra.mxu1 %v9332_v11  ;;  %9367 = vmatpush3.bf16.msra.mxu0 %v9364_v12  ;;  %v2538_v12 = vld [vmem:[#allocation14 + $0x80] sm:$0xff] }
 0x5d8   :  { %9337 = vmatprep.subr.bf16.mxu1 %v9336_v17  ;;  %9369 = vmatprep.subr.bf16.mxu0 %v9368_v18  ;;  %v9401_v14 = vpack.c.bf16 %v2539_v13, %v2538_v12  ;;  %v2803_v13 = vld [vmem:[%s12684_s4 + $0x8] sm:$0xff] }
 0x5db   :  { %9339 = vmatpush3.bf16.msra.mxu1 %v9336_v17  ;;  %9371 = vmatpush3.bf16.msra.mxu0 %v9368_v18 }
 0x5dc   :  { %9341 = vmatprep.subr.bf16.mxu1 %v9340_v22  ;;  %9373 = vmatprep.subr.bf16.mxu0 %v9372_v24 }
 0x5df   :  { %9343 = vmatpush3.bf16.msra.mxu1 %v9340_v22  ;;  %9375 = vmatpush3.bf16.msra.mxu0 %v9372_v24  ;;  %v9407_v24 = vpack.c.bf16 %v2543_v21, %v2542_v20  ;;  %v2804_v20 = vld [vmem:[%s12684_s4 + $0x10] sm:$0xff]  ;;  %v2807_v21 = vld [vmem:[%s12684_s4 + $0x28] sm:$0xff] }
 0x5e0   :  { %9376 = vmatprep.subr.bf16.mxu1 %v10670_v0  ;;  %9388 = vmatprep.subr.bf16.mxu0 %v10670_v0 }
 0x694   :  { %v8289_v28 = vpop.f32.mrb[48].mxu1  ;;  %v8307_v30 = vpop.f32.mrb[60].mxu0 }
 0x695   :  { %v2120_v1 = vmax.f32 %v8289_v28, %v8307_v30  ;;  %v1999_v31 = vpop.f32.mrb[49].mxu1  ;;  %v2100_v32 = vpop.f32.mrb[61].mxu0  ;;  %v9410_v28 = vpack.c.bf16 %v2545_v26, %v2544_v25  ;;  %v2677_v25 = vld [vmem:[#allocation34 + $0x10] sm:$0xff] }
 0x696   :  { %v2119_v34 = vmax.f32 %v1999_v31, %v2100_v32  ;;  %v2675_v32 = vld [vmem:[#allocation34] sm:$0xff] }
 0x698   :  { %v8292_v37 = vpop.f32.mrb[50].mxu1  ;;  %v8310_v33 = vpop.f32.mrb[62].mxu0  ;;  %8343 = vmatprep.mubr.f32.mxu1 %v2119_v34  ;;  %8381 = vmatprep.mubr.f32.mxu0 %v2119_v34 }
 0x699   :  { %v2122_v39 = vmax.f32 %v8292_v37, %v8310_v33  ;;  %v2009_v40 = vpop.f32.mrb[51].mxu1  ;;  %v2110_v41 = vpop.f32.mrb[63].mxu0  ;;  %8344 = vmatmul.mubr.f32.vlgmr.msra.gmra.mrb[52].mxu1 %v2120_v1  ;;  %8382 = vmatmul.mubr.f32.vlgmr.msra.gmra.mrb[64].mxu0 %v2120_v1 }
 0x69a   :  { %v2121_v42 = vmax.f32 %v2009_v40, %v2110_v41  ;;  %9378 = vmatpush3.bf16.msra.mxu1 %v9377_v35  ;;  %9390 = vmatpush3.bf16.msra.mxu0 %v9389_v36 }
 0x69b   :  { %9379 = vmatprep.subr.bf16.mxu1 %v10670_v0  ;;  %9391 = vmatprep.subr.bf16.mxu0 %v10670_v0 }
 0x69c   :  { %8346 = vmatprep.mubr.f32.mxu1 %v2121_v42  ;;  %8384 = vmatprep.mubr.f32.mxu0 %v2121_v42 }
 0x69d   :  { %8347 = vmatmul.mubr.f32.gmra.mrb[54].mxu1 %v2122_v39  ;;  %8385 = vmatmul.mubr.f32.gmra.mrb[66].mxu0 %v2122_v39 }
 0x69e   :  { %8403 = vmatprep.mubr.msk.f32.mxu1 %vm10672_vm0, %v11295_v53  ;;  %8428 = vmatprep.mubr.msk.f32.mxu0 %vm10672_vm0, %v11295_v53 }
 0x69f   :  { %9381 = vmatpush3.bf16.msra.mxu1 %v9380_v47  ;;  %9393 = vmatpush3.bf16.msra.mxu0 %v9392_v49 }
 0x6a0   :  { %9382 = vmatprep.subr.bf16.mxu1 %v10670_v0  ;;  %9394 = vmatprep.subr.bf16.mxu0 %v10670_v0 }
 0x6a3   :  { %9384 = vmatpush3.bf16.msra.mxu1 %v9383_v52  ;;  %9396 = vmatpush3.bf16.msra.mxu0 %v9395_v44 }
 0x6a4   :  { %9385 = vmatprep.subr.bf16.mxu1 %v10670_v0  ;;  %9397 = vmatprep.subr.bf16.mxu0 %v10670_v0 }
 0x6a7   :  { %9387 = vmatpush3.bf16.msra.mxu1 %v9386_v58  ;;  %9399 = vmatpush3.bf16.msra.mxu0 %v9398_v61 }
 0x6a8   :  { %9400 = vmatprep.subr.bf16.mxu1 %v10670_v0 }
 0x76c   :  { %v8345_v62 = vpop.f32.mrb[52].mxu1  ;;  %v8383_v63 = vpop.f32.mrb[64].mxu0 }
 0x76d   :  { %v2326_v2 = vmax.f32 %v8345_v62, %v8383_v63  ;;  %v2205_v4 = vpop.f32.mrb[53].mxu1  ;;  %v2306_v5 = vpop.f32.mrb[65].mxu0 }
 0x76e   :  { %v2325_v6 = vmax.f32 %v2205_v4, %v2306_v5  ;;  %v2662_v5 = vpop.permute.xlu1 %2661 }
 0x76f   :  { %2330 = vst.msk [vmem:[#allocation5 + $0x8] sm:$0xff] %vm1481_vm6, %v2326_v2 }
 0x770   :  { %2329 = vst.msk [vmem:[#allocation5] sm:$0xff] %vm1481_vm6, %v2325_v6  ;;  %v8348_v3 = vpop.f32.mrb[54].mxu1  ;;  %v8386_v7 = vpop.f32.mrb[66].mxu0 }
 0x771   :  { %v2328_v8 = vmax.f32 %v8348_v3, %v8386_v7  ;;  %v2215_v9 = vpop.f32.mrb[55].mxu1  ;;  %v2316_v10 = vpop.f32.mrb[67].mxu0 }
 0x772   :  { %v2327_v11 = vmax.f32 %v2215_v9, %v2316_v10 }
 0x773   :  { %2332 = vst.msk [vmem:[#allocation5 + $0x18] sm:$0x3] %vm1487_vm7, %v2328_v8  ;;  %v2667_v8 = vpop.permute.xlu0 %2666 }
 0x774   :  { %2331 = vst.msk [vmem:[#allocation5 + $0x10] sm:$0xff] %vm1481_vm6, %v2327_v11 }
 0x776   :  { %v2334_v23 = vld [vmem:[#allocation5 + $0x8] sm:$0xff] }
 0x777   :  { %v2344_v17 = vld [vmem:[#allocation5 + $0x1] sm:$0xff] }
 0x778   :  { %v2333_v18 = vld [vmem:[#allocation5] sm:$0xff]  ;;  %8404 = vmatmul.mubr.msk.f32.vlgmr.msra.gmra.mrb[56].mxu1 %vm1481_vm6, %v2344_v17 }
 0x779   :  { %8429 = vmatmul.mubr.msk.f32.vlgmr.msra.gmra.mrb[68].mxu0 %vm1481_vm6, %v2333_v18  ;;  %9402 = vmatpush3.bf16.msra.mxu1 %v9401_v14  ;;  %v2534_v30 = vld [vmem:[#allocation5 + $0x2] sm:$0xff] }
 0x77a   :  { %8406 = vmatprep.mubr.msk.f32.mxu1 %vm10672_vm0, %v11295_v53  ;;  %8431 = vmatprep.mubr.msk.f32.mxu0 %vm10672_vm0, %v11295_v53  ;;  %v2805_v14 = vld [vmem:[%s12684_s4 + $0x18] sm:$0xff] }
 0x77b   :  { %9403 = vmatprep.subr.bf16.mxu1 %v10670_v0  ;;  %v2345_v22 = vld [vmem:[#allocation5 + $0x9] sm:$0xff]  ;;  %v2346_v27 = vld [vmem:[#allocation5 + $0x11] sm:$0xff]  ;;  %v9422_v18 = vpack.c.bf16 %v2805_v14, %v2803_v13  ;;  %v2995_v13 = vld [vmem:[#allocation16 + $0x108] sm:$0xff] }
 0x77c   :  { %8407 = vmatmul.mubr.msk.f32.gmra.mrb[58].mxu1 %vm1481_vm6, %v2345_v22  ;;  %v2335_v29 = vld [vmem:[#allocation5 + $0x10] sm:$0xff]  ;;  %v2809_v22 = vld [vmem:[%s12684_s4 + $0x38] sm:$0xff] }
 0x77d   :  { %8432 = vmatmul.mubr.msk.f32.gmra.mrb[70].mxu0 %vm1481_vm6, %v2334_v23  ;;  %9405 = vmatpush3.bf16.msra.mxu1 %v9404_v19  ;;  %v2535_v1 = vld [vmem:[#allocation5 + $0xa] sm:$0xff]  ;;  %v2536_v31 = vld [vmem:[#allocation5 + $0x12] sm:$0xff]  ;;  %v2676_v23 = vld [vmem:[#allocation34 + $0x8] sm:$0xff]  ;;  %v9426_v26 = vpack.c.bf16 %v2809_v22, %v2807_v21 }
 0x77e   :  { %8409 = vmatprep.mubr.msk.f32.mxu1 %vm10672_vm0, %v11295_v53  ;;  %8434 = vmatprep.mubr.msk.f32.mxu0 %vm10672_vm0, %v11295_v53  ;;  %v2802_v19 = vld [vmem:[%s12684_s4] sm:$0xff]  ;;  %v3014_v22 = vld [vmem:[#allocation16 + $0x1a0] sm:$0xff] }
 0x77f   :  { %9406 = vmatprep.subr.bf16.mxu1 %v10670_v0 }
 0x780   :  { %8410 = vmatmul.mubr.msk.f32.gmra.mrb[60].mxu1 %vm1481_vm6, %v2346_v27  ;;  %v2806_v27 = vld [vmem:[%s12684_s4 + $0x20] sm:$0xff] }
 0x781   :  { %8435 = vmatmul.mubr.msk.f32.gmra.mrb[72].mxu0 %vm1481_vm6, %v2335_v29  ;;  %9408 = vmatpush3.bf16.msra.mxu1 %v9407_v24  ;;  %v9424_v24 = vpack.c.bf16 %v2804_v20, %v2802_v19  ;;  %v2808_v29 = vld [vmem:[%s12684_s4 + $0x30] sm:$0xff]  ;;  %v2996_v19 = vld [vmem:[#allocation16 + $0x110] sm:$0xff]  ;;  %v2997_v20 = vld [vmem:[#allocation16 + $0x118] sm:$0xff] }
 0x782   :  { %8453 = vmatprep.mubr.msk.f32.mxu1 %vm10672_vm0, %v11295_v53  ;;  %9409 = vmatprep.subr.bf16.mxu1 %v10670_v0  ;;  %v9460_v21 = vpack.c.bf16 %v2997_v20, %v2996_v19  ;;  %v3019_v19 = vld [vmem:[#allocation16 + $0x1c8] sm:$0xff] }
 0x783   :  { %8470 = vmatprep.mubr.msk.f32.mxu0 %vm2685_vm9, %v2675_v32  ;;  %v2679_v32 = vld [vmem:[#allocation34 + $0x20] sm:$0xff] }
 0x785   :  { %9411 = vmatpush3.bf16.msra.mxu1 %v9410_v28  ;;  %v2811_v28 = vld [vmem:[%s12684_s4 + $0x48] sm:$0xff] }
 0x788   :  { %8454 = vmatmul.mubr.msk.f32.vlgmr.msra.gmra.mrb[62].mxu1 %vm1481_vm6, %v2534_v30  ;;  %v2813_v30 = vld [vmem:[%s12684_s4 + $0x58] sm:$0xff] }
 0x789   :  { %8456 = vmatprep.mubr.msk.f32.mxu1 %vm10672_vm0, %v11295_v53 }
 0x78c   :  { %8457 = vmatmul.mubr.msk.f32.gmra.mrb[64].mxu1 %vm1481_vm6, %v2535_v1  ;;  %v2678_v1 = vld [vmem:[#allocation34 + $0x18] sm:$0xff] }
 0x78d   :  { %8459 = vmatprep.mubr.msk.f32.mxu1 %vm10672_vm0, %v11295_v53 }
 0x790   :  { %8460 = vmatmul.mubr.msk.f32.gmra.mrb[66].mxu1 %vm1481_vm6, %v2536_v31  ;;  %v9428_v31 = vpack.c.bf16 %v2808_v29, %v2806_v27  ;;  %v3016_v27 = vld [vmem:[#allocation16 + $0x1b0] sm:$0xff] }
 0x84b   :  { %v2431_v34 = vpop.f32.mrb[56].mxu1 }
 0x84c   :  { %v2520_v35 = vpop.f32.mrb[68].mxu0  ;;  %v8405_v37 = vpop.f32.mrb[57].mxu1 }
 0x84d   :  { %v2521_v36 = vadd.f32 %v2520_v35, %v2431_v34  ;;  %v8430_v33 = vpop.f32.mrb[69].mxu0  ;;  %v9430_v34 = vpack.c.bf16 %v2813_v30, %v2811_v28  ;;  %v2810_v35 = vld [vmem:[%s12684_s4 + $0x40] sm:$0xff]  ;;  %v2815_v37 = vld [vmem:[%s12684_s4 + $0x68] sm:$0xff] }
 0x84e   :  { %v2817_v33 = vld [vmem:[%s12684_s4 + $0x78] sm:$0xff]  ;;  %v3017_v28 = vld [vmem:[#allocation16 + $0x1b8] sm:$0xff] }
 0x84f   :  { %v2436_v39 = vpop.f32.mrb[58].mxu1  ;;  %v9466_v30 = vpack.c.bf16 %v3017_v28, %v3016_v27  ;;  %v2972_v27 = vld [vmem:[#allocation16 + $0x78] sm:$0xff] }
 0x850   :  { %v2525_v40 = vpop.f32.mrb[70].mxu0  ;;  %v8408_v42 = vpop.f32.mrb[59].mxu1 }
 0x851   :  { %v2526_v41 = vadd.f32 %v2525_v40, %v2436_v39  ;;  %v8433_v45 = vpop.f32.mrb[71].mxu0  ;;  %v2680_v39 = vld [vmem:[#allocation34 + $0x28] sm:$0x3]  ;;  %v2814_v42 = vld [vmem:[%s12684_s4 + $0x60] sm:$0xff] }
 0x852   :  { %v2816_v45 = vld [vmem:[%s12684_s4 + $0x70] sm:$0xff] }
 0x853   :  { %v2441_v46 = vpop.f32.mrb[60].mxu1 }
 0x854   :  { %v2530_v47 = vpop.f32.mrb[72].mxu0  ;;  %v8411_v48 = vpop.f32.mrb[61].mxu1 }
 0x855   :  { %v2531_v38 = vadd.f32 %v2530_v47, %v2441_v46  ;;  %v8436_v49 = vpop.f32.mrb[73].mxu0  ;;  %v2819_v46 = vld [vmem:[%s12684_s4 + $0x88] sm:$0xff]  ;;  %v2821_v47 = vld [vmem:[%s12684_s4 + $0x98] sm:$0xff] }
 0x856   :  { %v9438_v48 = vpack.c.bf16 %v2821_v47, %v2819_v46  ;;  %v2818_v49 = vld [vmem:[%s12684_s4 + $0x80] sm:$0xff]  ;;  %v2977_v46 = vld [vmem:[#allocation16 + $0xa0] sm:$0xff]  ;;  %v2978_v47 = vld [vmem:[#allocation16 + $0xa8] sm:$0xff] }
 0x85b   :  { %v2621_v50 = vpop.f32.mrb[62].mxu1 }
 0x85c   :  { %v2635_v52 = vadd.f32 %v2621_v50, %v2521_v36  ;;  %v8455_v54 = vpop.f32.mrb[63].mxu1  ;;  %v2812_v36 = vld [vmem:[%s12684_s4 + $0x50] sm:$0xff] }
 0x85d   :  { %v9432_v40 = vpack.c.bf16 %v2812_v36, %v2810_v35  ;;  %v2820_v50 = vld [vmem:[%s12684_s4 + $0x90] sm:$0xff]  ;;  %v2975_v36 = vld [vmem:[#allocation16 + $0x90] sm:$0xff] }
 0x85e   :  { %v2645_v55 = vadd.f32 %v6979_v51, %v2635_v52  ;;  %v2825_v52 = vld [vmem:[%s12684_s4 + $0xb8] sm:$0xff]  ;;  %v9440_v54 = vpack.c.bf16 %v2820_v50, %v2818_v49  ;;  %v2958_v35 = vld [vmem:[#allocation16 + $0x8] sm:$0xff]  ;;  %v9494_v50 = vpack.c.bf16 %v2978_v47, %v2977_v46 }
 0x85f   :  { %v2626_v44 = vpop.f32.mrb[64].mxu1  ;;  %v3008_v47 = vld [vmem:[#allocation16 + $0x170] sm:$0xff] }
 0x860   :  { %v2648_v56 = vmax.f32 %v2645_v55, 0.0  ;;  %v2636_v57 = vadd.f32 %v2626_v44, %v2526_v41  ;;  %v8458_v58 = vpop.f32.mrb[65].mxu1  ;;  %v9434_v41 = vpack.c.bf16 %v2817_v33, %v2815_v37  ;;  %v2822_v44 = vld [vmem:[%s12684_s4 + $0xa0] sm:$0xff] }
 0x861   :  { %v2976_v37 = vld [vmem:[#allocation16 + $0x98] sm:$0xff] }
 0x862   :  { %v2669_v60 = vmul.f32 %v2657_v59, %v2648_v56  ;;  %v2646_v61 = vadd.f32 %v6979_v51, %v2636_v57  ;;  %v2824_v56 = vld [vmem:[%s12684_s4 + $0xb0] sm:$0xff]  ;;  %v2827_v57 = vld [vmem:[%s12684_s4 + $0xc8] sm:$0xff] }
 0x863   :  { %v2631_v62 = vpop.f32.mrb[66].mxu1  ;;  %v9444_v58 = vpack.c.bf16 %v2824_v56, %v2822_v44  ;;  %v2980_v44 = vld [vmem:[#allocation16 + $0xb8] sm:$0xff] }
 0x864   :  { %2672 = vst [vmem:[#allocation6 + $0x1] sm:$0xff] %v2669_v60  ;;  %v2649_v63 = vmax.f32 %v2646_v61, 0.0  ;;  %v2637_v2 = vadd.f32 %v2631_v62, %v2531_v38  ;;  %v8461_v4 = vpop.f32.mrb[67].mxu1  ;;  %v9436_v38 = vpack.c.bf16 %v2816_v45, %v2814_v42  ;;  %v2826_v60 = vld [vmem:[%s12684_s4 + $0xc0] sm:$0xff]  ;;  %v2828_v61 = vld [vmem:[%s12684_s4 + $0xd0] sm:$0xff]  ;;  %v2831_v62 = vld [vmem:[%s12684_s4 + $0xe8] sm:$0xff] }
 0x865   :  { %v2960_v42 = vld [vmem:[#allocation16 + $0x18] sm:$0xff] }
 0x866   :  { %v2670_v6 = vmul.f32 %v2662_v5, %v2649_v63  ;;  %v2647_v3 = vadd.f32 %v6979_v51, %v2637_v2  ;;  %v2823_v51 = vld [vmem:[%s12684_s4 + $0xa8] sm:$0xff]  ;;  %v2833_v63 = vld [vmem:[%s12684_s4 + $0xf8] sm:$0xff]  ;;  %v9448_v2 = vpack.c.bf16 %v2828_v61, %v2826_v60  ;;  %v2830_v5 = vld [vmem:[%s12684_s4 + $0xe0] sm:$0xff] }
 0x867   :  { %v9442_v55 = vpack.c.bf16 %v2825_v52, %v2823_v51  ;;  %v9450_v4 = vpack.c.bf16 %v2833_v63, %v2831_v62  ;;  %v2961_v51 = vld [vmem:[#allocation16 + $0x20] sm:$0xff]  ;;  %v2962_v52 = vld [vmem:[#allocation16 + $0x28] sm:$0xff] }
 0x868   :  { %2673 = vst [vmem:[#allocation6 + $0x9] sm:$0xff] %v2670_v6  ;;  %v2650_v7 = vmax.f32 %v2647_v3, 0.0  ;;  %v2832_v6 = vld [vmem:[%s12684_s4 + $0xf0] sm:$0xff]  ;;  %v9496_v56 = vpack.c.bf16 %v2962_v52, %v2961_v51  ;;  %v2981_v61 = vld [vmem:[#allocation16 + $0xc0] sm:$0xff] }
 0x869   :  { %v9452_v3 = vpack.c.bf16 %v2832_v6, %v2830_v5  ;;  %v2982_v62 = vld [vmem:[#allocation16 + $0xc8] sm:$0xff]  ;;  %v2983_v6 = vld [vmem:[#allocation16 + $0xd0] sm:$0xff] }
 0x86a   :  { %v2671_v9 = vmul.f32 %v2667_v8, %v2650_v7  ;;  %v2973_v7 = vld [vmem:[#allocation16 + $0x80] sm:$0xff]  ;;  %v2974_v8 = vld [vmem:[#allocation16 + $0x88] sm:$0xff] }
 0x86b   :  { %v2681_v10 = vld [vmem:[#allocation6] sm:$0xff] }
 0x86c   :  { %2674 = vst [vmem:[#allocation6 + $0x11] sm:$0xff] %v2671_v9  ;;  %v9486_v9 = vpack.c.bf16 %v2974_v8, %v2973_v7  ;;  %v2966_v5 = vld [vmem:[#allocation16 + $0x48] sm:$0xff] }
 0x86d   :  { %v3273_v51 = vld [vmem:[#allocation16 + $0x288] sm:$0xff] }
 0x86f   :  { %v2682_v11 = vld [vmem:[#allocation6 + $0x8] sm:$0xff] }
 0x870   :  { %v9412_v12 = vpack.c.bf16 %v2682_v11, %v2681_v10  ;;  %v3010_v10 = vld [vmem:[#allocation16 + $0x180] sm:$0xff]  ;;  %v3011_v11 = vld [vmem:[#allocation16 + $0x188] sm:$0xff] }
 0x871   :  { %v9454_v14 = vpack.c.bf16 %v3011_v11, %v3010_v10  ;;  %v2968_v10 = vld [vmem:[#allocation16 + $0x58] sm:$0xff] }
 0x872   :  { %9413 = vmatprep.subr.bf16.mxu0 %v9412_v12 }
 0x873   :  { %9415 = vmatpush3.bf16.msra.mxu0 %v9412_v12  ;;  %v2683_v15 = vld [vmem:[#allocation6 + $0x10] sm:$0xff]  ;;  %v2684_v16 = vld [vmem:[#allocation6 + $0x18] sm:$0x3]  ;;  %9455 = vmatprep.subr.bf16.mxu1 %v9454_v14 }
 0x874   :  { %v9416_v17 = vpack.c.bf16 %v2684_v16, %v2683_v15  ;;  %v2994_v12 = vld [vmem:[#allocation16 + $0x100] sm:$0xff]  ;;  %v3012_v16 = vld [vmem:[#allocation16 + $0x190] sm:$0xff] }
 0x875   :  { %v9456_v15 = vpack.c.bf16 %v2995_v13, %v2994_v12  ;;  %v2985_v12 = vld [vmem:[#allocation16 + $0xe0] sm:$0xff]  ;;  %v2986_v13 = vld [vmem:[#allocation16 + $0xe8] sm:$0xff] }
 0x876   :  { %9418 = vmatprep.subr.msk.bf16.mxu0 %vm11251_vm5, %v9416_v17  ;;  %v9510_v14 = vpack.c.bf16 %v2986_v13, %v2985_v12 }
 0x877   :  { %9421 = vmatpush3.bf16.msk.msra.mxu0 %vm11251_vm5, %v9416_v17  ;;  %v3013_v17 = vld [vmem:[#allocation16 + $0x198] sm:$0xff]  ;;  %9457 = vmatpush3.bf16.msra.mxu1 %v9456_v15  ;;  %v2969_v15 = vld [vmem:[#allocation16 + $0x60] sm:$0xff] }
 0x878   :  { %9423 = vmatprep.subr.bf16.mxu0 %v9422_v18  ;;  %v9458_v18 = vpack.c.bf16 %v3013_v17, %v3012_v16  ;;  %v2970_v16 = vld [vmem:[#allocation16 + $0x68] sm:$0xff] }
 0x879   :  { %v9512_v17 = vpack.c.bf16 %v2970_v16, %v2969_v15 }
 0x87a   :  { %8471 = vmatmul.mubr.msk.f32.vlgmr.msra.gmra.mrb[74].mxu0 %vm2685_vm9, %v2676_v23  ;;  %9459 = vmatprep.subr.bf16.mxu1 %v9458_v18  ;;  %v3015_v23 = vld [vmem:[#allocation16 + $0x1a8] sm:$0xff]  ;;  %v3018_v18 = vld [vmem:[#allocation16 + $0x1c0] sm:$0xff] }
 0x87b   :  { %8473 = vmatprep.mubr.msk.f32.mxu0 %vm2685_vm9, %v2677_v25  ;;  %9425 = vmatpush1.bf16.msra.mxu0 %v9424_v24  ;;  %v2998_v24 = vld [vmem:[#allocation16 + $0x120] sm:$0xff]  ;;  %v9462_v25 = vpack.c.bf16 %v3015_v23, %v3014_v22  ;;  %v9470_v20 = vpack.c.bf16 %v3019_v19, %v3018_v18  ;;  %v3003_v22 = vld [vmem:[#allocation16 + $0x148] sm:$0xff]  ;;  %v2987_v23 = vld [vmem:[#allocation16 + $0xf0] sm:$0xff] }
 0x87c   :  { %9427 = vmatprep.subr.bf16.mxu0 %v9426_v26  ;;  %v2999_v26 = vld [vmem:[#allocation16 + $0x128] sm:$0xff]  ;;  %9461 = vmatpush3.bf16.msra.mxu1 %v9460_v21  ;;  %v3002_v21 = vld [vmem:[#allocation16 + $0x140] sm:$0xff] }
 0x87d   :  { %v9464_v29 = vpack.c.bf16 %v2999_v26, %v2998_v24  ;;  %9463 = vmatprep.subr.bf16.mxu1 %v9462_v25  ;;  %v9472_v24 = vpack.c.bf16 %v3003_v22, %v3002_v21  ;;  %v2988_v25 = vld [vmem:[#allocation16 + $0xf8] sm:$0xff]  ;;  %v2971_v26 = vld [vmem:[#allocation16 + $0x70] sm:$0xff] }
 0x87e   :  { %8474 = vmatmul.mubr.msk.f32.gmra.mrb[76].mxu0 %vm2685_vm9, %v2678_v1  ;;  %v3000_v1 = vld [vmem:[#allocation16 + $0x130] sm:$0xff]  ;;  %v9516_v28 = vpack.c.bf16 %v2972_v27, %v2971_v26  ;;  %v3259_v27 = vld [vmem:[#allocation16 + $0x218] sm:$0xff] }
 0x87f   :  { %8476 = vmatprep.mubr.msk.f32.mxu0 %vm2685_vm9, %v2679_v32  ;;  %9429 = vmatpush1.bf16.msra.mxu0 %v9428_v31  ;;  %v3001_v31 = vld [vmem:[#allocation16 + $0x138] sm:$0xff]  ;;  %v3258_v26 = vld [vmem:[#allocation16 + $0x210] sm:$0xff] }
 0x880   :  { %9431 = vmatprep.subr.bf16.mxu0 %v9430_v34  ;;  %9465 = vmatpush3.bf16.msra.mxu1 %v9464_v29  ;;  %v9468_v32 = vpack.c.bf16 %v3001_v31, %v3000_v1  ;;  %v2957_v34 = vld [vmem:[#allocation16] sm:$0xff]  ;;  %v9514_v29 = vpack.c.bf16 %v2988_v25, %v2987_v23  ;;  %v3021_v1 = vld [vmem:[#allocation16 + $0x1d8] sm:$0xff] }
 0x881   :  { %9467 = vmatprep.subr.bf16.mxu1 %v9466_v30  ;;  %v9488_v33 = vpack.c.bf16 %v2958_v35, %v2957_v34  ;;  %v3020_v30 = vld [vmem:[#allocation16 + $0x1d0] sm:$0xff]  ;;  %v3005_v34 = vld [vmem:[#allocation16 + $0x158] sm:$0xff] }
 0x882   :  { %8477 = vmatmul.mubr.msk.f32.gmra.mrb[78].mxu0 %vm2685_vm9, %v2680_v39  ;;  %v9474_v31 = vpack.c.bf16 %v3021_v1, %v3020_v30 }
 0x883   :  { %9433 = vmatpush1.bf16.msra.mxu0 %v9432_v40  ;;  %2898 = vmatprep.mubr.f32.mxu0 %v11295_v53  ;;  %v2829_v53 = vld [vmem:[%s12684_s4 + $0xd8] sm:$0xff]  ;;  %v9490_v40 = vpack.c.bf16 %v2976_v37, %v2975_v36  ;;  %v3022_v36 = vld [vmem:[#allocation16 + $0x1e0] sm:$0xff]  ;;  %v3023_v37 = vld [vmem:[#allocation16 + $0x1e8] sm:$0xff] }
 0x884   :  { %9435 = vmatprep.subr.bf16.mxu0 %v9434_v41  ;;  %v9446_v59 = vpack.c.bf16 %v2829_v53, %v2827_v57  ;;  %9469 = vmatpush3.bf16.msra.mxu1 %v9468_v32  ;;  %v2959_v41 = vld [vmem:[#allocation16 + $0x10] sm:$0xff] }
 0x885   :  { %9471 = vmatprep.subr.bf16.mxu1 %v9470_v20  ;;  %v3004_v32 = vld [vmem:[#allocation16 + $0x150] sm:$0xff] }
 0x886   :  { %v9476_v35 = vpack.c.bf16 %v3005_v34, %v3004_v32  ;;  %v3434_v32 = vld [vmem:[%s12686_s21 + $0x48] sm:$0xff] }
 0x887   :  { %9437 = vmatpush1.bf16.msra.mxu0 %v9436_v38  ;;  %v11443_v38 = vld [vmem:[#allocation8] sm:$0xff] }
 0x888   :  { %9439 = vmatprep.subr.bf16.mxu0 %v9438_v48  ;;  %12685 = vst [vmem:[#allocation71_spill] sm:$0xff] %v11443_v38  ;;  %v9492_v48 = vpack.c.bf16 %v2960_v42, %v2959_v41  ;;  %9473 = vmatpush3.bf16.msra.mxu1 %v9472_v24  ;;  %v3024_v42 = vld [vmem:[#allocation16 + $0x1f0] sm:$0xff] }
 0x889   :  { %9475 = vmatprep.subr.bf16.mxu1 %v9474_v31  ;;  %v3433_v31 = vld [vmem:[%s12686_s21 + $0x40] sm:$0xff] }
 0x88b   :  { %9441 = vmatpush1.bf16.msra.mxu0 %v9440_v54 }
 0x88c   :  { %9443 = vmatprep.subr.bf16.mxu0 %v9442_v55  ;;  %v2979_v55 = vld [vmem:[#allocation16 + $0xb0] sm:$0xff]  ;;  %9477 = vmatpush3.bf16.msra.mxu1 %v9476_v35 }
 0x88d   :  { %v9498_v53 = vpack.c.bf16 %v2980_v44, %v2979_v55  ;;  %v3426_v55 = vld [vmem:[%s12686_s21 + $0x8] sm:$0xff] }
 0x88f   :  { %9445 = vmatpush1.bf16.msra.mxu0 %v9444_v58  ;;  %v2963_v58 = vld [vmem:[#allocation16 + $0x30] sm:$0xff] }
 0x890   :  { %9447 = vmatprep.subr.bf16.mxu0 %v9446_v59  ;;  %v2964_v59 = vld [vmem:[#allocation16 + $0x38] sm:$0xff] }
 0x891   :  { %v9500_v63 = vpack.c.bf16 %v2964_v59, %v2963_v58  ;;  %v3428_v58 = vld [vmem:[%s12686_s21 + $0x18] sm:$0xff] }
 0x893   :  { %9449 = vmatpush1.bf16.msra.mxu0 %v9448_v2  ;;  %v9502_v2 = vpack.c.bf16 %v2982_v62, %v2981_v61  ;;  %v3429_v62 = vld [vmem:[%s12686_s21 + $0x20] sm:$0xff] }
 0x894   :  { %9451 = vmatprep.subr.bf16.mxu0 %v9450_v4  ;;  %v2965_v4 = vld [vmem:[#allocation16 + $0x40] sm:$0xff] }
 0x895   :  { %v9504_v7 = vpack.c.bf16 %v2966_v5, %v2965_v4  ;;  %v3257_v4 = vld [vmem:[#allocation16 + $0x208] sm:$0xff] }
 0x896   :  { %v3431_v5 = vld [vmem:[%s12686_s21 + $0x30] sm:$0xff] }
 0x897   :  { %9453 = vmatpush1.bf16.msra.mxu0 %v9452_v3  ;;  %v2984_v3 = vld [vmem:[#allocation16 + $0xd8] sm:$0xff] }
 0x898   :  { %9487 = vmatprep.subr.bf16.mxu0 %v9486_v9  ;;  %v9506_v8 = vpack.c.bf16 %v2984_v3, %v2983_v6  ;;  %v2967_v9 = vld [vmem:[#allocation16 + $0x50] sm:$0xff]  ;;  %v3275_v3 = vld [vmem:[#allocation16 + $0x298] sm:$0xff] }
 0x899   :  { %v9508_v11 = vpack.c.bf16 %v2968_v10, %v2967_v9  ;;  %v3274_v6 = vld [vmem:[#allocation16 + $0x290] sm:$0xff] }
 0x89a   :  { %v9522_v24 = vpack.c.bf16 %v3275_v3, %v3274_v6 }
 0x94d   :  { %v8472_v39 = vpop.f32.mrb[74].mxu0 }
 0x94e   :  { %v2773_v45 = vpop.f32.mrb[75].mxu0 }
 0x94f   :  { %2899 = vmatmul.mubr.f32.vlgmr.msra.gmra.mrb[80].mxu0 %v2773_v45  ;;  %v3025_v45 = vld [vmem:[#allocation16 + $0x1f8] sm:$0xff] }
 0x950   :  { %2904 = vmatprep.mubr.f32.mxu0 %v11443_v38  ;;  %9489 = vmatpush3.bf16.msra.mxu0 %v9488_v33  ;;  %v9478_v33 = vpack.c.bf16 %v3023_v37, %v3022_v36  ;;  %v9482_v46 = vpack.c.bf16 %v3025_v45, %v3024_v42  ;;  %v9524_v42 = vpack.c.bf16 %v3259_v27, %v3258_v26  ;;  %v3439_v26 = vld [vmem:[%s12686_s21 + $0x70] sm:$0xff]  ;;  %v3282_v27 = vld [vmem:[#allocation16 + $0x2d0] sm:$0xff] }
 0x951   :  { %v8475_v49 = vpop.f32.mrb[76].mxu0  ;;  %9491 = vmatprep.subr.bf16.mxu0 %v9490_v40  ;;  %v3007_v40 = vld [vmem:[#allocation16 + $0x168] sm:$0xff] }
 0x952   :  { %v2783_v54 = vpop.f32.mrb[77].mxu0  ;;  %9479 = vmatprep.subr.bf16.mxu1 %v9478_v33  ;;  %v3276_v33 = vld [vmem:[#allocation16 + $0x2a0] sm:$0xff] }
 0x953   :  { %2905 = vmatmul.mubr.f32.gmra.mrb[82].mxu0 %v8472_v39  ;;  %v3006_v39 = vld [vmem:[#allocation16 + $0x160] sm:$0xff] }
 0x954   :  { %2910 = vmatprep.mubr.f32.mxu0 %v11443_v38  ;;  %9493 = vmatpush3.bf16.msra.mxu0 %v9492_v48  ;;  %v9480_v41 = vpack.c.bf16 %v3007_v40, %v3006_v39  ;;  %v3009_v48 = vld [vmem:[#allocation16 + $0x178] sm:$0xff]  ;;  %v3277_v39 = vld [vmem:[#allocation16 + $0x2a8] sm:$0xff] }
 0x955   :  { %v8478_v57 = vpop.f32.mrb[78].mxu0  ;;  %9495 = vmatprep.subr.bf16.mxu0 %v9494_v50  ;;  %v3272_v50 = vld [vmem:[#allocation16 + $0x280] sm:$0xff] }
 0x956   :  { %v2793_v60 = vpop.f32.mrb[79].mxu0  ;;  %9481 = vmatpush3.bf16.msra.mxu1 %v9480_v41  ;;  %v9518_v52 = vpack.c.bf16 %v3273_v51, %v3272_v50  ;;  %v9563_v50 = vpack.c.bf16 %v3434_v32, %v3433_v31 }
 0x957   :  { %2911 = vmatmul.mubr.f32.gmra.mrb[84].mxu0 %v2783_v54  ;;  %9483 = vmatprep.subr.bf16.mxu1 %v9482_v46  ;;  %v3425_v54 = vld [vmem:[%s12686_s21] sm:$0xff] }
 0x958   :  { %2916 = vmatprep.mubr.f32.mxu0 %v11443_v38  ;;  %9497 = vmatpush3.bf16.msra.mxu0 %v9496_v56  ;;  %v9551_v56 = vpack.c.bf16 %v3426_v55, %v3425_v54  ;;  %v9526_v55 = vpack.c.bf16 %v3277_v39, %v3276_v33 }
 0x959   :  { %9499 = vmatprep.subr.bf16.mxu0 %v9498_v53  ;;  %v3427_v53 = vld [vmem:[%s12686_s21 + $0x10] sm:$0xff] }
 0x95b   :  { %2917 = vmatmul.mubr.f32.gmra.mrb[86].mxu0 %v8475_v49  ;;  %v9484_v49 = vpack.c.bf16 %v3009_v48, %v3008_v47  ;;  %v3260_v48 = vld [vmem:[#allocation16 + $0x220] sm:$0xff] }
 0x95c   :  { %2922 = vmatprep.mubr.f32.mxu0 %v11443_v38  ;;  %9501 = vmatpush3.bf16.msra.mxu0 %v9500_v63  ;;  %v3430_v63 = vld [vmem:[%s12686_s21 + $0x28] sm:$0xff] }
 0x95d   :  { %9503 = vmatprep.subr.bf16.mxu0 %v9502_v2  ;;  %9485 = vmatpush3.bf16.msra.mxu1 %v9484_v49  ;;  %v3256_v2 = vld [vmem:[#allocation16 + $0x200] sm:$0xff]  ;;  %v9557_v13 = vpack.c.bf16 %v3430_v63, %v3429_v62  ;;  %v3261_v49 = vld [vmem:[#allocation16 + $0x228] sm:$0xff] }
 0x95e   :  { %9519 = vmatprep.subr.bf16.mxu1 %v9518_v52  ;;  %v9520_v23 = vpack.c.bf16 %v3257_v4, %v3256_v2  ;;  %v9528_v2 = vpack.c.bf16 %v3261_v49, %v3260_v48  ;;  %v7004_v48 = vld [vmem:[%s12686_s21 + $0x108] sm:$0xff] }
 0x95f   :  { %2923 = vmatmul.mubr.f32.gmra.mrb[88].mxu0 %v2793_v60  ;;  %v9554_v60 = vpack.c.bf16 %v3428_v58, %v3427_v53  ;;  %v3278_v58 = vld [vmem:[#allocation16 + $0x2b0] sm:$0xff] }
 0x960   :  { %2928 = vmatprep.mubr.f32.mxu0 %v11443_v38  ;;  %9505 = vmatpush3.bf16.msra.mxu0 %v9504_v7  ;;  %v3432_v7 = vld [vmem:[%s12686_s21 + $0x38] sm:$0xff] }
 0x961   :  { %9507 = vmatprep.subr.bf16.mxu0 %v9506_v8 }
 0x963   :  { %2929 = vmatmul.mubr.f32.gmra.mrb[90].mxu0 %v8478_v57 }
 0x964   :  { %9509 = vmatpush3.bf16.msra.mxu0 %v9508_v11 }
 0x965   :  { %9511 = vmatprep.subr.bf16.mxu0 %v9510_v14 }
 0x968   :  { %9513 = vmatpush3.bf16.msra.mxu0 %v9512_v17 }
 0x969   :  { %9515 = vmatprep.subr.bf16.mxu0 %v9514_v29  ;;  %v9560_v29 = vpack.c.bf16 %v3432_v7, %v3431_v5 }
 0x96c   :  { %9517 = vmatpush3.bf16.msra.mxu0 %v9516_v28 }
 0x96d   :  { %9550 = vmatprep.subr.bf16.mxu0 %v10670_v0 }
 0xa22   :  { %v2900_v44 = vpop.f32.mrb[80].mxu0 }
 0xa23   :  { %2935 = vst [vmem:[#allocation7] sm:$0xff] %v2900_v44  ;;  %v2902_v57 = vpop.f32.mrb[81].mxu0 }
 0xa24   :  { %2936 = vst [vmem:[#allocation7 + $0x8] sm:$0xff] %v2902_v57  ;;  %3225 = vmatprep.mubr.f32.mxu0 %v2902_v57 }
 0xa25   :  { %3226 = vmatmul.mubr.f32.vlgmr.msra.gmra.mrb[92].mxu0 %v2900_v44  ;;  %v3435_v44 = vld [vmem:[%s12686_s21 + $0x50] sm:$0xff] }
 0xa26   :  { %v11455_v59 = vpop.f32.mrb[82].mxu0  ;;  %9552 = vmatpush3.bf16.msra.mxu0 %v9551_v56  ;;  %v3436_v56 = vld [vmem:[%s12686_s21 + $0x58] sm:$0xff] }
 0xa27   :  { %v11457_v61 = vpop.f32.mrb[83].mxu0  ;;  %9553 = vmatprep.subr.bf16.mxu0 %v10670_v0  ;;  %v3040_v10 = vrot.slane %v11455_v59, 1  ;;  %v3294_v11 = vrot.slane %v11455_v59, 2  ;;  %v9566_v3 = vpack.c.bf16 %v3436_v56, %v3435_v44  ;;  %v3269_v44 = vld [vmem:[#allocation16 + $0x268] sm:$0xff] }
 0xa28   :  { %3230 = vmatprep.mubr.f32.mxu0 %v11457_v61  ;;  %v3043_v9 = vrot.slane %v11457_v61, 1  ;;  %v3297_v15 = vrot.slane %v11457_v61, 2 }
 0xa29   :  { %3231 = vmatmul.mubr.f32.gmra.mrb[94].mxu0 %v11455_v59 }
 0xa2a   :  { %v2912_v8 = vpop.f32.mrb[84].mxu0  ;;  %9555 = vmatpush3.bf16.msra.mxu0 %v9554_v60  ;;  %v2989_v12 = vld [vmem:[#allocation7] sm:$0xfe]  ;;  %v3279_v60 = vld [vmem:[#allocation16 + $0x2b8] sm:$0xff] }
 0xa2b   :  { %v2914_v14 = vpop.f32.mrb[85].mxu0  ;;  %v2990_v16 = vld [vmem:[#allocation7 + $0x8] sm:$0xfe]  ;;  %v3039_v17 = vrot.slane %v2989_v12, 1  ;;  %9556 = vmatprep.subr.bf16.mxu0 %v10670_v0  ;;  %v3045_v18 = vrot.slane %v2912_v8, 1  ;;  %v3299_v22 = vrot.slane %v2912_v8, 2 }
 0xa2c   :  { %v3042_v19 = vrot.slane %v2990_v16, 1  ;;  %v3047_v20 = vrot.slane %v2914_v14, 1  ;;  %3235 = vmatprep.mubr.f32.mxu0 %v2914_v14  ;;  %v3301_v21 = vrot.slane %v2914_v14, 2  ;;  %v3262_v12 = vld [vmem:[#allocation16 + $0x230] sm:$0xff]  ;;  %v3437_v14 = vld [vmem:[%s12686_s21 + $0x60] sm:$0xff] }
 0xa2d   :  { %v3046_v25 = vsel %vm3038_vm10, %v3040_v10, %v3045_v18  ;;  %3236 = vmatmul.mubr.f32.gmra.mrb[96].mxu0 %v2912_v8  ;;  %v11484_v35 = vsel %vm3292_vm11, %v3294_v11, %v3299_v22  ;;  %v3041_v37 = vsel %vm3038_vm10, %v3039_v17, %v3040_v10  ;;  %v9530_v10 = vpack.c.bf16 %v3279_v60, %v3278_v58  ;;  %v3286_v60 = vld [vmem:[#allocation16 + $0x2f0] sm:$0xff] }
 0xa2e   :  { %v2918_v28 = vpop.f32.mrb[86].mxu0  ;;  %v3044_v30 = vsel %vm3038_vm10, %v3042_v19, %v3043_v9  ;;  %9558 = vmatpush3.bf16.msra.mxu0 %v9557_v13  ;;  %v3048_v1 = vsel %vm3038_vm10, %v3043_v9, %v3047_v20  ;;  %v11479_v34 = vsel %vm3292_vm11, %v3297_v15, %v3301_v21  ;;  %v3263_v13 = vld [vmem:[#allocation16 + $0x238] sm:$0xff]  ;;  %v3281_v19 = vld [vmem:[#allocation16 + $0x2c8] sm:$0xff] }
 0xa2f   :  { %v2920_v36 = vpop.f32.mrb[87].mxu0  ;;  %3135 = vmatprep.mubr.f32.mxu1 %v3044_v30  ;;  %9559 = vmatprep.subr.bf16.mxu0 %v10670_v0  ;;  %v3049_v40 = vrot.slane %v2918_v28, 1  ;;  %v3303_v41 = vrot.slane %v2918_v28, 2 }
 0xa30   :  { %3136 = vmatmul.mubr.f32.vlgmr.msra.gmra.mrb[68].mxu1 %v3041_v37  ;;  %v3051_v45 = vrot.slane %v2920_v36, 1  ;;  %3240 = vmatprep.mubr.f32.mxu0 %v2920_v36  ;;  %v3305_v46 = vrot.slane %v2920_v36, 2  ;;  %v3266_v36 = vld [vmem:[#allocation16 + $0x250] sm:$0xff]  ;;  %v3267_v37 = vld [vmem:[#allocation16 + $0x258] sm:$0xff] }
 0xa31   :  { %9521 = vmatpush3.bf16.msra.mxu1 %v9520_v23  ;;  %3140 = vmatprep.mubr.f32.mxu1 %v3048_v1  ;;  %v3050_v47 = vsel %vm3038_vm10, %v3045_v18, %v3049_v40  ;;  %v11490_v51 = vsel %vm3292_vm11, %v3299_v22, %v3303_v41  ;;  %v3280_v18 = vld [vmem:[#allocation16 + $0x2c0] sm:$0xff]  ;;  %v3252_v1 = vld [vmem:[#allocation7 + $0x8] sm:$0xfc]  ;;  %v9540_v49 = vpack.c.bf16 %v3267_v37, %v3266_v36 }
 0xa32   :  { %v11492_v52 = vpop.f32.mrb[88].mxu0  ;;  %9523 = vmatprep.subr.bf16.mxu1 %v9522_v24  ;;  %9561 = vmatpush3.bf16.msra.mxu0 %v9560_v29  ;;  %v3052_v54 = vsel %vm3038_vm10, %v3047_v20, %v3051_v45  ;;  %v11498_v57 = vsel %vm3292_vm11, %v3301_v21, %v3305_v46  ;;  %v3438_v20 = vld [vmem:[%s12686_s21 + $0x68] sm:$0xff]  ;;  %v9532_v21 = vpack.c.bf16 %v3263_v13, %v3262_v12  ;;  %v3265_v24 = vld [vmem:[#allocation16 + $0x248] sm:$0xff]  ;;  %v3283_v29 = vld [vmem:[#allocation16 + $0x2d8] sm:$0xff] }
 0xa33   :  { %v11500_v53 = vpop.f32.mrb[89].mxu0  ;;  %9562 = vmatprep.subr.bf16.mxu0 %v10670_v0  ;;  %3241 = vmatmul.mubr.f32.gmra.mrb[98].mxu0 %v2918_v28  ;;  %v3053_v62 = vrot.slane %v11492_v52, 1  ;;  %v3307_v63 = vrot.slane %v11492_v52, 2  ;;  %v9534_v22 = vpack.c.bf16 %v3281_v19, %v3280_v18  ;;  %v3264_v23 = vld [vmem:[#allocation16 + $0x240] sm:$0xff]  ;;  %v3440_v28 = vld [vmem:[%s12686_s21 + $0x78] sm:$0xff]  ;;  %v9538_v32 = vpack.c.bf16 %v3283_v29, %v3282_v27  ;;  %v3271_v12 = vld [vmem:[#allocation16 + $0x278] sm:$0xff] }
 0xa34   :  { %3141 = vmatmul.mubr.f32.gmra.mrb[70].mxu1 %v3046_v25  ;;  %v3055_v4 = vrot.slane %v11500_v53, 1  ;;  %3245 = vmatprep.mubr.f32.mxu0 %v11500_v53  ;;  %v3309_v5 = vrot.slane %v11500_v53, 2  ;;  %v9569_v25 = vpack.c.bf16 %v3438_v20, %v3437_v14  ;;  %v9536_v30 = vpack.c.bf16 %v3265_v24, %v3264_v23  ;;  %v7007_v13 = vld [vmem:[%s12686_s21 + $0x120] sm:$0xff]  ;;  %v7008_v14 = vld [vmem:[%s12686_s21 + $0x128] sm:$0xff]  ;;  %v7009_v23 = vld [vmem:[%s12686_s21 + $0x130] sm:$0xff] }
 0xa35   :  { %9525 = vmatpush3.bf16.msra.mxu1 %v9524_v42  ;;  %3145 = vmatprep.mubr.f32.mxu1 %v3052_v54  ;;  %v3054_v6 = vsel %vm3038_vm10, %v3049_v40, %v3053_v62  ;;  %v11514_v7 = vsel %vm3292_vm11, %v3303_v41, %v3307_v63  ;;  %v9572_v33 = vpack.c.bf16 %v3440_v28, %v3439_v26  ;;  %v3284_v41 = vld [vmem:[#allocation16 + $0x2e0] sm:$0xff]  ;;  %v3285_v42 = vld [vmem:[#allocation16 + $0x2e8] sm:$0xff]  ;;  %v6987_v19 = vld [vmem:[%s12686_s21 + $0x80] sm:$0xff] }
 0xa36   :  { %v2930_v8 = vpop.f32.mrb[90].mxu0  ;;  %9527 = vmatprep.subr.bf16.mxu1 %v9526_v55  ;;  %9564 = vmatpush3.bf16.msra.mxu0 %v9563_v50  ;;  %v3056_v9 = vsel %vm3038_vm10, %v3051_v45, %v3055_v4  ;;  %v11523_v16 = vsel %vm3292_vm11, %v3305_v46, %v3309_v5  ;;  %v3296_v46 = vrot.slane %v3252_v1, 2  ;;  %v9542_v54 = vpack.c.bf16 %v3285_v42, %v3284_v41  ;;  %v3268_v55 = vld [vmem:[#allocation16 + $0x260] sm:$0xff]  ;;  %v7010_v24 = vld [vmem:[%s12686_s21 + $0x138] sm:$0xff]  ;;  %v6989_v27 = vld [vmem:[%s12686_s21 + $0x90] sm:$0xff] }
 0xa37   :  { %2945 = vst [vmem:[#allocation7 + $0x50] sm:$0x3] %v2930_v8  ;;  %v2932_v17 = vpop.f32.mrb[91].mxu0  ;;  %9565 = vmatprep.subr.bf16.mxu0 %v10670_v0  ;;  %3246 = vmatmul.mubr.f32.gmra.mrb[100].mxu0 %v11492_v52  ;;  %v9544_v8 = vpack.c.bf16 %v3269_v44, %v3268_v55  ;;  %v3421_v18 = vld [vmem:[#allocation4 + $0x8] sm:$0xff]  ;;  %v6990_v29 = vld [vmem:[%s12686_s21 + $0x98] sm:$0xff]  ;;  %v7011_v1 = vld [vmem:[%s12686_s21 + $0x140] sm:$0xff] }
 0xa38   :  { %2946 = vst [vmem:[#allocation7 + $0x58] sm:$0x3] %v2932_v17  ;;  %3146 = vmatmul.mubr.f32.gmra.mrb[72].mxu1 %v3050_v47  ;;  %8511 = vmatprep.mubr.msk.f32.mxu0 %vm10672_vm0, %v11443_v38  ;;  %v7003_v47 = vld [vmem:[%s12686_s21 + $0x100] sm:$0xff]  ;;  %v6988_v20 = vld [vmem:[%s12686_s21 + $0x88] sm:$0xff]  ;;  %v9578_v59 = vpack.c.bf16 %v6990_v29, %v6989_v27  ;;  %v6993_v42 = vld [vmem:[%s12686_s21 + $0xb0] sm:$0xff] }
 0xa39   :  { %9529 = vmatpush3.bf16.msra.mxu1 %v9528_v2  ;;  %3150 = vmatprep.mubr.f32.mxu1 %v3056_v9  ;;  %v9599_v58 = vpack.c.bf16 %v7004_v48, %v7003_v47  ;;  %v3287_v2 = vld [vmem:[#allocation16 + $0x2f8] sm:$0xff]  ;;  %v9575_v26 = vpack.c.bf16 %v6988_v20, %v6987_v19  ;;  %v6992_v36 = vld [vmem:[%s12686_s21 + $0xa8] sm:$0xff]  ;;  %v3827_v19 = vld [vmem:[#allocation35] sm:$0xff] }
 0xa3a   :  { %9531 = vmatprep.subr.bf16.mxu1 %v9530_v10  ;;  %9567 = vmatpush3.bf16.msra.mxu0 %v9566_v3  ;;  %v7006_v3 = vld [vmem:[%s12686_s21 + $0x118] sm:$0xff]  ;;  %v3420_v9 = vld [vmem:[#allocation4] sm:$0xff]  ;;  %v7016_v48 = vld [vmem:[%s12686_s21 + $0x168] sm:$0xff] }
 0xa3b   :  { %9568 = vmatprep.subr.bf16.mxu0 %v10670_v0  ;;  %v3270_v10 = vld [vmem:[#allocation16 + $0x270] sm:$0xff]  ;;  %v7015_v47 = vld [vmem:[%s12686_s21 + $0x160] sm:$0xff] }
 0xa3c   :  { %3151 = vmatmul.mubr.f32.gmra.mrb[74].mxu1 %v3054_v6  ;;  %v7005_v6 = vld [vmem:[%s12686_s21 + $0x110] sm:$0xff]  ;;  %v9548_v17 = vpack.c.bf16 %v3271_v12, %v3270_v10  ;;  %v9617_v55 = vpack.c.bf16 %v7016_v48, %v7015_v47  ;;  %v3536_v12 = vld [vmem:[#allocation4 + $0x1] sm:$0xff] }
 0xa3d   :  { %9533 = vmatpush3.bf16.msra.mxu1 %v9532_v21  ;;  %v9602_v61 = vpack.c.bf16 %v7006_v3, %v7005_v6  ;;  %v7000_v6 = vld [vmem:[%s12686_s21 + $0xe8] sm:$0xff]  ;;  %v7001_v3 = vld [vmem:[%s12686_s21 + $0xf0] sm:$0xff] }
 0xa3e   :  { %9535 = vmatprep.subr.bf16.mxu1 %v9534_v22  ;;  %v2991_v31 = vld [vmem:[#allocation7 + $0x50] sm:$0x1]  ;;  %9570 = vmatpush3.bf16.msra.mxu0 %v9569_v25  ;;  %v9605_v22 = vpack.c.bf16 %v7008_v14, %v7007_v13  ;;  %v3422_v25 = vld [vmem:[#allocation4 + $0x10] sm:$0xff]  ;;  %v3657_v13 = vld [vmem:[#allocation4 + $0x22] sm:$0xff] }
 0xa3f   :  { %v2992_v39 = vld [vmem:[#allocation7 + $0x58] sm:$0x1]  ;;  %v3057_v40 = vrot.slane %v2991_v31, 1  ;;  %9571 = vmatprep.subr.bf16.mxu0 %v10670_v0  ;;  %v3655_v10 = vld [vmem:[#allocation4 + $0x12] sm:$0xff] }
 0xa40   :  { %v3059_v45 = vrot.slane %v2992_v39, 1  ;;  %v7012_v31 = vld [vmem:[%s12686_s21 + $0x148] sm:$0xff]  ;;  %v3424_v39 = vld [vmem:[#allocation4 + $0x20] sm:$0xff]  ;;  %v3538_v14 = vld [vmem:[#allocation4 + $0x11] sm:$0xff] }
 0xa41   :  { %9537 = vmatpush3.bf16.msra.mxu1 %v9536_v30  ;;  %v3058_v56 = vsel %vm3038_vm10, %v3053_v62, %v3057_v40  ;;  %v9546_v62 = vpack.c.bf16 %v3287_v2, %v3286_v60  ;;  %v9608_v30 = vpack.c.bf16 %v7010_v24, %v7009_v23  ;;  %v9611_v37 = vpack.c.bf16 %v7012_v31, %v7011_v1  ;;  %v3254_v41 = vld [vmem:[#allocation7 + $0x58] sm:$0x3]  ;;  %v6997_v60 = vld [vmem:[%s12686_s21 + $0xd0] sm:$0xff]  ;;  %v6998_v2 = vld [vmem:[%s12686_s21 + $0xd8] sm:$0xff] }
 0xa42   :  { %v3060_v50 = vsel %vm3038_vm10, %v3055_v4, %v3059_v45  ;;  %9539 = vmatprep.subr.bf16.mxu1 %v9538_v32  ;;  %9573 = vmatpush3.bf16.msra.mxu0 %v9572_v33  ;;  %v3298_v4 = vsel %vm3292_vm11, %v3296_v46, %v3297_v15  ;;  %v3251_v15 = vld [vmem:[#allocation7] sm:$0xfc]  ;;  %v3423_v32 = vld [vmem:[#allocation4 + $0x18] sm:$0xff]  ;;  %v3253_v46 = vld [vmem:[#allocation7 + $0x50] sm:$0x3] }
 0xa43   :  { %3155 = vmatprep.mubr.f32.mxu1 %v3060_v50  ;;  %9598 = vmatprep.subr.bf16.mxu0 %v10670_v0  ;;  %v3293_v21 = vrot.slane %v3251_v15, 2  ;;  %v7014_v33 = vld [vmem:[%s12686_s21 + $0x158] sm:$0xff]  ;;  %v6995_v50 = vld [vmem:[%s12686_s21 + $0xc0] sm:$0xff]  ;;  %v3537_v15 = vld [vmem:[#allocation4 + $0x9] sm:$0xff] }
 0xa44   :  { %3156 = vmatmul.mubr.f32.gmra.mrb[76].mxu1 %v3058_v56  ;;  %v6994_v45 = vld [vmem:[%s12686_s21 + $0xb8] sm:$0xff] }
 0xa45   :  { %3389 = vmatprep.mubr.f32.mxu1 %v3298_v4  ;;  %9541 = vmatpush3.bf16.msra.mxu1 %v9540_v49  ;;  %v3295_v28 = vsel %vm3292_vm11, %v3293_v21, %v3294_v11  ;;  %v6991_v11 = vld [vmem:[%s12686_s21 + $0xa0] sm:$0xff]  ;;  %v9584_v49 = vpack.c.bf16 %v6994_v45, %v6993_v42  ;;  %v7018_v56 = vld [vmem:[%s12686_s21 + $0x178] sm:$0xff] }
 0xa46   :  { %9543 = vmatprep.subr.bf16.mxu1 %v9542_v54  ;;  %8512 = vmatmul.mubr.f32.vlgmr.msra.gmra.mrb[102].mxu0 %v3420_v9  ;;  %v9581_v40 = vpack.c.bf16 %v6992_v36, %v6991_v11  ;;  %v6996_v54 = vld [vmem:[%s12686_s21 + $0xc8] sm:$0xff]  ;;  %v6999_v4 = vld [vmem:[%s12686_s21 + $0xe0] sm:$0xff] }
 0xa47   :  { %9600 = vmatpush3.bf16.msra.mxu0 %v9599_v58  ;;  %8514 = vmatprep.mubr.msk.f32.mxu0 %vm10672_vm0, %v11443_v38  ;;  %v9587_v58 = vpack.c.bf16 %v6996_v54, %v6995_v50  ;;  %v9593_v52 = vpack.c.bf16 %v7000_v6, %v6999_v4 }
 0xa48   :  { %9601 = vmatprep.subr.bf16.mxu0 %v10670_v0 }
 0xa49   :  { %9545 = vmatpush3.bf16.msra.mxu1 %v9544_v8  ;;  %v7002_v8 = vld [vmem:[%s12686_s21 + $0xf8] sm:$0xff] }
 0xa4a   :  { %9547 = vmatprep.subr.bf16.mxu1 %v9546_v62  ;;  %8515 = vmatmul.mubr.f32.gmra.mrb[104].mxu0 %v3421_v18  ;;  %v9596_v9 = vpack.c.bf16 %v7002_v8, %v7001_v3  ;;  %v3654_v62 = vld [vmem:[#allocation4 + $0xa] sm:$0xff]  ;;  %v3540_v18 = vld [vmem:[#allocation4 + $0x21] sm:$0xff] }
 0xa4b   :  { %9603 = vmatpush3.bf16.msra.mxu0 %v9602_v61  ;;  %8517 = vmatprep.mubr.msk.f32.mxu0 %vm10672_vm0, %v11443_v38  ;;  %v3656_v61 = vld [vmem:[#allocation4 + $0x1a] sm:$0xff] }
 0xa4c   :  { %9604 = vmatprep.subr.bf16.mxu0 %v10670_v0 }
 0xa4d   :  { %9549 = vmatpush3.bf16.msra.mxu1 %v9548_v17  ;;  %v3539_v17 = vld [vmem:[#allocation4 + $0x19] sm:$0xff] }
 0xa4e   :  { %9574 = vmatprep.subr.bf16.mxu1 %v10670_v0  ;;  %8518 = vmatmul.mubr.f32.gmra.mrb[106].mxu0 %v3422_v25 }
 0xa4f   :  { %9606 = vmatpush3.bf16.msra.mxu0 %v9605_v22  ;;  %8520 = vmatprep.mubr.msk.f32.mxu0 %vm10672_vm0, %v11443_v38 }
 0xa50   :  { %3390 = vmatmul.mubr.f32.vlgmr.msra.gmra.mrb[78].mxu1 %v3295_v28  ;;  %9607 = vmatprep.subr.bf16.mxu0 %v10670_v0 }
 0xa51   :  { %3394 = vmatprep.mubr.f32.mxu1 %v11479_v34  ;;  %9576 = vmatpush3.bf16.msra.mxu1 %v9575_v26  ;;  %v7013_v34 = vld [vmem:[%s12686_s21 + $0x150] sm:$0xff] }
 0xa52   :  { %9577 = vmatprep.subr.bf16.mxu1 %v10670_v0  ;;  %8521 = vmatmul.mubr.f32.gmra.mrb[108].mxu0 %v3423_v32 }
 0xa53   :  { %9609 = vmatpush3.bf16.msra.mxu0 %v9608_v30  ;;  %8523 = vmatprep.mubr.msk.f32.mxu0 %vm10672_vm0, %v11443_v38 }
 0xa54   :  { %3395 = vmatmul.mubr.f32.gmra.mrb[80].mxu1 %v11484_v35  ;;  %9610 = vmatprep.subr.bf16.mxu0 %v10670_v0  ;;  %v9614_v35 = vpack.c.bf16 %v7014_v33, %v7013_v34 }
 0xa55   :  { %3399 = vmatprep.mubr.f32.mxu1 %v11498_v57  ;;  %9579 = vmatpush3.bf16.msra.mxu1 %v9578_v59  ;;  %v3313_v57 = vrot.slane %v3254_v41, 2 }
 0xa56   :  { %9580 = vmatprep.subr.bf16.mxu1 %v10670_v0  ;;  %8524 = vmatmul.mubr.f32.gmra.mrb[110].mxu0 %v3424_v39 }
 0xa57   :  { %9612 = vmatpush3.bf16.msra.mxu0 %v9611_v37  ;;  %8605 = vmatprep.mubr.msk.f32.mxu0 %vm10672_vm0, %v11443_v38  ;;  %v3314_v44 = vsel %vm3292_vm11, %v3309_v5, %v3313_v57  ;;  %v9590_v5 = vpack.c.bf16 %v6998_v2, %v6997_v60 }
 0xa58   :  { %3400 = vmatmul.mubr.f32.gmra.mrb[82].mxu1 %v11490_v51  ;;  %9613 = vmatprep.subr.bf16.mxu0 %v10670_v0  ;;  %v3311_v51 = vrot.slane %v3253_v46, 2 }
 0xa59   :  { %3404 = vmatprep.mubr.f32.mxu1 %v11523_v16  ;;  %9582 = vmatpush3.bf16.msra.mxu1 %v9581_v40  ;;  %v7017_v16 = vld [vmem:[%s12686_s21 + $0x170] sm:$0xff] }
 0xa5a   :  { %9583 = vmatprep.subr.bf16.mxu1 %v10670_v0  ;;  %v9620_v53 = vpack.c.bf16 %v7018_v56, %v7017_v16 }
 0xa5b   :  { %9615 = vmatpush3.bf16.msra.mxu0 %v9614_v35 }
 0xa5c   :  { %3405 = vmatmul.mubr.f32.gmra.mrb[84].mxu1 %v11514_v7  ;;  %9616 = vmatprep.subr.bf16.mxu0 %v10670_v0  ;;  %v3312_v7 = vsel %vm3292_vm11, %v3307_v63, %v3311_v51  ;;  %v3653_v63 = vld [vmem:[#allocation4 + $0x2] sm:$0xff] }
 0xa5d   :  { %3409 = vmatprep.mubr.f32.mxu1 %v3314_v44  ;;  %9585 = vmatpush3.bf16.msra.mxu1 %v9584_v49 }
 0xa5e   :  { %9586 = vmatprep.subr.bf16.mxu1 %v10670_v0 }
 0xa5f   :  { %9618 = vmatpush3.bf16.msra.mxu0 %v9617_v55 }
 0xa60   :  { %3410 = vmatmul.mubr.f32.gmra.mrb[86].mxu1 %v3312_v7  ;;  %9619 = vmatprep.subr.bf16.mxu0 %v10670_v0 }
 0xa61   :  { %9588 = vmatpush3.bf16.msra.mxu1 %v9587_v58  ;;  %8558 = vmatprep.mubr.msk.f32.mxu1 %vm10672_vm0, %v11443_v38 }
 0xa62   :  { %9589 = vmatprep.subr.bf16.mxu1 %v10670_v0 }
 0xa63   :  { %9621 = vmatpush3.bf16.msra.mxu0 %v9620_v53 }
 0xa65   :  { %9591 = vmatpush3.bf16.msra.mxu1 %v9590_v5 }
 0xa66   :  { %9592 = vmatprep.subr.bf16.mxu1 %v10670_v0  ;;  %8606 = vmatmul.mubr.f32.vlgmr.msra.gmra.mrb[112].mxu0 %v3653_v63 }
 0xa67   :  { %8608 = vmatprep.mubr.msk.f32.mxu0 %vm10672_vm0, %v11443_v38 }
 0xa69   :  { %9594 = vmatpush3.bf16.msra.mxu1 %v9593_v52 }
 0xa6a   :  { %9595 = vmatprep.subr.bf16.mxu1 %v10670_v0  ;;  %8609 = vmatmul.mubr.f32.gmra.mrb[114].mxu0 %v3654_v62 }
 0xa6b   :  { %8611 = vmatprep.mubr.msk.f32.mxu0 %vm10672_vm0, %v11443_v38 }
 0xa6d   :  { %9597 = vmatpush3.bf16.msra.mxu1 %v9596_v9 }
 0xa6e   :  { %8612 = vmatmul.mubr.f32.gmra.mrb[116].mxu0 %v3655_v10 }
 0xa6f   :  { %8614 = vmatprep.mubr.msk.f32.mxu0 %vm10672_vm0, %v11443_v38 }
 0xa70   :  { %8559 = vmatmul.mubr.f32.vlgmr.msra.gmra.mrb[88].mxu1 %v3536_v12 }
 0xa71   :  { %8561 = vmatprep.mubr.msk.f32.mxu1 %vm10672_vm0, %v11443_v38 }
 0xa72   :  { %8615 = vmatmul.mubr.f32.gmra.mrb[118].mxu0 %v3656_v61 }
 0xa73   :  { %8617 = vmatprep.mubr.msk.f32.mxu0 %vm10672_vm0, %v11443_v38 }
 0xa74   :  { %8562 = vmatmul.mubr.f32.gmra.mrb[90].mxu1 %v3537_v15 }
 0xa75   :  { %8564 = vmatprep.mubr.msk.f32.mxu1 %vm10672_vm0, %v11443_v38 }
 0xa76   :  { %8618 = vmatmul.mubr.f32.gmra.mrb[120].mxu0 %v3657_v13 }
 0xa78   :  { %8565 = vmatmul.mubr.f32.gmra.mrb[92].mxu1 %v3538_v14 }
 0xa79   :  { %8567 = vmatprep.mubr.msk.f32.mxu1 %vm10672_vm0, %v11443_v38 }
 0xa7c   :  { %8568 = vmatmul.mubr.f32.gmra.mrb[94].mxu1 %v3539_v17 }
 0xa7d   :  { %8570 = vmatprep.mubr.msk.f32.mxu1 %vm10672_vm0, %v11443_v38 }
 0xa80   :  { %8571 = vmatmul.mubr.f32.gmra.mrb[96].mxu1 %v3540_v18 }
 0xa81   :  { %8632 = vmatprep.mubr.msk.f32.mxu1 %vm1917_vm8, %v3827_v19 }
 0xaf8   :  { %v7427_v20 = vpop.f32.mrb[92].mxu0 }
 0xaf9   :  { %v7428_v21 = vpop.f32.mrb[93].mxu0 }
 0xafa   :  { %v7429_v22 = vadd.f32 %v7428_v21, %v7427_v20 }
 0xafc   :  { %v7430_v23 = vpop.f32.mrb[94].mxu0 }
 0xafd   :  { %v7431_v24 = vpop.f32.mrb[95].mxu0 }
 0xafe   :  { %v7432_v25 = vadd.f32 %v7431_v24, %v7430_v23 }
 0xb00   :  { %v7433_v26 = vpop.f32.mrb[96].mxu0 }
 0xb01   :  { %v7434_v27 = vpop.f32.mrb[97].mxu0 }
 0xb02   :  { %v7435_v29 = vadd.f32 %v7434_v27, %v7433_v26 }
 0xb03   :  { %v7380_v28 = vpop.f32.mrb[68].mxu1 }
 0xb04   :  { %v7381_v30 = vpop.f32.mrb[69].mxu1 }
 0xb05   :  { %v7382_v1 = vadd.f32 %v7381_v30, %v7380_v28 }
 0xb06   :  { %v7436_v31 = vpop.f32.mrb[98].mxu0 }
 0xb07   :  { %v3228_v32 = vadd.f32 %v7429_v22, %v7382_v1  ;;  %v7383_v59 = vpop.f32.mrb[70].mxu1  ;;  %v7437_v11 = vpop.f32.mrb[99].mxu0 }
 0xb08   :  { %v7384_v36 = vpop.f32.mrb[71].mxu1  ;;  %v7438_v37 = vadd.f32 %v7437_v11, %v7436_v31 }
 0xb09   :  { %v7385_v34 = vadd.f32 %v7384_v36, %v7383_v59 }
 0xb0a   :  { %v7439_v33 = vpop.f32.mrb[100].mxu0 }
 0xb0b   :  { %v3233_v39 = vadd.f32 %v7432_v25, %v7385_v34  ;;  %v7386_v40 = vpop.f32.mrb[72].mxu1  ;;  %v7440_v41 = vpop.f32.mrb[101].mxu0  ;;  %v7019_v34 = vld [vmem:[%s12687_s11] ss:$0 sm:$0xff] }
 0xb0c   :  { %v7387_v42 = vpop.f32.mrb[73].mxu1  ;;  %v7441_v45 = vadd.f32 %v7440_v41, %v7439_v33 }
 0xb0d   :  { %v7388_v35 = vadd.f32 %v7387_v42, %v7386_v40 }
 0xb0f   :  { %v3238_v57 = vadd.f32 %v7435_v29, %v7388_v35  ;;  %v7389_v46 = vpop.f32.mrb[74].mxu1 }
 0xb10   :  { %v7390_v47 = vpop.f32.mrb[75].mxu1 }
 0xb11   :  { %v7391_v48 = vadd.f32 %v7390_v47, %v7389_v46 }
 0xb13   :  { %v3243_v49 = vadd.f32 %v7438_v37, %v7391_v48 }
 0xb17   :  { %v7392_v50 = vpop.f32.mrb[76].mxu1 }
 0xb18   :  { %v7393_v54 = vpop.f32.mrb[77].mxu1 }
 0xb19   :  { %v7394_v51 = vadd.f32 %v7393_v54, %v7392_v50  ;;  %v3507_v55 = vpop.f32.mrb[102].mxu0 }
 0xb1a   :  { %v8513_v44 = vpop.f32.mrb[103].mxu0 }
 0xb1b   :  { %v3248_v16 = vadd.f32 %v7441_v45, %v7394_v51 }
 0xb1d   :  { %v3512_v56 = vpop.f32.mrb[104].mxu0 }
 0xb1e   :  { %v8516_v58 = vpop.f32.mrb[105].mxu0 }
 0xb1f   :  { %v3800_v58 = vpop.permute.xlu0 %3799 }
 0xb21   :  { %v3517_v60 = vpop.f32.mrb[106].mxu0 }
 0xb22   :  { %v8519_v2 = vpop.f32.mrb[107].mxu0 }
 0xb23   :  { %v7474_v7 = vpop.f32.mrb[78].mxu1 }
 0xb24   :  { %v7475_v53 = vpop.f32.mrb[79].mxu1 }
 0xb25   :  { %v7476_v5 = vadd.f32 %v7475_v53, %v7474_v7  ;;  %v3522_v4 = vpop.f32.mrb[108].mxu0 }
 0xb26   :  { %v8522_v6 = vpop.f32.mrb[109].mxu0 }
 0xb27   :  { %v3415_v52 = vadd.f32 %v7476_v5, %v3228_v32  ;;  %v7477_v63 = vpop.f32.mrb[80].mxu1 }
 0xb28   :  { %v7478_v3 = vpop.f32.mrb[81].mxu1 }
 0xb29   :  { %v7479_v8 = vadd.f32 %v7478_v3, %v7477_v63  ;;  %v3527_v9 = vpop.f32.mrb[110].mxu0  ;;  %v3531_v62 = vadd.f32 %v3507_v55, %v3415_v52 }
 0xb2a   :  { %v8525_v10 = vpop.f32.mrb[111].mxu0 }
 0xb2b   :  { %v3416_v12 = vadd.f32 %v7479_v8, %v3233_v39  ;;  %v7480_v61 = vpop.f32.mrb[82].mxu1 }
 0xb2c   :  { %v7481_v15 = vpop.f32.mrb[83].mxu1 }
 0xb2d   :  { %v7482_v13 = vadd.f32 %v7481_v15, %v7480_v61  ;;  %v3532_v14 = vadd.f32 %v3512_v56, %v3416_v12  ;;  %v3810_v61 = vpop.permute.xlu0 %3809 }
 0xb2f   :  { %v3417_v17 = vadd.f32 %v7482_v13, %v3238_v57  ;;  %v7483_v18 = vpop.f32.mrb[84].mxu1 }
 0xb30   :  { %v7484_v19 = vpop.f32.mrb[85].mxu1 }
 0xb31   :  { %v7485_v20 = vadd.f32 %v7484_v19, %v7483_v18  ;;  %v3533_v21 = vadd.f32 %v3517_v60, %v3417_v17 }
 0xb33   :  { %v3418_v22 = vadd.f32 %v7485_v20, %v3243_v49  ;;  %v7486_v23 = vpop.f32.mrb[86].mxu1  ;;  %v3795_v49 = vpop.permute.xlu1 %3794 }
 0xb34   :  { %v7487_v24 = vpop.f32.mrb[87].mxu1 }
 0xb35   :  { %v7488_v25 = vadd.f32 %v7487_v24, %v7486_v23  ;;  %v3534_v26 = vadd.f32 %v3522_v4, %v3418_v22 }
 0xb37   :  { %v3419_v27 = vadd.f32 %v7488_v25, %v3248_v16  ;;  %v3805_v52 = vpop.permute.xlu1 %3804  ;;  %v3992_v25 = vld [vmem:[#allocation37 + $0x8] sm:$0xff] }
 0xb39   :  { %v3741_v29 = vpop.f32.mrb[112].mxu0  ;;  %v3535_v28 = vadd.f32 %v3527_v9, %v3419_v27 }
 0xb3a   :  { %v8607_v30 = vpop.f32.mrb[113].mxu0 }
 0xb3b   :  { %v3815_v20 = vpop.permute.xlu1 %3814 }
 0xb3d   :  { %v3746_v1 = vpop.f32.mrb[114].mxu0 }
 0xb3e   :  { %v8610_v31 = vpop.f32.mrb[115].mxu0 }
 0xb3f   :  { %v3993_v31 = vld [vmem:[#allocation37 + $0x10] sm:$0xff] }
 0xb41   :  { %v3751_v32 = vpop.f32.mrb[116].mxu0 }
 0xb42   :  { %v8613_v59 = vpop.f32.mrb[117].mxu0 }
 0xb43   :  { %v3624_v11 = vpop.f32.mrb[88].mxu1  ;;  %v3998_v59 = vld [vmem:[#allocation37 + $0x38] sm:$0xff] }
 0xb44   :  { %v3648_v36 = vadd.f32 %v3624_v11, %v3531_v62  ;;  %v8560_v37 = vpop.f32.mrb[89].mxu1  ;;  %v3828_v11 = vld [vmem:[#allocation35 + $0x8] sm:$0xff] }
 0xb45   :  { %v3756_v33 = vpop.f32.mrb[118].mxu0  ;;  %v3829_v37 = vld [vmem:[#allocation35 + $0x10] sm:$0xff] }
 0xb46   :  { %v3765_v39 = vadd.f32 %v3741_v29, %v3648_v36  ;;  %v8616_v40 = vpop.f32.mrb[119].mxu0 }
 0xb47   :  { %v3629_v41 = vpop.f32.mrb[90].mxu1  ;;  %v4000_v40 = vld [vmem:[#allocation37 + $0x48] sm:$0xff] }
 0xb48   :  { %v3777_v42 = vadd.f32 %v7019_v34, %v3765_v39  ;;  %v3649_v45 = vadd.f32 %v3629_v41, %v3532_v14  ;;  %v8563_v35 = vpop.f32.mrb[91].mxu1  ;;  %v3997_v39 = vld [vmem:[#allocation37 + $0x30] sm:$0xff]  ;;  %v4002_v41 = vld [vmem:[#allocation37 + $0x58] sm:$0xff] }
 0xb49   :  { %v3761_v57 = vpop.f32.mrb[120].mxu0  ;;  %v3831_v35 = vld [vmem:[#allocation35 + $0x20] sm:$0xff]  ;;  %v9644_v43 = vpack.c.bf16 %v4002_v41, %v4000_v40  ;;  %v4228_v41 = vld [vmem:[#allocation17 + $0x128] sm:$0xff] }
 0xb4a   :  { %v3782_v46 = vmax.f32 %v3777_v42, 0.0  ;;  %v3766_v47 = vadd.f32 %v3746_v1, %v3649_v45  ;;  %v8619_v48 = vpop.f32.mrb[121].mxu0  ;;  %v3991_v1 = vld [vmem:[#allocation37] sm:$0xff]  ;;  %v3830_v42 = vld [vmem:[#allocation35 + $0x18] sm:$0xff] }
 0xb4b   :  { %v3634_v50 = vpop.f32.mrb[92].mxu1  ;;  %v9638_v36 = vpack.c.bf16 %v3993_v31, %v3991_v1  ;;  %v4006_v48 = vld [vmem:[#allocation37 + $0x78] sm:$0xff]  ;;  %v4241_v31 = vld [vmem:[#allocation17 + $0x190] sm:$0xff] }
 0xb4c   :  { %v3817_v54 = vmul.f32 %v3795_v49, %v3782_v46  ;;  %v3778_v51 = vadd.f32 %v7019_v34, %v3766_v47  ;;  %v3650_v55 = vadd.f32 %v3634_v50, %v3533_v21  ;;  %v8566_v44 = vpop.f32.mrb[93].mxu1  ;;  %v4001_v46 = vld [vmem:[#allocation37 + $0x50] sm:$0xff]  ;;  %v4004_v47 = vld [vmem:[#allocation37 + $0x68] sm:$0xff]  ;;  %v3832_v49 = vld [vmem:[#allocation35 + $0x28] sm:$0xff] }
 0xb4d   :  { %v4005_v44 = vld [vmem:[#allocation37 + $0x70] sm:$0xff] }
 0xb4e   :  { %3822 = vst [vmem:[#allocation8 + $0x1] sm:$0xff] %v3817_v54  ;;  %v3783_v16 = vmax.f32 %v3778_v51, 0.0  ;;  %v3767_v56 = vadd.f32 %v3751_v32, %v3650_v55  ;;  %v3996_v32 = vld [vmem:[#allocation37 + $0x28] sm:$0xff]  ;;  %v3833_v54 = vld [vmem:[#allocation35 + $0x30] sm:$0xff]  ;;  %v9648_v51 = vpack.c.bf16 %v4006_v48, %v4004_v47 }
 0xb4f   :  { %v3639_v60 = vpop.f32.mrb[94].mxu1  ;;  %v4003_v55 = vld [vmem:[#allocation37 + $0x60] sm:$0xff] }
 0xb50   :  { %v3818_v2 = vmul.f32 %v3800_v58, %v3783_v16  ;;  %v3779_v7 = vadd.f32 %v7019_v34, %v3767_v56  ;;  %v3651_v53 = vadd.f32 %v3639_v60, %v3534_v26  ;;  %v8569_v5 = vpop.f32.mrb[95].mxu1  ;;  %v3994_v26 = vld [vmem:[#allocation37 + $0x18] sm:$0xff]  ;;  %v4008_v16 = vld [vmem:[#allocation37 + $0x88] sm:$0xff]  ;;  %v9650_v60 = vpack.c.bf16 %v4005_v44, %v4003_v55  ;;  %v4186_v48 = vld [vmem:[#allocation17] sm:$0xff] }
 0xb51   :  { %v9636_v30 = vpack.c.bf16 %v3994_v26, %v3992_v25  ;;  %v4010_v56 = vld [vmem:[#allocation37 + $0x98] sm:$0xff]  ;;  %v3834_v58 = vld [vmem:[#allocation35 + $0x38] sm:$0xff]  ;;  %v4009_v5 = vld [vmem:[#allocation37 + $0x90] sm:$0xff] }
 0xb52   :  { %3823 = vst [vmem:[#allocation8 + $0x9] sm:$0xff] %v3818_v2  ;;  %v3784_v4 = vmax.f32 %v3779_v7, 0.0  ;;  %v3768_v6 = vadd.f32 %v3756_v33, %v3651_v53  ;;  %v3995_v33 = vld [vmem:[#allocation37 + $0x20] sm:$0xff]  ;;  %v3835_v2 = vld [vmem:[#allocation35 + $0x40] sm:$0xff]  ;;  %v9652_v7 = vpack.c.bf16 %v4010_v56, %v4008_v16  ;;  %v4189_v56 = vld [vmem:[#allocation17 + $0x18] sm:$0xff] }
 0xb53   :  { %v3644_v63 = vpop.f32.mrb[96].mxu1  ;;  %v9642_v45 = vpack.c.bf16 %v3997_v39, %v3995_v33  ;;  %v4007_v53 = vld [vmem:[#allocation37 + $0x80] sm:$0xff]  ;;  %v4244_v33 = vld [vmem:[#allocation17 + $0x1a8] sm:$0xff]  ;;  %v4188_v16 = vld [vmem:[#allocation17 + $0x10] sm:$0xff] }
 0xb54   :  { %v3819_v3 = vmul.f32 %v3805_v52, %v3784_v4  ;;  %v3780_v8 = vadd.f32 %v7019_v34, %v3768_v6  ;;  %v3652_v9 = vadd.f32 %v3644_v63, %v3535_v28  ;;  %v8572_v62 = vpop.f32.mrb[97].mxu1  ;;  %v4012_v4 = vld [vmem:[#allocation37 + $0xa8] sm:$0xff]  ;;  %v4014_v6 = vld [vmem:[#allocation37 + $0xb8] sm:$0xff]  ;;  %v9654_v63 = vpack.c.bf16 %v4009_v5, %v4007_v53  ;;  %v4239_v26 = vld [vmem:[#allocation17 + $0x180] sm:$0xff] }
 0xb55   :  { %v3837_v14 = vld [vmem:[#allocation8] sm:$0xff]  ;;  %v3836_v52 = vld [vmem:[#allocation35 + $0x48] sm:$0x3]  ;;  %v4227_v39 = vld [vmem:[#allocation17 + $0x120] sm:$0xff] }
 0xb56   :  { %3824 = vst [vmem:[#allocation8 + $0x11] sm:$0xff] %v3819_v3  ;;  %v3785_v10 = vmax.f32 %v3780_v8, 0.0  ;;  %v3769_v12 = vadd.f32 %v3761_v57, %v3652_v9  ;;  %v3999_v57 = vld [vmem:[#allocation37 + $0x40] sm:$0xff]  ;;  %v9656_v3 = vpack.c.bf16 %v4014_v6, %v4012_v4  ;;  %v4013_v9 = vld [vmem:[#allocation37 + $0xb0] sm:$0xff]  ;;  %v4016_v62 = vld [vmem:[#allocation37 + $0xc8] sm:$0xff] }
 0xb57   :  { %v9646_v50 = vpack.c.bf16 %v4001_v46, %v3999_v57  ;;  %v4011_v8 = vld [vmem:[#allocation37 + $0xa0] sm:$0xff]  ;;  %v4229_v57 = vld [vmem:[#allocation17 + $0x130] sm:$0xff]  ;;  %v4230_v46 = vld [vmem:[#allocation17 + $0x138] sm:$0xff] }
 0xb58   :  { %v3820_v15 = vmul.f32 %v3810_v61, %v3785_v10  ;;  %v3781_v13 = vadd.f32 %v7019_v34, %v3769_v12  ;;  %v9640_v34 = vpack.c.bf16 %v3998_v59, %v3996_v32  ;;  %v4018_v10 = vld [vmem:[#allocation37 + $0xd8] sm:$0xff]  ;;  %v9658_v12 = vpack.c.bf16 %v4013_v9, %v4011_v8  ;;  %v4190_v4 = vld [vmem:[#allocation17 + $0x20] sm:$0xff]  ;;  %v4191_v6 = vld [vmem:[#allocation17 + $0x28] sm:$0xff] }
 0xb59   :  { %v3838_v17 = vld [vmem:[#allocation8 + $0x8] sm:$0xff]  ;;  %v9660_v61 = vpack.c.bf16 %v4018_v10, %v4016_v62  ;;  %v4242_v32 = vld [vmem:[#allocation17 + $0x198] sm:$0xff]  ;;  %v9682_v47 = vpack.c.bf16 %v4230_v46, %v4229_v57  ;;  %v9710_v8 = vpack.c.bf16 %v4191_v6, %v4190_v4 }
 0xb5a   :  { %3825 = vst [vmem:[#allocation8 + $0x19] sm:$0xff] %v3820_v15  ;;  %v3786_v18 = vmax.f32 %v3781_v13, 0.0  ;;  %v9622_v19 = vpack.c.bf16 %v3838_v17, %v3837_v14  ;;  %v4015_v15 = vld [vmem:[#allocation37 + $0xc0] sm:$0xff]  ;;  %v4017_v13 = vld [vmem:[#allocation37 + $0xd0] sm:$0xff]  ;;  %v4020_v14 = vld [vmem:[#allocation37 + $0xe8] sm:$0xff]  ;;  %v9672_v59 = vpack.c.bf16 %v4242_v32, %v4241_v31 }
 0xb5b   :  { %v4022_v17 = vld [vmem:[#allocation37 + $0xf8] sm:$0xff]  ;;  %v4192_v10 = vld [vmem:[#allocation17 + $0x30] sm:$0xff]  ;;  %v4215_v31 = vld [vmem:[#allocation17 + $0xe8] sm:$0xff] }
 0xb5c   :  { %v3821_v21 = vmul.f32 %v3815_v20, %v3786_v18  ;;  %9623 = vmatprep.subr.bf16.mxu1 %v9622_v19  ;;  %v9662_v18 = vpack.c.bf16 %v4017_v13, %v4015_v15  ;;  %v4019_v20 = vld [vmem:[#allocation37 + $0xe0] sm:$0xff]  ;;  %v4211_v13 = vld [vmem:[#allocation17 + $0xc8] sm:$0xff]  ;;  %v4238_v4 = vld [vmem:[#allocation17 + $0x178] sm:$0xff] }
 0xb5d   :  { %9625 = vmatpush3.bf16.msra.mxu1 %v9622_v19  ;;  %v3839_v22 = vld [vmem:[#allocation8 + $0x10] sm:$0xff]  ;;  %v9664_v19 = vpack.c.bf16 %v4022_v17, %v4020_v14  ;;  %v4210_v15 = vld [vmem:[#allocation17 + $0xc0] sm:$0xff] }
 0xb5e   :  { %3826 = vst [vmem:[#allocation8 + $0x21] sm:$0xff] %v3821_v21  ;;  %v4021_v21 = vld [vmem:[#allocation37 + $0xf0] sm:$0xff] }
 0xb61   :  { %v3840_v23 = vld [vmem:[#allocation8 + $0x18] sm:$0xff] }
 0xb62   :  { %v9626_v24 = vpack.c.bf16 %v3840_v23, %v3839_v22  ;;  %v9666_v22 = vpack.c.bf16 %v4021_v21, %v4019_v20  ;;  %v4202_v23 = vld [vmem:[#allocation17 + $0x80] sm:$0xff]  ;;  %v4195_v20 = vld [vmem:[#allocation17 + $0x48] sm:$0xff] }
 0xb64   :  { %9627 = vmatprep.subr.bf16.mxu1 %v9626_v24 }
 0xb65   :  { %9629 = vmatpush3.bf16.msra.mxu1 %v9626_v24  ;;  %v3841_v27 = vld [vmem:[#allocation8 + $0x20] sm:$0xff]  ;;  %v3842_v29 = vld [vmem:[#allocation8 + $0x28] sm:$0x3] }
 0xb66   :  { %v9630_v28 = vpack.c.bf16 %v3842_v29, %v3841_v27  ;;  %v4203_v24 = vld [vmem:[#allocation17 + $0x88] sm:$0xff]  ;;  %v4223_v29 = vld [vmem:[#allocation17 + $0x100] sm:$0xff] }
 0xb67   :  { %v9700_v25 = vpack.c.bf16 %v4203_v24, %v4202_v23  ;;  %v4240_v27 = vld [vmem:[#allocation17 + $0x188] sm:$0xff]  ;;  %v4213_v23 = vld [vmem:[#allocation17 + $0xd8] sm:$0xff] }
 0xb68   :  { %9632 = vmatprep.subr.msk.bf16.mxu1 %vm11251_vm5, %v9630_v28 }
 0xb69   :  { %9635 = vmatpush3.bf16.msk.msra.mxu1 %vm11251_vm5, %v9630_v28  ;;  %v4224_v28 = vld [vmem:[#allocation17 + $0x108] sm:$0xff] }
 0xb6a   :  { %9637 = vmatprep.subr.bf16.mxu1 %v9636_v30  ;;  %v9668_v30 = vpack.c.bf16 %v4240_v27, %v4239_v26  ;;  %v9670_v1 = vpack.c.bf16 %v4224_v28, %v4223_v29  ;;  %v4196_v29 = vld [vmem:[#allocation17 + $0x50] sm:$0xff]  ;;  %v4197_v28 = vld [vmem:[#allocation17 + $0x58] sm:$0xff] }
 0xb6c   :  { %8633 = vmatmul.mubr.msk.f32.vlgmr.msra.gmra.mrb[98].mxu1 %vm1917_vm8, %v3828_v11  ;;  %9669 = vmatprep.subr.bf16.mxu0 %v9668_v30  ;;  %v4225_v11 = vld [vmem:[#allocation17 + $0x110] sm:$0xff]  ;;  %v9722_v30 = vpack.c.bf16 %v4197_v28, %v4196_v29 }
 0xb6d   :  { %8635 = vmatprep.mubr.msk.f32.mxu1 %vm1917_vm8, %v3829_v37  ;;  %9639 = vmatpush1.bf16.msra.mxu1 %v9638_v36  ;;  %v4226_v36 = vld [vmem:[#allocation17 + $0x118] sm:$0xff] }
 0xb6e   :  { %9641 = vmatprep.subr.bf16.mxu1 %v9640_v34  ;;  %9671 = vmatpush3.bf16.msra.mxu0 %v9670_v1  ;;  %v9674_v37 = vpack.c.bf16 %v4226_v36, %v4225_v11  ;;  %v4243_v34 = vld [vmem:[#allocation17 + $0x1a0] sm:$0xff]  ;;  %v4199_v11 = vld [vmem:[#allocation17 + $0x68] sm:$0xff] }
 0xb6f   :  { %9673 = vmatprep.subr.bf16.mxu0 %v9672_v59  ;;  %v9676_v40 = vpack.c.bf16 %v4244_v33, %v4243_v34  ;;  %v4214_v1 = vld [vmem:[#allocation17 + $0xe0] sm:$0xff]  ;;  %v4248_v34 = vld [vmem:[#allocation17 + $0x1c8] sm:$0xff] }
 0xb70   :  { %8636 = vmatmul.mubr.msk.f32.gmra.mrb[100].mxu1 %vm1917_vm8, %v3830_v42  ;;  %v4245_v42 = vld [vmem:[#allocation17 + $0x1b0] sm:$0xff]  ;;  %v9724_v32 = vpack.c.bf16 %v4215_v31, %v4214_v1  ;;  %v4198_v59 = vld [vmem:[#allocation17 + $0x60] sm:$0xff] }
 0xb71   :  { %8638 = vmatprep.mubr.msk.f32.mxu1 %vm1917_vm8, %v3831_v35  ;;  %9643 = vmatpush1.bf16.msra.mxu1 %v9642_v45  ;;  %v9678_v45 = vpack.c.bf16 %v4228_v41, %v4227_v39  ;;  %v4246_v35 = vld [vmem:[#allocation17 + $0x1b8] sm:$0xff]  ;;  %v9726_v36 = vpack.c.bf16 %v4199_v11, %v4198_v59  ;;  %v4231_v39 = vld [vmem:[#allocation17 + $0x140] sm:$0xff]  ;;  %v4216_v41 = vld [vmem:[#allocation17 + $0xf0] sm:$0xff] }
 0xb72   :  { %9645 = vmatprep.subr.bf16.mxu1 %v9644_v43  ;;  %9675 = vmatpush3.bf16.msra.mxu0 %v9674_v37  ;;  %v9680_v43 = vpack.c.bf16 %v4246_v35, %v4245_v42  ;;  %v4247_v37 = vld [vmem:[#allocation17 + $0x1c0] sm:$0xff]  ;;  %v4200_v35 = vld [vmem:[#allocation17 + $0x70] sm:$0xff] }
 0xb73   :  { %9677 = vmatprep.subr.bf16.mxu0 %v9676_v40  ;;  %v9684_v33 = vpack.c.bf16 %v4248_v34, %v4247_v37  ;;  %v4232_v40 = vld [vmem:[#allocation17 + $0x148] sm:$0xff] }
 0xb74   :  { %8639 = vmatmul.mubr.msk.f32.gmra.mrb[102].mxu1 %vm1917_vm8, %v3832_v49  ;;  %v4187_v49 = vld [vmem:[#allocation17 + $0x8] sm:$0xff]  ;;  %v9686_v42 = vpack.c.bf16 %v4232_v40, %v4231_v39  ;;  %v4575_v39 = vld [vmem:[#allocation17 + $0x298] sm:$0xff] }
 0xb75   :  { %8641 = vmatprep.mubr.msk.f32.mxu1 %vm1917_vm8, %v3833_v54  ;;  %9647 = vmatpush1.bf16.msra.mxu1 %v9646_v50  ;;  %v4204_v50 = vld [vmem:[#allocation17 + $0x90] sm:$0xff]  ;;  %v4205_v54 = vld [vmem:[#allocation17 + $0x98] sm:$0xff] }
 0xb76   :  { %9649 = vmatprep.subr.bf16.mxu1 %v9648_v51  ;;  %9679 = vmatpush3.bf16.msra.mxu0 %v9678_v45  ;;  %v9702_v51 = vpack.c.bf16 %v4187_v49, %v4186_v48  ;;  %v9704_v44 = vpack.c.bf16 %v4205_v54, %v4204_v50  ;;  %v4217_v45 = vld [vmem:[#allocation17 + $0xf8] sm:$0xff]  ;;  %v4233_v50 = vld [vmem:[#allocation17 + $0x150] sm:$0xff] }
 0xb77   :  { %9681 = vmatprep.subr.bf16.mxu0 %v9680_v43  ;;  %v4201_v43 = vld [vmem:[#allocation17 + $0x78] sm:$0xff]  ;;  %v9728_v57 = vpack.c.bf16 %v4217_v45, %v4216_v41 }
 0xb78   :  { %8642 = vmatmul.mubr.msk.f32.gmra.mrb[104].mxu1 %vm1917_vm8, %v3834_v58  ;;  %v9730_v46 = vpack.c.bf16 %v4201_v43, %v4200_v35  ;;  %v4250_v48 = vld [vmem:[#allocation17 + $0x1d8] sm:$0xff] }
 0xb79   :  { %8644 = vmatprep.mubr.msk.f32.mxu1 %vm1917_vm8, %v3835_v2  ;;  %9651 = vmatpush1.bf16.msra.mxu1 %v9650_v60  ;;  %v4206_v60 = vld [vmem:[#allocation17 + $0xa0] sm:$0xff]  ;;  %v4207_v2 = vld [vmem:[#allocation17 + $0xa8] sm:$0xff]  ;;  %v4234_v54 = vld [vmem:[#allocation17 + $0x158] sm:$0xff] }
 0xb7a   :  { %9653 = vmatprep.subr.bf16.mxu1 %v9652_v7  ;;  %9683 = vmatpush3.bf16.msra.mxu0 %v9682_v47  ;;  %v9706_v7 = vpack.c.bf16 %v4189_v56, %v4188_v16  ;;  %v9708_v5 = vpack.c.bf16 %v4207_v2, %v4206_v60  ;;  %v4249_v47 = vld [vmem:[#allocation17 + $0x1d0] sm:$0xff]  ;;  %v4235_v56 = vld [vmem:[#allocation17 + $0x160] sm:$0xff] }
 0xb7b   :  { %9685 = vmatprep.subr.bf16.mxu0 %v9684_v33  ;;  %v9688_v49 = vpack.c.bf16 %v4250_v48, %v4249_v47  ;;  %v4253_v2 = vld [vmem:[#allocation17 + $0x1f0] sm:$0xff]  ;;  %v4785_v47 = vld [vmem:[#allocation19 + $0x48] sm:$0xff] }
 0xb7c   :  { %8645 = vmatmul.mubr.msk.f32.gmra.mrb[106].mxu1 %vm1917_vm8, %v3836_v52  ;;  %v4574_v33 = vld [vmem:[#allocation17 + $0x290] sm:$0xff] }
 0xb7d   :  { %9655 = vmatpush1.bf16.msra.mxu1 %v9654_v63  ;;  %4087 = vmatprep.mubr.f32.mxu1 %v11443_v38  ;;  %v4208_v63 = vld [vmem:[#allocation17 + $0xb0] sm:$0xff] }
 0xb7e   :  { %9657 = vmatprep.subr.bf16.mxu1 %v9656_v3  ;;  %v4209_v3 = vld [vmem:[#allocation17 + $0xb8] sm:$0xff]  ;;  %9687 = vmatpush3.bf16.msra.mxu0 %v9686_v42 }
 0xb7f   :  { %v9712_v62 = vpack.c.bf16 %v4209_v3, %v4208_v63  ;;  %9689 = vmatprep.subr.bf16.mxu0 %v9688_v49  ;;  %v4573_v63 = vld [vmem:[#allocation17 + $0x288] sm:$0xff] }
 0xb81   :  { %9659 = vmatpush1.bf16.msra.mxu1 %v9658_v12  ;;  %v4193_v12 = vld [vmem:[#allocation17 + $0x38] sm:$0xff] }
 0xb82   :  { %9661 = vmatprep.subr.bf16.mxu1 %v9660_v61  ;;  %v9714_v14 = vpack.c.bf16 %v4193_v12, %v4192_v10 }
 0xb85   :  { %9663 = vmatpush1.bf16.msra.mxu1 %v9662_v18  ;;  %v9716_v18 = vpack.c.bf16 %v4211_v13, %v4210_v15  ;;  %v4779_v15 = vld [vmem:[#allocation19 + $0x18] sm:$0xff] }
 0xb86   :  { %9665 = vmatprep.subr.bf16.mxu1 %v9664_v19  ;;  %v4194_v19 = vld [vmem:[#allocation17 + $0x40] sm:$0xff] }
 0xb87   :  { %v9718_v24 = vpack.c.bf16 %v4195_v20, %v4194_v19  ;;  %v4781_v19 = vld [vmem:[#allocation19 + $0x28] sm:$0xff]  ;;  %v4782_v20 = vld [vmem:[#allocation19 + $0x30] sm:$0xff] }
 0xb89   :  { %9667 = vmatpush1.bf16.msra.mxu1 %v9666_v22  ;;  %v4212_v22 = vld [vmem:[#allocation17 + $0xd0] sm:$0xff] }
 0xb8a   :  { %9701 = vmatprep.subr.bf16.mxu1 %v9700_v25  ;;  %v9720_v26 = vpack.c.bf16 %v4213_v23, %v4212_v22  ;;  %v4557_v22 = vld [vmem:[#allocation17 + $0x208] sm:$0xff]  ;;  %v4783_v23 = vld [vmem:[#allocation19 + $0x38] sm:$0xff] }
 0xb8b   :  { %v9774_v41 = vpack.c.bf16 %v4783_v23, %v4782_v20  ;;  %v4579_v20 = vld [vmem:[#allocation17 + $0x2b8] sm:$0xff] }
 0xc3f   :  { %v8634_v55 = vpop.f32.mrb[98].mxu1 }
 0xc40   :  { %v3942_v58 = vpop.f32.mrb[99].mxu1 }
 0xc41   :  { %4088 = vmatmul.mubr.f32.vlgmr.msra.gmra.mrb[108].mxu1 %v3942_v58  ;;  %v4236_v58 = vld [vmem:[#allocation17 + $0x168] sm:$0xff] }
 0xc42   :  { %4093 = vmatprep.mubr.f32.mxu1 %v11443_v38  ;;  %9703 = vmatpush3.bf16.msra.mxu1 %v9702_v51  ;;  %v9690_v51 = vpack.c.bf16 %v4234_v54, %v4233_v50  ;;  %v9694_v60 = vpack.c.bf16 %v4236_v58, %v4235_v56 }
 0xc43   :  { %v8637_v53 = vpop.f32.mrb[100].mxu1  ;;  %9705 = vmatprep.subr.bf16.mxu1 %v9704_v44  ;;  %v4252_v44 = vld [vmem:[#allocation17 + $0x1e8] sm:$0xff] }
 0xc44   :  { %v3952_v52 = vpop.f32.mrb[101].mxu1  ;;  %9691 = vmatpush3.bf16.msra.mxu0 %v9690_v51 }
 0xc45   :  { %4094 = vmatmul.mubr.f32.gmra.mrb[110].mxu1 %v8634_v55  ;;  %v4251_v55 = vld [vmem:[#allocation17 + $0x1e0] sm:$0xff] }
 0xc46   :  { %4099 = vmatprep.mubr.f32.mxu1 %v11443_v38  ;;  %9707 = vmatpush3.bf16.msra.mxu1 %v9706_v7  ;;  %v9692_v16 = vpack.c.bf16 %v4252_v44, %v4251_v55  ;;  %v4254_v7 = vld [vmem:[#allocation17 + $0x1f8] sm:$0xff]  ;;  %v9736_v55 = vpack.c.bf16 %v4575_v39, %v4574_v33  ;;  %v4558_v44 = vld [vmem:[#allocation17 + $0x210] sm:$0xff]  ;;  %v4580_v39 = vld [vmem:[#allocation17 + $0x2c0] sm:$0xff] }
 0xc47   :  { %v8640_v9 = vpop.f32.mrb[102].mxu1  ;;  %9709 = vmatprep.subr.bf16.mxu1 %v9708_v5  ;;  %v4237_v5 = vld [vmem:[#allocation17 + $0x170] sm:$0xff] }
 0xc48   :  { %v3962_v61 = vpop.f32.mrb[103].mxu1  ;;  %9693 = vmatprep.subr.bf16.mxu0 %v9692_v16  ;;  %v9698_v6 = vpack.c.bf16 %v4238_v4, %v4237_v5  ;;  %v4559_v16 = vld [vmem:[#allocation17 + $0x218] sm:$0xff] }
 0xc49   :  { %4100 = vmatmul.mubr.f32.gmra.mrb[112].mxu1 %v3952_v52  ;;  %9695 = vmatpush3.bf16.msra.mxu0 %v9694_v60  ;;  %v4572_v52 = vld [vmem:[#allocation17 + $0x280] sm:$0xff] }
 0xc4a   :  { %4105 = vmatprep.mubr.f32.mxu1 %v11443_v38  ;;  %9711 = vmatpush3.bf16.msra.mxu1 %v9710_v8  ;;  %v9732_v3 = vpack.c.bf16 %v4573_v63, %v4572_v52  ;;  %v4776_v8 = vld [vmem:[#allocation19] sm:$0xff]  ;;  %v9738_v52 = vpack.c.bf16 %v4559_v16, %v4558_v44  ;;  %v4786_v63 = vld [vmem:[#allocation19 + $0x50] sm:$0xff] }
 0xc4b   :  { %v8643_v17 = vpop.f32.mrb[104].mxu1  ;;  %9713 = vmatprep.subr.bf16.mxu1 %v9712_v62  ;;  %v4576_v60 = vld [vmem:[#allocation17 + $0x2a0] sm:$0xff] }
 0xc4c   :  { %v3972_v21 = vpop.f32.mrb[105].mxu1  ;;  %v4564_v16 = vld [vmem:[#allocation17 + $0x240] sm:$0xff] }
 0xc4d   :  { %4106 = vmatmul.mubr.f32.gmra.mrb[114].mxu1 %v8637_v53  ;;  %v9696_v53 = vpack.c.bf16 %v4254_v7, %v4253_v2  ;;  %v4577_v2 = vld [vmem:[#allocation17 + $0x2a8] sm:$0xff] }
 0xc4e   :  { %4111 = vmatprep.mubr.f32.mxu1 %v11443_v38  ;;  %9715 = vmatpush3.bf16.msra.mxu1 %v9714_v14 }
 0xc4f   :  { %v8646_v25 = vpop.f32.mrb[106].mxu1  ;;  %9717 = vmatprep.subr.bf16.mxu1 %v9716_v18  ;;  %9697 = vmatprep.subr.bf16.mxu0 %v9696_v53  ;;  %v4780_v18 = vld [vmem:[#allocation19 + $0x20] sm:$0xff] }
 0xc50   :  { %v3982_v27 = vpop.f32.mrb[107].mxu1  ;;  %9699 = vmatpush3.bf16.msra.mxu0 %v9698_v6  ;;  %v9771_v28 = vpack.c.bf16 %v4781_v19, %v4780_v18  ;;  %v4578_v19 = vld [vmem:[#allocation17 + $0x2b0] sm:$0xff] }
 0xc51   :  { %4112 = vmatmul.mubr.f32.gmra.mrb[116].mxu1 %v3962_v61  ;;  %9733 = vmatprep.subr.bf16.mxu0 %v9732_v3  ;;  %v4778_v61 = vld [vmem:[#allocation19 + $0x10] sm:$0xff]  ;;  %v4787_v3 = vld [vmem:[#allocation19 + $0x58] sm:$0xff] }
 0xc52   :  { %4117 = vmatprep.mubr.f32.mxu1 %v11443_v38  ;;  %9719 = vmatpush3.bf16.msra.mxu1 %v9718_v24  ;;  %v9768_v14 = vpack.c.bf16 %v4779_v15, %v4778_v61  ;;  %v4560_v61 = vld [vmem:[#allocation17 + $0x220] sm:$0xff]  ;;  %v4561_v15 = vld [vmem:[#allocation17 + $0x228] sm:$0xff] }
 0xc53   :  { %9721 = vmatprep.subr.bf16.mxu1 %v9720_v26 }
 0xc55   :  { %4118 = vmatmul.mubr.f32.gmra.mrb[118].mxu1 %v8640_v9  ;;  %v4777_v9 = vld [vmem:[#allocation19 + $0x8] sm:$0xff] }
 0xc56   :  { %4123 = vmatprep.mubr.f32.mxu1 %v11443_v38  ;;  %9723 = vmatpush3.bf16.msra.mxu1 %v9722_v30  ;;  %v9765_v10 = vpack.c.bf16 %v4777_v9, %v4776_v8 }
 0xc57   :  { %9725 = vmatprep.subr.bf16.mxu1 %v9724_v32 }
 0xc59   :  { %4124 = vmatmul.mubr.f32.gmra.mrb[120].mxu1 %v3972_v21  ;;  %v4556_v21 = vld [vmem:[#allocation17 + $0x200] sm:$0xff] }
 0xc5a   :  { %4129 = vmatprep.mubr.f32.mxu1 %v11443_v38  ;;  %9727 = vmatpush3.bf16.msra.mxu1 %v9726_v36 }
 0xc5b   :  { %9729 = vmatprep.subr.bf16.mxu1 %v9728_v57  ;;  %v9734_v57 = vpack.c.bf16 %v4557_v22, %v4556_v21  ;;  %v9780_v22 = vpack.c.bf16 %v4787_v3, %v4786_v63 }
 0xc5d   :  { %4130 = vmatmul.mubr.f32.gmra.mrb[122].mxu1 %v8643_v17 }
 0xc5e   :  { %4135 = vmatprep.mubr.f32.mxu1 %v11443_v38  ;;  %9731 = vmatpush3.bf16.msra.mxu1 %v9730_v46  ;;  %v4784_v46 = vld [vmem:[#allocation19 + $0x40] sm:$0xff] }
 0xc5f   :  { %9764 = vmatprep.subr.bf16.mxu1 %v10670_v0  ;;  %v9777_v53 = vpack.c.bf16 %v4785_v47, %v4784_v46  ;;  %v4790_v47 = vld [vmem:[#allocation19 + $0x70] sm:$0xff] }
 0xc61   :  { %4136 = vmatmul.mubr.f32.gmra.mrb[124].mxu1 %v3982_v27 }
 0xc62   :  { %4141 = vmatprep.mubr.f32.mxu1 %v11443_v38 }
 0xc65   :  { %4142 = vmatmul.mubr.f32.gmra.mrb[126].mxu1 %v8646_v25 }
 0xd14   :  { %v4089_v62 = vpop.f32.mrb[108].mxu1 }
 0xd15   :  { %4148 = vst [vmem:[#allocation9] sm:$0xff] %v4089_v62  ;;  %v4091_v12 = vpop.f32.mrb[109].mxu1 }
 0xd16   :  { %4149 = vst [vmem:[#allocation9 + $0x8] sm:$0xff] %v4091_v12  ;;  %4505 = vmatprep.mubr.f32.mxu1 %v4091_v12  ;;  %v9740_v12 = vpack.c.bf16 %v4577_v2, %v4576_v60  ;;  %v4582_v2 = vld [vmem:[#allocation17 + $0x2d0] sm:$0xff] }
 0xd17   :  { %4506 = vmatmul.mubr.f32.vlgmr.msra.gmra.mrb[128].mxu1 %v4089_v62 }
 0xd18   :  { %v11660_v13 = vpop.f32.mrb[110].mxu1  ;;  %9766 = vmatpush3.bf16.msra.mxu1 %v9765_v10 }
 0xd19   :  { %v11662_v17 = vpop.f32.mrb[111].mxu1  ;;  %9767 = vmatprep.subr.bf16.mxu1 %v10670_v0  ;;  %v4276_v26 = vrot.slane %v11660_v13, 1  ;;  %v4593_v27 = vrot.slane %v11660_v13, 2 }
 0xd1a   :  { %4510 = vmatprep.mubr.f32.mxu1 %v11662_v17  ;;  %v4279_v25 = vrot.slane %v11662_v17, 1  ;;  %v4596_v11 = vrot.slane %v11662_v17, 2 }
 0xd1b   :  { %4511 = vmatmul.mubr.f32.gmra.mrb[130].mxu1 %v11660_v13 }
 0xd1c   :  { %v4101_v24 = vpop.f32.mrb[112].mxu1  ;;  %v4218_v29 = vld [vmem:[#allocation9] sm:$0xfe]  ;;  %9769 = vmatpush3.bf16.msra.mxu1 %v9768_v14 }
 0xd1d   :  { %v4103_v30 = vpop.f32.mrb[113].mxu1  ;;  %v4219_v1 = vld [vmem:[#allocation9 + $0x8] sm:$0xfe]  ;;  %v4275_v31 = vrot.slane %v4218_v29, 1  ;;  %v4281_v32 = vrot.slane %v4101_v24, 1  ;;  %v4598_v59 = vrot.slane %v4101_v24, 2  ;;  %9770 = vmatprep.subr.bf16.mxu1 %v10670_v0 }
 0xd1e   :  { %v4278_v36 = vrot.slane %v4219_v1, 1  ;;  %v4283_v37 = vrot.slane %v4103_v30, 1  ;;  %4515 = vmatprep.mubr.f32.mxu1 %v4103_v30  ;;  %v4600_v34 = vrot.slane %v4103_v30, 2  ;;  %v4788_v29 = vld [vmem:[#allocation19 + $0x60] sm:$0xff] }
 0xd1f   :  { %4516 = vmatmul.mubr.f32.gmra.mrb[132].mxu1 %v4101_v24  ;;  %v4282_v40 = vsel %vm3038_vm10, %v4276_v26, %v4281_v32  ;;  %v11676_v42 = vsel %vm3292_vm11, %v4593_v27, %v4598_v59  ;;  %v4277_v50 = vsel %vm3038_vm10, %v4275_v31, %v4276_v26  ;;  %v9742_v26 = vpack.c.bf16 %v4561_v15, %v4560_v61  ;;  %v4566_v15 = vld [vmem:[#allocation17 + $0x250] sm:$0xff] }
 0xd20   :  { %v4107_v45 = vpop.f32.mrb[114].mxu1  ;;  %v4280_v35 = vsel %vm3038_vm10, %v4278_v36, %v4279_v25  ;;  %v4284_v43 = vsel %vm3038_vm10, %v4279_v25, %v4283_v37  ;;  %9772 = vmatpush3.bf16.msra.mxu1 %v9771_v28  ;;  %v11683_v48 = vsel %vm3292_vm11, %v4596_v11, %v4600_v34  ;;  %v4789_v28 = vld [vmem:[#allocation19 + $0x68] sm:$0xff]  ;;  %v4562_v36 = vld [vmem:[#allocation17 + $0x230] sm:$0xff] }
 0xd21   :  { %v4109_v49 = vpop.f32.mrb[115].mxu1  ;;  %4395 = vmatprep.mubr.f32.mxu0 %v4280_v35  ;;  %v4285_v54 = vrot.slane %v4107_v45, 1  ;;  %v4602_v51 = vrot.slane %v4107_v45, 2  ;;  %9773 = vmatprep.subr.bf16.mxu1 %v10670_v0 }
 0xd22   :  { %4396 = vmatmul.mubr.f32.vlgmr.msra.gmra.mrb[122].mxu0 %v4277_v50  ;;  %v4287_v56 = vrot.slane %v4109_v49, 1  ;;  %4520 = vmatprep.mubr.f32.mxu1 %v4109_v49  ;;  %v4604_v58 = vrot.slane %v4109_v49, 2  ;;  %v4791_v49 = vld [vmem:[#allocation19 + $0x78] sm:$0xff] }
 0xd23   :  { %4400 = vmatprep.mubr.f32.mxu0 %v4284_v43  ;;  %4521 = vmatmul.mubr.f32.gmra.mrb[134].mxu1 %v4107_v45  ;;  %v4286_v7 = vsel %vm3038_vm10, %v4281_v32, %v4285_v54  ;;  %v11689_v5 = vsel %vm3292_vm11, %v4598_v59, %v4602_v51  ;;  %v9744_v59 = vpack.c.bf16 %v4579_v20, %v4578_v19  ;;  %v4584_v20 = vld [vmem:[#allocation17 + $0x2e0] sm:$0xff] }
 0xd24   :  { %v4113_v4 = vpop.f32.mrb[116].mxu1  ;;  %9735 = vmatpush3.bf16.msra.mxu0 %v9734_v57  ;;  %v4288_v6 = vsel %vm3038_vm10, %v4283_v37, %v4287_v56  ;;  %9775 = vmatpush3.bf16.msra.mxu1 %v9774_v41  ;;  %v11693_v8 = vsel %vm3292_vm11, %v4600_v34, %v4604_v58  ;;  %v4563_v37 = vld [vmem:[#allocation17 + $0x238] sm:$0xff]  ;;  %v9783_v45 = vpack.c.bf16 %v4789_v28, %v4788_v29 }
 0xd25   :  { %v4115_v9 = vpop.f32.mrb[117].mxu1  ;;  %9737 = vmatprep.subr.bf16.mxu0 %v9736_v55  ;;  %v4289_v62 = vrot.slane %v4113_v4, 1  ;;  %v4606_v10 = vrot.slane %v4113_v4, 2  ;;  %9776 = vmatprep.subr.bf16.mxu1 %v10670_v0  ;;  %v9746_v46 = vpack.c.bf16 %v4563_v37, %v4562_v36  ;;  %v4568_v36 = vld [vmem:[#allocation17 + $0x260] sm:$0xff]  ;;  %v4569_v37 = vld [vmem:[#allocation17 + $0x268] sm:$0xff] }
 0xd26   :  { %4401 = vmatmul.mubr.f32.gmra.mrb[124].mxu0 %v4282_v40  ;;  %v4291_v14 = vrot.slane %v4115_v9, 1  ;;  %4525 = vmatprep.mubr.f32.mxu1 %v4115_v9  ;;  %v4608_v18 = vrot.slane %v4115_v9, 2  ;;  %v4581_v40 = vld [vmem:[#allocation17 + $0x2c8] sm:$0xff] }
 0xd27   :  { %4405 = vmatprep.mubr.f32.mxu0 %v4288_v6  ;;  %4526 = vmatmul.mubr.f32.gmra.mrb[136].mxu1 %v4113_v4  ;;  %v4290_v21 = vsel %vm3038_vm10, %v4285_v54, %v4289_v62  ;;  %v11698_v23 = vsel %vm3292_vm11, %v4602_v51, %v4606_v10  ;;  %v9748_v44 = vpack.c.bf16 %v4581_v40, %v4580_v39  ;;  %v4586_v40 = vld [vmem:[#allocation17 + $0x2f0] sm:$0xff] }
 0xd28   :  { %v4119_v24 = vpop.f32.mrb[118].mxu1  ;;  %9739 = vmatpush3.bf16.msra.mxu0 %v9738_v52  ;;  %v4292_v25 = vsel %vm3038_vm10, %v4287_v56, %v4291_v14  ;;  %9778 = vmatpush3.bf16.msra.mxu1 %v9777_v53  ;;  %v11702_v30 = vsel %vm3292_vm11, %v4604_v58, %v4608_v18  ;;  %v4565_v56 = vld [vmem:[#allocation17 + $0x248] sm:$0xff]  ;;  %v9786_v4 = vpack.c.bf16 %v4791_v49, %v4790_v47 }
 0xd29   :  { %v4121_v1 = vpop.f32.mrb[119].mxu1  ;;  %9741 = vmatprep.subr.bf16.mxu0 %v9740_v12  ;;  %v4293_v31 = vrot.slane %v4119_v24, 1  ;;  %v4610_v32 = vrot.slane %v4119_v24, 2  ;;  %9779 = vmatprep.subr.bf16.mxu1 %v10670_v0  ;;  %v9750_v3 = vpack.c.bf16 %v4565_v56, %v4564_v16  ;;  %v9758_v49 = vpack.c.bf16 %v4569_v37, %v4568_v36  ;;  %v4571_v16 = vld [vmem:[#allocation17 + $0x278] sm:$0xff] }
 0xd2a   :  { %4406 = vmatmul.mubr.f32.gmra.mrb[126].mxu0 %v4286_v7  ;;  %v4295_v34 = vrot.slane %v4121_v1, 1  ;;  %4530 = vmatprep.mubr.f32.mxu1 %v4121_v1  ;;  %v4612_v33 = vrot.slane %v4121_v1, 2  ;;  %v4583_v7 = vld [vmem:[#allocation17 + $0x2d8] sm:$0xff] }
 0xd2b   :  { %4410 = vmatprep.mubr.f32.mxu0 %v4292_v25  ;;  %4531 = vmatmul.mubr.f32.gmra.mrb[138].mxu1 %v4119_v24  ;;  %v4294_v41 = vsel %vm3038_vm10, %v4289_v62, %v4293_v31  ;;  %v11707_v35 = vsel %vm3292_vm11, %v4606_v10, %v4610_v32  ;;  %v9752_v61 = vpack.c.bf16 %v4583_v7, %v4582_v2  ;;  %v5069_v2 = vld [vmem:[#allocation19 + $0x118] sm:$0xff] }
 0xd2c   :  { %v4125_v43 = vpop.f32.mrb[120].mxu1  ;;  %9743 = vmatpush3.bf16.msra.mxu0 %v9742_v26  ;;  %v4296_v57 = vsel %vm3038_vm10, %v4291_v14, %v4295_v34  ;;  %9781 = vmatpush3.bf16.msra.mxu1 %v9780_v22  ;;  %v11711_v50 = vsel %vm3292_vm11, %v4608_v18, %v4612_v33  ;;  %v4567_v14 = vld [vmem:[#allocation17 + $0x258] sm:$0xff] }
 0xd2d   :  { %v4127_v54 = vpop.f32.mrb[121].mxu1  ;;  %9745 = vmatprep.subr.bf16.mxu0 %v9744_v59  ;;  %v4297_v51 = vrot.slane %v4125_v43, 1  ;;  %v4614_v55 = vrot.slane %v4125_v43, 2  ;;  %9782 = vmatprep.subr.bf16.mxu1 %v10670_v0  ;;  %v9754_v29 = vpack.c.bf16 %v4567_v14, %v4566_v15 }
 0xd2e   :  { %4411 = vmatmul.mubr.f32.gmra.mrb[128].mxu0 %v4290_v21  ;;  %v4299_v58 = vrot.slane %v4127_v54, 1  ;;  %4535 = vmatprep.mubr.f32.mxu1 %v4127_v54  ;;  %v4616_v60 = vrot.slane %v4127_v54, 2  ;;  %v4585_v21 = vld [vmem:[#allocation17 + $0x2e8] sm:$0xff] }
 0xd2f   :  { %4415 = vmatprep.mubr.f32.mxu0 %v4296_v57  ;;  %4536 = vmatmul.mubr.f32.gmra.mrb[140].mxu1 %v4125_v43  ;;  %v4298_v53 = vsel %vm3038_vm10, %v4293_v31, %v4297_v51  ;;  %v11716_v6 = vsel %vm3292_vm11, %v4610_v32, %v4614_v55  ;;  %v9756_v59 = vpack.c.bf16 %v4585_v21, %v4584_v20  ;;  %v5072_v20 = vld [vmem:[#allocation19 + $0x130] sm:$0xff]  ;;  %v5073_v21 = vld [vmem:[#allocation19 + $0x138] sm:$0xff] }
 0xd30   :  { %v4131_v52 = vpop.f32.mrb[122].mxu1  ;;  %9747 = vmatpush3.bf16.msra.mxu0 %v9746_v46  ;;  %v4300_v63 = vsel %vm3038_vm10, %v4295_v34, %v4299_v58  ;;  %9784 = vmatpush3.bf16.msra.mxu1 %v9783_v45  ;;  %v11720_v9 = vsel %vm3292_vm11, %v4612_v33, %v4616_v60  ;;  %v5066_v34 = vld [vmem:[#allocation19 + $0x100] sm:$0xff]  ;;  %v5067_v45 = vld [vmem:[#allocation19 + $0x108] sm:$0xff]  ;;  %v9822_v37 = vpack.c.bf16 %v5073_v21, %v5072_v20 }
 0xd31   :  { %v4133_v62 = vpop.f32.mrb[123].mxu1  ;;  %9749 = vmatprep.subr.bf16.mxu0 %v9748_v44  ;;  %v4301_v10 = vrot.slane %v4131_v52, 1  ;;  %v4618_v12 = vrot.slane %v4131_v52, 2  ;;  %9785 = vmatprep.subr.bf16.mxu1 %v10670_v0  ;;  %v4570_v44 = vld [vmem:[#allocation17 + $0x270] sm:$0xff]  ;;  %v9813_v56 = vpack.c.bf16 %v5067_v45, %v5066_v34 }
 0xd32   :  { %4416 = vmatmul.mubr.f32.gmra.mrb[130].mxu0 %v4294_v41  ;;  %v4303_v18 = vrot.slane %v4133_v62, 1  ;;  %4540 = vmatprep.mubr.f32.mxu1 %v4133_v62  ;;  %v4620_v19 = vrot.slane %v4133_v62, 2  ;;  %v4587_v41 = vld [vmem:[#allocation17 + $0x2f8] sm:$0xff]  ;;  %v9762_v7 = vpack.c.bf16 %v4571_v16, %v4570_v44  ;;  %v4926_v44 = vld [vmem:[#allocation19 + $0xa8] sm:$0xff] }
 0xd33   :  { %4420 = vmatprep.mubr.f32.mxu0 %v4300_v63  ;;  %4541 = vmatmul.mubr.f32.gmra.mrb[142].mxu1 %v4131_v52  ;;  %v4302_v22 = vsel %vm3038_vm10, %v4297_v51, %v4301_v10  ;;  %v11725_v24 = vsel %vm3292_vm11, %v4614_v55, %v4618_v12  ;;  %v9760_v55 = vpack.c.bf16 %v4587_v41, %v4586_v40  ;;  %v5070_v52 = vld [vmem:[#allocation19 + $0x120] sm:$0xff]  ;;  %v5071_v63 = vld [vmem:[#allocation19 + $0x128] sm:$0xff]  ;;  %v4770_v40 = vld [vmem:[#allocation2 + $0x18] sm:$0xff] }
 0xd34   :  { %v11727_v25 = vpop.f32.mrb[124].mxu1  ;;  %9751 = vmatpush3.bf16.msra.mxu0 %v9750_v3  ;;  %v4304_v26 = vsel %vm3038_vm10, %v4299_v58, %v4303_v18  ;;  %9787 = vmatpush3.bf16.msra.mxu1 %v9786_v4  ;;  %v11731_v28 = vsel %vm3292_vm11, %v4616_v60, %v4620_v19  ;;  %v4767_v58 = vld [vmem:[#allocation2] sm:$0xff]  ;;  %v5068_v60 = vld [vmem:[#allocation19 + $0x110] sm:$0xff]  ;;  %v4768_v4 = vld [vmem:[#allocation2 + $0x8] sm:$0xff]  ;;  %v9819_v15 = vpack.c.bf16 %v5071_v63, %v5070_v52 }
 0xd35   :  { %v11733_v1 = vpop.f32.mrb[125].mxu1  ;;  %9753 = vmatprep.subr.bf16.mxu0 %v9752_v61  ;;  %v4305_v31 = vrot.slane %v11727_v25, 1  ;;  %v4622_v32 = vrot.slane %v11727_v25, 2  ;;  %9812 = vmatprep.subr.bf16.mxu1 %v10670_v0  ;;  %v4552_v3 = vld [vmem:[#allocation9 + $0x8] sm:$0xfc]  ;;  %v4769_v61 = vld [vmem:[#allocation2 + $0x10] sm:$0xff] }
 0xd36   :  { %4421 = vmatmul.mubr.f32.gmra.mrb[132].mxu0 %v4298_v53  ;;  %v4307_v33 = vrot.slane %v11733_v1, 1  ;;  %4545 = vmatprep.mubr.f32.mxu1 %v11733_v1  ;;  %v4624_v39 = vrot.slane %v11733_v1, 2  ;;  %v9816_v53 = vpack.c.bf16 %v5069_v2, %v5068_v60  ;;  %v5075_v41 = vld [vmem:[#allocation19 + $0x148] sm:$0xff]  ;;  %v4928_v60 = vld [vmem:[#allocation19 + $0xb8] sm:$0xff] }
 0xd37   :  { %4425 = vmatprep.mubr.f32.mxu0 %v4304_v26  ;;  %4546 = vmatmul.mubr.f32.gmra.mrb[144].mxu1 %v11727_v25  ;;  %v4306_v43 = vsel %vm3038_vm10, %v4301_v10, %v4305_v31  ;;  %v11748_v57 = vsel %vm3292_vm11, %v4618_v12, %v4622_v32  ;;  %v4921_v26 = vld [vmem:[#allocation19 + $0x80] sm:$0xff]  ;;  %v5079_v16 = vld [vmem:[#allocation19 + $0x168] sm:$0xff]  ;;  %v5059_v1 = vld [vmem:[#allocation2 + $0x1a] sm:$0xff] }
 0xd38   :  { %v4143_v46 = vpop.f32.mrb[126].mxu1  ;;  %9755 = vmatpush3.bf16.msra.mxu0 %v9754_v29  ;;  %v4308_v47 = vsel %vm3038_vm10, %v4303_v18, %v4307_v33  ;;  %8679 = vmatprep.mubr.msk.f32.mxu1 %vm10672_vm0, %v11443_v38  ;;  %v11756_v54 = vsel %vm3292_vm11, %v4620_v19, %v4624_v39  ;;  %v4595_v18 = vrot.slane %v4552_v3, 2  ;;  %v4551_v19 = vld [vmem:[#allocation9] sm:$0xfc]  ;;  %v4922_v29 = vld [vmem:[#allocation19 + $0x88] sm:$0xff]  ;;  %v4931_v3 = vld [vmem:[#allocation19 + $0xd0] sm:$0xff] }
 0xd39   :  { %4166 = vst [vmem:[#allocation9 + $0x90] sm:$0x3] %v4143_v46  ;;  %v4145_v51 = vpop.f32.mrb[127].mxu1  ;;  %9757 = vmatprep.subr.bf16.mxu0 %v9756_v59  ;;  %v4592_v36 = vrot.slane %v4551_v19, 2  ;;  %v9789_v45 = vpack.c.bf16 %v4922_v29, %v4921_v26  ;;  %v4930_v52 = vld [vmem:[#allocation19 + $0xc8] sm:$0xff]  ;;  %v5060_v25 = vld [vmem:[#allocation2 + $0x22] sm:$0xff] }
 0xd3a   :  { %4167 = vst [vmem:[#allocation9 + $0x98] sm:$0x3] %v4145_v51  ;;  %4426 = vmatmul.mubr.f32.gmra.mrb[134].mxu0 %v4302_v22  ;;  %v4597_v34 = vsel %vm3292_vm11, %v4595_v18, %v4596_v11  ;;  %v5076_v11 = vld [vmem:[#allocation19 + $0x150] sm:$0xff] }
 0xd3b   :  { %4430 = vmatprep.mubr.f32.mxu0 %v4308_v47  ;;  %8680 = vmatmul.mubr.f32.vlgmr.msra.gmra.mrb[146].mxu1 %v4767_v58  ;;  %v4594_v46 = vsel %vm3292_vm11, %v4592_v36, %v4593_v27  ;;  %v5077_v47 = vld [vmem:[#allocation19 + $0x158] sm:$0xff]  ;;  %v5078_v27 = vld [vmem:[#allocation19 + $0x160] sm:$0xff]  ;;  %v4927_v58 = vld [vmem:[#allocation19 + $0xb0] sm:$0xff] }
 0xd3c   :  { %9759 = vmatpush3.bf16.msra.mxu0 %v9758_v49  ;;  %8682 = vmatprep.mubr.msk.f32.mxu1 %vm10672_vm0, %v11443_v38  ;;  %v4771_v49 = vld [vmem:[#allocation2 + $0x20] sm:$0xff]  ;;  %v9828_v13 = vpack.c.bf16 %v5077_v47, %v5076_v11  ;;  %v9831_v2 = vpack.c.bf16 %v5079_v16, %v5078_v27  ;;  %v5058_v21 = vld [vmem:[#allocation2 + $0x12] sm:$0xff]  ;;  %v5293_v47 = vld [vmem:[#allocation20 + $0x20] sm:$0xff] }
 0xd3d   :  { %9761 = vmatprep.subr.bf16.mxu0 %v9760_v55  ;;  %9814 = vmatpush3.bf16.msra.mxu1 %v9813_v56  ;;  %v4925_v55 = vld [vmem:[#allocation19 + $0xa0] sm:$0xff]  ;;  %v5062_v26 = vld [vmem:[#allocation2 + $0x32] sm:$0xff] }
 0xd3e   :  { %4431 = vmatmul.mubr.f32.gmra.mrb[136].mxu0 %v4306_v43  ;;  %9815 = vmatprep.subr.bf16.mxu1 %v10670_v0  ;;  %v4924_v43 = vld [vmem:[#allocation19 + $0x98] sm:$0xff]  ;;  %v9795_v56 = vpack.c.bf16 %v4926_v44, %v4925_v55  ;;  %v5295_v55 = vld [vmem:[#allocation20 + $0x30] sm:$0xff]  ;;  %v5297_v27 = vld [vmem:[#allocation20 + $0x40] sm:$0xff] }
 0xd3f   :  { %8683 = vmatmul.mubr.f32.gmra.mrb[148].mxu1 %v4768_v4  ;;  %v4929_v4 = vld [vmem:[#allocation19 + $0xc0] sm:$0xff]  ;;  %v4914_v29 = vld [vmem:[#allocation2 + $0x19] sm:$0xff]  ;;  %v5298_v16 = vld [vmem:[#allocation20 + $0x48] sm:$0xff] }
 0xd40   :  { %v4220_v62 = vld [vmem:[#allocation9 + $0x90] sm:$0x1]  ;;  %9763 = vmatpush3.bf16.msra.mxu0 %v9762_v7  ;;  %8685 = vmatprep.mubr.msk.f32.mxu1 %vm10672_vm0, %v11443_v38  ;;  %v5081_v7 = vld [vmem:[#allocation19 + $0x178] sm:$0xff] }
 0xd41   :  { %v4221_v10 = vld [vmem:[#allocation9 + $0x98] sm:$0x1]  ;;  %v4309_v12 = vrot.slane %v4220_v62, 1  ;;  %9817 = vmatpush3.bf16.msra.mxu1 %v9816_v53  ;;  %9788 = vmatprep.subr.bf16.mxu0 %v10670_v0  ;;  %v9798_v53 = vpack.c.bf16 %v4928_v60, %v4927_v58  ;;  %v4932_v62 = vld [vmem:[#allocation19 + $0xd8] sm:$0xff]  ;;  %v4553_v19 = vld [vmem:[#allocation9 + $0x90] sm:$0x3] }
 0xd42   :  { %v4311_v14 = vrot.slane %v4221_v10, 1  ;;  %9818 = vmatprep.subr.bf16.mxu1 %v10670_v0  ;;  %v4933_v10 = vld [vmem:[#allocation19 + $0xe0] sm:$0xff]  ;;  %v4626_v20 = vrot.slane %v4553_v19, 2  ;;  %v5296_v44 = vld [vmem:[#allocation20 + $0x38] sm:$0xff] }
 0xd43   :  { %8686 = vmatmul.mubr.f32.gmra.mrb[150].mxu1 %v4769_v61  ;;  %v4310_v59 = vsel %vm3038_vm10, %v4305_v31, %v4309_v12  ;;  %v4923_v31 = vld [vmem:[#allocation19 + $0x90] sm:$0xff]  ;;  %v4934_v12 = vld [vmem:[#allocation19 + $0xe8] sm:$0xff]  ;;  %v4915_v36 = vld [vmem:[#allocation2 + $0x21] sm:$0xff] }
 0xd44   :  { %v4312_v22 = vsel %vm3038_vm10, %v4307_v33, %v4311_v14  ;;  %8688 = vmatprep.mubr.msk.f32.mxu1 %vm10672_vm0, %v11443_v38  ;;  %v5074_v33 = vld [vmem:[#allocation19 + $0x140] sm:$0xff]  ;;  %v9792_v51 = vpack.c.bf16 %v4924_v43, %v4923_v31  ;;  %v9807_v61 = vpack.c.bf16 %v4934_v12, %v4933_v10  ;;  %v4936_v14 = vld [vmem:[#allocation19 + $0xf8] sm:$0xff]  ;;  %v5290_v31 = vld [vmem:[#allocation20 + $0x8] sm:$0xff] }
 0xd45   :  { %4435 = vmatprep.mubr.f32.mxu0 %v4312_v22  ;;  %9820 = vmatpush3.bf16.msra.mxu1 %v9819_v15  ;;  %v9825_v17 = vpack.c.bf16 %v5075_v41, %v5074_v33  ;;  %v5056_v15 = vld [vmem:[#allocation2 + $0x2] sm:$0xff]  ;;  %v4913_v22 = vld [vmem:[#allocation2 + $0x11] sm:$0xff]  ;;  %v4918_v33 = vld [vmem:[#allocation2 + $0x39] sm:$0xff] }
 0xd46   :  { %4436 = vmatmul.mubr.f32.gmra.mrb[138].mxu0 %v4310_v59  ;;  %9821 = vmatprep.subr.bf16.mxu1 %v10670_v0  ;;  %v5063_v59 = vld [vmem:[#allocation2 + $0x3a] sm:$0xff] }
 0xd47   :  { %4712 = vmatprep.mubr.f32.mxu0 %v4597_v34  ;;  %8689 = vmatmul.mubr.f32.gmra.mrb[152].mxu1 %v4770_v40  ;;  %v4916_v34 = vld [vmem:[#allocation2 + $0x29] sm:$0xff]  ;;  %v4917_v40 = vld [vmem:[#allocation2 + $0x31] sm:$0xff]  ;;  %v4919_v41 = vld [vmem:[#allocation2 + $0x41] sm:$0xff] }
 0xd48   :  { %8691 = vmatprep.mubr.msk.f32.mxu1 %vm10672_vm0, %v11443_v38  ;;  %v5300_v58 = vld [vmem:[#allocation20 + $0x58] sm:$0xff] }
 0xd49   :  { %9823 = vmatpush3.bf16.msra.mxu1 %v9822_v37  ;;  %v5064_v37 = vld [vmem:[#allocation2 + $0x42] sm:$0xff] }
 0xd4a   :  { %4713 = vmatmul.mubr.f32.vlgmr.msra.gmra.mrb[140].mxu0 %v4594_v46  ;;  %9824 = vmatprep.subr.bf16.mxu1 %v10670_v0  ;;  %v5291_v46 = vld [vmem:[#allocation20 + $0x10] sm:$0xff] }
 0xd4b   :  { %4717 = vmatprep.mubr.f32.mxu0 %v11683_v48  ;;  %9790 = vmatpush3.bf16.msra.mxu0 %v9789_v45  ;;  %v4772_v48 = vld [vmem:[#allocation2 + $0x28] sm:$0xff] }
 0xd4c   :  { %9791 = vmatprep.subr.bf16.mxu0 %v10670_v0  ;;  %8692 = vmatmul.mubr.f32.gmra.mrb[154].mxu1 %v4771_v49  ;;  %v5289_v45 = vld [vmem:[#allocation20] sm:$0xff]  ;;  %v5294_v49 = vld [vmem:[#allocation20 + $0x28] sm:$0xff] }
 0xd4d   :  { %8694 = vmatprep.mubr.msk.f32.mxu1 %vm10672_vm0, %v11443_v38  ;;  %9826 = vmatpush3.bf16.msra.mxu1 %v9825_v17  ;;  %v9837_v43 = vpack.c.bf16 %v5290_v31, %v5289_v45  ;;  %v5292_v17 = vld [vmem:[#allocation20 + $0x18] sm:$0xff] }
 0xd4e   :  { %4718 = vmatmul.mubr.f32.gmra.mrb[142].mxu0 %v11676_v42  ;;  %9827 = vmatprep.subr.bf16.mxu1 %v10670_v0  ;;  %v5080_v42 = vld [vmem:[#allocation19 + $0x170] sm:$0xff]  ;;  %v9840_v11 = vpack.c.bf16 %v5292_v17, %v5291_v46 }
 0xd4f   :  { %4722 = vmatprep.mubr.f32.mxu0 %v11693_v8  ;;  %9793 = vmatpush3.bf16.msra.mxu0 %v9792_v51  ;;  %v4773_v8 = vld [vmem:[#allocation2 + $0x30] sm:$0xff]  ;;  %v9834_v63 = vpack.c.bf16 %v5081_v7, %v5080_v42  ;;  %v9843_v51 = vpack.c.bf16 %v5294_v49, %v5293_v47 }
 0xd50   :  { %9794 = vmatprep.subr.bf16.mxu0 %v10670_v0  ;;  %8695 = vmatmul.mubr.f32.gmra.mrb[156].mxu1 %v4772_v48  ;;  %v9849_v48 = vpack.c.bf16 %v5298_v16, %v5297_v27  ;;  %v5302_v42 = vld [vmem:[#allocation20 + $0x68] sm:$0xff] }
 0xd51   :  { %8697 = vmatprep.mubr.msk.f32.mxu1 %vm10672_vm0, %v11443_v38  ;;  %9829 = vmatpush3.bf16.msra.mxu1 %v9828_v13  ;;  %v9846_v13 = vpack.c.bf16 %v5296_v44, %v5295_v55 }
 0xd52   :  { %4723 = vmatmul.mubr.f32.gmra.mrb[144].mxu0 %v11689_v5  ;;  %9830 = vmatprep.subr.bf16.mxu1 %v10670_v0  ;;  %v4774_v5 = vld [vmem:[#allocation2 + $0x38] sm:$0xff] }
 0xd53   :  { %4727 = vmatprep.mubr.f32.mxu0 %v11702_v30  ;;  %9796 = vmatpush3.bf16.msra.mxu0 %v9795_v56  ;;  %v9801_v30 = vpack.c.bf16 %v4930_v52, %v4929_v4  ;;  %v5299_v56 = vld [vmem:[#allocation20 + $0x50] sm:$0xff] }
 0xd54   :  { %9797 = vmatprep.subr.bf16.mxu0 %v10670_v0  ;;  %8698 = vmatmul.mubr.f32.gmra.mrb[158].mxu1 %v4773_v8  ;;  %v9852_v60 = vpack.c.bf16 %v5300_v58, %v5299_v56  ;;  %v5303_v8 = vld [vmem:[#allocation20 + $0x70] sm:$0xff] }
 0xd55   :  { %8700 = vmatprep.mubr.msk.f32.mxu1 %vm10672_vm0, %v11443_v38  ;;  %9832 = vmatpush3.bf16.msra.mxu1 %v9831_v2  ;;  %v5301_v2 = vld [vmem:[#allocation20 + $0x60] sm:$0xff] }
 0xd56   :  { %4728 = vmatmul.mubr.f32.gmra.mrb[146].mxu0 %v11698_v23  ;;  %9833 = vmatprep.subr.bf16.mxu1 %v10670_v0  ;;  %v4775_v23 = vld [vmem:[#allocation2 + $0x40] sm:$0xff]  ;;  %v9855_v7 = vpack.c.bf16 %v5302_v42, %v5301_v2 }
 0xd57   :  { %4732 = vmatprep.mubr.f32.mxu0 %v11711_v50  ;;  %9799 = vmatpush3.bf16.msra.mxu0 %v9798_v53  ;;  %v9804_v50 = vpack.c.bf16 %v4932_v62, %v4931_v3  ;;  %v5304_v53 = vld [vmem:[#allocation20 + $0x78] sm:$0xff]  ;;  %v5442_v3 = vld [vmem:[#allocation43 + $0x8] sm:$0xff] }
 0xd58   :  { %9800 = vmatprep.subr.bf16.mxu0 %v10670_v0  ;;  %8701 = vmatmul.mubr.f32.gmra.mrb[160].mxu1 %v4774_v5  ;;  %v9858_v4 = vpack.c.bf16 %v5304_v53, %v5303_v8 }
 0xd59   :  { %8703 = vmatprep.mubr.msk.f32.mxu1 %vm10672_vm0, %v11443_v38  ;;  %9835 = vmatpush3.bf16.msra.mxu1 %v9834_v63 }
 0xd5a   :  { %4733 = vmatmul.mubr.f32.gmra.mrb[148].mxu0 %v11707_v35  ;;  %9860 = vmatprep.subr.bf16.mxu1 %v10670_v0  ;;  %v4554_v35 = vld [vmem:[#allocation9 + $0x98] sm:$0x3] }
 0xd5b   :  { %4737 = vmatprep.mubr.f32.mxu0 %v11720_v9  ;;  %9802 = vmatpush3.bf16.msra.mxu0 %v9801_v30  ;;  %v4935_v9 = vld [vmem:[#allocation19 + $0xf0] sm:$0xff]  ;;  %v4628_v18 = vrot.slane %v4554_v35, 2  ;;  %v5441_v30 = vld [vmem:[#allocation43] sm:$0xff] }
 0xd5c   :  { %9803 = vmatprep.subr.bf16.mxu0 %v10670_v0  ;;  %8704 = vmatmul.mubr.f32.gmra.mrb[162].mxu1 %v4775_v23  ;;  %v11869_v62 = vpack.c.bf16 %v5442_v3, %v5441_v30  ;;  %v5443_v23 = vld [vmem:[#allocation43 + $0x10] sm:$0xff] }
 0xd5d   :  { %8797 = vmatprep.mubr.msk.f32.mxu1 %vm10672_vm0, %v11443_v38 }
 0xd5e   :  { %4738 = vmatmul.mubr.f32.gmra.mrb[150].mxu0 %v11716_v6  ;;  %v9810_v6 = vpack.c.bf16 %v4936_v14, %v4935_v9  ;;  %v5446_v9 = vld [vmem:[#allocation43 + $0x28] sm:$0xff] }
 0xd5f   :  { %4742 = vmatprep.mubr.f32.mxu0 %v11731_v28  ;;  %9805 = vmatpush3.bf16.msra.mxu0 %v9804_v50  ;;  %v5057_v28 = vld [vmem:[#allocation2 + $0xa] sm:$0xff]  ;;  %v5444_v50 = vld [vmem:[#allocation43 + $0x18] sm:$0xff] }
 0xd60   :  { %9806 = vmatprep.subr.bf16.mxu0 %v10670_v0  ;;  %8798 = vmatmul.mubr.f32.vlgmr.msra.gmra.mrb[164].mxu1 %v5056_v15  ;;  %v11872_v35 = vpack.c.bf16 %v5444_v50, %v5443_v23  ;;  %v5445_v15 = vld [vmem:[#allocation43 + $0x20] sm:$0xff] }
 0xd61   :  { %8800 = vmatprep.mubr.msk.f32.mxu1 %vm10672_vm0, %v11443_v38  ;;  %9862 = vmatpush3.bf16.msra.mxu1 %v11869_v62  ;;  %v11876_v19 = vpack.c.bf16 %v5446_v9, %v5445_v15 }
 0xd62   :  { %4743 = vmatmul.mubr.f32.gmra.mrb[152].mxu0 %v11725_v24  ;;  %v4629_v24 = vsel %vm3292_vm11, %v4624_v39, %v4628_v18  ;;  %v4911_v39 = vld [vmem:[#allocation2 + $0x1] sm:$0xff]  ;;  %9863 = vmatprep.subr.bf16.mxu1 %v10670_v0 }
 0xd63   :  { %4747 = vmatprep.mubr.f32.mxu0 %v11756_v54  ;;  %9808 = vmatpush3.bf16.msra.mxu0 %v9807_v61  ;;  %v4627_v54 = vsel %vm3292_vm11, %v4622_v32, %v4626_v20  ;;  %v4912_v32 = vld [vmem:[#allocation2 + $0x9] sm:$0xff] }
 0xd64   :  { %9809 = vmatprep.subr.bf16.mxu0 %v10670_v0  ;;  %8801 = vmatmul.mubr.f32.gmra.mrb[166].mxu1 %v5057_v28 }
 0xd65   :  { %8803 = vmatprep.mubr.msk.f32.mxu1 %vm10672_vm0, %v11443_v38  ;;  %9865 = vmatpush3.bf16.msra.mxu1 %v11872_v35 }
 0xd66   :  { %4748 = vmatmul.mubr.f32.gmra.mrb[154].mxu0 %v11748_v57  ;;  %v5061_v57 = vld [vmem:[#allocation2 + $0x2a] sm:$0xff]  ;;  %9866 = vmatprep.subr.bf16.mxu1 %v10670_v0 }
 0xd67   :  { %4752 = vmatprep.mubr.f32.mxu0 %v4629_v24  ;;  %9811 = vmatpush3.bf16.msra.mxu0 %v9810_v6 }
 0xd68   :  { %8804 = vmatmul.mubr.f32.gmra.mrb[168].mxu1 %v5058_v21  ;;  %9836 = vmatprep.subr.bf16.mxu0 %v10670_v0 }
 0xd69   :  { %8806 = vmatprep.mubr.msk.f32.mxu1 %vm10672_vm0, %v11443_v38  ;;  %9868 = vmatpush3.bf16.msra.mxu1 %v11876_v19 }
 0xd6a   :  { %4753 = vmatmul.mubr.f32.gmra.mrb[156].mxu0 %v4627_v54  ;;  %9869 = vmatprep.subr.bf16.mxu1 %v10670_v0 }
 0xd6b   :  { %8738 = vmatprep.mubr.msk.f32.mxu0 %vm10672_vm0, %v11443_v38 }
 0xd6c   :  { %8807 = vmatmul.mubr.f32.gmra.mrb[170].mxu1 %v5059_v1 }
 0xd6d   :  { %8809 = vmatprep.mubr.msk.f32.mxu1 %vm10672_vm0, %v11443_v38 }
 0xd6e   :  { %8739 = vmatmul.mubr.f32.vlgmr.msra.gmra.mrb[158].mxu0 %v4911_v39 }
 0xd6f   :  { %8741 = vmatprep.mubr.msk.f32.mxu0 %vm10672_vm0, %v11443_v38  ;;  %9838 = vmatpush3.bf16.msra.mxu0 %v9837_v43 }
 0xd70   :  { %8810 = vmatmul.mubr.f32.gmra.mrb[172].mxu1 %v5060_v25  ;;  %9839 = vmatprep.subr.bf16.mxu0 %v10670_v0 }
 0xd71   :  { %8812 = vmatprep.mubr.msk.f32.mxu1 %vm10672_vm0, %v11443_v38 }
 0xd72   :  { %8742 = vmatmul.mubr.f32.gmra.mrb[160].mxu0 %v4912_v32 }
 0xd73   :  { %8744 = vmatprep.mubr.msk.f32.mxu0 %vm10672_vm0, %v11443_v38  ;;  %9841 = vmatpush3.bf16.msra.mxu0 %v9840_v11 }
 0xd74   :  { %8813 = vmatmul.mubr.f32.gmra.mrb[174].mxu1 %v5061_v57  ;;  %9842 = vmatprep.subr.bf16.mxu0 %v10670_v0 }
 0xd75   :  { %8815 = vmatprep.mubr.msk.f32.mxu1 %vm10672_vm0, %v11443_v38 }
 0xd76   :  { %8745 = vmatmul.mubr.f32.gmra.mrb[162].mxu0 %v4913_v22 }
 0xd77   :  { %8747 = vmatprep.mubr.msk.f32.mxu0 %vm10672_vm0, %v11443_v38  ;;  %9844 = vmatpush3.bf16.msra.mxu0 %v9843_v51 }
 0xd78   :  { %8816 = vmatmul.mubr.f32.gmra.mrb[176].mxu1 %v5062_v26  ;;  %9845 = vmatprep.subr.bf16.mxu0 %v10670_v0 }
 0xd79   :  { %8818 = vmatprep.mubr.msk.f32.mxu1 %vm10672_vm0, %v11443_v38 }
 0xd7a   :  { %8748 = vmatmul.mubr.f32.gmra.mrb[164].mxu0 %v4914_v29 }
 0xd7b   :  { %8750 = vmatprep.mubr.msk.f32.mxu0 %vm10672_vm0, %v11443_v38  ;;  %9847 = vmatpush3.bf16.msra.mxu0 %v9846_v13 }
 0xd7c   :  { %8819 = vmatmul.mubr.f32.gmra.mrb[178].mxu1 %v5063_v59  ;;  %9848 = vmatprep.subr.bf16.mxu0 %v10670_v0 }
 0xd7d   :  { %8821 = vmatprep.mubr.msk.f32.mxu1 %vm10672_vm0, %v11443_v38 }
 0xd7e   :  { %8751 = vmatmul.mubr.f32.gmra.mrb[166].mxu0 %v4915_v36 }
 0xd7f   :  { %8753 = vmatprep.mubr.msk.f32.mxu0 %vm10672_vm0, %v11443_v38  ;;  %9850 = vmatpush3.bf16.msra.mxu0 %v9849_v48 }
 0xd80   :  { %8822 = vmatmul.mubr.f32.gmra.mrb[180].mxu1 %v5064_v37  ;;  %9851 = vmatprep.subr.bf16.mxu0 %v10670_v0 }
 0xd81   :  { %8899 = vmatprep.mubr.msk.f32.mxu1 %vm10672_vm0, %v11443_v38 }
 0xd82   :  { %8754 = vmatmul.mubr.f32.gmra.mrb[168].mxu0 %v4916_v34 }
 0xd83   :  { %8756 = vmatprep.mubr.msk.f32.mxu0 %vm10672_vm0, %v11443_v38  ;;  %9853 = vmatpush3.bf16.msra.mxu0 %v9852_v60 }
 0xd84   :  { %9854 = vmatprep.subr.bf16.mxu0 %v10670_v0 }
 0xd86   :  { %8757 = vmatmul.mubr.f32.gmra.mrb[170].mxu0 %v4917_v40 }
 0xd87   :  { %8759 = vmatprep.mubr.msk.f32.mxu0 %vm10672_vm0, %v11443_v38  ;;  %9856 = vmatpush3.bf16.msra.mxu0 %v9855_v7 }
 0xd88   :  { %9857 = vmatprep.subr.bf16.mxu0 %v10670_v0 }
 0xd8a   :  { %8760 = vmatmul.mubr.f32.gmra.mrb[172].mxu0 %v4918_v33 }
 0xd8b   :  { %8762 = vmatprep.mubr.msk.f32.mxu0 %vm10672_vm0, %v11443_v38  ;;  %9859 = vmatpush3.bf16.msra.mxu0 %v9858_v4 }
 0xd8c   :  { %9872 = vmatprep.subr.bf16.mxu0 %v10670_v0 }
 0xd8e   :  { %8763 = vmatmul.mubr.f32.gmra.mrb[174].mxu0 %v4919_v41 }
 0xd8f   :  { %8856 = vmatprep.mubr.msk.f32.mxu0 %vm10672_vm0, %v11443_v38 }
 0xdea   :  { %v7659_v52 = vpop.f32.mrb[128].mxu1 }
 0xdeb   :  { %v7660_v63 = vpop.f32.mrb[129].mxu1 }
 0xdec   :  { %v7661_v5 = vadd.f32 %v7660_v63, %v7659_v52 }
 0xdee   :  { %v7662_v10 = vpop.f32.mrb[130].mxu1 }
 0xdef   :  { %v7663_v12 = vpop.f32.mrb[131].mxu1 }
 0xdf0   :  { %v7664_v61 = vadd.f32 %v7663_v12, %v7662_v10 }
 0xdf2   :  { %v7665_v14 = vpop.f32.mrb[132].mxu1 }
 0xdf3   :  { %v7666_v18 = vpop.f32.mrb[133].mxu1 }
 0xdf4   :  { %v7667_v6 = vadd.f32 %v7666_v18, %v7665_v14 }
 0xdf5   :  { %v7600_v28 = vpop.f32.mrb[122].mxu0 }
 0xdf6   :  { %v7601_v20 = vpop.f32.mrb[123].mxu0  ;;  %v7668_v24 = vpop.f32.mrb[134].mxu1 }
 0xdf7   :  { %v7602_v21 = vadd.f32 %v7601_v20, %v7600_v28  ;;  %v7669_v54 = vpop.f32.mrb[135].mxu1 }
 0xdf8   :  { %v7670_v1 = vadd.f32 %v7669_v54, %v7668_v24 }
 0xdf9   :  { %v4508_v39 = vadd.f32 %v7661_v5, %v7602_v21  ;;  %v7603_v25 = vpop.f32.mrb[124].mxu0 }
 0xdfa   :  { %v7604_v32 = vpop.f32.mrb[125].mxu0  ;;  %v7671_v57 = vpop.f32.mrb[136].mxu1 }
 0xdfb   :  { %v7605_v22 = vadd.f32 %v7604_v32, %v7603_v25  ;;  %v7672_v26 = vpop.f32.mrb[137].mxu1 }
 0xdfc   :  { %v7673_v29 = vadd.f32 %v7672_v26, %v7671_v57 }
 0xdfd   :  { %v4513_v59 = vadd.f32 %v7664_v61, %v7605_v22  ;;  %v7606_v36 = vpop.f32.mrb[126].mxu0 }
 0xdfe   :  { %v7607_v37 = vpop.f32.mrb[127].mxu0  ;;  %v7674_v34 = vpop.f32.mrb[138].mxu1 }
 0xdff   :  { %v7608_v40 = vadd.f32 %v7607_v37, %v7606_v36  ;;  %v7675_v33 = vpop.f32.mrb[139].mxu1 }
 0xe00   :  { %v7676_v41 = vadd.f32 %v7675_v33, %v7674_v34 }
 0xe01   :  { %v4518_v45 = vadd.f32 %v7667_v6, %v7608_v40  ;;  %v7609_v31 = vpop.f32.mrb[128].mxu0 }
 0xe02   :  { %v7610_v43 = vpop.f32.mrb[129].mxu0  ;;  %v7677_v46 = vpop.f32.mrb[140].mxu1 }
 0xe03   :  { %v7611_v17 = vadd.f32 %v7610_v43, %v7609_v31  ;;  %v7678_v11 = vpop.f32.mrb[141].mxu1 }
 0xe04   :  { %v7679_v47 = vadd.f32 %v7678_v11, %v7677_v46 }
 0xe05   :  { %v4523_v49 = vadd.f32 %v7670_v1, %v7611_v17  ;;  %v7612_v51 = vpop.f32.mrb[130].mxu0 }
 0xe06   :  { %v7613_v55 = vpop.f32.mrb[131].mxu0  ;;  %v7680_v44 = vpop.f32.mrb[142].mxu1 }
 0xe07   :  { %v7614_v13 = vadd.f32 %v7613_v55, %v7612_v51  ;;  %v7681_v27 = vpop.f32.mrb[143].mxu1 }
 0xe08   :  { %v7682_v16 = vadd.f32 %v7681_v27, %v7680_v44 }
 0xe09   :  { %v4528_v48 = vadd.f32 %v7673_v29, %v7614_v13  ;;  %v7615_v56 = vpop.f32.mrb[132].mxu0 }
 0xe0a   :  { %v7616_v58 = vpop.f32.mrb[133].mxu0  ;;  %v7683_v60 = vpop.f32.mrb[144].mxu1 }
 0xe0b   :  { %v7617_v2 = vadd.f32 %v7616_v58, %v7615_v56  ;;  %v7684_v42 = vpop.f32.mrb[145].mxu1 }
 0xe0c   :  { %v7685_v7 = vadd.f32 %v7684_v42, %v7683_v60 }
 0xe0d   :  { %v4533_v8 = vadd.f32 %v7676_v41, %v7617_v2  ;;  %v7618_v53 = vpop.f32.mrb[134].mxu0 }
 0xe0e   :  { %v7619_v4 = vpop.f32.mrb[135].mxu0  ;;  %v4858_v52 = vpop.f32.mrb[146].mxu1 }
 0xe0f   :  { %v7620_v63 = vadd.f32 %v7619_v4, %v7618_v53  ;;  %v8681_v5 = vpop.f32.mrb[147].mxu1 }
 0xe11   :  { %v4538_v30 = vadd.f32 %v7679_v47, %v7620_v63  ;;  %v7621_v3 = vpop.f32.mrb[136].mxu0 }
 0xe12   :  { %v7622_v23 = vpop.f32.mrb[137].mxu0  ;;  %v4863_v50 = vpop.f32.mrb[148].mxu1 }
 0xe13   :  { %v7623_v10 = vadd.f32 %v7622_v23, %v7621_v3  ;;  %v8684_v12 = vpop.f32.mrb[149].mxu1 }
 0xe15   :  { %v11881_v61 = vadd.f32 %v7682_v16, %v7623_v10 }
 0xe16   :  { %v4868_v15 = vpop.f32.mrb[150].mxu1 }
 0xe17   :  { %v8687_v9 = vpop.f32.mrb[151].mxu1 }
 0xe19   :  { %v7624_v14 = vpop.f32.mrb[138].mxu0 }
 0xe1a   :  { %v7625_v18 = vpop.f32.mrb[139].mxu0  ;;  %v4873_v6 = vpop.f32.mrb[152].mxu1 }
 0xe1b   :  { %v7626_v28 = vadd.f32 %v7625_v18, %v7624_v14  ;;  %v8690_v20 = vpop.f32.mrb[153].mxu1 }
 0xe1d   :  { %v4548_v24 = vadd.f32 %v7685_v7, %v7626_v28  ;;  %v7718_v21 = vpop.f32.mrb[140].mxu0 }
 0xe1e   :  { %v7719_v54 = vpop.f32.mrb[141].mxu0 }
 0xe1f   :  { %v7720_v1 = vadd.f32 %v7719_v54, %v7718_v21  ;;  %v4878_v25 = vpop.f32.mrb[154].mxu1 }
 0xe20   :  { %v8693_v32 = vpop.f32.mrb[155].mxu1 }
 0xe21   :  { %v4758_v57 = vadd.f32 %v7720_v1, %v4508_v39  ;;  %v7721_v22 = vpop.f32.mrb[142].mxu0 }
 0xe22   :  { %v7722_v26 = vpop.f32.mrb[143].mxu0 }
 0xe23   :  { %v7723_v29 = vadd.f32 %v7722_v26, %v7721_v22  ;;  %v4883_v36 = vpop.f32.mrb[156].mxu1  ;;  %v4902_v37 = vadd.f32 %v4858_v52, %v4758_v57 }
 0xe24   :  { %v8696_v34 = vpop.f32.mrb[157].mxu1 }
 0xe25   :  { %v4759_v40 = vadd.f32 %v7723_v29, %v4513_v59  ;;  %v7724_v33 = vpop.f32.mrb[144].mxu0  ;;  %v11895_v29 = vld [vmem:[%s12688_s27] ss:$0 sm:$0xff] }
 0xe26   :  { %v7725_v41 = vpop.f32.mrb[145].mxu0 }
 0xe27   :  { %v7726_v31 = vadd.f32 %v7725_v41, %v7724_v33  ;;  %v4888_v43 = vpop.f32.mrb[158].mxu1  ;;  %v4903_v46 = vadd.f32 %v4863_v50, %v4759_v40 }
 0xe28   :  { %v8699_v17 = vpop.f32.mrb[159].mxu1 }
 0xe29   :  { %v4760_v11 = vadd.f32 %v7726_v31, %v4518_v45  ;;  %v7727_v47 = vpop.f32.mrb[146].mxu0  ;;  %v5555_v17 = vld [vmem:[#allocation43 + $0x40] sm:$0xff] }
 0xe2a   :  { %v7728_v51 = vpop.f32.mrb[147].mxu0 }
 0xe2b   :  { %v7729_v55 = vadd.f32 %v7728_v51, %v7727_v47  ;;  %v4893_v44 = vpop.f32.mrb[160].mxu1  ;;  %v4904_v13 = vadd.f32 %v4868_v15, %v4760_v11  ;;  %v5556_v11 = vld [vmem:[#allocation43 + $0x48] sm:$0xff] }
 0xe2c   :  { %v8702_v39 = vpop.f32.mrb[161].mxu1 }
 0xe2d   :  { %v4761_v27 = vadd.f32 %v7729_v55, %v4523_v49  ;;  %v7730_v16 = vpop.f32.mrb[148].mxu0  ;;  %v11900_v39 = vpack.c.bf16 %v5556_v11, %v5555_v17 }
 0xe2e   :  { %v7731_v56 = vpop.f32.mrb[149].mxu0 }
 0xe2f   :  { %v7732_v58 = vadd.f32 %v7731_v56, %v7730_v16  ;;  %v4898_v60 = vpop.f32.mrb[162].mxu1  ;;  %v11883_v2 = vadd.f32 %v4873_v6, %v4761_v27 }
 0xe30   :  { %v8705_v59 = vpop.f32.mrb[163].mxu1 }
 0xe31   :  { %v4762_v42 = vadd.f32 %v7732_v58, %v4528_v48  ;;  %v7733_v7 = vpop.f32.mrb[150].mxu0  ;;  %v5558_v59 = vld [vmem:[#allocation43 + $0x58] sm:$0xff] }
 0xe32   :  { %v7734_v53 = vpop.f32.mrb[151].mxu0 }
 0xe33   :  { %v7735_v4 = vadd.f32 %v7734_v53, %v7733_v7  ;;  %v5148_v52 = vpop.f32.mrb[164].mxu1  ;;  %v11885_v45 = vadd.f32 %v4878_v25, %v4762_v42 }
 0xe34   :  { %v8799_v63 = vpop.f32.mrb[165].mxu1 }
 0xe35   :  { %v4763_v5 = vadd.f32 %v7735_v4, %v4533_v8  ;;  %v7736_v3 = vpop.f32.mrb[152].mxu0  ;;  %v5243_v4 = vpop.permute.xlu1 %5242 }
 0xe36   :  { %v7737_v23 = vpop.f32.mrb[153].mxu0 }
 0xe37   :  { %v7738_v50 = vadd.f32 %v7737_v23, %v7736_v3  ;;  %v5153_v49 = vpop.f32.mrb[166].mxu1  ;;  %v11887_v10 = vadd.f32 %v4883_v36, %v4763_v5 }
 0xe38   :  { %v8802_v12 = vpop.f32.mrb[167].mxu1 }
 0xe39   :  { %v4764_v15 = vadd.f32 %v7738_v50, %v4538_v30  ;;  %v7739_v9 = vpop.f32.mrb[154].mxu0  ;;  %v5559_v50 = vld [vmem:[#allocation43 + $0x60] sm:$0xff] }
 0xe3a   :  { %v7740_v14 = vpop.f32.mrb[155].mxu0 }
 0xe3b   :  { %v7741_v48 = vadd.f32 %v7740_v14, %v7739_v9  ;;  %v5158_v18 = vpop.f32.mrb[168].mxu1  ;;  %v11889_v6 = vadd.f32 %v4888_v43, %v4764_v15 }
 0xe3c   :  { %v8805_v28 = vpop.f32.mrb[169].mxu1 }
 0xe3d   :  { %v4765_v20 = vadd.f32 %v7741_v48, %v11881_v61  ;;  %v7742_v21 = vpop.f32.mrb[156].mxu0 }
 0xe3e   :  { %v7743_v8 = vpop.f32.mrb[157].mxu0 }
 0xe3f   :  { %v7744_v54 = vadd.f32 %v7743_v8, %v7742_v21  ;;  %v5163_v1 = vpop.f32.mrb[170].mxu1  ;;  %v11892_v25 = vadd.f32 %v4893_v44, %v4765_v20 }
 0xe40   :  { %v8808_v32 = vpop.f32.mrb[171].mxu1 }
 0xe41   :  { %v4766_v57 = vadd.f32 %v7744_v54, %v4548_v24  ;;  %v5003_v22 = vpop.f32.mrb[158].mxu0 }
 0xe42   :  { %v5047_v30 = vadd.f32 %v5003_v22, %v4902_v37  ;;  %v8740_v26 = vpop.f32.mrb[159].mxu0  ;;  %v5238_v37 = vpop.permute.xlu0 %5237 }
 0xe43   :  { %v5168_v36 = vpop.f32.mrb[172].mxu1  ;;  %v11897_v34 = vadd.f32 %v4898_v60, %v4766_v57  ;;  %v5557_v60 = vld [vmem:[#allocation43 + $0x50] sm:$0xff]  ;;  %v5253_v22 = vpop.permute.xlu1 %5252 }
 0xe44   :  { %v5192_v40 = vadd.f32 %v5148_v52, %v5047_v30  ;;  %v8811_v33 = vpop.f32.mrb[173].mxu1  ;;  %v11906_v63 = vpack.c.bf16 %v5558_v59, %v5557_v60 }
 0xe45   :  { %v5008_v41 = vpop.f32.mrb[160].mxu0 }
 0xe46   :  { %v5208_v61 = vadd.f32 %v11895_v29, %v5192_v40  ;;  %v5048_v31 = vadd.f32 %v5008_v41, %v4903_v46  ;;  %v8743_v43 = vpop.f32.mrb[161].mxu0  ;;  %v5248_v48 = vpop.permute.xlu0 %5247 }
 0xe47   :  { %v5173_v47 = vpop.f32.mrb[174].mxu1 }
 0xe48   :  { %v5217_v51 = vmax.f32 %v5208_v61, 0.0  ;;  %v5193_v24 = vadd.f32 %v5153_v49, %v5048_v31  ;;  %v8814_v55 = vpop.f32.mrb[175].mxu1  ;;  %v5560_v49 = vld [vmem:[#allocation43 + $0x68] sm:$0xff] }
 0xe49   :  { %v5013_v44 = vpop.f32.mrb[162].mxu0  ;;  %v11914_v28 = vpack.c.bf16 %v5560_v49, %v5559_v50  ;;  %v5263_v55 = vpop.permute.xlu1 %5262  ;;  %v5448_v50 = vld [vmem:[#allocation43 + $0x38] sm:$0xff]  ;;  %v5561_v49 = vld [vmem:[#allocation43 + $0x70] sm:$0xff] }
 0xe4a   :  { %v5280_v27 = vmul.f32 %v5238_v37, %v5217_v51  ;;  %v5209_v16 = vadd.f32 %v11895_v29, %v5193_v24  ;;  %v5049_v56 = vadd.f32 %v5013_v44, %v4904_v13  ;;  %v8746_v58 = vpop.f32.mrb[163].mxu0 }
 0xe4b   :  { %v5178_v42 = vpop.f32.mrb[176].mxu1 }
 0xe4c   :  { %v5218_v46 = vmax.f32 %v5209_v16, 0.0  ;;  %v5194_v7 = vadd.f32 %v5158_v18, %v5049_v56  ;;  %8857 = vmatmul.mubr.f32.vlgmr.msra.gmra.mrb[176].mxu0 %v5280_v27  ;;  %v8817_v53 = vpop.f32.mrb[177].mxu1 }
 0xe4d   :  { %v5018_v52 = vpop.f32.mrb[164].mxu0  ;;  %8859 = vmatprep.mubr.msk.f32.mxu0 %vm10672_vm0, %v11443_v38  ;;  %9874 = vmatpush3.bf16.msra.mxu0 %v11900_v39 }
 0xe4e   :  { %v5210_v5 = vadd.f32 %v11895_v29, %v5194_v7  ;;  %v5050_v13 = vadd.f32 %v5018_v52, %v11883_v2  ;;  %v8749_v3 = vpop.f32.mrb[165].mxu0  ;;  %v5281_v23 = vmul.f32 %v5243_v4, %v5218_v46  ;;  %9875 = vmatprep.subr.bf16.mxu0 %v10670_v0 }
 0xe4f   :  { %v5183_v12 = vpop.f32.mrb[178].mxu1 }
 0xe50   :  { %v5219_v15 = vmax.f32 %v5210_v5, 0.0  ;;  %v5195_v9 = vadd.f32 %v5163_v1, %v5050_v13  ;;  %8860 = vmatmul.mubr.f32.gmra.mrb[178].mxu0 %v5281_v23  ;;  %v8820_v14 = vpop.f32.mrb[179].mxu1  ;;  %v5447_v23 = vld [vmem:[#allocation43 + $0x30] sm:$0xff] }
 0xe51   :  { %v5023_v18 = vpop.f32.mrb[166].mxu0  ;;  %8862 = vmatprep.mubr.msk.f32.mxu0 %vm10672_vm0, %v11443_v38  ;;  %9877 = vmatpush3.bf16.msra.mxu0 %v11906_v63 }
 0xe52   :  { %v5211_v2 = vadd.f32 %v11895_v29, %v5195_v9  ;;  %v5051_v20 = vadd.f32 %v5023_v18, %v11885_v45  ;;  %v8752_v21 = vpop.f32.mrb[167].mxu0  ;;  %v5282_v8 = vmul.f32 %v5248_v48, %v5219_v15  ;;  %9878 = vmatprep.subr.bf16.mxu0 %v10670_v0  ;;  %v5562_v15 = vld [vmem:[#allocation43 + $0x78] sm:$0xff] }
 0xe53   :  { %v5188_v54 = vpop.f32.mrb[180].mxu1  ;;  %v11953_v9 = vld [vmem:[%s12689_s25] ss:$0 sm:$0xff] }
 0xe54   :  { %v5220_v1 = vmax.f32 %v5211_v2, 0.0  ;;  %v5196_v32 = vadd.f32 %v5168_v36, %v5051_v20  ;;  %8863 = vmatmul.mubr.f32.gmra.mrb[180].mxu0 %v5282_v8  ;;  %v8823_v57 = vpop.f32.mrb[181].mxu1  ;;  %v5258_v36 = vpop.permute.xlu0 %5257  ;;  %v5654_v8 = vld [vmem:[#allocation43 + $0x80] sm:$0xff] }
 0xe55   :  { %v5028_v30 = vpop.f32.mrb[168].mxu0  ;;  %8865 = vmatprep.mubr.msk.f32.mxu0 %vm10672_vm0, %v11443_v38  ;;  %9880 = vmatpush3.bf16.msra.mxu0 %v11914_v28 }
 0xe56   :  { %v5212_v26 = vadd.f32 %v11895_v29, %v5196_v32  ;;  %v5052_v45 = vadd.f32 %v5028_v30, %v11887_v10  ;;  %v8755_v40 = vpop.f32.mrb[169].mxu0  ;;  %v5283_v33 = vmul.f32 %v5253_v22, %v5220_v1  ;;  %9881 = vmatprep.subr.bf16.mxu0 %v10670_v0  ;;  %v5753_v1 = vld [vmem:[#allocation43 + $0xc0] sm:$0xff]  ;;  %v5754_v32 = vld [vmem:[#allocation43 + $0xc8] sm:$0xff] }
 0xe57   :  { %v5656_v40 = vld [vmem:[#allocation43 + $0x90] sm:$0xff] }
 0xe58   :  { %v5221_v41 = vmax.f32 %v5212_v26, 0.0  ;;  %v5197_v61 = vadd.f32 %v5173_v47, %v5052_v45  ;;  %8866 = vmatmul.mubr.f32.gmra.mrb[182].mxu0 %v5283_v33  ;;  %v11962_v45 = vpack.c.bf16 %v5754_v32, %v5753_v1  ;;  %v5657_v33 = vld [vmem:[#allocation43 + $0x98] sm:$0xff] }
 0xe59   :  { %v5033_v31 = vpop.f32.mrb[170].mxu0  ;;  %8868 = vmatprep.mubr.msk.f32.mxu0 %vm10672_vm0, %v11443_v38 }
 0xe5a   :  { %v5213_v43 = vadd.f32 %v11895_v29, %v5197_v61  ;;  %v5053_v17 = vadd.f32 %v5033_v31, %v11889_v6  ;;  %v8758_v11 = vpop.f32.mrb[171].mxu0  ;;  %v5284_v51 = vmul.f32 %v5258_v36, %v5221_v41  ;;  %v5268_v6 = vpop.permute.xlu0 %5267  ;;  %v5755_v61 = vld [vmem:[#allocation43 + $0xd0] sm:$0xff]  ;;  %v5756_v36 = vld [vmem:[#allocation43 + $0xd8] sm:$0xff] }
 0xe5b   :  { %v11978_v11 = vpack.c.bf16 %v5657_v33, %v5656_v40 }
 0xe5c   :  { %v5222_v24 = vmax.f32 %v5213_v43, 0.0  ;;  %v5198_v10 = vadd.f32 %v5178_v42, %v5053_v17  ;;  %8869 = vmatmul.mubr.f32.gmra.mrb[184].mxu0 %v5284_v51  ;;  %v11980_v51 = vpack.c.bf16 %v5756_v36, %v5755_v61 }
 0xe5d   :  { %v5038_v37 = vpop.f32.mrb[172].mxu0  ;;  %8871 = vmatprep.mubr.msk.f32.mxu0 %vm10672_vm0, %v11443_v38 }
 0xe5e   :  { %v5214_v47 = vadd.f32 %v11895_v29, %v5198_v10  ;;  %v5054_v44 = vadd.f32 %v5038_v37, %v11892_v25  ;;  %v8761_v27 = vpop.f32.mrb[173].mxu0  ;;  %v5285_v16 = vmul.f32 %v5263_v55, %v5222_v24  ;;  %v5273_v25 = vpop.permute.xlu1 %5272  ;;  %v5658_v24 = vld [vmem:[#allocation43 + $0xa0] sm:$0xff]  ;;  %v5659_v10 = vld [vmem:[#allocation43 + $0xa8] sm:$0xff] }
 0xe5f   :  { %v5278_v3 = vpop.permute.xlu0 %5277  ;;  %v5757_v37 = vld [vmem:[#allocation43 + $0xe0] sm:$0xff] }
 0xe60   :  { %v5223_v56 = vmax.f32 %v5214_v47, 0.0  ;;  %v5199_v58 = vadd.f32 %v5183_v12, %v5054_v44  ;;  %8872 = vmatmul.mubr.f32.gmra.mrb[186].mxu0 %v5285_v16  ;;  %v11944_v12 = vpack.c.bf16 %v5448_v50, %v5447_v23  ;;  %v5758_v47 = vld [vmem:[#allocation43 + $0xe8] sm:$0xff] }
 0xe61   :  { %v5043_v60 = vpop.f32.mrb[174].mxu0  ;;  %8874 = vmatprep.mubr.msk.f32.mxu0 %vm10672_vm0, %v11443_v38 }
 0xe62   :  { %v5215_v59 = vadd.f32 %v11895_v29, %v5199_v58  ;;  %v5055_v42 = vadd.f32 %v5043_v60, %v11897_v34  ;;  %v8764_v46 = vpop.f32.mrb[175].mxu0  ;;  %v5286_v7 = vmul.f32 %v5268_v6, %v5223_v56  ;;  %9871 = vmatpush3.bf16.msra.mxu1 %v11944_v12  ;;  %v11998_v56 = vpack.c.bf16 %v5659_v10, %v5658_v24  ;;  %v5660_v6 = vld [vmem:[#allocation43 + $0xb0] sm:$0xff]  ;;  %v5661_v60 = vld [vmem:[#allocation43 + $0xb8] sm:$0xff] }
 0xe63   :  { %9884 = vmatprep.subr.bf16.mxu1 %v10670_v0  ;;  %v12000_v58 = vpack.c.bf16 %v5758_v47, %v5757_v37  ;;  %v5760_v46 = vld [vmem:[#allocation43 + $0xf8] sm:$0xff] }
 0xe64   :  { %v5224_v53 = vmax.f32 %v5215_v59, 0.0  ;;  %v5200_v4 = vadd.f32 %v5188_v54, %v5055_v42  ;;  %8875 = vmatmul.mubr.f32.gmra.mrb[188].mxu0 %v5286_v7  ;;  %v5655_v54 = vld [vmem:[#allocation43 + $0x88] sm:$0xff]  ;;  %v5759_v42 = vld [vmem:[#allocation43 + $0xf0] sm:$0xff] }
 0xe65   :  { %8877 = vmatprep.mubr.msk.f32.mxu0 %vm10672_vm0, %v11443_v38  ;;  %v11960_v26 = vpack.c.bf16 %v5655_v54, %v5654_v8 }
 0xe66   :  { %v5216_v52 = vadd.f32 %v11895_v29, %v5200_v4  ;;  %v5287_v5 = vmul.f32 %v5273_v25, %v5224_v53  ;;  %v11946_v29 = vpack.c.bf16 %v5562_v15, %v5561_v49  ;;  %v12018_v25 = vpack.c.bf16 %v5661_v60, %v5660_v6 }
 0xe68   :  { %v5225_v13 = vmax.f32 %v5216_v52, 0.0  ;;  %8878 = vmatmul.mubr.f32.gmra.mrb[190].mxu0 %v5287_v5  ;;  %v12020_v52 = vpack.c.bf16 %v5760_v46, %v5759_v42 }
 0xe69   :  { %8880 = vmatprep.mubr.msk.f32.mxu0 %vm10672_vm0, %v11443_v38  ;;  %9883 = vmatpush3.bf16.msra.mxu0 %v11946_v29 }
 0xe6a   :  { %v5288_v34 = vmul.f32 %v5278_v3, %v5225_v13  ;;  %9896 = vmatprep.subr.bf16.mxu0 %v10670_v0 }
 0xe6c   :  { %8881 = vmatmul.mubr.f32.gmra.mrb[192].mxu0 %v5288_v34 }
 0xe6d   :  { %8930 = vmatprep.mubr.msk.f32.mxu0 %vm10672_vm0, %v11443_v38 }
 0xf1f   :  { %v5378_v14 = vpop.f32.mrb[176].mxu0 }
 0xf20   :  { %v5379_v48 = vadd.f32 %v11953_v9, %v5378_v14  ;;  %v8858_v18 = vpop.f32.mrb[177].mxu0 }
 0xf22   :  { %5422 = vst.msk [vmem:[#allocation10] sm:$0xff] %vm1481_vm6, %v5379_v48 }
 0xf23   :  { %v5383_v2 = vpop.f32.mrb[178].mxu0 }
 0xf24   :  { %v5384_v20 = vadd.f32 %v11953_v9, %v5383_v2  ;;  %v8861_v21 = vpop.f32.mrb[179].mxu0 }
 0xf26   :  { %5423 = vst.msk [vmem:[#allocation10 + $0x8] sm:$0xff] %vm1481_vm6, %v5384_v20 }
 0xf27   :  { %v5388_v57 = vpop.f32.mrb[180].mxu0 }
 0xf28   :  { %v5389_v22 = vadd.f32 %v11953_v9, %v5388_v57  ;;  %v8864_v30 = vpop.f32.mrb[181].mxu0 }
 0xf29   :  { %v11964_v41 = vld [vmem:[#allocation10] sm:$0xff] }
 0xf2a   :  { %5424 = vst.msk [vmem:[#allocation10 + $0x10] sm:$0xff] %vm1481_vm6, %v5389_v22  ;;  %8900 = vmatmul.mubr.msk.f32.vlgmr.msra.gmra.mrb[182].mxu1 %vm1481_vm6, %v11964_v41  ;;  %8931 = vmatmul.mubr.msk.f32.vlgmr.msra.gmra.mrb[194].mxu0 %vm1481_vm6, %v11964_v41 }
 0xf2b   :  { %v5393_v31 = vpop.f32.mrb[182].mxu0  ;;  %8902 = vmatprep.mubr.msk.f32.mxu1 %vm10672_vm0, %v11443_v38  ;;  %8933 = vmatprep.mubr.msk.f32.mxu0 %vm10672_vm0, %v11443_v38 }
 0xf2c   :  { %v5394_v43 = vadd.f32 %v11953_v9, %v5393_v31  ;;  %v8867_v17 = vpop.f32.mrb[183].mxu0  ;;  %9886 = vmatpush3.bf16.msra.mxu1 %v11960_v26  ;;  %9898 = vmatpush3.bf16.msra.mxu0 %v11962_v45 }
 0xf2d   :  { %v11982_v55 = vld [vmem:[#allocation10 + $0x8] sm:$0xff]  ;;  %9887 = vmatprep.subr.bf16.mxu1 %v10670_v0  ;;  %9899 = vmatprep.subr.bf16.mxu0 %v10670_v0 }
 0xf2e   :  { %5425 = vst.msk [vmem:[#allocation10 + $0x18] sm:$0xff] %vm1481_vm6, %v5394_v43  ;;  %8903 = vmatmul.mubr.msk.f32.gmra.mrb[184].mxu1 %vm1481_vm6, %v11982_v55  ;;  %8934 = vmatmul.mubr.msk.f32.gmra.mrb[196].mxu0 %vm1481_vm6, %v11982_v55 }
 0xf2f   :  { %v5398_v44 = vpop.f32.mrb[184].mxu0  ;;  %8905 = vmatprep.mubr.msk.f32.mxu1 %vm10672_vm0, %v11443_v38  ;;  %8936 = vmatprep.mubr.msk.f32.mxu0 %vm10672_vm0, %v11443_v38 }
 0xf30   :  { %v5399_v27 = vadd.f32 %v11953_v9, %v5398_v44  ;;  %v8870_v16 = vpop.f32.mrb[185].mxu0  ;;  %9889 = vmatpush3.bf16.msra.mxu1 %v11978_v11  ;;  %9901 = vmatpush3.bf16.msra.mxu0 %v11980_v51 }
 0xf31   :  { %v12002_v59 = vld [vmem:[#allocation10 + $0x10] sm:$0xff]  ;;  %9890 = vmatprep.subr.bf16.mxu1 %v10670_v0  ;;  %9902 = vmatprep.subr.bf16.mxu0 %v10670_v0 }
 0xf32   :  { %5426 = vst.msk [vmem:[#allocation10 + $0x20] sm:$0xff] %vm1481_vm6, %v5399_v27  ;;  %8906 = vmatmul.mubr.msk.f32.gmra.mrb[186].mxu1 %vm1481_vm6, %v12002_v59  ;;  %8937 = vmatmul.mubr.msk.f32.gmra.mrb[198].mxu0 %vm1481_vm6, %v12002_v59 }
 0xf33   :  { %v5403_v7 = vpop.f32.mrb[186].mxu0  ;;  %8908 = vmatprep.mubr.msk.f32.mxu1 %vm10672_vm0, %v11443_v38  ;;  %8939 = vmatprep.mubr.msk.f32.mxu0 %vm10672_vm0, %v11443_v38 }
 0xf34   :  { %v5404_v53 = vadd.f32 %v11953_v9, %v5403_v7  ;;  %v8873_v4 = vpop.f32.mrb[187].mxu0  ;;  %9892 = vmatpush3.bf16.msra.mxu1 %v11998_v56  ;;  %9904 = vmatpush3.bf16.msra.mxu0 %v12000_v58 }
 0xf35   :  { %v5439_v5 = vld [vmem:[#allocation10 + $0x18] sm:$0xff]  ;;  %9893 = vmatprep.subr.bf16.mxu1 %v10670_v0  ;;  %9905 = vmatprep.subr.bf16.mxu0 %v10670_v0 }
 0xf36   :  { %5427 = vst.msk [vmem:[#allocation10 + $0x28] sm:$0xff] %vm1481_vm6, %v5404_v53  ;;  %8909 = vmatmul.mubr.msk.f32.gmra.mrb[188].mxu1 %vm1481_vm6, %v5439_v5  ;;  %8940 = vmatmul.mubr.msk.f32.gmra.mrb[200].mxu0 %vm1481_vm6, %v5439_v5 }
 0xf37   :  { %v5408_v13 = vpop.f32.mrb[188].mxu0  ;;  %8911 = vmatprep.mubr.msk.f32.mxu1 %vm10672_vm0, %v11443_v38  ;;  %8942 = vmatprep.mubr.msk.f32.mxu0 %vm10672_vm0, %v11443_v38 }
 0xf38   :  { %v5409_v3 = vadd.f32 %v11953_v9, %v5408_v13  ;;  %v8876_v34 = vpop.f32.mrb[189].mxu0  ;;  %9895 = vmatpush3.bf16.msra.mxu1 %v12018_v25  ;;  %9907 = vmatpush3.bf16.msra.mxu0 %v12020_v52 }
 0xf39   :  { %v5440_v23 = vld [vmem:[#allocation10 + $0x20] sm:$0xf]  ;;  %9908 = vmatprep.subr.bf16.mxu1 %v10670_v0  ;;  %9920 = vmatprep.subr.bf16.mxu0 %v10670_v0 }
 0xf3a   :  { %5428 = vst.msk [vmem:[#allocation10 + $0x30] sm:$0xff] %vm1481_vm6, %v5409_v3  ;;  %8912 = vmatmul.mubr.msk.f32.gmra.mrb[190].mxu1 %vm1481_vm6, %v5440_v23  ;;  %8943 = vmatmul.mubr.msk.f32.gmra.mrb[202].mxu0 %vm1481_vm6, %v5440_v23 }
 0xf3b   :  { %v5413_v50 = vpop.f32.mrb[190].mxu0  ;;  %8961 = vmatprep.mubr.msk.f32.mxu1 %vm10672_vm0, %v11443_v38  ;;  %8992 = vmatprep.mubr.msk.f32.mxu0 %vm10672_vm0, %v11443_v38 }
 0xf3c   :  { %v5414_v49 = vadd.f32 %v11953_v9, %v5413_v50  ;;  %v8879_v15 = vpop.f32.mrb[191].mxu0 }
 0xf3e   :  { %5429 = vst.msk [vmem:[#allocation10 + $0x38] sm:$0xff] %vm1481_vm6, %v5414_v49  ;;  %8962 = vmatmul.mubr.msk.f32.vlgmr.msra.gmra.mrb[192].mxu1 %vm1481_vm6, %v11964_v41  ;;  %8993 = vmatmul.mubr.msk.f32.vlgmr.msra.gmra.mrb[204].mxu0 %vm1481_vm6, %v11964_v41 }
 0xf3f   :  { %v5418_v14 = vpop.f32.mrb[192].mxu0  ;;  %8964 = vmatprep.mubr.msk.f32.mxu1 %vm10672_vm0, %v11443_v38  ;;  %8995 = vmatprep.mubr.msk.f32.mxu0 %vm10672_vm0, %v11443_v38 }
 0xf40   :  { %v5419_v48 = vadd.f32 %v11953_v9, %v5418_v14  ;;  %v8882_v18 = vpop.f32.mrb[193].mxu0  ;;  %9910 = vmatpush3.bf16.msra.mxu1 %v11869_v62  ;;  %9922 = vmatpush3.bf16.msra.mxu0 %v11900_v39  ;;  %v5851_v62 = vld [vmem:[#allocation10 + $0x24] sm:$0xff] }
 0xf41   :  { %9911 = vmatprep.subr.bf16.mxu1 %v10670_v0  ;;  %9923 = vmatprep.subr.bf16.mxu0 %v10670_v0 }
 0xf42   :  { %5430 = vst.msk [vmem:[#allocation10 + $0x40] sm:$0xff] %vm1481_vm6, %v5419_v48  ;;  %8965 = vmatmul.mubr.msk.f32.gmra.mrb[194].mxu1 %vm1481_vm6, %v11982_v55  ;;  %8996 = vmatmul.mubr.msk.f32.gmra.mrb[206].mxu0 %vm1481_vm6, %v11982_v55 }
 0xf43   :  { %8967 = vmatprep.mubr.msk.f32.mxu1 %vm10672_vm0, %v11443_v38  ;;  %8998 = vmatprep.mubr.msk.f32.mxu0 %vm10672_vm0, %v11443_v38 }
 0xf44   :  { %9913 = vmatpush3.bf16.msra.mxu1 %v11872_v35  ;;  %9925 = vmatpush3.bf16.msra.mxu0 %v11906_v63  ;;  %v5852_v35 = vld [vmem:[#allocation10 + $0x2c] sm:$0xff] }
 0xf45   :  { %9914 = vmatprep.subr.bf16.mxu1 %v10670_v0  ;;  %9926 = vmatprep.subr.bf16.mxu0 %v10670_v0 }
 0xf46   :  { %8968 = vmatmul.mubr.msk.f32.gmra.mrb[196].mxu1 %vm1481_vm6, %v12002_v59  ;;  %8999 = vmatmul.mubr.msk.f32.gmra.mrb[208].mxu0 %vm1481_vm6, %v12002_v59 }
 0xf47   :  { %8970 = vmatprep.mubr.msk.f32.mxu1 %vm10672_vm0, %v11443_v38  ;;  %9001 = vmatprep.mubr.msk.f32.mxu0 %vm10672_vm0, %v11443_v38 }
 0xf48   :  { %9916 = vmatpush3.bf16.msra.mxu1 %v11876_v19  ;;  %9928 = vmatpush3.bf16.msra.mxu0 %v11914_v28  ;;  %v5853_v19 = vld [vmem:[#allocation10 + $0x34] sm:$0xff] }
 0xf49   :  { %9917 = vmatprep.subr.bf16.mxu1 %v10670_v0  ;;  %9929 = vmatprep.subr.bf16.mxu0 %v10670_v0  ;;  %v5854_v39 = vld [vmem:[#allocation10 + $0x3c] sm:$0xff]  ;;  %v5855_v63 = vld [vmem:[#allocation10 + $0x44] sm:$0xf] }
 0xf4a   :  { %8971 = vmatmul.mubr.msk.f32.gmra.mrb[198].mxu1 %vm1481_vm6, %v5439_v5  ;;  %9002 = vmatmul.mubr.msk.f32.gmra.mrb[210].mxu0 %vm1481_vm6, %v5439_v5 }
 0xf4b   :  { %8973 = vmatprep.mubr.msk.f32.mxu1 %vm10672_vm0, %v11443_v38  ;;  %9004 = vmatprep.mubr.msk.f32.mxu0 %vm10672_vm0, %v11443_v38 }
 0xf4c   :  { %9919 = vmatpush3.bf16.msra.mxu1 %v11944_v12  ;;  %9931 = vmatpush3.bf16.msra.mxu0 %v11946_v29 }
 0xf4d   :  { %9932 = vmatprep.subr.bf16.mxu1 %v10670_v0  ;;  %9944 = vmatprep.subr.bf16.mxu0 %v10670_v0 }
 0xf4e   :  { %8974 = vmatmul.mubr.msk.f32.gmra.mrb[200].mxu1 %vm1481_vm6, %v5440_v23  ;;  %9005 = vmatmul.mubr.msk.f32.gmra.mrb[212].mxu0 %vm1481_vm6, %v5440_v23 }
 0xf4f   :  { %9023 = vmatprep.mubr.msk.f32.mxu1 %vm10672_vm0, %v11443_v38  ;;  %9054 = vmatprep.mubr.msk.f32.mxu0 %vm10672_vm0, %v11443_v38 }
 0xf52   :  { %9024 = vmatmul.mubr.msk.f32.vlgmr.msra.gmra.mrb[202].mxu1 %vm1481_vm6, %v5851_v62  ;;  %9055 = vmatmul.mubr.msk.f32.vlgmr.msra.gmra.mrb[214].mxu0 %vm1481_vm6, %v5851_v62 }
 0xf53   :  { %9026 = vmatprep.mubr.msk.f32.mxu1 %vm10672_vm0, %v11443_v38  ;;  %9057 = vmatprep.mubr.msk.f32.mxu0 %vm10672_vm0, %v11443_v38 }
 0xf54   :  { %9934 = vmatpush3.bf16.msra.mxu1 %v11960_v26  ;;  %9946 = vmatpush3.bf16.msra.mxu0 %v11962_v45 }
 0xf55   :  { %9935 = vmatprep.subr.bf16.mxu1 %v10670_v0  ;;  %9947 = vmatprep.subr.bf16.mxu0 %v10670_v0 }
 0xf56   :  { %9027 = vmatmul.mubr.msk.f32.gmra.mrb[204].mxu1 %vm1481_vm6, %v5852_v35  ;;  %9058 = vmatmul.mubr.msk.f32.gmra.mrb[216].mxu0 %vm1481_vm6, %v5852_v35 }
 0xf57   :  { %9029 = vmatprep.mubr.msk.f32.mxu1 %vm10672_vm0, %v11443_v38  ;;  %9060 = vmatprep.mubr.msk.f32.mxu0 %vm10672_vm0, %v11443_v38 }
 0xf58   :  { %9937 = vmatpush3.bf16.msra.mxu1 %v11978_v11  ;;  %9949 = vmatpush3.bf16.msra.mxu0 %v11980_v51 }
 0xf59   :  { %9938 = vmatprep.subr.bf16.mxu1 %v10670_v0  ;;  %9950 = vmatprep.subr.bf16.mxu0 %v10670_v0 }
 0xf5a   :  { %9030 = vmatmul.mubr.msk.f32.gmra.mrb[206].mxu1 %vm1481_vm6, %v5853_v19  ;;  %9061 = vmatmul.mubr.msk.f32.gmra.mrb[218].mxu0 %vm1481_vm6, %v5853_v19 }
 0xf5b   :  { %9032 = vmatprep.mubr.msk.f32.mxu1 %vm10672_vm0, %v11443_v38  ;;  %9063 = vmatprep.mubr.msk.f32.mxu0 %vm10672_vm0, %v11443_v38 }
 0xf5c   :  { %9940 = vmatpush3.bf16.msra.mxu1 %v11998_v56  ;;  %9952 = vmatpush3.bf16.msra.mxu0 %v12000_v58 }
 0xf5d   :  { %9941 = vmatprep.subr.bf16.mxu1 %v10670_v0  ;;  %9953 = vmatprep.subr.bf16.mxu0 %v10670_v0 }
 0xf5e   :  { %9033 = vmatmul.mubr.msk.f32.gmra.mrb[208].mxu1 %vm1481_vm6, %v5854_v39  ;;  %9064 = vmatmul.mubr.msk.f32.gmra.mrb[220].mxu0 %vm1481_vm6, %v5854_v39 }
 0xf5f   :  { %9035 = vmatprep.mubr.msk.f32.mxu1 %vm10672_vm0, %v11443_v38  ;;  %9066 = vmatprep.mubr.msk.f32.mxu0 %vm10672_vm0, %v11443_v38 }
 0xf60   :  { %9943 = vmatpush3.bf16.msra.mxu1 %v12018_v25  ;;  %9955 = vmatpush3.bf16.msra.mxu0 %v12020_v52 }
 0xf62   :  { %9036 = vmatmul.mubr.msk.f32.gmra.mrb[210].mxu1 %vm1481_vm6, %v5855_v63  ;;  %9067 = vmatmul.mubr.msk.f32.gmra.mrb[222].mxu0 %vm1481_vm6, %v5855_v63 }
 0xf63   :  { %9085 = vmatprep.mubr.msk.f32.mxu1 %vm10672_vm0, %v11443_v38  ;;  %9116 = vmatprep.mubr.msk.f32.mxu0 %vm10672_vm0, %v11443_v38 }
 0xf66   :  { %9086 = vmatmul.mubr.msk.f32.vlgmr.msra.gmra.mrb[212].mxu1 %vm1481_vm6, %v5851_v62  ;;  %9117 = vmatmul.mubr.msk.f32.vlgmr.msra.gmra.mrb[224].mxu0 %vm1481_vm6, %v5851_v62 }
 0xf67   :  { %9088 = vmatprep.mubr.msk.f32.mxu1 %vm10672_vm0, %v11443_v38  ;;  %9119 = vmatprep.mubr.msk.f32.mxu0 %vm10672_vm0, %v11443_v38 }
 0xf6a   :  { %9089 = vmatmul.mubr.msk.f32.gmra.mrb[214].mxu1 %vm1481_vm6, %v5852_v35  ;;  %9120 = vmatmul.mubr.msk.f32.gmra.mrb[226].mxu0 %vm1481_vm6, %v5852_v35 }
 0xf6b   :  { %9091 = vmatprep.mubr.msk.f32.mxu1 %vm10672_vm0, %v11443_v38  ;;  %9122 = vmatprep.mubr.msk.f32.mxu0 %vm10672_vm0, %v11443_v38 }
 0xf6e   :  { %9092 = vmatmul.mubr.msk.f32.gmra.mrb[216].mxu1 %vm1481_vm6, %v5853_v19  ;;  %9123 = vmatmul.mubr.msk.f32.gmra.mrb[228].mxu0 %vm1481_vm6, %v5853_v19 }
 0xf6f   :  { %9094 = vmatprep.mubr.msk.f32.mxu1 %vm10672_vm0, %v11443_v38  ;;  %9125 = vmatprep.mubr.msk.f32.mxu0 %vm10672_vm0, %v11443_v38 }
 0xf72   :  { %9095 = vmatmul.mubr.msk.f32.gmra.mrb[218].mxu1 %vm1481_vm6, %v5854_v39  ;;  %9126 = vmatmul.mubr.msk.f32.gmra.mrb[230].mxu0 %vm1481_vm6, %v5854_v39 }
 0xf73   :  { %9097 = vmatprep.mubr.msk.f32.mxu1 %vm10672_vm0, %v11443_v38  ;;  %9128 = vmatprep.mubr.msk.f32.mxu0 %vm10672_vm0, %v11443_v38 }
 0xf76   :  { %9098 = vmatmul.mubr.msk.f32.gmra.mrb[220].mxu1 %vm1481_vm6, %v5855_v63  ;;  %9129 = vmatmul.mubr.msk.f32.gmra.mrb[232].mxu0 %vm1481_vm6, %v5855_v63 }
 0xffd   :  { %v5530_v0 = vpop.f32.mrb[182].mxu1  ;;  %v5629_v28 = vpop.f32.mrb[194].mxu0 }
 0xffe   :  { %v6231_v12 = vmax.f32 %v5530_v0, %v5629_v28  ;;  %v8901_v29 = vpop.f32.mrb[183].mxu1  ;;  %v8932_v9 = vpop.f32.mrb[195].mxu0 }
0x1001   :  { %v5535_v2 = vpop.f32.mrb[184].mxu1  ;;  %v5634_v20 = vpop.f32.mrb[196].mxu0 }
0x1002   :  { %v6232_v21 = vmax.f32 %v5535_v2, %v5634_v20  ;;  %v8904_v8 = vpop.f32.mrb[185].mxu1  ;;  %v8935_v54 = vpop.f32.mrb[197].mxu0 }
0x1005   :  { %v12169_v1 = vpop.f32.mrb[186].mxu1  ;;  %v12171_v32 = vpop.f32.mrb[198].mxu0 }
0x1006   :  { %v6233_v57 = vmax.f32 %v12169_v1, %v12171_v32  ;;  %v8907_v22 = vpop.f32.mrb[187].mxu1  ;;  %v8938_v30 = vpop.f32.mrb[199].mxu0 }
0x1009   :  { %v12175_v26 = vpop.f32.mrb[188].mxu1  ;;  %v12177_v45 = vpop.f32.mrb[200].mxu0 }
0x100a   :  { %v6234_v40 = vmax.f32 %v12175_v26, %v12177_v45  ;;  %v8910_v33 = vpop.f32.mrb[189].mxu1  ;;  %v8941_v41 = vpop.f32.mrb[201].mxu0 }
0x100d   :  { %v12181_v61 = vpop.f32.mrb[190].mxu1  ;;  %v12183_v36 = vpop.f32.mrb[202].mxu0 }
0x100e   :  { %v6235_v31 = vmax.f32 %v12181_v61, %v12183_v36  ;;  %v8913_v43 = vpop.f32.mrb[191].mxu1  ;;  %v8944_v17 = vpop.f32.mrb[203].mxu0 }
0x1011   :  { %v5728_v11 = vpop.f32.mrb[192].mxu1  ;;  %v5827_v51 = vpop.f32.mrb[204].mxu0 }
0x1012   :  { %v6236_v24 = vmax.f32 %v5728_v11, %v5827_v51  ;;  %v8963_v10 = vpop.f32.mrb[193].mxu1  ;;  %v8994_v55 = vpop.f32.mrb[205].mxu0 }
0x1014   :  { %v6241_v37 = vmax.f32 %v6231_v12, %v6236_v24 }
0x1015   :  { %v5733_v47 = vpop.f32.mrb[194].mxu1  ;;  %v5832_v44 = vpop.f32.mrb[206].mxu0 }
0x1016   :  { %v6246_v27 = vsub.f32 %v5530_v0, %v6241_v37  ;;  %v6261_v16 = vsub.f32 %v5629_v28, %v6241_v37  ;;  %v6276_v56 = vsub.f32 %v5728_v11, %v6241_v37  ;;  %v6291_v58 = vsub.f32 %v5827_v51, %v6241_v37  ;;  %v8966_v6 = vpop.f32.mrb[195].mxu1  ;;  %v8997_v60 = vpop.f32.mrb[207].mxu0 }
0x1017   :  { %v6237_v59 = vmax.f32 %v5733_v47, %v5832_v44 }
0x1018   :  { %v6251_v42 = vmul.f32 1.442695, %v6246_v27  ;;  %v6266_v46 = vmul.f32 1.442695, %v6261_v16  ;;  %v6281_v7 = vmul.f32 1.442695, %v6276_v56 }
0x1019   :  { %v6296_v53 = vmul.f32 1.442695, %v6291_v58  ;;  %v6242_v4 = vmax.f32 %v6232_v21, %v6237_v59  ;;  %v5738_v25 = vpop.f32.mrb[196].mxu1  ;;  %v5837_v52 = vpop.f32.mrb[208].mxu0 }
0x101a   :  { %10046 = vpow2.f32 %v6251_v42  ;;  %v6238_v5 = vmax.f32 %v5738_v25, %v5837_v52  ;;  %v8969_v13 = vpop.f32.mrb[197].mxu1  ;;  %v9000_v3 = vpop.f32.mrb[209].mxu0 }
0x101b   :  { %10048 = vpow2.f32 %v6266_v46  ;;  %v6247_v34 = vsub.f32 %v5535_v2, %v6242_v4  ;;  %v6262_v23 = vsub.f32 %v5634_v20, %v6242_v4  ;;  %v6277_v50 = vsub.f32 %v5733_v47, %v6242_v4 }
0x101c   :  { %10050 = vpow2.f32 %v6281_v7  ;;  %v6292_v49 = vsub.f32 %v5832_v44, %v6242_v4  ;;  %v6243_v15 = vmax.f32 %v6233_v57, %v6238_v5 }
0x101d   :  { %10052 = vpow2.f32 %v6296_v53  ;;  %v6253_v14 = vmul.f32 1.442695, %v6247_v34  ;;  %v6268_v48 = vmul.f32 1.442695, %v6262_v23  ;;  %v6283_v18 = vmul.f32 1.442695, %v6277_v50 }
0x101e   :  { %v6298_v62 = vmul.f32 1.442695, %v6292_v49  ;;  %v6248_v35 = vsub.f32 %v12169_v1, %v6243_v15  ;;  %v6263_v19 = vsub.f32 %v12171_v32, %v6243_v15  ;;  %v6278_v39 = vsub.f32 %v5738_v25, %v6243_v15  ;;  %v5743_v63 = vpop.f32.mrb[198].mxu1  ;;  %v5842_v0 = vpop.f32.mrb[210].mxu0 }
0x101f   :  { %10054 = vpow2.f32 %v6253_v14  ;;  %v6293_v28 = vsub.f32 %v5837_v52, %v6243_v15  ;;  %v6239_v12 = vmax.f32 %v5743_v63, %v5842_v0  ;;  %v8972_v29 = vpop.f32.mrb[199].mxu1  ;;  %v9003_v9 = vpop.f32.mrb[211].mxu0 }
0x1020   :  { %10056 = vpow2.f32 %v6268_v48  ;;  %v6255_v2 = vmul.f32 1.442695, %v6248_v35  ;;  %v6270_v20 = vmul.f32 1.442695, %v6263_v19  ;;  %v6285_v21 = vmul.f32 1.442695, %v6278_v39 }
0x1021   :  { %10058 = vpow2.f32 %v6283_v18  ;;  %v6244_v8 = vmax.f32 %v6234_v40, %v6239_v12  ;;  %v5748_v54 = vpop.f32.mrb[200].mxu1  ;;  %v5847_v57 = vpop.f32.mrb[212].mxu0  ;;  %v6300_v1 = vmul.f32 1.442695, %v6293_v28 }
0x1022   :  { %10060 = vpow2.f32 %v6298_v62  ;;  %v6240_v22 = vmax.f32 %v5748_v54, %v5847_v57  ;;  %v8975_v32 = vpop.f32.mrb[201].mxu1  ;;  %v9006_v30 = vpop.f32.mrb[213].mxu0 }
0x1023   :  { %10062 = vpow2.f32 %v6255_v2  ;;  %v6249_v33 = vsub.f32 %v12175_v26, %v6244_v8  ;;  %v6264_v41 = vsub.f32 %v12177_v45, %v6244_v8  ;;  %v6279_v43 = vsub.f32 %v5743_v63, %v6244_v8 }
0x1024   :  { %v12191_v17 = vpop.eup %10046  ;;  %10064 = vpow2.f32 %v6270_v20  ;;  %v6294_v11 = vsub.f32 %v5842_v0, %v6244_v8  ;;  %v6245_v40 = vmax.f32 %v6235_v31, %v6240_v22 }
0x1025   :  { %v12196_v51 = vpop.eup %10048  ;;  %10066 = vpow2.f32 %v6285_v21  ;;  %v6257_v24 = vmul.f32 1.442695, %v6249_v33  ;;  %v6272_v10 = vmul.f32 1.442695, %v6264_v41  ;;  %v6287_v55 = vmul.f32 1.442695, %v6279_v43 }
0x1026   :  { %v12198_v37 = vpop.eup %10050  ;;  %v6306_v26 = vadd.f32 %v12196_v51, %v12191_v17  ;;  %10068 = vpow2.f32 %v6300_v1  ;;  %v6302_v45 = vmul.f32 1.442695, %v6294_v11  ;;  %v6250_v47 = vsub.f32 %v12181_v61, %v6245_v40  ;;  %v12203_v44 = vpop.f32.mrb[202].mxu1 }
0x1027   :  { %v12205_v27 = vpop.f32.mrb[214].mxu0  ;;  %v12207_v31 = vpop.eup %10052  ;;  %10070 = vpow2.f32 %v6257_v24  ;;  %v6265_v16 = vsub.f32 %v12183_v36, %v6245_v40  ;;  %v6280_v56 = vsub.f32 %v5748_v54, %v6245_v40  ;;  %v6295_v58 = vsub.f32 %v5847_v57, %v6245_v40 }
0x1028   :  { %v9025_v6 = vpop.f32.mrb[203].mxu1  ;;  %v9056_v60 = vpop.f32.mrb[215].mxu0  ;;  %v6311_v59 = vadd.f32 %v12198_v37, %v6306_v26  ;;  %10072 = vpow2.f32 %v6272_v10  ;;  %v6259_v42 = vmul.f32 1.442695, %v6250_v47  ;;  %v6346_v61 = vmax.f32 %v12203_v44, %v12205_v27 }
0x1029   :  { %v12213_v46 = vpop.eup %10054  ;;  %10074 = vpow2.f32 %v6287_v55  ;;  %v6274_v7 = vmul.f32 1.442695, %v6265_v16  ;;  %v12218_v36 = vpop.f32.mrb[204].mxu1  ;;  %v6289_v13 = vmul.f32 1.442695, %v6280_v56 }
0x102a   :  { %v12215_v53 = vpop.eup %10056  ;;  %v6316_v4 = vadd.f32 %v12207_v31, %v6311_v59  ;;  %10076 = vpow2.f32 %v6302_v45  ;;  %v12220_v25 = vpop.f32.mrb[216].mxu0  ;;  %v6304_v49 = vmul.f32 1.442695, %v6295_v58 }
0x102b   :  { %v12222_v52 = vpop.eup %10058  ;;  %v6307_v5 = vadd.f32 %v12215_v53, %v12213_v46  ;;  %10078 = vpow2.f32 %v6259_v42  ;;  %v6347_v3 = vmax.f32 %v12218_v36, %v12220_v25  ;;  %v9028_v34 = vpop.f32.mrb[205].mxu1 }
0x102c   :  { %v9059_v23 = vpop.f32.mrb[217].mxu0  ;;  %v10061_v50 = vpop.eup %10060  ;;  %10080 = vrcp.f32 %v6316_v4 }
0x102d   :  { %v12228_v15 = vpop.eup %10062  ;;  %v6312_v14 = vadd.f32 %v12222_v52, %v6307_v5  ;;  %10082 = vpow2.f32 %v6274_v7  ;;  %v12231_v48 = vpop.f32.mrb[206].mxu1 }
0x102e   :  { %v12233_v18 = vpop.f32.mrb[218].mxu0  ;;  %v12235_v62 = vpop.eup %10064  ;;  %10084 = vpow2.f32 %v6289_v13 }
0x102f   :  { %v6348_v35 = vmax.f32 %v12231_v48, %v12233_v18  ;;  %v9031_v19 = vpop.f32.mrb[207].mxu1  ;;  %v9062_v39 = vpop.f32.mrb[219].mxu0  ;;  %v6317_v0 = vadd.f32 %v10061_v50, %v6312_v14  ;;  %v6308_v28 = vadd.f32 %v12235_v62, %v12228_v15  ;;  %10086 = vpow2.f32 %v6304_v49 }
0x1030   :  { %v12239_v63 = vpop.eup %10066  ;;  %v12278_v58 = vpop.permute.xlu1 %6468 }
0x1031   :  { %v12243_v12 = vpop.eup %10068  ;;  %10088 = vrcp.f32 %v6317_v0  ;;  %v6313_v9 = vadd.f32 %v12239_v63, %v6308_v28  ;;  %v12248_v2 = vpop.f32.mrb[208].mxu1 }
0x1032   :  { %v12245_v29 = vpop.eup %10070  ;;  %v12250_v20 = vpop.f32.mrb[220].mxu0 }
0x1033   :  { %v12252_v21 = vpop.eup %10072  ;;  %v6349_v8 = vmax.f32 %v12248_v2, %v12250_v20  ;;  %v9034_v54 = vpop.f32.mrb[209].mxu1  ;;  %v6318_v22 = vadd.f32 %v12243_v12, %v6313_v9 }
0x1034   :  { %v9065_v57 = vpop.f32.mrb[221].mxu0  ;;  %v12256_v1 = vpop.eup %10074  ;;  %v6309_v32 = vadd.f32 %v12252_v21, %v12245_v29 }
0x1035   :  { %v12261_v30 = vpop.eup %10076  ;;  %10090 = vrcp.f32 %v6318_v22  ;;  %v12266_v43 = vpop.f32.mrb[210].mxu1 }
0x1036   :  { %v12263_v33 = vpop.eup %10078  ;;  %v6314_v41 = vadd.f32 %v12256_v1, %v6309_v32  ;;  %v12268_v11 = vpop.f32.mrb[222].mxu0 }
0x1037   :  { %v10081_v40 = vpop.eup %10080  ;;  %v6350_v24 = vmax.f32 %v12266_v43, %v12268_v11  ;;  %v9037_v10 = vpop.f32.mrb[211].mxu1 }
0x1038   :  { %v9068_v55 = vpop.f32.mrb[223].mxu0  ;;  %v12272_v26 = vpop.eup %10082  ;;  %v6341_v45 = vmul.f32 %v10081_v40, %v12207_v31  ;;  %v6319_v47 = vadd.f32 %v12261_v30, %v6314_v41  ;;  %v6322_v16 = vmul.f32 %v10081_v40, %v12191_v17  ;;  %v6331_v56 = vmul.f32 %v10081_v40, %v12196_v51 }
0x1039   :  { %v6310_v6 = vadd.f32 %v12272_v26, %v12263_v33  ;;  %v6336_v60 = vmul.f32 %v10081_v40, %v12198_v37  ;;  %v12283_v59 = vpop.eup %10084  ;;  %v6117_v42 = vpop.f32.mrb[212].mxu1 }
0x103a   :  { %v6207_v7 = vpop.f32.mrb[224].mxu0  ;;  %v12285_v4 = vpop.eup %10086  ;;  %10092 = vrcp.f32 %v6319_v47  ;;  %v12289_v34 = vmul.f32 %v12278_v58, %v6341_v45  ;;  %v6491_v23 = vmul.f32 %v12278_v58, %v6322_v16  ;;  %v12299_v9 = vmul.f32 %v12278_v58, %v6331_v56 }
0x103b   :  { %v6315_v31 = vadd.f32 %v12283_v59, %v6310_v6  ;;  %v6351_v5 = vmax.f32 %v6117_v42, %v6207_v7  ;;  %v9087_v17 = vpop.f32.mrb[213].mxu1  ;;  %v9118_v13 = vpop.f32.mrb[225].mxu0 }
0x103c   :  { %v10089_v51 = vpop.eup %10088  ;;  %v12314_v32 = vpop.permute.xlu0 %6473 }
0x103d   :  { %v6342_v49 = vmul.f32 %v10089_v51, %v10061_v50  ;;  %v6320_v37 = vadd.f32 %v12285_v4, %v6315_v31  ;;  %v6356_v14 = vmax.f32 %v6346_v61, %v6351_v5  ;;  %v6324_v19 = vmul.f32 %v10089_v51, %v12213_v46  ;;  %v6122_v39 = vpop.f32.mrb[214].mxu1  ;;  %v6212_v0 = vpop.f32.mrb[226].mxu0 }
0x103e   :  { %v6332_v28 = vmul.f32 %v10089_v51, %v12215_v53  ;;  %v12302_v54 = vmul.f32 %v10089_v51, %v12222_v52  ;;  %v12305_v50 = vmul.f32 %v12278_v58, %v6336_v60  ;;  %v9090_v61 = vpop.f32.mrb[215].mxu1  ;;  %v9121_v46 = vpop.f32.mrb[227].mxu0  ;;  %v6352_v10 = vmax.f32 %v6122_v39, %v6212_v0 }
0x103f   :  { %10094 = vrcp.f32 %v6320_v37  ;;  %vm6361_vm12 = vcmp.ge.f32.partialorder %v12203_v44, %v6356_v14  ;;  %vm6381_vm13 = vcmp.ge.f32.partialorder %v12205_v27, %v6356_v14  ;;  %vm6411_vm14 = vcmp.ge.f32.partialorder %v6117_v42, %v6356_v14  ;;  %v12309_v57 = vpop.eup %10090  ;;  %v12316_v41 = vpop.permute.xlu1 %6478 }
0x1040   :  { %v7073_v53 = vsel %vm6361_vm12, 1.0, %v11443_v38  ;;  %v7078_v22 = vsel %vm6381_vm13, 1.0, %v11443_v38  ;;  %v7083_v52 = vsel %vm6411_vm14, 1.0, %v11443_v38  ;;  %vm6441_vm15 = vcmp.ge.f32.partialorder %v6207_v7, %v6356_v14 }
0x1041   :  { %v6376_v40 = vmax.f32 %v7073_v53, 0.0  ;;  %v12319_v44 = vsel %vm6441_vm15, 1.0, %v11443_v38  ;;  %v6496_v27 = vmul.f32 %v7073_v53, %v12278_v58  ;;  %v12323_v55 = vmul.f32 %v12314_v32, %v6342_v49  ;;  %v6127_v45 = vpop.f32.mrb[216].mxu1  ;;  %v6217_v47 = vpop.f32.mrb[228].mxu0 }
0x1042   :  { %v6326_v16 = vmul.f32 %v12309_v57, %v12228_v15  ;;  %v12328_v56 = vmul.f32 %v12314_v32, %v6324_v19  ;;  %v12332_v6 = vmul.f32 %v12309_v57, %v12235_v62  ;;  %v6357_v42 = vmax.f32 %v6347_v3, %v6352_v10  ;;  %v9093_v31 = vpop.f32.mrb[217].mxu1  ;;  %v9124_v5 = vpop.f32.mrb[229].mxu0 }
0x1043   :  { %v6396_v60 = vsub.f32 1.0, %v6376_v40  ;;  %v6353_v7 = vmax.f32 %v6127_v45, %v6217_v47  ;;  %v12338_v17 = vsel %vm464_vm1, %v6496_v27, 0.0  ;;  %v6526_v13 = vadd.f32 %v6496_v27, %v6491_v23 }
0x1044   :  { %v12341_v15 = vmul.f32 %v12316_v41, %v6326_v16  ;;  %v6501_v51 = vmul.f32 %v6496_v27, %v6491_v23  ;;  %v12344_v49 = vmul.f32 %v12314_v32, %v6332_v28  ;;  %v12346_v62 = vpop.eup %10092  ;;  %vm6362_vm0 = vcmp.ge.f32.partialorder %v12218_v36, %v6357_v42 }
0x1045   :  { %v6401_v37 = vmul.f32 %v7078_v22, %v6396_v60  ;;  %vm6382_vm2 = vcmp.ge.f32.partialorder %v12220_v25, %v6357_v42  ;;  %vm6412_vm3 = vcmp.ge.f32.partialorder %v6122_v39, %v6357_v42  ;;  %v7074_v3 = vsel %vm6362_vm0, 1.0, %v11443_v38  ;;  %v6132_v61 = vpop.f32.mrb[218].mxu1  ;;  %v6222_v23 = vpop.f32.mrb[230].mxu0 }
0x1046   :  { %v7079_v14 = vsel %vm6382_vm2, 1.0, %v11443_v38  ;;  %v7084_v19 = vsel %vm6412_vm3, 1.0, %v11443_v38  ;;  %vm6442_vm4 = vcmp.ge.f32.partialorder %v6212_v0, %v6357_v42  ;;  %v6377_v53 = vmax.f32 %v7074_v3, 0.0  ;;  %v9096_v36 = vpop.f32.mrb[219].mxu1  ;;  %v9127_v25 = vpop.f32.mrb[231].mxu0 }
0x1047   :  { %v6406_v46 = vmax.f32 %v6376_v40, %v6401_v37  ;;  %v12354_v28 = vmul.f32 %v12278_v58, %v6401_v37  ;;  %v12357_v22 = vsel %vm6442_vm4, 1.0, %v11443_v38  ;;  %v12360_v39 = vmul.f32 %v7074_v3, %v12314_v32 }
0x1048   :  { %v6358_v27 = vmax.f32 %v6348_v35, %v6353_v7  ;;  %v6354_v0 = vmax.f32 %v6132_v61, %v6222_v23  ;;  %v12367_v40 = vmul.f32 %v12346_v62, %v12245_v29  ;;  %v6397_v60 = vsub.f32 1.0, %v6377_v53 }
0x1049   :  { %v12369_v10 = vpop.eup %10094  ;;  %v6426_v16 = vsub.f32 1.0, %v6406_v46  ;;  %v12372_v42 = vsel %vm464_vm1, %v6526_v13, 0.0  ;;  %v12375_v31 = vsel %vm464_vm1, %v6501_v51, 0.0  ;;  %v12379_v35 = vpop.f32.mrb[220].mxu1  ;;  %vm6513_vm13 = vcmask 125952  }
0x104a   :  { %vm6363_vm5 = vcmp.ge.f32.partialorder %v12231_v48, %v6358_v27  ;;  %vm6383_vm6 = vcmp.ge.f32.partialorder %v12233_v18, %v6358_v27  ;;  %vm6413_vm7 = vcmp.ge.f32.partialorder %v6127_v45, %v6358_v27  ;;  %vm6443_vm8 = vcmp.ge.f32.partialorder %v6217_v47, %v6358_v27  ;;  %v12381_v29 = vpop.f32.mrb[232].mxu0  ;;  %v9099_v3 = vpop.f32.mrb[221].mxu1 }
0x104b   :  { %v6431_v7 = vmul.f32 %v7083_v52, %v6426_v16  ;;  %v6402_v5 = vmul.f32 %v7079_v14, %v6397_v60  ;;  %v7075_v37 = vsel %vm6363_vm5, 1.0, %v11443_v38  ;;  %v7080_v13 = vsel %vm6383_vm6, 1.0, %v11443_v38  ;;  %v9130_v36 = vpop.f32.mrb[233].mxu0 }
0x104c   :  { %v6378_v51 = vmax.f32 %v7075_v37, 0.0  ;;  %v7085_v25 = vsel %vm6413_vm7, 1.0, %v11443_v38  ;;  %v12387_v48 = vsel %vm6443_vm8, 1.0, %v11443_v38  ;;  %v6359_v18 = vmax.f32 %v6349_v8, %v6354_v0 }
0x104d   :  { %v6436_v45 = vmax.f32 %v6406_v46, %v6431_v7  ;;  %v12393_v52 = vmul.f32 %v12278_v58, %v6431_v7  ;;  %v6407_v47 = vmax.f32 %v6377_v53, %v6402_v5  ;;  %v12396_v14 = vmul.f32 %v12314_v32, %v6402_v5  ;;  %v12405_v7 = vpop.permute.xlu0 %6483 }
0x104e   :  { %v6398_v27 = vsub.f32 1.0, %v6378_v51  ;;  %vm6364_vm9 = vcmp.ge.f32.partialorder %v12248_v2, %v6359_v18  ;;  %vm6384_vm10 = vcmp.ge.f32.partialorder %v12250_v20, %v6359_v18  ;;  %vm6414_vm11 = vcmp.ge.f32.partialorder %v6132_v61, %v6359_v18 }
0x104f   :  { %v6456_v16 = vsub.f32 1.0, %v6436_v45  ;;  %v6427_v60 = vsub.f32 1.0, %v6407_v47  ;;  %v7076_v3 = vsel %vm6364_vm9, 1.0, %v11443_v38  ;;  %v7081_v8 = vsel %vm6384_vm10, 1.0, %v11443_v38 }
0x1050   :  { %v12402_v46 = vmul.f32 %v7080_v13, %v6398_v27  ;;  %v6379_v0 = vmax.f32 %v7076_v3, 0.0  ;;  %v7086_v53 = vsel %vm6414_vm11, 1.0, %v11443_v38  ;;  %vm6444_vm12 = vcmp.ge.f32.partialorder %v6222_v23, %v6359_v18 }
0x1051   :  { %v6461_v5 = vmul.f32 %v12319_v44, %v6456_v16  ;;  %v6432_v2 = vmul.f32 %v7084_v19, %v6427_v60  ;;  %v7091_v20 = vsel %vm6444_vm12, 1.0, %v11443_v38  ;;  %v6355_v61 = vmax.f32 %v12379_v35, %v12381_v29 }
0x1052   :  { %v6408_v36 = vmax.f32 %v6378_v51, %v12402_v46  ;;  %v6399_v45 = vsub.f32 1.0, %v6379_v0  ;;  %v12413_v13 = vmul.f32 %v7075_v37, %v12316_v41  ;;  %v12416_v27 = vmul.f32 %v7076_v3, %v12405_v7 }
0x1053   :  { %v12419_v23 = vmul.f32 %v12278_v58, %v6461_v5  ;;  %v6437_v44 = vmax.f32 %v6407_v47, %v6432_v2  ;;  %v12422_v19 = vmul.f32 %v12314_v32, %v6432_v2  ;;  %v6360_v18 = vmax.f32 %v6350_v24, %v6355_v61 }
0x1054   :  { %v6428_v16 = vsub.f32 1.0, %v6408_v36  ;;  %v12427_v51 = vmul.f32 %v7081_v8, %v6399_v45  ;;  %v6551_v37 = vsel %vm464_vm1, %v12360_v39, 0.0  ;;  %v6553_v60 = vsel %vm464_vm1, %v12413_v13, 0.0 }
0x1055   :  { %12690 = vst [vmem:[#allocation72_spill] sm:$0xff] %v12419_v23  ;;  %v12435_v58 = vmul.f32 %v12419_v23, %v12289_v34  ;;  %v12439_v47 = vadd.f32 %v12419_v23, %v12289_v34  ;;  %v6457_v3 = vsub.f32 1.0, %v6437_v44  ;;  %vm6365_vm14 = vcmp.ge.f32.partialorder %v12266_v43, %v6360_v18 }
0x1056   :  { %v6433_v24 = vmul.f32 %v7085_v25, %v6428_v16  ;;  %v6409_v8 = vmax.f32 %v6379_v0, %v12427_v51  ;;  %v7077_v5 = vsel %vm6365_vm14, 1.0, %v11443_v38  ;;  %vm6385_vm15 = vcmp.ge.f32.partialorder %v12268_v11, %v6360_v18 }
0x1057   :  { %12691 = vst [vmem:[#allocation73_spill] sm:$0xff] %v12435_v58  ;;  %v6462_v2 = vmul.f32 %v12357_v22, %v6457_v3  ;;  %v6380_v61 = vmax.f32 %v7077_v5, 0.0  ;;  %v7082_v45 = vsel %vm6385_vm15, 1.0, %v11443_v38  ;;  %vm6415_vm0 = vcmp.ge.f32.partialorder %v12379_v35, %v6360_v18  ;;  %v12448_v58 = vpop.permute.xlu1 %6488 }
0x1058   :  { %v6438_v34 = vmax.f32 %v6408_v36, %v6433_v24  ;;  %v12451_v44 = vmul.f32 %v12316_v41, %v6433_v24  ;;  %v6429_v43 = vsub.f32 1.0, %v6409_v8  ;;  %v7087_v25 = vsel %vm6415_vm0, 1.0, %v11443_v38 }
0x1059   :  { %v12455_v0 = vmul.f32 %v12314_v32, %v6462_v2  ;;  %v6400_v11 = vsub.f32 1.0, %v6380_v61  ;;  %vm6445_vm2 = vcmp.ge.f32.partialorder %v12381_v29, %v6360_v18  ;;  %v6500_v22 = vmul.f32 %v7077_v5, %v12448_v58 }
0x105a   :  { %v6458_v16 = vsub.f32 1.0, %v6438_v34  ;;  %v12459_v3 = vmul.f32 %v7086_v53, %v6429_v43  ;;  %v7092_v35 = vsel %vm6445_vm2, 1.0, %v11443_v38  ;;  %v6552_v36 = vadd.f32 %v6551_v37, %v12338_v17 }
0x105b   :  { %12692 = vst [vmem:[#allocation74_spill] sm:$0xff] %v12455_v0  ;;  %v12465_v24 = vmul.f32 %v12455_v0, %v12323_v55  ;;  %v12469_v2 = vadd.f32 %v12455_v0, %v12323_v55  ;;  %v6405_v23 = vmul.f32 %v7082_v45, %v6400_v11  ;;  %v6555_v29 = vsel %vm464_vm1, %v12416_v27, 0.0 }
0x105c   :  { %v6463_v18 = vmul.f32 %v12387_v48, %v6458_v16  ;;  %v6439_v53 = vmax.f32 %v6409_v8, %v12459_v3  ;;  %v6554_v5 = vadd.f32 %v6553_v60, %v6552_v36  ;;  %v6557_v34 = vsel %vm6513_vm13, %v6500_v22, 0.0 }
0x105d   :  { %v6410_v17 = vmax.f32 %v6380_v61, %v6405_v23  ;;  %v6330_v37 = vmul.f32 %v12369_v10, %v12263_v33  ;;  %v6494_v43 = vmul.f32 %v12405_v7, %v12367_v40  ;;  %v6527_v55 = vadd.f32 %v12360_v39, %v12328_v56 }
0x105e   :  { %v12483_v45 = vmul.f32 %v12316_v41, %v6463_v18  ;;  %v6459_v11 = vsub.f32 1.0, %v6439_v53  ;;  %v6556_v48 = vadd.f32 %v6555_v29, %v6554_v5  ;;  %v6528_v60 = vadd.f32 %v12413_v13, %v12341_v15 }
0x105f   :  { %v6430_v8 = vsub.f32 1.0, %v6410_v17  ;;  %v6495_v61 = vmul.f32 %v12448_v58, %v6330_v37  ;;  %v6529_v16 = vadd.f32 %v12416_v27, %v6494_v43  ;;  %v6532_v33 = vsel %vm464_vm1, %v6527_v55, 0.0 }
0x1060   :  { %12693 = vst [vmem:[#allocation75_spill] sm:$0xff] %v12483_v45  ;;  %v6464_v36 = vmul.f32 %v7091_v20, %v6459_v11  ;;  %v6558_v40 = vadd.f32 %v6557_v34, %v6556_v48  ;;  %v6533_v38 = vadd.f32 %v6532_v33, %v12372_v42  ;;  %v6534_v0 = vsel %vm464_vm1, %v6528_v60, 0.0 }
0x1061   :  { %v12492_v18 = vmul.f32 %v7087_v25, %v6430_v8  ;;  %v6530_v53 = vadd.f32 %v6500_v22, %v6495_v61  ;;  %v6536_v29 = vsel %vm464_vm1, %v6529_v16, 0.0  ;;  %v6502_v5 = vmul.f32 %v12360_v39, %v12328_v56 }
0x1062   :  { %v12498_v37 = vmul.f32 %v12405_v7, %v6464_v36  ;;  %6559 = vadd.xlane.f32.xlu0 %v6558_v40  ;;  %v6535_v45 = vadd.f32 %v6534_v0, %v6533_v38  ;;  %v6503_v20 = vmul.f32 %v12413_v13, %v12341_v15  ;;  %v6504_v42 = vmul.f32 %v12416_v27, %v6494_v43 }
0x1063   :  { %v6440_v34 = vmax.f32 %v6410_v17, %v12492_v18  ;;  %v6538_v25 = vsel %vm6513_vm13, %v6530_v53, 0.0  ;;  %v6505_v55 = vmul.f32 %v6500_v22, %v6495_v61  ;;  %v6507_v11 = vsel %vm464_vm1, %v6502_v5, 0.0 }
0x1064   :  { %v6537_v48 = vadd.f32 %v6536_v29, %v6535_v45  ;;  %v6508_v56 = vadd.f32 %v6507_v11, %v12375_v31  ;;  %v6509_v39 = vsel %vm464_vm1, %v6503_v20, 0.0  ;;  %v6511_v60 = vsel %vm464_vm1, %v6504_v42, 0.0 }
0x1065   :  { %v6460_v38 = vsub.f32 1.0, %v6440_v34  ;;  %v6514_v0 = vsel %vm6513_vm13, %v6505_v55, 0.0  ;;  %v6586_v15 = vmul.f32 %v12316_v41, %v12402_v46  ;;  %v6587_v13 = vmul.f32 %v12405_v7, %v12427_v51 }
0x1066   :  { %v6539_v27 = vadd.f32 %v6538_v25, %v6537_v48  ;;  %v6510_v22 = vadd.f32 %v6509_v39, %v6508_v56  ;;  %v6588_v17 = vmul.f32 %v12448_v58, %v6405_v23  ;;  %v6637_v31 = vsel %vm464_vm1, %v12354_v28, 0.0 }
0x1067   :  { %v6465_v43 = vmul.f32 %v7092_v35, %v6460_v38  ;;  %v6638_v45 = vsel %vm464_vm1, %v12396_v14, 0.0  ;;  %v6640_v8 = vsel %vm464_vm1, %v6586_v15, 0.0  ;;  %v6642_v61 = vsel %vm464_vm1, %v6587_v13, 0.0 }
0x1068   :  { %6540 = vadd.xlane.f32.xlu1 %v6539_v27  ;;  %v6512_v46 = vadd.f32 %v6511_v60, %v6510_v22  ;;  %v6639_v16 = vadd.f32 %v6638_v45, %v6637_v31  ;;  %v6644_v51 = vsel %vm6513_vm13, %v6588_v17, 0.0  ;;  %v6334_v33 = vmul.f32 %v12346_v62, %v12252_v21 }
0x1069   :  { %v12525_v23 = vmul.f32 %v12448_v58, %v6465_v43  ;;  %v6335_v35 = vmul.f32 %v12369_v10, %v12272_v26  ;;  %v6581_v36 = vmul.f32 %v12316_v41, %v12332_v6  ;;  %v6613_v40 = vadd.f32 %v12354_v28, %v12299_v9 }
0x106a   :  { %v6515_v53 = vadd.f32 %v6514_v0, %v6512_v46  ;;  %v6641_v29 = vadd.f32 %v6640_v8, %v6639_v16  ;;  %v6582_v5 = vmul.f32 %v12405_v7, %v6334_v33  ;;  %v6614_v20 = vadd.f32 %v12396_v14, %v12344_v49 }
0x106b   :  { %v6583_v21 = vmul.f32 %v12448_v58, %v6335_v35  ;;  %v6615_v42 = vadd.f32 %v6586_v15, %v6581_v36  ;;  %v6618_v34 = vsel %vm464_vm1, %v6613_v40, 0.0  ;;  %v6589_v26 = vmul.f32 %v12354_v28, %v12299_v9 }
0x106c   :  { %6516 = vadd.xlane.f32.xlu0 %v6515_v53  ;;  %v6643_v6 = vadd.f32 %v6642_v61, %v6641_v29  ;;  %v6616_v25 = vadd.f32 %v6587_v13, %v6582_v5  ;;  %v6619_v55 = vsel %vm464_vm1, %v6614_v20, 0.0  ;;  %v6590_v11 = vmul.f32 %v12396_v14, %v12344_v49 }
0x106d   :  { %v6617_v48 = vadd.f32 %v6588_v17, %v6583_v21  ;;  %v6620_v56 = vadd.f32 %v6619_v55, %v6618_v34  ;;  %v6621_v39 = vsel %vm464_vm1, %v6615_v42, 0.0  ;;  %v6591_v60 = vmul.f32 %v6586_v15, %v6581_v36 }
0x106e   :  { %v6645_v38 = vadd.f32 %v6644_v51, %v6643_v6  ;;  %v6623_v0 = vsel %vm464_vm1, %v6616_v25, 0.0  ;;  %v6592_v27 = vmul.f32 %v6587_v13, %v6582_v5  ;;  %v6593_v22 = vmul.f32 %v6588_v17, %v6583_v21 }
0x106f   :  { %v6622_v31 = vadd.f32 %v6621_v39, %v6620_v56  ;;  %v6625_v9 = vsel %vm6513_vm13, %v6617_v48, 0.0  ;;  %v6594_v28 = vsel %vm464_vm1, %v6589_v26, 0.0  ;;  %v6595_v43 = vsel %vm464_vm1, %v6590_v11, 0.0 }
0x1070   :  { %6646 = vadd.xlane.f32.xlu0 %v6645_v38  ;;  %v6596_v45 = vadd.f32 %v6595_v43, %v6594_v28  ;;  %v6597_v49 = vsel %vm464_vm1, %v6591_v60, 0.0  ;;  %v6599_v14 = vsel %vm464_vm1, %v6592_v27, 0.0  ;;  %v6601_v15 = vsel %vm6513_vm13, %v6593_v22, 0.0 }
0x1071   :  { %v6624_v8 = vadd.f32 %v6623_v0, %v6622_v31  ;;  %v6674_v13 = vmul.f32 %v12405_v7, %v12459_v3  ;;  %v6675_v17 = vmul.f32 %v12448_v58, %v12492_v18  ;;  %v6724_v61 = vsel %vm464_vm1, %v12393_v52, 0.0 }
0x1072   :  { %v6598_v46 = vadd.f32 %v6597_v49, %v6596_v45  ;;  %v6725_v16 = vsel %vm464_vm1, %v12422_v19, 0.0  ;;  %v6727_v51 = vsel %vm464_vm1, %v12451_v44, 0.0  ;;  %v6338_v33 = vmul.f32 %v12309_v57, %v12239_v63 }
0x1073   :  { %v6626_v35 = vadd.f32 %v6625_v9, %v6624_v8  ;;  %v6726_v36 = vadd.f32 %v6725_v16, %v6724_v61  ;;  %v6729_v3 = vsel %vm464_vm1, %v6674_v13, 0.0  ;;  %v6731_v40 = vsel %vm6513_vm13, %v6675_v17, 0.0 }
0x1074   :  { %v6600_v18 = vadd.f32 %v6599_v14, %v6598_v46  ;;  %v6339_v53 = vmul.f32 %v12346_v62, %v12256_v1  ;;  %v6340_v29 = vmul.f32 %v12369_v10, %v12283_v59  ;;  %v6667_v5 = vmul.f32 %v12314_v32, %v12302_v54 }
0x1075   :  { %6627 = vadd.xlane.f32.xlu1 %v6626_v35  ;;  %v6728_v20 = vadd.f32 %v6727_v51, %v6726_v36  ;;  %v6668_v63 = vmul.f32 %v12316_v41, %v6338_v33  ;;  %v6700_v21 = vadd.f32 %v12393_v52, %v12305_v50  ;;  %v6676_v42 = vmul.f32 %v12393_v52, %v12305_v50 }
0x1076   :  { %v6602_v34 = vadd.f32 %v6601_v15, %v6600_v18  ;;  %v6669_v26 = vmul.f32 %v12405_v7, %v6339_v53  ;;  %v6670_v1 = vmul.f32 %v12448_v58, %v6340_v29  ;;  %v6701_v59 = vadd.f32 %v12422_v19, %v6667_v5 }
0x1077   :  { %v6730_v6 = vadd.f32 %v6729_v3, %v6728_v20  ;;  %v6702_v54 = vadd.f32 %v12451_v44, %v6668_v63  ;;  %v6705_v32 = vsel %vm464_vm1, %v6700_v21, 0.0  ;;  %v6677_v25 = vmul.f32 %v12422_v19, %v6667_v5 }
0x1078   :  { %6603 = vadd.xlane.f32.xlu0 %v6602_v34  ;;  %v6703_v55 = vadd.f32 %v6674_v13, %v6669_v26  ;;  %v6704_v11 = vadd.f32 %v6675_v17, %v6670_v1  ;;  %v6706_v48 = vsel %vm464_vm1, %v6701_v59, 0.0  ;;  %v6678_v50 = vmul.f32 %v12451_v44, %v6668_v63  ;;  %v12696_v63 = vld [vmem:[#allocation72_spill] sm:$0xff] }
0x1079   :  { %v6732_v52 = vadd.f32 %v6731_v40, %v6730_v6  ;;  %v6707_v56 = vadd.f32 %v6706_v48, %v6705_v32  ;;  %v6708_v39 = vsel %vm464_vm1, %v6702_v54, 0.0  ;;  %v6679_v60 = vmul.f32 %v6674_v13, %v6669_v26 }
0x107a   :  { %v6710_v38 = vsel %vm464_vm1, %v6703_v55, 0.0  ;;  %v6712_v0 = vsel %vm6513_vm13, %v6704_v11, 0.0  ;;  %v6680_v27 = vmul.f32 %v6675_v17, %v6670_v1  ;;  %v6681_v22 = vsel %vm464_vm1, %v6676_v42, 0.0  ;;  %v12697_v42 = vld [vmem:[#allocation74_spill] sm:$0xff] }
0x107b   :  { %6733 = vadd.xlane.f32.xlu1 %v6732_v52  ;;  %v6709_v19 = vadd.f32 %v6708_v39, %v6707_v56  ;;  %v6682_v31 = vsel %vm464_vm1, %v6677_v25, 0.0  ;;  %v6684_v9 = vsel %vm464_vm1, %v6678_v50, 0.0  ;;  %v6686_v44 = vsel %vm464_vm1, %v6679_v60, 0.0 }
0x107c   :  { %v6683_v28 = vadd.f32 %v6682_v31, %v6681_v22  ;;  %v6688_v43 = vsel %vm6513_vm13, %v6680_v27, 0.0  ;;  %v6343_v45 = vmul.f32 %v12309_v57, %v12243_v12  ;;  %v6344_v49 = vmul.f32 %v12346_v62, %v12261_v30  ;;  %v12694_v30 = vld [vmem:[#allocation73_spill] sm:$0xff] }
0x107d   :  { %v6711_v14 = vadd.f32 %v6710_v38, %v6709_v19  ;;  %v6345_v15 = vmul.f32 %v12369_v10, %v12285_v4  ;;  %v6792_v8 = vsel %vm464_vm1, %v12439_v47, 0.0  ;;  %v6793_v13 = vsel %vm464_vm1, %v12469_v2, 0.0  ;;  %v12695_v47 = vld [vmem:[#allocation75_spill] sm:$0xff] }
0x107e   :  { %v6685_v17 = vadd.f32 %v6684_v9, %v6683_v28  ;;  %v6755_v61 = vmul.f32 %v12316_v41, %v6343_v45  ;;  %v6756_v46 = vmul.f32 %v12405_v7, %v6344_v49  ;;  %v6794_v16 = vadd.f32 %v6793_v13, %v6792_v8 }
0x107f   :  { %v6713_v12 = vadd.f32 %v6712_v0, %v6711_v14  ;;  %v6757_v57 = vmul.f32 %v12448_v58, %v6345_v15  ;;  %v6768_v62 = vsel %vm464_vm1, %v12694_v30, 0.0  ;;  %v6769_v4 = vsel %vm464_vm1, %v12465_v24, 0.0 }
0x1080   :  { %v6687_v10 = vadd.f32 %v6686_v44, %v6685_v17  ;;  %v6789_v51 = vadd.f32 %v12695_v47, %v6755_v61  ;;  %v6790_v2 = vadd.f32 %v12498_v37, %v6756_v46  ;;  %v6765_v33 = vmul.f32 %v12695_v47, %v6755_v61 }
0x1081   :  { %6714 = vadd.xlane.f32.xlu0 %v6713_v12  ;;  %v6791_v41 = vadd.f32 %v12525_v23, %v6757_v57  ;;  %v6766_v7 = vmul.f32 %v12498_v37, %v6756_v46  ;;  %v6767_v58 = vmul.f32 %v12525_v23, %v6757_v57  ;;  %v6770_v35 = vadd.f32 %v6769_v4, %v6768_v62 }
0x1082   :  { %v6689_v36 = vadd.f32 %v6688_v43, %v6687_v10  ;;  %v6795_v3 = vsel %vm464_vm1, %v6789_v51, 0.0  ;;  %v6797_v24 = vsel %vm464_vm1, %v6790_v2, 0.0  ;;  %v6771_v40 = vsel %vm464_vm1, %v6765_v33, 0.0 }
0x1083   :  { %v6796_v18 = vadd.f32 %v6795_v3, %v6794_v16  ;;  %v6799_v53 = vsel %vm6513_vm13, %v6791_v41, 0.0  ;;  %v6772_v29 = vadd.f32 %v6771_v40, %v6770_v35  ;;  %v6773_v5 = vsel %vm464_vm1, %v6766_v7, 0.0 }
0x1084   :  { %6690 = vadd.xlane.f32.xlu1 %v6689_v36  ;;  %v6775_v20 = vsel %vm6513_vm13, %v6767_v58, 0.0  ;;  %v6811_v21 = vsel %vm464_vm1, %v12696_v63, 0.0  ;;  %v6812_v34 = vsel %vm464_vm1, %v12697_v42, 0.0  ;;  %v6814_v26 = vsel %vm464_vm1, %v12695_v47, 0.0 }
0x1085   :  { %v6798_v1 = vadd.f32 %v6797_v24, %v6796_v18  ;;  %v6774_v59 = vadd.f32 %v6773_v5, %v6772_v29  ;;  %v6813_v6 = vadd.f32 %v6812_v34, %v6811_v21  ;;  %v6816_v54 = vsel %vm464_vm1, %v12498_v37, 0.0 }
0x1086   :  { %v6818_v11 = vsel %vm6513_vm13, %v12525_v23, 0.0 }
0x1087   :  { %v6800_v32 = vadd.f32 %v6799_v53, %v6798_v1  ;;  %v6776_v25 = vadd.f32 %v6775_v20, %v6774_v59  ;;  %v6815_v55 = vadd.f32 %v6814_v26, %v6813_v6 }
0x1089   :  { %6801 = vadd.xlane.f32.xlu1 %v6800_v32  ;;  %6777 = vadd.xlane.f32.xlu0 %v6776_v25  ;;  %v6817_v48 = vadd.f32 %v6816_v54, %v6815_v55 }
0x108b   :  { %v6819_v50 = vadd.f32 %v6818_v11, %v6817_v48 }
0x108d   :  { %6820 = vadd.xlane.f32.xlu0 %v6819_v50 }
0x10ef   :  { %v6560_v52 = vpop.xlane.xlu0 %6559 }
0x10f0   :  { %v6561_v56 = vrot.slane %v6560_v52, 4 }
0x10f2   :  { %v6562_v60 = vadd.f32 %v6561_v56, %v6560_v52 }
0x10f4   :  { %v6563_v22 = vrot.slane %v6562_v60, 2 }
0x10f5   :  { %v6541_v39 = vpop.xlane.xlu1 %6540 }
0x10f6   :  { %v6542_v38 = vrot.slane %v6541_v39, 4  ;;  %v6564_v43 = vadd.f32 %v6563_v22, %v6562_v60 }
0x10f8   :  { %v6543_v0 = vadd.f32 %v6542_v38, %v6541_v39  ;;  %v6565_v13 = vrot.slane %v6564_v43, 1 }
0x10f9   :  { %v6517_v27 = vpop.xlane.xlu0 %6516 }
0x10fa   :  { %v6544_v37 = vrot.slane %v6543_v0, 2  ;;  %v6518_v19 = vrot.slane %v6517_v27, 4  ;;  %v6566_v62 = vadd.f32 %v6565_v13, %v6564_v43 }
0x10fc   :  { %v6519_v31 = vadd.f32 %v6518_v19, %v6517_v27  ;;  %v6545_v44 = vadd.f32 %v6544_v37, %v6543_v0 }
0x10fd   :  { %v6647_v9 = vpop.xlane.xlu0 %6646 }
0x10fe   :  { %v6520_v28 = vrot.slane %v6519_v31, 2  ;;  %v6648_v23 = vrot.slane %v6647_v9, 4  ;;  %v6546_v49 = vrot.slane %v6545_v44, 1 }
0x1100   :  { %v6521_v45 = vadd.f32 %v6520_v28, %v6519_v31  ;;  %v6649_v14 = vadd.f32 %v6648_v23, %v6647_v9  ;;  %v6547_v12 = vadd.f32 %v6546_v49, %v6545_v44 }
0x1102   :  { %v6628_v15 = vpop.xlane.xlu1 %6627  ;;  %v6522_v8 = vrot.slane %v6521_v45, 1  ;;  %v6650_v57 = vrot.slane %v6649_v14, 2 }
0x1103   :  { %v6629_v17 = vrot.slane %v6628_v15, 4 }
0x1104   :  { %v6523_v61 = vadd.f32 %v6522_v8, %v6521_v45  ;;  %v6651_v41 = vadd.f32 %v6650_v57, %v6649_v14 }
0x1105   :  { %v6630_v46 = vadd.f32 %v6629_v17, %v6628_v15  ;;  %v6604_v16 = vpop.xlane.xlu0 %6603 }
0x1106   :  { %v6605_v30 = vrot.slane %v6604_v16, 4  ;;  %9958 = vpush %v6523_v61  ;;  %v6652_v24 = vrot.slane %v6651_v41, 1 }
0x1107   :  { %v6631_v4 = vrot.slane %v6630_v46, 2  ;;  %9960 = vpush %v6547_v12 }
0x1108   :  { %v6606_v10 = vadd.f32 %v6605_v30, %v6604_v16  ;;  %v6734_v47 = vpop.xlane.xlu1 %6733  ;;  %9962 = vpush %v6566_v62  ;;  %v6653_v21 = vadd.f32 %v6652_v24, %v6651_v41 }
0x1109   :  { %v6632_v51 = vadd.f32 %v6631_v4, %v6630_v46  ;;  %v6735_v33 = vrot.slane %v6734_v47, 4 }
0x110a   :  { %v6607_v2 = vrot.slane %v6606_v10, 2 }
0x110b   :  { %v6633_v58 = vrot.slane %v6632_v51, 1  ;;  %v6736_v35 = vadd.f32 %v6735_v33, %v6734_v47 }
0x110c   :  { %v6608_v7 = vadd.f32 %v6607_v2, %v6606_v10 }
0x110d   :  { %v6634_v5 = vadd.f32 %v6633_v58, %v6632_v51  ;;  %v6737_v20 = vrot.slane %v6736_v35, 2 }
0x110e   :  { %v6715_v36 = vpop.xlane.xlu0 %6714  ;;  %v6609_v3 = vrot.slane %v6608_v7, 1 }
0x110f   :  { %v6716_v40 = vrot.slane %v6715_v36, 4  ;;  %v6738_v54 = vadd.f32 %v6737_v20, %v6736_v35 }
0x1110   :  { %v6610_v18 = vadd.f32 %v6609_v3, %v6608_v7 }
0x1111   :  { %v6717_v53 = vadd.f32 %v6716_v40, %v6715_v36  ;;  %v6691_v29 = vpop.xlane.xlu1 %6690  ;;  %v6739_v39 = vrot.slane %v6738_v54, 1 }
0x1112   :  { %v6692_v63 = vrot.slane %v6691_v29, 4  ;;  %9964 = vpush %v6610_v18 }
0x1113   :  { %v6718_v42 = vrot.slane %v6717_v53, 2  ;;  %9966 = vpush %v6634_v5  ;;  %v6740_v9 = vadd.f32 %v6739_v39, %v6738_v54 }
0x1114   :  { %v6693_v34 = vadd.f32 %v6692_v63, %v6691_v29  ;;  %9968 = vpush %v6653_v21  ;;  %v12698_v29 = vld [vmem:[#allocation71_spill] sm:$0xff] }
0x1115   :  { %v6719_v26 = vadd.f32 %v6718_v42, %v6717_v53 }
0x1116   :  { %v6694_v1 = vrot.slane %v6693_v34, 2  ;;  %v6802_v59 = vpop.xlane.xlu1 %6801  ;;  %v6778_v6 = vpop.xlane.xlu0 %6777 }
0x1117   :  { %v6803_v32 = vrot.slane %v6802_v59, 4  ;;  %v6779_v25 = vrot.slane %v6778_v6, 4  ;;  %v6720_v55 = vrot.slane %v6719_v26, 1 }
0x1118   :  { %v6695_v11 = vadd.f32 %v6694_v1, %v6693_v34 }
0x1119   :  { %v6804_v48 = vadd.f32 %v6803_v32, %v6802_v59  ;;  %v6780_v50 = vadd.f32 %v6779_v25, %v6778_v6  ;;  %v6721_v27 = vadd.f32 %v6720_v55, %v6719_v26 }
0x111a   :  { %v6821_v52 = vpop.xlane.xlu0 %6820  ;;  %v6696_v56 = vrot.slane %v6695_v11, 1 }
0x111b   :  { %v6805_v60 = vrot.slane %v6804_v48, 2  ;;  %v6781_v38 = vrot.slane %v6780_v50, 2  ;;  %v6822_v0 = vrot.slane %v6821_v52, 4 }
0x111c   :  { %v6697_v22 = vadd.f32 %v6696_v56, %v6695_v11 }
0x111d   :  { %v6806_v37 = vadd.f32 %v6805_v60, %v6804_v48  ;;  %v6823_v19 = vadd.f32 %v6822_v0, %v6821_v52  ;;  %v6782_v31 = vadd.f32 %v6781_v38, %v6780_v50 }
0x111e   :  { %9970 = vpush %v6697_v22 }
0x111f   :  { %v6824_v44 = vrot.slane %v6823_v19, 2  ;;  %9972 = vpush %v6721_v27  ;;  %v6783_v28 = vrot.slane %v6782_v31, 1  ;;  %v6807_v23 = vrot.slane %v6806_v37, 1 }
0x1120   :  { %9974 = vpush %v6740_v9 }
0x1121   :  { %v6825_v43 = vadd.f32 %v6824_v44, %v6823_v19  ;;  %v6784_v45 = vadd.f32 %v6783_v28, %v6782_v31  ;;  %v6808_v49 = vadd.f32 %v6807_v23, %v6806_v37 }
0x1123   :  { %9976 = vpush %v6784_v45  ;;  %v6826_v14 = vrot.slane %v6825_v43, 1 }
0x1124   :  { %9978 = vpush %v6808_v49 }
0x1125   :  { %v6827_v15 = vadd.f32 %v6826_v14, %v6825_v43 }
0x1127   :  { %9980 = vpush %v6827_v15 }
0x1137   :  { %s9959_s12 = spop %9958 }
0x1138   :  { %s9961_s15 = spop %9960  ;;  %v6525_v62 = vstv %s9959_s12 }
0x1139   :  { %s12631_s8 = spop %9962  ;;  %v6549_v13 = vstv %s9961_s15  ;;  %v6569_v51 = vmul.f32 2.0, %v6525_v62 }
0x113a   :  { %v6570_v61 = vmax.f32 %v6549_v13, 1e-07  ;;  %v6568_v58 = vstv %s12631_s8 }
0x113b   :  { %vm6574_vm3 = vcmp.gt.f32.partialorder %v6568_v58, 0.0 }
0x113c   :  { %v7093_v26 = vsel %vm6574_vm3, 1.0, %v12698_v29 }
0x1143   :  { %s9965_s16 = spop %9964 }
0x1144   :  { %s9967_s17 = spop %9966  ;;  %v6612_v12 = vstv %s9965_s16 }
0x1145   :  { %v6636_v8 = vstv %s9967_s17  ;;  %s9969_s18 = spop %9968  ;;  %v6656_v10 = vmul.f32 2.0, %v6612_v12 }
0x1146   :  { %v6657_v17 = vmax.f32 %v6636_v8, 1e-07  ;;  %v6655_v41 = vstv %s9969_s18 }
0x1147   :  { %vm6661_vm1 = vcmp.gt.f32.partialorder %v6655_v41, 0.0 }
0x1148   :  { %10096 = vrcp.f32 %v6657_v17  ;;  %v7094_v5 = vsel %vm6661_vm1, 1.0, %v12698_v29 }
0x1149   :  { %10098 = vrcp.f32 %v6570_v61 }
0x114f   :  { %s9971_s22 = spop %9970 }
0x1150   :  { %s9973_s23 = spop %9972  ;;  %v6699_v33 = vstv %s9971_s22 }
0x1151   :  { %v6723_v46 = vstv %s9973_s23  ;;  %s9975_s14 = spop %9974  ;;  %v6743_v35 = vmul.f32 2.0, %v6699_v33 }
0x1152   :  { %v6744_v16 = vmax.f32 %v6723_v46, 1e-07  ;;  %v10097_v30 = vpop.eup %10096  ;;  %v6742_v36 = vstv %s9975_s14 }
0x1153   :  { %v10099_v47 = vpop.eup %10098  ;;  %v6659_v2 = vmul.f32 %v10097_v30, %v6656_v10  ;;  %vm6748_vm4 = vcmp.gt.f32.partialorder %v6742_v36, 0.0 }
0x1154   :  { %10100 = vrcp.f32 %v6744_v16  ;;  %s12633_s19 = spop %9976  ;;  %v6572_v7 = vmul.f32 %v10099_v47, %v6569_v51  ;;  %v7095_v1 = vsel %vm6748_vm4, 1.0, %v12698_v29 }
0x1155   :  { %s9979_s3 = spop %9978  ;;  %v6660_v24 = vsub.f32 1.0, %v6659_v2  ;;  %v6786_v18 = vstv %s12633_s19 }
0x1156   :  { %v6810_v57 = vstv %s9979_s3  ;;  %v6573_v53 = vsub.f32 1.0, %v6572_v7  ;;  %v6830_v42 = vmul.f32 2.0, %v6786_v18 }
0x1157   :  { %v6831_v4 = vmax.f32 %v6810_v57, 1e-07  ;;  %v6664_v21 = vmul.f32 %v7094_v5, %v6660_v24 }
0x1158   :  { %s9981_s29 = spop %9980  ;;  %v6577_v59 = vmul.f32 %v7093_v26, %v6573_v53 }
0x1159   :  { %10102 = vrcp.f32 %v6831_v4  ;;  %v6829_v63 = vstv %s9981_s29 }
0x115a   :  { %vm6835_vm5 = vcmp.gt.f32.partialorder %v6829_v63, 0.0  ;;  %v6665_v32 = vadd.f32 %v6664_v21, %v6577_v59 }
0x115b   :  { %v7096_v55 = vsel %vm6835_vm5, 1.0, %v12698_v29 }
0x115e   :  { %v10101_v3 = vpop.eup %10100 }
0x115f   :  { %v6746_v40 = vmul.f32 %v10101_v3, %v6743_v35 }
0x1161   :  { %v6747_v20 = vsub.f32 1.0, %v6746_v40 }
0x1163   :  { %v10103_v34 = vpop.eup %10102  ;;  %v6751_v6 = vmul.f32 %v7095_v1, %v6747_v20 }
0x1164   :  { %v6833_v54 = vmul.f32 %v10103_v34, %v6830_v42 }
0x1165   :  { %v6752_v11 = vadd.f32 %v6751_v6, %v6665_v32 }
0x1166   :  { %v6834_v25 = vsub.f32 1.0, %v6833_v54 }
0x1168   :  { %v6838_v48 = vmul.f32 %v7096_v55, %v6834_v25 }
0x116a   :  { %v6839_v50 = vadd.f32 %v6838_v48, %v6752_v11 }
0x116c   :  { %v6840_v52 = vmul.f32 0.25, %v6839_v50 }
0x116e   :  { %6841 = vst [vmem:[#allocation44] sm:$0x1] %v6840_v52 }
0x116f   :  { %10579 = shalt.err (!%p10576_p4)
}
0x1170   :  { %s10580_s28 = scalar_lea.hbm %s10839_s30, 16 }
0x1171   :  { %p10581_p5 = scmp.ne.s32.totalorder %s10839_s30, %s10580_s28  ;;  %p10584_p6 = scmp.lt.u32.totalorder %s10580_s28, %s10839_s30 }
0x1173   :  { %p10586_p7 = pnand %p10584_p6, %p10581_p5 }
0x1175   :  { %10589 = shalt.err (!%p10586_p7)
}
0x1176   :  { %6851 = dma.vmem_to_hbm [thread:$0]  %s6849_s26, 16, %s10839_s30, [#allocation13]  }
0x1177   :  { %10612 = dma.done.wait [#allocation13], 16  }
0x1178   :  { %10613 = vsyncadd [#allocation13], 4294967280 }
0x1179   :  { %6855 = vsyncpa [#allocation12], 1 }
0x117a   :  { %6856 = vsyncpa [#allocation15], 1 }
0x117b   :  { %6857 = vsyncpa [#allocation18], 1 }
0x117c   :  { %6858 = vsyncpa [#allocation21], 1 }
0x117d   :  { %6859 = vsyncpa [#allocation24], 1 }
0x117e   :  { %6860 = vsyncpa [#allocation27], 1 }
0x117f   :  { %6861 = vsyncpa [#allocation30], 1 }
0x1180   :  { %6862 = vsyncpa [#allocation33], 1 }
0x1181   :  { %6863 = vsyncpa [#allocation36], 1 }
0x1182   :  { %6864 = vsyncpa [#allocation39], 1 }
0x1183   :  { %6865 = vsyncpa [#allocation42], 1 }
0x1184   :  { %6866 = vsyncpa [#allocation13], 1 }

</bundles_post_ra>
